<compile_context>
chip_gen: v5e
topology: v5e:2x2
jax: 0.10.0
libtpu: 0.0.40
codegen_flags: <defaults>
</compile_context>

<pallas_src>
import math

import jax
import jax.numpy as jnp
from jax import lax
from jax.experimental import pallas as pl
from jax.experimental.pallas import tpu as pltpu

# ----------------------------- configuration (small) ------------------------
B = 2              # batch
T = 8              # decoder (target) sequence length
S_ENC = 8          # encoder sequence length (all streams)
D = 32             # d_model
H = 4              # decoder_attention_heads
HD = D // H        # head_dim
FFN = 64           # decoder_ffn_dim
L = 2              # decoder_layers
V = 64             # vocab size
PAD_IDX = 1
POS_OFFSET = 2     # config.extra_pos_embeddings (LearnedPositionalEmbedding offset)
MAX_POS = 64

LN_EPS = 1e-5
SCALING = HD ** (-0.5)
NEG = -1e9         # finite stand-in for -inf masking (NaN-safe)

MULTI_INPUTS = ("source", "persona", "event")
E = len(MULTI_INPUTS)

N = B * T          # flattened decoder tokens
NK = B * S_ENC     # flattened encoder tokens per stream

assert T & (T - 1) == 0 and S_ENC & (S_ENC - 1) == 0, "power-of-two seq lens"
LOG2_T = T.bit_length() - 1
LOG2_S = S_ENC.bit_length() - 1

# rows of the per-layer bias / LayerNorm slab (each row zero-padded to width 3*D)
R_B_QKV, R_B_SO, R_LN1_G, R_LN1_B = 0, 1, 2, 3
R_B_QC, R_B_KV0, R_B_CO0 = 4, 5, 8
R_LN2_G, R_LN2_B, R_B_WA, R_B_FC1, R_B_FC2, R_LN3_G, R_LN3_B = 11, 12, 13, 14, 15, 16, 17
N_VEC_ROWS = 18


# ----------------------------- kernel helpers -------------------------------
def _layer_norm(x, gamma, beta):
    mean = jnp.mean(x, axis=-1, keepdims=True)
    var = jnp.mean((x - mean) ** 2, axis=-1, keepdims=True)
    return (x - mean) * lax.rsqrt(var + LN_EPS) * gamma + beta


def _gelu(x):  # exact (erf) gelu, BART default activation
    return 0.5 * x * (1.0 + lax.erf(x * (1.0 / math.sqrt(2.0))))


def _dot(a, b):
    return jnp.dot(a, b, preferred_element_type=jnp.float32)


def _dot_tb(a, b):  # a @ b.T without materializing the transpose
    return lax.dot_general(a, b, (((1,), (1,)), ((), ())),
                           preferred_element_type=jnp.float32)


def _mha(q, k, v, bias):
    """q: (Nq, D) already scaled; k, v: (Nk, D); bias: additive mask (Nq, Nk)."""
    outs = []
    for h in range(H):
        lo, hi = h * HD, (h + 1) * HD
        s = _dot_tb(q[:, lo:hi], k[:, lo:hi]) + bias
        s = s - jnp.max(s, axis=-1, keepdims=True)
        p = jnp.exp(s)
        p = p * pl.reciprocal(jnp.sum(p, axis=-1, keepdims=True), approx=True)
        outs.append(_dot(p, v[:, lo:hi]))
    return jnp.concatenate(outs, axis=-1)


# ----------------------------- the kernel ------------------------------------
def decoder_kernel(ids_ref, dec_pad_ref, enc_hs_ref, enc_mask_ref,
                   tok_ref, pos_ref, emb_ln_ref,
                   w_dd_ref, w_d3d_ref, w_d2d_ref, w_ffn_ref, vec_ref,
                   out_ref):
    # ---- attention masks, built once and shared by every layer --------------
    qi = lax.broadcasted_iota(jnp.int32, (N, N), 0)
    kj = lax.broadcasted_iota(jnp.int32, (N, N), 1)
    same_batch = (qi >> LOG2_T) == (kj >> LOG2_T)
    causal = kj <= qi                                  # within a batch block: t_k <= t_q
    dec_keep = dec_pad_ref[...] < 0.5                  # (1, N): key is NOT padding
    self_bias = jnp.where(same_batch & causal & dec_keep, 0.0, NEG)

    cqi = lax.broadcasted_iota(jnp.int32, (N, NK), 0)
    ckj = lax.broadcasted_iota(jnp.int32, (N, NK), 1)
    cross_same = (cqi >> LOG2_T) == (ckj >> LOG2_S)
    cross_biases = []
    for e in range(E):
        keep = enc_mask_ref[e] > 0.5                   # invert_mask: pad where mask == 0
        cross_biases.append(jnp.where(cross_same & keep, 0.0, NEG))

    # ---- embedding front-end (one-hot matmul lookup) -------------------------
    ids = ids_ref[...]                                 # (N, 1) int32
    onehot = (ids == lax.broadcasted_iota(jnp.int32, (N, V), 1)).astype(jnp.float32)
    x = _dot(onehot, tok_ref[...])                     # (N, D); embed_scale == 1.0
    x = x + jnp.concatenate([pos_ref[...]] * B, axis=0)   # learned positions, tiled over batch
    x = _layer_norm(x, emb_ln_ref[0:1, :], emb_ln_ref[1:2, :])

    # ---- decoder layers (post-norm) ------------------------------------------
    for l in range(L):
        vec = vec_ref[l]                               # (18, 3D) biases + LN params

        def row(r, w):
            return vec[r:r + 1, :w]                    # (1, w)

        # self-attention: causal + decoder key padding
        residual = x
        qkv = _dot(x, w_d3d_ref[l, 0]) + row(R_B_QKV, 3 * D)      # fused q|k|v
        q = qkv[:, 0:D] * SCALING
        k = qkv[:, D:2 * D]
        v = qkv[:, 2 * D:3 * D]
        a = _mha(q, k, v, self_bias)
        a = _dot(a, w_dd_ref[l, 0]) + row(R_B_SO, D)
        x = _layer_norm(residual + a, row(R_LN1_G, D), row(R_LN1_B, D))

        # three cross-attention streams over the encoder hidden states
        residual = x
        q_all = _dot(x, w_d3d_ref[l, 1]) + row(R_B_QC, 3 * D)     # fused cross queries
        cross_outs = []
        for e in range(E):
            kv = _dot(enc_hs_ref[e], w_d2d_ref[l, e]) + row(R_B_KV0 + e, 2 * D)
            ke, ve = kv[:, 0:D], kv[:, D:2 * D]
            qe = q_all[:, e * D:(e + 1) * D] * SCALING
            ae = _mha(qe, ke, ve, cross_biases[e])
            ae = _dot(ae, w_dd_ref[l, 1 + e]) + row(R_B_CO0 + e, D)
            cross_outs.append(ae)
        cat = jnp.concatenate(cross_outs, axis=-1)                 # (N, 3D)
        a = _dot_tb(cat, w_d3d_ref[l, 2]) + row(R_B_WA, D)         # weight_attn, stored (D, 3D)
        x = _layer_norm(residual + a, row(R_LN2_G, D), row(R_LN2_B, D))

        # feed-forward
        residual = x
        h1 = _gelu(_dot(x, w_ffn_ref[l, 0]) + row(R_B_FC1, FFN))
        h2 = _dot_tb(h1, w_ffn_ref[l, 1]) + row(R_B_FC2, D)        # fc2 stored (D, FFN)
        x = _layer_norm(residual + h2, row(R_LN3_G, D), row(R_LN3_B, D))

    # add_final_layer_norm = False for BART -> no final LayerNorm.
    out_ref[...] = x


# ----------------------------- wrapper ---------------------------------------
def multibart_decoder(input_ids, encoder_hidden_states, encoder_padding_mask,
                      decoder_padding_mask, params):
    """input_ids: (B, T) int32
       encoder_hidden_states: dict key -> (B, S_ENC, D) f32
       encoder_padding_mask : dict key -> (B, S_ENC) f32, 1 = real token, 0 = pad
       decoder_padding_mask : (B, T) f32, 1 = pad
       returns (B, T, D) f32"""
    ids = input_ids.reshape(N, 1).astype(jnp.int32)
    dec_pad = decoder_padding_mask.reshape(1, N).astype(jnp.float32)
    enc_hs = jnp.stack([encoder_hidden_states[k].reshape(NK, D) for k in MULTI_INPUTS])
    enc_mask = jnp.stack([encoder_padding_mask[k].reshape(1, NK).astype(jnp.float32)
                          for k in MULTI_INPUTS])
    # LearnedPositionalEmbedding with use_cache=False: rows [offset : offset + T]
    pos = params["pos_table"][POS_OFFSET:POS_OFFSET + T]

    vmem = pl.BlockSpec(memory_space=pltpu.MemorySpace.VMEM)
    out = pl.pallas_call(
        decoder_kernel,
        out_shape=jax.ShapeDtypeStruct((N, D), jnp.float32),
        in_specs=[vmem] * 12,
        out_specs=vmem,
    )(ids, dec_pad, enc_hs, enc_mask,
      params["tok_emb"], pos, params["emb_ln"],
      params["w_dd"], params["w_d3d"], params["w_d2d"], params["w_ffn"],
      params["vecs"])
    return out.reshape(B, T, D)


# ----------------------------- synthetic parameters --------------------------
def init_params(key):
    """Weights are stored in x @ W orientation (== PyTorch weight.T), except
    weight_attn and fc2 which are kept in PyTorch (out, in) layout and applied
    with a contract-last-dims dot."""
    ks = iter(jax.random.split(key, 64))
    s = 0.05

    def rnd(shape):
        return jax.random.normal(next(ks), shape, jnp.float32) * s

    tok_emb = rnd((V, D)).at[PAD_IDX].set(0.0)           # padding_idx row zeroed
    pos_table = rnd((MAX_POS + POS_OFFSET, D))
    emb_ln = jnp.stack([jnp.ones((D,), jnp.float32), jnp.zeros((D,), jnp.float32)])

    w_dd = rnd((L, 1 + E, D, D))          # [self out_proj, cross out_proj x3]
    w_d3d = rnd((L, 3, D, 3 * D))         # [self qkv fused, cross q fused, weight_attn (D,3D)]
    w_d2d = rnd((L, E, D, 2 * D))         # cross k|v fused per stream
    w_ffn = rnd((L, 2, D, FFN))           # [fc1 (in,out), fc2 stored as (out,in)=(D,FFN)]

    vecs = jnp.zeros((L, N_VEC_ROWS, 3 * D), jnp.float32)
    bias_rows = {R_B_QKV: 3 * D, R_B_SO: D, R_B_QC: 3 * D,
                 R_B_KV0: 2 * D, R_B_KV0 + 1: 2 * D, R_B_KV0 + 2: 2 * D,
                 R_B_CO0: D, R_B_CO0 + 1: D, R_B_CO0 + 2: D,
                 R_B_WA: D, R_B_FC1: FFN, R_B_FC2: D}
    for l in range(L):
        for r, w in bias_rows.items():
            vecs = vecs.at[l, r, :w].set(rnd((w,)))
        for r in (R_LN1_G, R_LN2_G, R_LN3_G):
            vecs = vecs.at[l, r, :D].set(1.0)            # LN gammas = 1, betas stay 0

    return dict(tok_emb=tok_emb, pos_table=pos_table, emb_ln=emb_ln,
                w_dd=w_dd, w_d3d=w_d3d, w_d2d=w_d2d, w_ffn=w_ffn, vecs=vecs)


if __name__ == "__main__":
    key = jax.random.PRNGKey(0)
    k_ids, k_enc, k_par = jax.random.split(key, 3)

    input_ids = jax.random.randint(k_ids, (B, T), 3, V).astype(jnp.int32)
    input_ids = input_ids.at[1, T - 2:].set(PAD_IDX)       # pad the tail of batch 1
    decoder_padding_mask = (input_ids == PAD_IDX).astype(jnp.float32)

    enc_keys = jax.random.split(k_enc, E)
    encoder_hidden_states = {k: jax.random.normal(enc_keys[i], (B, S_ENC, D), jnp.float32)
                             for i, k in enumerate(MULTI_INPUTS)}
    encoder_padding_mask = {}
    for i, k in enumerate(MULTI_INPUTS):
        m = jnp.ones((B, S_ENC), jnp.float32)
        if i == 0:
            m = m.at[0, S_ENC - 1:].set(0.0)               # pad last position of stream 0, batch 0
        encoder_padding_mask[k] = m

    params = init_params(k_par)
    out = multibart_decoder(input_ids, encoder_hidden_states, encoder_padding_mask,
                            decoder_padding_mask, params)
    jax.block_until_ready(out)

    assert out.shape == (B, T, D)
    assert bool(jnp.all(jnp.isfinite(out)))
    print("KERNEL_OK")
</pallas_src>

<mosaic_0001>
module attributes {stable_mosaic.version = 11 : i64} {
  func.func @decoder_kernel(%arg0: memref<16x1xi32, #tpu.memory_space<vmem>>, %arg1: memref<1x16xf32, #tpu.memory_space<vmem>>, %arg2: memref<3x16x32xf32, #tpu.memory_space<vmem>>, %arg3: memref<3x1x16xf32, #tpu.memory_space<vmem>>, %arg4: memref<64x32xf32, #tpu.memory_space<vmem>>, %arg5: memref<8x32xf32, #tpu.memory_space<vmem>>, %arg6: memref<2x32xf32, #tpu.memory_space<vmem>>, %arg7: memref<2x4x32x32xf32, #tpu.memory_space<vmem>>, %arg8: memref<2x3x32x96xf32, #tpu.memory_space<vmem>>, %arg9: memref<2x3x32x64xf32, #tpu.memory_space<vmem>>, %arg10: memref<2x2x32x64xf32, #tpu.memory_space<vmem>>, %arg11: memref<2x18x96xf32, #tpu.memory_space<vmem>>, %arg12: memref<16x32xf32, #tpu.memory_space<vmem>>) attributes {dimension_semantics = [], scalar_prefetch = 0 : i64, scratch_operands = 0 : i64, tpu.core_type = #tpu.core_type<tc>} {
    %0 = tpu.iota {dimensions = array<i32: 0>} : vector<16x16xi32>
    %1 = tpu.iota {dimensions = array<i32: 1>} : vector<16x16xi32>
    %c3_i32 = arith.constant 3 : i32
    %2 = vector.broadcast %c3_i32 : i32 to vector<16x16xi32>
    %3 = arith.shrsi %0, %2 : vector<16x16xi32>
    %c3_i32_0 = arith.constant 3 : i32
    %4 = vector.broadcast %c3_i32_0 : i32 to vector<16x16xi32>
    %5 = arith.shrsi %1, %4 : vector<16x16xi32>
    %6 = arith.cmpi eq, %3, %5 : vector<16x16xi32>
    %7 = arith.cmpi sle, %1, %0 : vector<16x16xi32>
    %c0 = arith.constant 0 : index
    %c0_1 = arith.constant 0 : index
    %8 = vector.load %arg1[%c0, %c0_1] : memref<1x16xf32, #tpu.memory_space<vmem>>, vector<1x16xf32>
    %cst = arith.constant 5.000000e-01 : f32
    %9 = vector.broadcast %cst : f32 to vector<1x16xf32>
    %10 = arith.cmpf olt, %8, %9 : vector<1x16xf32>
    %11 = arith.andi %6, %7 : vector<16x16xi1>
    %12 = vector.broadcast %10 : vector<1x16xi1> to vector<16x16xi1>
    %13 = arith.andi %11, %12 : vector<16x16xi1>
    %cst_2 = arith.constant 0.000000e+00 : f32
    %cst_3 = arith.constant -1.000000e+09 : f32
    %14 = vector.broadcast %cst_2 : f32 to vector<16x16xf32>
    %15 = vector.broadcast %cst_3 : f32 to vector<16x16xf32>
    %16 = arith.select %13, %14, %15 : vector<16x16xi1>, vector<16x16xf32>
    %17 = tpu.iota {dimensions = array<i32: 0>} : vector<16x16xi32>
    %18 = tpu.iota {dimensions = array<i32: 1>} : vector<16x16xi32>
    %c3_i32_4 = arith.constant 3 : i32
    %19 = vector.broadcast %c3_i32_4 : i32 to vector<16x16xi32>
    %20 = arith.shrsi %17, %19 : vector<16x16xi32>
    %c3_i32_5 = arith.constant 3 : i32
    %21 = vector.broadcast %c3_i32_5 : i32 to vector<16x16xi32>
    %22 = arith.shrsi %18, %21 : vector<16x16xi32>
    %23 = arith.cmpi eq, %20, %22 : vector<16x16xi32>
    %c0_6 = arith.constant 0 : index
    %c0_7 = arith.constant 0 : index
    %c0_8 = arith.constant 0 : index
    %24 = vector.load %arg3[%c0_6, %c0_7, %c0_8] : memref<3x1x16xf32, #tpu.memory_space<vmem>>, vector<1x1x16xf32>
    %25 = vector.shape_cast %24 : vector<1x1x16xf32> to vector<1x16xf32>
    %cst_9 = arith.constant 5.000000e-01 : f32
    %26 = vector.broadcast %cst_9 : f32 to vector<1x16xf32>
    %27 = arith.cmpf ogt, %25, %26 : vector<1x16xf32>
    %28 = vector.broadcast %27 : vector<1x16xi1> to vector<16x16xi1>
    %29 = arith.andi %23, %28 : vector<16x16xi1>
    %cst_10 = arith.constant 0.000000e+00 : f32
    %cst_11 = arith.constant -1.000000e+09 : f32
    %30 = vector.broadcast %cst_10 : f32 to vector<16x16xf32>
    %31 = vector.broadcast %cst_11 : f32 to vector<16x16xf32>
    %32 = arith.select %29, %30, %31 : vector<16x16xi1>, vector<16x16xf32>
    %c1 = arith.constant 1 : index
    %c0_12 = arith.constant 0 : index
    %c0_13 = arith.constant 0 : index
    %33 = vector.load %arg3[%c1, %c0_12, %c0_13] : memref<3x1x16xf32, #tpu.memory_space<vmem>>, vector<1x1x16xf32>
    %34 = vector.shape_cast %33 : vector<1x1x16xf32> to vector<1x16xf32>
    %cst_14 = arith.constant 5.000000e-01 : f32
    %35 = vector.broadcast %cst_14 : f32 to vector<1x16xf32>
    %36 = arith.cmpf ogt, %34, %35 : vector<1x16xf32>
    %37 = vector.broadcast %36 : vector<1x16xi1> to vector<16x16xi1>
    %38 = arith.andi %23, %37 : vector<16x16xi1>
    %cst_15 = arith.constant 0.000000e+00 : f32
    %cst_16 = arith.constant -1.000000e+09 : f32
    %39 = vector.broadcast %cst_15 : f32 to vector<16x16xf32>
    %40 = vector.broadcast %cst_16 : f32 to vector<16x16xf32>
    %41 = arith.select %38, %39, %40 : vector<16x16xi1>, vector<16x16xf32>
    %c2 = arith.constant 2 : index
    %c0_17 = arith.constant 0 : index
    %c0_18 = arith.constant 0 : index
    %42 = vector.load %arg3[%c2, %c0_17, %c0_18] : memref<3x1x16xf32, #tpu.memory_space<vmem>>, vector<1x1x16xf32>
    %43 = vector.shape_cast %42 : vector<1x1x16xf32> to vector<1x16xf32>
    %cst_19 = arith.constant 5.000000e-01 : f32
    %44 = vector.broadcast %cst_19 : f32 to vector<1x16xf32>
    %45 = arith.cmpf ogt, %43, %44 : vector<1x16xf32>
    %46 = vector.broadcast %45 : vector<1x16xi1> to vector<16x16xi1>
    %47 = arith.andi %23, %46 : vector<16x16xi1>
    %cst_20 = arith.constant 0.000000e+00 : f32
    %cst_21 = arith.constant -1.000000e+09 : f32
    %48 = vector.broadcast %cst_20 : f32 to vector<16x16xf32>
    %49 = vector.broadcast %cst_21 : f32 to vector<16x16xf32>
    %50 = arith.select %47, %48, %49 : vector<16x16xi1>, vector<16x16xf32>
    %c0_22 = arith.constant 0 : index
    %c0_23 = arith.constant 0 : index
    %51 = vector.load %arg0[%c0_22, %c0_23] : memref<16x1xi32, #tpu.memory_space<vmem>>, vector<16x1xi32>
    %52 = tpu.iota {dimensions = array<i32: 1>} : vector<16x64xi32>
    %53 = vector.broadcast %51 : vector<16x1xi32> to vector<16x64xi32>
    %54 = arith.cmpi eq, %53, %52 : vector<16x64xi32>
    %55 = arith.extui %54 : vector<16x64xi1> to vector<16x64xi32>
    %56 = arith.sitofp %55 : vector<16x64xi32> to vector<16x64xf32>
    %c0_24 = arith.constant 0 : index
    %c0_25 = arith.constant 0 : index
    %57 = vector.load %arg4[%c0_24, %c0_25] : memref<64x32xf32, #tpu.memory_space<vmem>>, vector<64x32xf32>
    %cst_26 = arith.constant dense<0.000000e+00> : vector<16x32xf32>
    %58 = tpu.matmul %56, %57, %cst_26 {dimension_numbers = #tpu.dot_dimension_numbers<[1], [0], [0], [1], [0, 0, 1, 1], [], []>} : vector<16x64xf32>, vector<64x32xf32>, vector<16x32xf32> -> vector<16x32xf32>
    %c0_27 = arith.constant 0 : index
    %c0_28 = arith.constant 0 : index
    %59 = vector.load %arg5[%c0_27, %c0_28] : memref<8x32xf32, #tpu.memory_space<vmem>>, vector<8x32xf32>
    %60 = tpu.concatenate %59, %59 in 0 : vector<8x32xf32>, vector<8x32xf32> -> vector<16x32xf32>
    %61 = arith.addf %58, %60 : vector<16x32xf32>
    %c0_29 = arith.constant 0 : index
    %c0_30 = arith.constant 0 : index
    %62 = vector.load %arg6[%c0_29, %c0_30] : memref<2x32xf32, #tpu.memory_space<vmem>>, vector<1x32xf32>
    %c1_31 = arith.constant 1 : index
    %c0_32 = arith.constant 0 : index
    %63 = vector.load %arg6[%c1_31, %c0_32] : memref<2x32xf32, #tpu.memory_space<vmem>>, vector<1x32xf32>
    %cst_33 = arith.constant dense<0.000000e+00> : vector<16xf32>
    %64 = vector.multi_reduction <add>, %61, %cst_33 [1] : vector<16x32xf32> to vector<16xf32>
    %65 = vector.shape_cast %64 : vector<16xf32> to vector<16x1xf32>
    %cst_34 = arith.constant 3.200000e+01 : f32
    %66 = vector.broadcast %cst_34 : f32 to vector<16x1xf32>
    %67 = arith.divf %65, %66 : vector<16x1xf32>
    %68 = vector.broadcast %67 : vector<16x1xf32> to vector<16x32xf32>
    %69 = arith.subf %61, %68 : vector<16x32xf32>
    %70 = arith.mulf %69, %69 : vector<16x32xf32>
    %cst_35 = arith.constant dense<0.000000e+00> : vector<16xf32>
    %71 = vector.multi_reduction <add>, %70, %cst_35 [1] : vector<16x32xf32> to vector<16xf32>
    %72 = vector.shape_cast %71 : vector<16xf32> to vector<16x1xf32>
    %cst_36 = arith.constant 3.200000e+01 : f32
    %73 = vector.broadcast %cst_36 : f32 to vector<16x1xf32>
    %74 = arith.divf %72, %73 : vector<16x1xf32>
    %75 = vector.broadcast %67 : vector<16x1xf32> to vector<16x32xf32>
    %76 = arith.subf %61, %75 : vector<16x32xf32>
    %cst_37 = arith.constant 9.99999974E-6 : f32
    %77 = vector.broadcast %cst_37 : f32 to vector<16x1xf32>
    %78 = arith.addf %74, %77 : vector<16x1xf32>
    %79 = math.rsqrt %78 : vector<16x1xf32>
    %80 = vector.broadcast %79 : vector<16x1xf32> to vector<16x32xf32>
    %81 = arith.mulf %76, %80 : vector<16x32xf32>
    %82 = vector.broadcast %62 : vector<1x32xf32> to vector<16x32xf32>
    %83 = arith.mulf %81, %82 : vector<16x32xf32>
    %84 = vector.broadcast %63 : vector<1x32xf32> to vector<16x32xf32>
    %85 = arith.addf %83, %84 : vector<16x32xf32>
    %c0_38 = arith.constant 0 : index
    %c0_39 = arith.constant 0 : index
    %c0_40 = arith.constant 0 : index
    %86 = vector.load %arg11[%c0_38, %c0_39, %c0_40] : memref<2x18x96xf32, #tpu.memory_space<vmem>>, vector<1x18x96xf32>
    %87 = vector.shape_cast %86 : vector<1x18x96xf32> to vector<18x96xf32>
    %c0_41 = arith.constant 0 : index
    %c0_42 = arith.constant 0 : index
    %c0_43 = arith.constant 0 : index
    %c0_44 = arith.constant 0 : index
    %88 = vector.load %arg8[%c0_41, %c0_42, %c0_43, %c0_44] : memref<2x3x32x96xf32, #tpu.memory_space<vmem>>, vector<1x1x32x96xf32>
    %89 = vector.shape_cast %88 : vector<1x1x32x96xf32> to vector<32x96xf32>
    %cst_45 = arith.constant dense<0.000000e+00> : vector<16x96xf32>
    %90 = tpu.matmul %85, %89, %cst_45 {dimension_numbers = #tpu.dot_dimension_numbers<[1], [0], [0], [1], [0, 0, 1, 1], [], []>} : vector<16x32xf32>, vector<32x96xf32>, vector<16x96xf32> -> vector<16x96xf32>
    %91 = vector.extract_strided_slice %87 {offsets = [0, 0], sizes = [1, 96], strides = [1, 1]} : vector<18x96xf32> to vector<1x96xf32>
    %92 = vector.broadcast %91 : vector<1x96xf32> to vector<16x96xf32>
    %93 = arith.addf %90, %92 : vector<16x96xf32>
    %94 = vector.extract_strided_slice %93 {offsets = [0, 0], sizes = [16, 32], strides = [1, 1]} : vector<16x96xf32> to vector<16x32xf32>
    %cst_46 = arith.constant 0.353553385 : f32
    %95 = vector.broadcast %cst_46 : f32 to vector<16x32xf32>
    %96 = arith.mulf %94, %95 : vector<16x32xf32>
    %97 = vector.extract_strided_slice %93 {offsets = [0, 32], sizes = [16, 32], strides = [1, 1]} : vector<16x96xf32> to vector<16x32xf32>
    %98 = vector.extract_strided_slice %93 {offsets = [0, 64], sizes = [16, 32], strides = [1, 1]} : vector<16x96xf32> to vector<16x32xf32>
    %99 = vector.extract_strided_slice %96 {offsets = [0, 0], sizes = [16, 8], strides = [1, 1]} : vector<16x32xf32> to vector<16x8xf32>
    %100 = vector.extract_strided_slice %97 {offsets = [0, 0], sizes = [16, 8], strides = [1, 1]} : vector<16x32xf32> to vector<16x8xf32>
    %cst_47 = arith.constant dense<0.000000e+00> : vector<16x16xf32>
    %101 = tpu.matmul %99, %100, %cst_47 {dimension_numbers = #tpu.dot_dimension_numbers<[1], [1], [0], [0], [0, 0, 1, 0], [], []>} : vector<16x8xf32>, vector<16x8xf32>, vector<16x16xf32> -> vector<16x16xf32>
    %102 = arith.addf %101, %16 : vector<16x16xf32>
    %cst_48 = arith.constant dense<0xFF800000> : vector<16xf32>
    %103 = vector.multi_reduction <maximumf>, %102, %cst_48 [1] : vector<16x16xf32> to vector<16xf32>
    %104 = vector.shape_cast %103 : vector<16xf32> to vector<16x1xf32>
    %105 = vector.broadcast %104 : vector<16x1xf32> to vector<16x16xf32>
    %106 = arith.subf %102, %105 : vector<16x16xf32>
    %107 = math.exp %106 : vector<16x16xf32>
    %cst_49 = arith.constant dense<0.000000e+00> : vector<16xf32>
    %108 = vector.multi_reduction <add>, %107, %cst_49 [1] : vector<16x16xf32> to vector<16xf32>
    %109 = vector.shape_cast %108 : vector<16xf32> to vector<16x1xf32>
    %110 = tpu.reciprocal %109 {approx = true} : vector<16x1xf32> -> vector<16x1xf32>
    %111 = vector.broadcast %110 : vector<16x1xf32> to vector<16x16xf32>
    %112 = arith.mulf %107, %111 : vector<16x16xf32>
    %113 = vector.extract_strided_slice %98 {offsets = [0, 0], sizes = [16, 8], strides = [1, 1]} : vector<16x32xf32> to vector<16x8xf32>
    %cst_50 = arith.constant dense<0.000000e+00> : vector<16x8xf32>
    %114 = tpu.matmul %112, %113, %cst_50 {dimension_numbers = #tpu.dot_dimension_numbers<[1], [0], [0], [1], [0, 0, 1, 1], [], []>} : vector<16x16xf32>, vector<16x8xf32>, vector<16x8xf32> -> vector<16x8xf32>
    %115 = vector.extract_strided_slice %96 {offsets = [0, 8], sizes = [16, 8], strides = [1, 1]} : vector<16x32xf32> to vector<16x8xf32>
    %116 = vector.extract_strided_slice %97 {offsets = [0, 8], sizes = [16, 8], strides = [1, 1]} : vector<16x32xf32> to vector<16x8xf32>
    %cst_51 = arith.constant dense<0.000000e+00> : vector<16x16xf32>
    %117 = tpu.matmul %115, %116, %cst_51 {dimension_numbers = #tpu.dot_dimension_numbers<[1], [1], [0], [0], [0, 0, 1, 0], [], []>} : vector<16x8xf32>, vector<16x8xf32>, vector<16x16xf32> -> vector<16x16xf32>
    %118 = arith.addf %117, %16 : vector<16x16xf32>
    %cst_52 = arith.constant dense<0xFF800000> : vector<16xf32>
    %119 = vector.multi_reduction <maximumf>, %118, %cst_52 [1] : vector<16x16xf32> to vector<16xf32>
    %120 = vector.shape_cast %119 : vector<16xf32> to vector<16x1xf32>
    %121 = vector.broadcast %120 : vector<16x1xf32> to vector<16x16xf32>
    %122 = arith.subf %118, %121 : vector<16x16xf32>
    %123 = math.exp %122 : vector<16x16xf32>
    %cst_53 = arith.constant dense<0.000000e+00> : vector<16xf32>
    %124 = vector.multi_reduction <add>, %123, %cst_53 [1] : vector<16x16xf32> to vector<16xf32>
    %125 = vector.shape_cast %124 : vector<16xf32> to vector<16x1xf32>
    %126 = tpu.reciprocal %125 {approx = true} : vector<16x1xf32> -> vector<16x1xf32>
    %127 = vector.broadcast %126 : vector<16x1xf32> to vector<16x16xf32>
    %128 = arith.mulf %123, %127 : vector<16x16xf32>
    %129 = vector.extract_strided_slice %98 {offsets = [0, 8], sizes = [16, 8], strides = [1, 1]} : vector<16x32xf32> to vector<16x8xf32>
    %cst_54 = arith.constant dense<0.000000e+00> : vector<16x8xf32>
    %130 = tpu.matmul %128, %129, %cst_54 {dimension_numbers = #tpu.dot_dimension_numbers<[1], [0], [0], [1], [0, 0, 1, 1], [], []>} : vector<16x16xf32>, vector<16x8xf32>, vector<16x8xf32> -> vector<16x8xf32>
    %131 = vector.extract_strided_slice %96 {offsets = [0, 16], sizes = [16, 8], strides = [1, 1]} : vector<16x32xf32> to vector<16x8xf32>
    %132 = vector.extract_strided_slice %97 {offsets = [0, 16], sizes = [16, 8], strides = [1, 1]} : vector<16x32xf32> to vector<16x8xf32>
    %cst_55 = arith.constant dense<0.000000e+00> : vector<16x16xf32>
    %133 = tpu.matmul %131, %132, %cst_55 {dimension_numbers = #tpu.dot_dimension_numbers<[1], [1], [0], [0], [0, 0, 1, 0], [], []>} : vector<16x8xf32>, vector<16x8xf32>, vector<16x16xf32> -> vector<16x16xf32>
    %134 = arith.addf %133, %16 : vector<16x16xf32>
    %cst_56 = arith.constant dense<0xFF800000> : vector<16xf32>
    %135 = vector.multi_reduction <maximumf>, %134, %cst_56 [1] : vector<16x16xf32> to vector<16xf32>
    %136 = vector.shape_cast %135 : vector<16xf32> to vector<16x1xf32>
    %137 = vector.broadcast %136 : vector<16x1xf32> to vector<16x16xf32>
    %138 = arith.subf %134, %137 : vector<16x16xf32>
    %139 = math.exp %138 : vector<16x16xf32>
    %cst_57 = arith.constant dense<0.000000e+00> : vector<16xf32>
    %140 = vector.multi_reduction <add>, %139, %cst_57 [1] : vector<16x16xf32> to vector<16xf32>
    %141 = vector.shape_cast %140 : vector<16xf32> to vector<16x1xf32>
    %142 = tpu.reciprocal %141 {approx = true} : vector<16x1xf32> -> vector<16x1xf32>
    %143 = vector.broadcast %142 : vector<16x1xf32> to vector<16x16xf32>
    %144 = arith.mulf %139, %143 : vector<16x16xf32>
    %145 = vector.extract_strided_slice %98 {offsets = [0, 16], sizes = [16, 8], strides = [1, 1]} : vector<16x32xf32> to vector<16x8xf32>
    %cst_58 = arith.constant dense<0.000000e+00> : vector<16x8xf32>
    %146 = tpu.matmul %144, %145, %cst_58 {dimension_numbers = #tpu.dot_dimension_numbers<[1], [0], [0], [1], [0, 0, 1, 1], [], []>} : vector<16x16xf32>, vector<16x8xf32>, vector<16x8xf32> -> vector<16x8xf32>
    %147 = vector.extract_strided_slice %96 {offsets = [0, 24], sizes = [16, 8], strides = [1, 1]} : vector<16x32xf32> to vector<16x8xf32>
    %148 = vector.extract_strided_slice %97 {offsets = [0, 24], sizes = [16, 8], strides = [1, 1]} : vector<16x32xf32> to vector<16x8xf32>
    %cst_59 = arith.constant dense<0.000000e+00> : vector<16x16xf32>
    %149 = tpu.matmul %147, %148, %cst_59 {dimension_numbers = #tpu.dot_dimension_numbers<[1], [1], [0], [0], [0, 0, 1, 0], [], []>} : vector<16x8xf32>, vector<16x8xf32>, vector<16x16xf32> -> vector<16x16xf32>
    %150 = arith.addf %149, %16 : vector<16x16xf32>
    %cst_60 = arith.constant dense<0xFF800000> : vector<16xf32>
    %151 = vector.multi_reduction <maximumf>, %150, %cst_60 [1] : vector<16x16xf32> to vector<16xf32>
    %152 = vector.shape_cast %151 : vector<16xf32> to vector<16x1xf32>
    %153 = vector.broadcast %152 : vector<16x1xf32> to vector<16x16xf32>
    %154 = arith.subf %150, %153 : vector<16x16xf32>
    %155 = math.exp %154 : vector<16x16xf32>
    %cst_61 = arith.constant dense<0.000000e+00> : vector<16xf32>
    %156 = vector.multi_reduction <add>, %155, %cst_61 [1] : vector<16x16xf32> to vector<16xf32>
    %157 = vector.shape_cast %156 : vector<16xf32> to vector<16x1xf32>
    %158 = tpu.reciprocal %157 {approx = true} : vector<16x1xf32> -> vector<16x1xf32>
    %159 = vector.broadcast %158 : vector<16x1xf32> to vector<16x16xf32>
    %160 = arith.mulf %155, %159 : vector<16x16xf32>
    %161 = vector.extract_strided_slice %98 {offsets = [0, 24], sizes = [16, 8], strides = [1, 1]} : vector<16x32xf32> to vector<16x8xf32>
    %cst_62 = arith.constant dense<0.000000e+00> : vector<16x8xf32>
    %162 = tpu.matmul %160, %161, %cst_62 {dimension_numbers = #tpu.dot_dimension_numbers<[1], [0], [0], [1], [0, 0, 1, 1], [], []>} : vector<16x16xf32>, vector<16x8xf32>, vector<16x8xf32> -> vector<16x8xf32>
    %163 = tpu.concatenate %114, %130, %146, %162 in 1 : vector<16x8xf32>, vector<16x8xf32>, vector<16x8xf32>, vector<16x8xf32> -> vector<16x32xf32>
    %c0_63 = arith.constant 0 : index
    %c0_64 = arith.constant 0 : index
    %c0_65 = arith.constant 0 : index
    %c0_66 = arith.constant 0 : index
    %164 = vector.load %arg7[%c0_63, %c0_64, %c0_65, %c0_66] : memref<2x4x32x32xf32, #tpu.memory_space<vmem>>, vector<1x1x32x32xf32>
    %165 = vector.shape_cast %164 : vector<1x1x32x32xf32> to vector<32x32xf32>
    %cst_67 = arith.constant dense<0.000000e+00> : vector<16x32xf32>
    %166 = tpu.matmul %163, %165, %cst_67 {dimension_numbers = #tpu.dot_dimension_numbers<[1], [0], [0], [1], [0, 0, 1, 1], [], []>} : vector<16x32xf32>, vector<32x32xf32>, vector<16x32xf32> -> vector<16x32xf32>
    %167 = vector.extract_strided_slice %87 {offsets = [1, 0], sizes = [1, 32], strides = [1, 1]} : vector<18x96xf32> to vector<1x32xf32>
    %168 = vector.broadcast %167 : vector<1x32xf32> to vector<16x32xf32>
    %169 = arith.addf %166, %168 : vector<16x32xf32>
    %170 = arith.addf %85, %169 : vector<16x32xf32>
    %171 = vector.extract_strided_slice %87 {offsets = [2, 0], sizes = [1, 32], strides = [1, 1]} : vector<18x96xf32> to vector<1x32xf32>
    %172 = vector.extract_strided_slice %87 {offsets = [3, 0], sizes = [1, 32], strides = [1, 1]} : vector<18x96xf32> to vector<1x32xf32>
    %cst_68 = arith.constant dense<0.000000e+00> : vector<16xf32>
    %173 = vector.multi_reduction <add>, %170, %cst_68 [1] : vector<16x32xf32> to vector<16xf32>
    %174 = vector.shape_cast %173 : vector<16xf32> to vector<16x1xf32>
    %cst_69 = arith.constant 3.200000e+01 : f32
    %175 = vector.broadcast %cst_69 : f32 to vector<16x1xf32>
    %176 = arith.divf %174, %175 : vector<16x1xf32>
    %177 = vector.broadcast %176 : vector<16x1xf32> to vector<16x32xf32>
    %178 = arith.subf %170, %177 : vector<16x32xf32>
    %179 = arith.mulf %178, %178 : vector<16x32xf32>
    %cst_70 = arith.constant dense<0.000000e+00> : vector<16xf32>
    %180 = vector.multi_reduction <add>, %179, %cst_70 [1] : vector<16x32xf32> to vector<16xf32>
    %181 = vector.shape_cast %180 : vector<16xf32> to vector<16x1xf32>
    %cst_71 = arith.constant 3.200000e+01 : f32
    %182 = vector.broadcast %cst_71 : f32 to vector<16x1xf32>
    %183 = arith.divf %181, %182 : vector<16x1xf32>
    %184 = vector.broadcast %176 : vector<16x1xf32> to vector<16x32xf32>
    %185 = arith.subf %170, %184 : vector<16x32xf32>
    %cst_72 = arith.constant 9.99999974E-6 : f32
    %186 = vector.broadcast %cst_72 : f32 to vector<16x1xf32>
    %187 = arith.addf %183, %186 : vector<16x1xf32>
    %188 = math.rsqrt %187 : vector<16x1xf32>
    %189 = vector.broadcast %188 : vector<16x1xf32> to vector<16x32xf32>
    %190 = arith.mulf %185, %189 : vector<16x32xf32>
    %191 = vector.broadcast %171 : vector<1x32xf32> to vector<16x32xf32>
    %192 = arith.mulf %190, %191 : vector<16x32xf32>
    %193 = vector.broadcast %172 : vector<1x32xf32> to vector<16x32xf32>
    %194 = arith.addf %192, %193 : vector<16x32xf32>
    %c0_73 = arith.constant 0 : index
    %c1_74 = arith.constant 1 : index
    %c0_75 = arith.constant 0 : index
    %c0_76 = arith.constant 0 : index
    %195 = vector.load %arg8[%c0_73, %c1_74, %c0_75, %c0_76] : memref<2x3x32x96xf32, #tpu.memory_space<vmem>>, vector<1x1x32x96xf32>
    %196 = vector.shape_cast %195 : vector<1x1x32x96xf32> to vector<32x96xf32>
    %cst_77 = arith.constant dense<0.000000e+00> : vector<16x96xf32>
    %197 = tpu.matmul %194, %196, %cst_77 {dimension_numbers = #tpu.dot_dimension_numbers<[1], [0], [0], [1], [0, 0, 1, 1], [], []>} : vector<16x32xf32>, vector<32x96xf32>, vector<16x96xf32> -> vector<16x96xf32>
    %198 = vector.extract_strided_slice %87 {offsets = [4, 0], sizes = [1, 96], strides = [1, 1]} : vector<18x96xf32> to vector<1x96xf32>
    %199 = vector.broadcast %198 : vector<1x96xf32> to vector<16x96xf32>
    %200 = arith.addf %197, %199 : vector<16x96xf32>
    %c0_78 = arith.constant 0 : index
    %c0_79 = arith.constant 0 : index
    %c0_80 = arith.constant 0 : index
    %201 = vector.load %arg2[%c0_78, %c0_79, %c0_80] : memref<3x16x32xf32, #tpu.memory_space<vmem>>, vector<1x16x32xf32>
    %202 = vector.shape_cast %201 : vector<1x16x32xf32> to vector<16x32xf32>
    %c0_81 = arith.constant 0 : index
    %c0_82 = arith.constant 0 : index
    %c0_83 = arith.constant 0 : index
    %c0_84 = arith.constant 0 : index
    %203 = vector.load %arg9[%c0_81, %c0_82, %c0_83, %c0_84] : memref<2x3x32x64xf32, #tpu.memory_space<vmem>>, vector<1x1x32x64xf32>
    %204 = vector.shape_cast %203 : vector<1x1x32x64xf32> to vector<32x64xf32>
    %cst_85 = arith.constant dense<0.000000e+00> : vector<16x64xf32>
    %205 = tpu.matmul %202, %204, %cst_85 {dimension_numbers = #tpu.dot_dimension_numbers<[1], [0], [0], [1], [0, 0, 1, 1], [], []>} : vector<16x32xf32>, vector<32x64xf32>, vector<16x64xf32> -> vector<16x64xf32>
    %206 = vector.extract_strided_slice %87 {offsets = [5, 0], sizes = [1, 64], strides = [1, 1]} : vector<18x96xf32> to vector<1x64xf32>
    %207 = vector.broadcast %206 : vector<1x64xf32> to vector<16x64xf32>
    %208 = arith.addf %205, %207 : vector<16x64xf32>
    %209 = vector.extract_strided_slice %208 {offsets = [0, 0], sizes = [16, 32], strides = [1, 1]} : vector<16x64xf32> to vector<16x32xf32>
    %210 = vector.extract_strided_slice %208 {offsets = [0, 32], sizes = [16, 32], strides = [1, 1]} : vector<16x64xf32> to vector<16x32xf32>
    %211 = vector.extract_strided_slice %200 {offsets = [0, 0], sizes = [16, 32], strides = [1, 1]} : vector<16x96xf32> to vector<16x32xf32>
    %cst_86 = arith.constant 0.353553385 : f32
    %212 = vector.broadcast %cst_86 : f32 to vector<16x32xf32>
    %213 = arith.mulf %211, %212 : vector<16x32xf32>
    %214 = vector.extract_strided_slice %213 {offsets = [0, 0], sizes = [16, 8], strides = [1, 1]} : vector<16x32xf32> to vector<16x8xf32>
    %215 = vector.extract_strided_slice %209 {offsets = [0, 0], sizes = [16, 8], strides = [1, 1]} : vector<16x32xf32> to vector<16x8xf32>
    %cst_87 = arith.constant dense<0.000000e+00> : vector<16x16xf32>
    %216 = tpu.matmul %214, %215, %cst_87 {dimension_numbers = #tpu.dot_dimension_numbers<[1], [1], [0], [0], [0, 0, 1, 0], [], []>} : vector<16x8xf32>, vector<16x8xf32>, vector<16x16xf32> -> vector<16x16xf32>
    %217 = arith.addf %216, %32 : vector<16x16xf32>
    %cst_88 = arith.constant dense<0xFF800000> : vector<16xf32>
    %218 = vector.multi_reduction <maximumf>, %217, %cst_88 [1] : vector<16x16xf32> to vector<16xf32>
    %219 = vector.shape_cast %218 : vector<16xf32> to vector<16x1xf32>
    %220 = vector.broadcast %219 : vector<16x1xf32> to vector<16x16xf32>
    %221 = arith.subf %217, %220 : vector<16x16xf32>
    %222 = math.exp %221 : vector<16x16xf32>
    %cst_89 = arith.constant dense<0.000000e+00> : vector<16xf32>
    %223 = vector.multi_reduction <add>, %222, %cst_89 [1] : vector<16x16xf32> to vector<16xf32>
    %224 = vector.shape_cast %223 : vector<16xf32> to vector<16x1xf32>
    %225 = tpu.reciprocal %224 {approx = true} : vector<16x1xf32> -> vector<16x1xf32>
    %226 = vector.broadcast %225 : vector<16x1xf32> to vector<16x16xf32>
    %227 = arith.mulf %222, %226 : vector<16x16xf32>
    %228 = vector.extract_strided_slice %210 {offsets = [0, 0], sizes = [16, 8], strides = [1, 1]} : vector<16x32xf32> to vector<16x8xf32>
    %cst_90 = arith.constant dense<0.000000e+00> : vector<16x8xf32>
    %229 = tpu.matmul %227, %228, %cst_90 {dimension_numbers = #tpu.dot_dimension_numbers<[1], [0], [0], [1], [0, 0, 1, 1], [], []>} : vector<16x16xf32>, vector<16x8xf32>, vector<16x8xf32> -> vector<16x8xf32>
    %230 = vector.extract_strided_slice %213 {offsets = [0, 8], sizes = [16, 8], strides = [1, 1]} : vector<16x32xf32> to vector<16x8xf32>
    %231 = vector.extract_strided_slice %209 {offsets = [0, 8], sizes = [16, 8], strides = [1, 1]} : vector<16x32xf32> to vector<16x8xf32>
    %cst_91 = arith.constant dense<0.000000e+00> : vector<16x16xf32>
    %232 = tpu.matmul %230, %231, %cst_91 {dimension_numbers = #tpu.dot_dimension_numbers<[1], [1], [0], [0], [0, 0, 1, 0], [], []>} : vector<16x8xf32>, vector<16x8xf32>, vector<16x16xf32> -> vector<16x16xf32>
    %233 = arith.addf %232, %32 : vector<16x16xf32>
    %cst_92 = arith.constant dense<0xFF800000> : vector<16xf32>
    %234 = vector.multi_reduction <maximumf>, %233, %cst_92 [1] : vector<16x16xf32> to vector<16xf32>
    %235 = vector.shape_cast %234 : vector<16xf32> to vector<16x1xf32>
    %236 = vector.broadcast %235 : vector<16x1xf32> to vector<16x16xf32>
    %237 = arith.subf %233, %236 : vector<16x16xf32>
    %238 = math.exp %237 : vector<16x16xf32>
    %cst_93 = arith.constant dense<0.000000e+00> : vector<16xf32>
    %239 = vector.multi_reduction <add>, %238, %cst_93 [1] : vector<16x16xf32> to vector<16xf32>
    %240 = vector.shape_cast %239 : vector<16xf32> to vector<16x1xf32>
    %241 = tpu.reciprocal %240 {approx = true} : vector<16x1xf32> -> vector<16x1xf32>
    %242 = vector.broadcast %241 : vector<16x1xf32> to vector<16x16xf32>
    %243 = arith.mulf %238, %242 : vector<16x16xf32>
    %244 = vector.extract_strided_slice %210 {offsets = [0, 8], sizes = [16, 8], strides = [1, 1]} : vector<16x32xf32> to vector<16x8xf32>
    %cst_94 = arith.constant dense<0.000000e+00> : vector<16x8xf32>
    %245 = tpu.matmul %243, %244, %cst_94 {dimension_numbers = #tpu.dot_dimension_numbers<[1], [0], [0], [1], [0, 0, 1, 1], [], []>} : vector<16x16xf32>, vector<16x8xf32>, vector<16x8xf32> -> vector<16x8xf32>
    %246 = vector.extract_strided_slice %213 {offsets = [0, 16], sizes = [16, 8], strides = [1, 1]} : vector<16x32xf32> to vector<16x8xf32>
    %247 = vector.extract_strided_slice %209 {offsets = [0, 16], sizes = [16, 8], strides = [1, 1]} : vector<16x32xf32> to vector<16x8xf32>
    %cst_95 = arith.constant dense<0.000000e+00> : vector<16x16xf32>
    %248 = tpu.matmul %246, %247, %cst_95 {dimension_numbers = #tpu.dot_dimension_numbers<[1], [1], [0], [0], [0, 0, 1, 0], [], []>} : vector<16x8xf32>, vector<16x8xf32>, vector<16x16xf32> -> vector<16x16xf32>
    %249 = arith.addf %248, %32 : vector<16x16xf32>
    %cst_96 = arith.constant dense<0xFF800000> : vector<16xf32>
    %250 = vector.multi_reduction <maximumf>, %249, %cst_96 [1] : vector<16x16xf32> to vector<16xf32>
    %251 = vector.shape_cast %250 : vector<16xf32> to vector<16x1xf32>
    %252 = vector.broadcast %251 : vector<16x1xf32> to vector<16x16xf32>
    %253 = arith.subf %249, %252 : vector<16x16xf32>
    %254 = math.exp %253 : vector<16x16xf32>
    %cst_97 = arith.constant dense<0.000000e+00> : vector<16xf32>
    %255 = vector.multi_reduction <add>, %254, %cst_97 [1] : vector<16x16xf32> to vector<16xf32>
    %256 = vector.shape_cast %255 : vector<16xf32> to vector<16x1xf32>
    %257 = tpu.reciprocal %256 {approx = true} : vector<16x1xf32> -> vector<16x1xf32>
    %258 = vector.broadcast %257 : vector<16x1xf32> to vector<16x16xf32>
    %259 = arith.mulf %254, %258 : vector<16x16xf32>
    %260 = vector.extract_strided_slice %210 {offsets = [0, 16], sizes = [16, 8], strides = [1, 1]} : vector<16x32xf32> to vector<16x8xf32>
    %cst_98 = arith.constant dense<0.000000e+00> : vector<16x8xf32>
    %261 = tpu.matmul %259, %260, %cst_98 {dimension_numbers = #tpu.dot_dimension_numbers<[1], [0], [0], [1], [0, 0, 1, 1], [], []>} : vector<16x16xf32>, vector<16x8xf32>, vector<16x8xf32> -> vector<16x8xf32>
    %262 = vector.extract_strided_slice %213 {offsets = [0, 24], sizes = [16, 8], strides = [1, 1]} : vector<16x32xf32> to vector<16x8xf32>
    %263 = vector.extract_strided_slice %209 {offsets = [0, 24], sizes = [16, 8], strides = [1, 1]} : vector<16x32xf32> to vector<16x8xf32>
    %cst_99 = arith.constant dense<0.000000e+00> : vector<16x16xf32>
    %264 = tpu.matmul %262, %263, %cst_99 {dimension_numbers = #tpu.dot_dimension_numbers<[1], [1], [0], [0], [0, 0, 1, 0], [], []>} : vector<16x8xf32>, vector<16x8xf32>, vector<16x16xf32> -> vector<16x16xf32>
    %265 = arith.addf %264, %32 : vector<16x16xf32>
    %cst_100 = arith.constant dense<0xFF800000> : vector<16xf32>
    %266 = vector.multi_reduction <maximumf>, %265, %cst_100 [1] : vector<16x16xf32> to vector<16xf32>
    %267 = vector.shape_cast %266 : vector<16xf32> to vector<16x1xf32>
    %268 = vector.broadcast %267 : vector<16x1xf32> to vector<16x16xf32>
    %269 = arith.subf %265, %268 : vector<16x16xf32>
    %270 = math.exp %269 : vector<16x16xf32>
    %cst_101 = arith.constant dense<0.000000e+00> : vector<16xf32>
    %271 = vector.multi_reduction <add>, %270, %cst_101 [1] : vector<16x16xf32> to vector<16xf32>
    %272 = vector.shape_cast %271 : vector<16xf32> to vector<16x1xf32>
    %273 = tpu.reciprocal %272 {approx = true} : vector<16x1xf32> -> vector<16x1xf32>
    %274 = vector.broadcast %273 : vector<16x1xf32> to vector<16x16xf32>
    %275 = arith.mulf %270, %274 : vector<16x16xf32>
    %276 = vector.extract_strided_slice %210 {offsets = [0, 24], sizes = [16, 8], strides = [1, 1]} : vector<16x32xf32> to vector<16x8xf32>
    %cst_102 = arith.constant dense<0.000000e+00> : vector<16x8xf32>
    %277 = tpu.matmul %275, %276, %cst_102 {dimension_numbers = #tpu.dot_dimension_numbers<[1], [0], [0], [1], [0, 0, 1, 1], [], []>} : vector<16x16xf32>, vector<16x8xf32>, vector<16x8xf32> -> vector<16x8xf32>
    %278 = tpu.concatenate %229, %245, %261, %277 in 1 : vector<16x8xf32>, vector<16x8xf32>, vector<16x8xf32>, vector<16x8xf32> -> vector<16x32xf32>
    %c0_103 = arith.constant 0 : index
    %c1_104 = arith.constant 1 : index
    %c0_105 = arith.constant 0 : index
    %c0_106 = arith.constant 0 : index
    %279 = vector.load %arg7[%c0_103, %c1_104, %c0_105, %c0_106] : memref<2x4x32x32xf32, #tpu.memory_space<vmem>>, vector<1x1x32x32xf32>
    %280 = vector.shape_cast %279 : vector<1x1x32x32xf32> to vector<32x32xf32>
    %cst_107 = arith.constant dense<0.000000e+00> : vector<16x32xf32>
    %281 = tpu.matmul %278, %280, %cst_107 {dimension_numbers = #tpu.dot_dimension_numbers<[1], [0], [0], [1], [0, 0, 1, 1], [], []>} : vector<16x32xf32>, vector<32x32xf32>, vector<16x32xf32> -> vector<16x32xf32>
    %282 = vector.extract_strided_slice %87 {offsets = [8, 0], sizes = [1, 32], strides = [1, 1]} : vector<18x96xf32> to vector<1x32xf32>
    %283 = vector.broadcast %282 : vector<1x32xf32> to vector<16x32xf32>
    %284 = arith.addf %281, %283 : vector<16x32xf32>
    %c1_108 = arith.constant 1 : index
    %c0_109 = arith.constant 0 : index
    %c0_110 = arith.constant 0 : index
    %285 = vector.load %arg2[%c1_108, %c0_109, %c0_110] : memref<3x16x32xf32, #tpu.memory_space<vmem>>, vector<1x16x32xf32>
    %286 = vector.shape_cast %285 : vector<1x16x32xf32> to vector<16x32xf32>
    %c0_111 = arith.constant 0 : index
    %c1_112 = arith.constant 1 : index
    %c0_113 = arith.constant 0 : index
    %c0_114 = arith.constant 0 : index
    %287 = vector.load %arg9[%c0_111, %c1_112, %c0_113, %c0_114] : memref<2x3x32x64xf32, #tpu.memory_space<vmem>>, vector<1x1x32x64xf32>
    %288 = vector.shape_cast %287 : vector<1x1x32x64xf32> to vector<32x64xf32>
    %cst_115 = arith.constant dense<0.000000e+00> : vector<16x64xf32>
    %289 = tpu.matmul %286, %288, %cst_115 {dimension_numbers = #tpu.dot_dimension_numbers<[1], [0], [0], [1], [0, 0, 1, 1], [], []>} : vector<16x32xf32>, vector<32x64xf32>, vector<16x64xf32> -> vector<16x64xf32>
    %290 = vector.extract_strided_slice %87 {offsets = [6, 0], sizes = [1, 64], strides = [1, 1]} : vector<18x96xf32> to vector<1x64xf32>
    %291 = vector.broadcast %290 : vector<1x64xf32> to vector<16x64xf32>
    %292 = arith.addf %289, %291 : vector<16x64xf32>
    %293 = vector.extract_strided_slice %292 {offsets = [0, 0], sizes = [16, 32], strides = [1, 1]} : vector<16x64xf32> to vector<16x32xf32>
    %294 = vector.extract_strided_slice %292 {offsets = [0, 32], sizes = [16, 32], strides = [1, 1]} : vector<16x64xf32> to vector<16x32xf32>
    %295 = vector.extract_strided_slice %200 {offsets = [0, 32], sizes = [16, 32], strides = [1, 1]} : vector<16x96xf32> to vector<16x32xf32>
    %cst_116 = arith.constant 0.353553385 : f32
    %296 = vector.broadcast %cst_116 : f32 to vector<16x32xf32>
    %297 = arith.mulf %295, %296 : vector<16x32xf32>
    %298 = vector.extract_strided_slice %297 {offsets = [0, 0], sizes = [16, 8], strides = [1, 1]} : vector<16x32xf32> to vector<16x8xf32>
    %299 = vector.extract_strided_slice %293 {offsets = [0, 0], sizes = [16, 8], strides = [1, 1]} : vector<16x32xf32> to vector<16x8xf32>
    %cst_117 = arith.constant dense<0.000000e+00> : vector<16x16xf32>
    %300 = tpu.matmul %298, %299, %cst_117 {dimension_numbers = #tpu.dot_dimension_numbers<[1], [1], [0], [0], [0, 0, 1, 0], [], []>} : vector<16x8xf32>, vector<16x8xf32>, vector<16x16xf32> -> vector<16x16xf32>
    %301 = arith.addf %300, %41 : vector<16x16xf32>
    %cst_118 = arith.constant dense<0xFF800000> : vector<16xf32>
    %302 = vector.multi_reduction <maximumf>, %301, %cst_118 [1] : vector<16x16xf32> to vector<16xf32>
    %303 = vector.shape_cast %302 : vector<16xf32> to vector<16x1xf32>
    %304 = vector.broadcast %303 : vector<16x1xf32> to vector<16x16xf32>
    %305 = arith.subf %301, %304 : vector<16x16xf32>
    %306 = math.exp %305 : vector<16x16xf32>
    %cst_119 = arith.constant dense<0.000000e+00> : vector<16xf32>
    %307 = vector.multi_reduction <add>, %306, %cst_119 [1] : vector<16x16xf32> to vector<16xf32>
    %308 = vector.shape_cast %307 : vector<16xf32> to vector<16x1xf32>
    %309 = tpu.reciprocal %308 {approx = true} : vector<16x1xf32> -> vector<16x1xf32>
    %310 = vector.broadcast %309 : vector<16x1xf32> to vector<16x16xf32>
    %311 = arith.mulf %306, %310 : vector<16x16xf32>
    %312 = vector.extract_strided_slice %294 {offsets = [0, 0], sizes = [16, 8], strides = [1, 1]} : vector<16x32xf32> to vector<16x8xf32>
    %cst_120 = arith.constant dense<0.000000e+00> : vector<16x8xf32>
    %313 = tpu.matmul %311, %312, %cst_120 {dimension_numbers = #tpu.dot_dimension_numbers<[1], [0], [0], [1], [0, 0, 1, 1], [], []>} : vector<16x16xf32>, vector<16x8xf32>, vector<16x8xf32> -> vector<16x8xf32>
    %314 = vector.extract_strided_slice %297 {offsets = [0, 8], sizes = [16, 8], strides = [1, 1]} : vector<16x32xf32> to vector<16x8xf32>
    %315 = vector.extract_strided_slice %293 {offsets = [0, 8], sizes = [16, 8], strides = [1, 1]} : vector<16x32xf32> to vector<16x8xf32>
    %cst_121 = arith.constant dense<0.000000e+00> : vector<16x16xf32>
    %316 = tpu.matmul %314, %315, %cst_121 {dimension_numbers = #tpu.dot_dimension_numbers<[1], [1], [0], [0], [0, 0, 1, 0], [], []>} : vector<16x8xf32>, vector<16x8xf32>, vector<16x16xf32> -> vector<16x16xf32>
    %317 = arith.addf %316, %41 : vector<16x16xf32>
    %cst_122 = arith.constant dense<0xFF800000> : vector<16xf32>
    %318 = vector.multi_reduction <maximumf>, %317, %cst_122 [1] : vector<16x16xf32> to vector<16xf32>
    %319 = vector.shape_cast %318 : vector<16xf32> to vector<16x1xf32>
    %320 = vector.broadcast %319 : vector<16x1xf32> to vector<16x16xf32>
    %321 = arith.subf %317, %320 : vector<16x16xf32>
    %322 = math.exp %321 : vector<16x16xf32>
    %cst_123 = arith.constant dense<0.000000e+00> : vector<16xf32>
    %323 = vector.multi_reduction <add>, %322, %cst_123 [1] : vector<16x16xf32> to vector<16xf32>
    %324 = vector.shape_cast %323 : vector<16xf32> to vector<16x1xf32>
    %325 = tpu.reciprocal %324 {approx = true} : vector<16x1xf32> -> vector<16x1xf32>
    %326 = vector.broadcast %325 : vector<16x1xf32> to vector<16x16xf32>
    %327 = arith.mulf %322, %326 : vector<16x16xf32>
    %328 = vector.extract_strided_slice %294 {offsets = [0, 8], sizes = [16, 8], strides = [1, 1]} : vector<16x32xf32> to vector<16x8xf32>
    %cst_124 = arith.constant dense<0.000000e+00> : vector<16x8xf32>
    %329 = tpu.matmul %327, %328, %cst_124 {dimension_numbers = #tpu.dot_dimension_numbers<[1], [0], [0], [1], [0, 0, 1, 1], [], []>} : vector<16x16xf32>, vector<16x8xf32>, vector<16x8xf32> -> vector<16x8xf32>
    %330 = vector.extract_strided_slice %297 {offsets = [0, 16], sizes = [16, 8], strides = [1, 1]} : vector<16x32xf32> to vector<16x8xf32>
    %331 = vector.extract_strided_slice %293 {offsets = [0, 16], sizes = [16, 8], strides = [1, 1]} : vector<16x32xf32> to vector<16x8xf32>
    %cst_125 = arith.constant dense<0.000000e+00> : vector<16x16xf32>
    %332 = tpu.matmul %330, %331, %cst_125 {dimension_numbers = #tpu.dot_dimension_numbers<[1], [1], [0], [0], [0, 0, 1, 0], [], []>} : vector<16x8xf32>, vector<16x8xf32>, vector<16x16xf32> -> vector<16x16xf32>
    %333 = arith.addf %332, %41 : vector<16x16xf32>
    %cst_126 = arith.constant dense<0xFF800000> : vector<16xf32>
    %334 = vector.multi_reduction <maximumf>, %333, %cst_126 [1] : vector<16x16xf32> to vector<16xf32>
    %335 = vector.shape_cast %334 : vector<16xf32> to vector<16x1xf32>
    %336 = vector.broadcast %335 : vector<16x1xf32> to vector<16x16xf32>
    %337 = arith.subf %333, %336 : vector<16x16xf32>
    %338 = math.exp %337 : vector<16x16xf32>
    %cst_127 = arith.constant dense<0.000000e+00> : vector<16xf32>
    %339 = vector.multi_reduction <add>, %338, %cst_127 [1] : vector<16x16xf32> to vector<16xf32>
    %340 = vector.shape_cast %339 : vector<16xf32> to vector<16x1xf32>
    %341 = tpu.reciprocal %340 {approx = true} : vector<16x1xf32> -> vector<16x1xf32>
    %342 = vector.broadcast %341 : vector<16x1xf32> to vector<16x16xf32>
    %343 = arith.mulf %338, %342 : vector<16x16xf32>
    %344 = vector.extract_strided_slice %294 {offsets = [0, 16], sizes = [16, 8], strides = [1, 1]} : vector<16x32xf32> to vector<16x8xf32>
    %cst_128 = arith.constant dense<0.000000e+00> : vector<16x8xf32>
    %345 = tpu.matmul %343, %344, %cst_128 {dimension_numbers = #tpu.dot_dimension_numbers<[1], [0], [0], [1], [0, 0, 1, 1], [], []>} : vector<16x16xf32>, vector<16x8xf32>, vector<16x8xf32> -> vector<16x8xf32>
    %346 = vector.extract_strided_slice %297 {offsets = [0, 24], sizes = [16, 8], strides = [1, 1]} : vector<16x32xf32> to vector<16x8xf32>
    %347 = vector.extract_strided_slice %293 {offsets = [0, 24], sizes = [16, 8], strides = [1, 1]} : vector<16x32xf32> to vector<16x8xf32>
    %cst_129 = arith.constant dense<0.000000e+00> : vector<16x16xf32>
    %348 = tpu.matmul %346, %347, %cst_129 {dimension_numbers = #tpu.dot_dimension_numbers<[1], [1], [0], [0], [0, 0, 1, 0], [], []>} : vector<16x8xf32>, vector<16x8xf32>, vector<16x16xf32> -> vector<16x16xf32>
    %349 = arith.addf %348, %41 : vector<16x16xf32>
    %cst_130 = arith.constant dense<0xFF800000> : vector<16xf32>
    %350 = vector.multi_reduction <maximumf>, %349, %cst_130 [1] : vector<16x16xf32> to vector<16xf32>
    %351 = vector.shape_cast %350 : vector<16xf32> to vector<16x1xf32>
    %352 = vector.broadcast %351 : vector<16x1xf32> to vector<16x16xf32>
    %353 = arith.subf %349, %352 : vector<16x16xf32>
    %354 = math.exp %353 : vector<16x16xf32>
    %cst_131 = arith.constant dense<0.000000e+00> : vector<16xf32>
    %355 = vector.multi_reduction <add>, %354, %cst_131 [1] : vector<16x16xf32> to vector<16xf32>
    %356 = vector.shape_cast %355 : vector<16xf32> to vector<16x1xf32>
    %357 = tpu.reciprocal %356 {approx = true} : vector<16x1xf32> -> vector<16x1xf32>
    %358 = vector.broadcast %357 : vector<16x1xf32> to vector<16x16xf32>
    %359 = arith.mulf %354, %358 : vector<16x16xf32>
    %360 = vector.extract_strided_slice %294 {offsets = [0, 24], sizes = [16, 8], strides = [1, 1]} : vector<16x32xf32> to vector<16x8xf32>
    %cst_132 = arith.constant dense<0.000000e+00> : vector<16x8xf32>
    %361 = tpu.matmul %359, %360, %cst_132 {dimension_numbers = #tpu.dot_dimension_numbers<[1], [0], [0], [1], [0, 0, 1, 1], [], []>} : vector<16x16xf32>, vector<16x8xf32>, vector<16x8xf32> -> vector<16x8xf32>
    %362 = tpu.concatenate %313, %329, %345, %361 in 1 : vector<16x8xf32>, vector<16x8xf32>, vector<16x8xf32>, vector<16x8xf32> -> vector<16x32xf32>
    %c0_133 = arith.constant 0 : index
    %c2_134 = arith.constant 2 : index
    %c0_135 = arith.constant 0 : index
    %c0_136 = arith.constant 0 : index
    %363 = vector.load %arg7[%c0_133, %c2_134, %c0_135, %c0_136] : memref<2x4x32x32xf32, #tpu.memory_space<vmem>>, vector<1x1x32x32xf32>
    %364 = vector.shape_cast %363 : vector<1x1x32x32xf32> to vector<32x32xf32>
    %cst_137 = arith.constant dense<0.000000e+00> : vector<16x32xf32>
    %365 = tpu.matmul %362, %364, %cst_137 {dimension_numbers = #tpu.dot_dimension_numbers<[1], [0], [0], [1], [0, 0, 1, 1], [], []>} : vector<16x32xf32>, vector<32x32xf32>, vector<16x32xf32> -> vector<16x32xf32>
    %366 = vector.extract_strided_slice %87 {offsets = [9, 0], sizes = [1, 32], strides = [1, 1]} : vector<18x96xf32> to vector<1x32xf32>
    %367 = vector.broadcast %366 : vector<1x32xf32> to vector<16x32xf32>
    %368 = arith.addf %365, %367 : vector<16x32xf32>
    %c2_138 = arith.constant 2 : index
    %c0_139 = arith.constant 0 : index
    %c0_140 = arith.constant 0 : index
    %369 = vector.load %arg2[%c2_138, %c0_139, %c0_140] : memref<3x16x32xf32, #tpu.memory_space<vmem>>, vector<1x16x32xf32>
    %370 = vector.shape_cast %369 : vector<1x16x32xf32> to vector<16x32xf32>
    %c0_141 = arith.constant 0 : index
    %c2_142 = arith.constant 2 : index
    %c0_143 = arith.constant 0 : index
    %c0_144 = arith.constant 0 : index
    %371 = vector.load %arg9[%c0_141, %c2_142, %c0_143, %c0_144] : memref<2x3x32x64xf32, #tpu.memory_space<vmem>>, vector<1x1x32x64xf32>
    %372 = vector.shape_cast %371 : vector<1x1x32x64xf32> to vector<32x64xf32>
    %cst_145 = arith.constant dense<0.000000e+00> : vector<16x64xf32>
    %373 = tpu.matmul %370, %372, %cst_145 {dimension_numbers = #tpu.dot_dimension_numbers<[1], [0], [0], [1], [0, 0, 1, 1], [], []>} : vector<16x32xf32>, vector<32x64xf32>, vector<16x64xf32> -> vector<16x64xf32>
    %374 = vector.extract_strided_slice %87 {offsets = [7, 0], sizes = [1, 64], strides = [1, 1]} : vector<18x96xf32> to vector<1x64xf32>
    %375 = vector.broadcast %374 : vector<1x64xf32> to vector<16x64xf32>
    %376 = arith.addf %373, %375 : vector<16x64xf32>
    %377 = vector.extract_strided_slice %376 {offsets = [0, 0], sizes = [16, 32], strides = [1, 1]} : vector<16x64xf32> to vector<16x32xf32>
    %378 = vector.extract_strided_slice %376 {offsets = [0, 32], sizes = [16, 32], strides = [1, 1]} : vector<16x64xf32> to vector<16x32xf32>
    %379 = vector.extract_strided_slice %200 {offsets = [0, 64], sizes = [16, 32], strides = [1, 1]} : vector<16x96xf32> to vector<16x32xf32>
    %cst_146 = arith.constant 0.353553385 : f32
    %380 = vector.broadcast %cst_146 : f32 to vector<16x32xf32>
    %381 = arith.mulf %379, %380 : vector<16x32xf32>
    %382 = vector.extract_strided_slice %381 {offsets = [0, 0], sizes = [16, 8], strides = [1, 1]} : vector<16x32xf32> to vector<16x8xf32>
    %383 = vector.extract_strided_slice %377 {offsets = [0, 0], sizes = [16, 8], strides = [1, 1]} : vector<16x32xf32> to vector<16x8xf32>
    %cst_147 = arith.constant dense<0.000000e+00> : vector<16x16xf32>
    %384 = tpu.matmul %382, %383, %cst_147 {dimension_numbers = #tpu.dot_dimension_numbers<[1], [1], [0], [0], [0, 0, 1, 0], [], []>} : vector<16x8xf32>, vector<16x8xf32>, vector<16x16xf32> -> vector<16x16xf32>
    %385 = arith.addf %384, %50 : vector<16x16xf32>
    %cst_148 = arith.constant dense<0xFF800000> : vector<16xf32>
    %386 = vector.multi_reduction <maximumf>, %385, %cst_148 [1] : vector<16x16xf32> to vector<16xf32>
    %387 = vector.shape_cast %386 : vector<16xf32> to vector<16x1xf32>
    %388 = vector.broadcast %387 : vector<16x1xf32> to vector<16x16xf32>
    %389 = arith.subf %385, %388 : vector<16x16xf32>
    %390 = math.exp %389 : vector<16x16xf32>
    %cst_149 = arith.constant dense<0.000000e+00> : vector<16xf32>
    %391 = vector.multi_reduction <add>, %390, %cst_149 [1] : vector<16x16xf32> to vector<16xf32>
    %392 = vector.shape_cast %391 : vector<16xf32> to vector<16x1xf32>
    %393 = tpu.reciprocal %392 {approx = true} : vector<16x1xf32> -> vector<16x1xf32>
    %394 = vector.broadcast %393 : vector<16x1xf32> to vector<16x16xf32>
    %395 = arith.mulf %390, %394 : vector<16x16xf32>
    %396 = vector.extract_strided_slice %378 {offsets = [0, 0], sizes = [16, 8], strides = [1, 1]} : vector<16x32xf32> to vector<16x8xf32>
    %cst_150 = arith.constant dense<0.000000e+00> : vector<16x8xf32>
    %397 = tpu.matmul %395, %396, %cst_150 {dimension_numbers = #tpu.dot_dimension_numbers<[1], [0], [0], [1], [0, 0, 1, 1], [], []>} : vector<16x16xf32>, vector<16x8xf32>, vector<16x8xf32> -> vector<16x8xf32>
    %398 = vector.extract_strided_slice %381 {offsets = [0, 8], sizes = [16, 8], strides = [1, 1]} : vector<16x32xf32> to vector<16x8xf32>
    %399 = vector.extract_strided_slice %377 {offsets = [0, 8], sizes = [16, 8], strides = [1, 1]} : vector<16x32xf32> to vector<16x8xf32>
    %cst_151 = arith.constant dense<0.000000e+00> : vector<16x16xf32>
    %400 = tpu.matmul %398, %399, %cst_151 {dimension_numbers = #tpu.dot_dimension_numbers<[1], [1], [0], [0], [0, 0, 1, 0], [], []>} : vector<16x8xf32>, vector<16x8xf32>, vector<16x16xf32> -> vector<16x16xf32>
    %401 = arith.addf %400, %50 : vector<16x16xf32>
    %cst_152 = arith.constant dense<0xFF800000> : vector<16xf32>
    %402 = vector.multi_reduction <maximumf>, %401, %cst_152 [1] : vector<16x16xf32> to vector<16xf32>
    %403 = vector.shape_cast %402 : vector<16xf32> to vector<16x1xf32>
    %404 = vector.broadcast %403 : vector<16x1xf32> to vector<16x16xf32>
    %405 = arith.subf %401, %404 : vector<16x16xf32>
    %406 = math.exp %405 : vector<16x16xf32>
    %cst_153 = arith.constant dense<0.000000e+00> : vector<16xf32>
    %407 = vector.multi_reduction <add>, %406, %cst_153 [1] : vector<16x16xf32> to vector<16xf32>
    %408 = vector.shape_cast %407 : vector<16xf32> to vector<16x1xf32>
    %409 = tpu.reciprocal %408 {approx = true} : vector<16x1xf32> -> vector<16x1xf32>
    %410 = vector.broadcast %409 : vector<16x1xf32> to vector<16x16xf32>
    %411 = arith.mulf %406, %410 : vector<16x16xf32>
    %412 = vector.extract_strided_slice %378 {offsets = [0, 8], sizes = [16, 8], strides = [1, 1]} : vector<16x32xf32> to vector<16x8xf32>
    %cst_154 = arith.constant dense<0.000000e+00> : vector<16x8xf32>
    %413 = tpu.matmul %411, %412, %cst_154 {dimension_numbers = #tpu.dot_dimension_numbers<[1], [0], [0], [1], [0, 0, 1, 1], [], []>} : vector<16x16xf32>, vector<16x8xf32>, vector<16x8xf32> -> vector<16x8xf32>
    %414 = vector.extract_strided_slice %381 {offsets = [0, 16], sizes = [16, 8], strides = [1, 1]} : vector<16x32xf32> to vector<16x8xf32>
    %415 = vector.extract_strided_slice %377 {offsets = [0, 16], sizes = [16, 8], strides = [1, 1]} : vector<16x32xf32> to vector<16x8xf32>
    %cst_155 = arith.constant dense<0.000000e+00> : vector<16x16xf32>
    %416 = tpu.matmul %414, %415, %cst_155 {dimension_numbers = #tpu.dot_dimension_numbers<[1], [1], [0], [0], [0, 0, 1, 0], [], []>} : vector<16x8xf32>, vector<16x8xf32>, vector<16x16xf32> -> vector<16x16xf32>
    %417 = arith.addf %416, %50 : vector<16x16xf32>
    %cst_156 = arith.constant dense<0xFF800000> : vector<16xf32>
    %418 = vector.multi_reduction <maximumf>, %417, %cst_156 [1] : vector<16x16xf32> to vector<16xf32>
    %419 = vector.shape_cast %418 : vector<16xf32> to vector<16x1xf32>
    %420 = vector.broadcast %419 : vector<16x1xf32> to vector<16x16xf32>
    %421 = arith.subf %417, %420 : vector<16x16xf32>
    %422 = math.exp %421 : vector<16x16xf32>
    %cst_157 = arith.constant dense<0.000000e+00> : vector<16xf32>
    %423 = vector.multi_reduction <add>, %422, %cst_157 [1] : vector<16x16xf32> to vector<16xf32>
    %424 = vector.shape_cast %423 : vector<16xf32> to vector<16x1xf32>
    %425 = tpu.reciprocal %424 {approx = true} : vector<16x1xf32> -> vector<16x1xf32>
    %426 = vector.broadcast %425 : vector<16x1xf32> to vector<16x16xf32>
    %427 = arith.mulf %422, %426 : vector<16x16xf32>
    %428 = vector.extract_strided_slice %378 {offsets = [0, 16], sizes = [16, 8], strides = [1, 1]} : vector<16x32xf32> to vector<16x8xf32>
    %cst_158 = arith.constant dense<0.000000e+00> : vector<16x8xf32>
    %429 = tpu.matmul %427, %428, %cst_158 {dimension_numbers = #tpu.dot_dimension_numbers<[1], [0], [0], [1], [0, 0, 1, 1], [], []>} : vector<16x16xf32>, vector<16x8xf32>, vector<16x8xf32> -> vector<16x8xf32>
    %430 = vector.extract_strided_slice %381 {offsets = [0, 24], sizes = [16, 8], strides = [1, 1]} : vector<16x32xf32> to vector<16x8xf32>
    %431 = vector.extract_strided_slice %377 {offsets = [0, 24], sizes = [16, 8], strides = [1, 1]} : vector<16x32xf32> to vector<16x8xf32>
    %cst_159 = arith.constant dense<0.000000e+00> : vector<16x16xf32>
    %432 = tpu.matmul %430, %431, %cst_159 {dimension_numbers = #tpu.dot_dimension_numbers<[1], [1], [0], [0], [0, 0, 1, 0], [], []>} : vector<16x8xf32>, vector<16x8xf32>, vector<16x16xf32> -> vector<16x16xf32>
    %433 = arith.addf %432, %50 : vector<16x16xf32>
    %cst_160 = arith.constant dense<0xFF800000> : vector<16xf32>
    %434 = vector.multi_reduction <maximumf>, %433, %cst_160 [1] : vector<16x16xf32> to vector<16xf32>
    %435 = vector.shape_cast %434 : vector<16xf32> to vector<16x1xf32>
    %436 = vector.broadcast %435 : vector<16x1xf32> to vector<16x16xf32>
    %437 = arith.subf %433, %436 : vector<16x16xf32>
    %438 = math.exp %437 : vector<16x16xf32>
    %cst_161 = arith.constant dense<0.000000e+00> : vector<16xf32>
    %439 = vector.multi_reduction <add>, %438, %cst_161 [1] : vector<16x16xf32> to vector<16xf32>
    %440 = vector.shape_cast %439 : vector<16xf32> to vector<16x1xf32>
    %441 = tpu.reciprocal %440 {approx = true} : vector<16x1xf32> -> vector<16x1xf32>
    %442 = vector.broadcast %441 : vector<16x1xf32> to vector<16x16xf32>
    %443 = arith.mulf %438, %442 : vector<16x16xf32>
    %444 = vector.extract_strided_slice %378 {offsets = [0, 24], sizes = [16, 8], strides = [1, 1]} : vector<16x32xf32> to vector<16x8xf32>
    %cst_162 = arith.constant dense<0.000000e+00> : vector<16x8xf32>
    %445 = tpu.matmul %443, %444, %cst_162 {dimension_numbers = #tpu.dot_dimension_numbers<[1], [0], [0], [1], [0, 0, 1, 1], [], []>} : vector<16x16xf32>, vector<16x8xf32>, vector<16x8xf32> -> vector<16x8xf32>
    %446 = tpu.concatenate %397, %413, %429, %445 in 1 : vector<16x8xf32>, vector<16x8xf32>, vector<16x8xf32>, vector<16x8xf32> -> vector<16x32xf32>
    %c0_163 = arith.constant 0 : index
    %c3 = arith.constant 3 : index
    %c0_164 = arith.constant 0 : index
    %c0_165 = arith.constant 0 : index
    %447 = vector.load %arg7[%c0_163, %c3, %c0_164, %c0_165] : memref<2x4x32x32xf32, #tpu.memory_space<vmem>>, vector<1x1x32x32xf32>
    %448 = vector.shape_cast %447 : vector<1x1x32x32xf32> to vector<32x32xf32>
    %cst_166 = arith.constant dense<0.000000e+00> : vector<16x32xf32>
    %449 = tpu.matmul %446, %448, %cst_166 {dimension_numbers = #tpu.dot_dimension_numbers<[1], [0], [0], [1], [0, 0, 1, 1], [], []>} : vector<16x32xf32>, vector<32x32xf32>, vector<16x32xf32> -> vector<16x32xf32>
    %450 = vector.extract_strided_slice %87 {offsets = [10, 0], sizes = [1, 32], strides = [1, 1]} : vector<18x96xf32> to vector<1x32xf32>
    %451 = vector.broadcast %450 : vector<1x32xf32> to vector<16x32xf32>
    %452 = arith.addf %449, %451 : vector<16x32xf32>
    %453 = tpu.concatenate %284, %368, %452 in 1 : vector<16x32xf32>, vector<16x32xf32>, vector<16x32xf32> -> vector<16x96xf32>
    %c0_167 = arith.constant 0 : index
    %c2_168 = arith.constant 2 : index
    %c0_169 = arith.constant 0 : index
    %c0_170 = arith.constant 0 : index
    %454 = vector.load %arg8[%c0_167, %c2_168, %c0_169, %c0_170] : memref<2x3x32x96xf32, #tpu.memory_space<vmem>>, vector<1x1x32x96xf32>
    %455 = vector.shape_cast %454 : vector<1x1x32x96xf32> to vector<32x96xf32>
    %cst_171 = arith.constant dense<0.000000e+00> : vector<16x32xf32>
    %456 = tpu.matmul %453, %455, %cst_171 {dimension_numbers = #tpu.dot_dimension_numbers<[1], [1], [0], [0], [0, 0, 1, 0], [], []>} : vector<16x96xf32>, vector<32x96xf32>, vector<16x32xf32> -> vector<16x32xf32>
    %457 = vector.extract_strided_slice %87 {offsets = [13, 0], sizes = [1, 32], strides = [1, 1]} : vector<18x96xf32> to vector<1x32xf32>
    %458 = vector.broadcast %457 : vector<1x32xf32> to vector<16x32xf32>
    %459 = arith.addf %456, %458 : vector<16x32xf32>
    %460 = arith.addf %194, %459 : vector<16x32xf32>
    %461 = vector.extract_strided_slice %87 {offsets = [11, 0], sizes = [1, 32], strides = [1, 1]} : vector<18x96xf32> to vector<1x32xf32>
    %462 = vector.extract_strided_slice %87 {offsets = [12, 0], sizes = [1, 32], strides = [1, 1]} : vector<18x96xf32> to vector<1x32xf32>
    %cst_172 = arith.constant dense<0.000000e+00> : vector<16xf32>
    %463 = vector.multi_reduction <add>, %460, %cst_172 [1] : vector<16x32xf32> to vector<16xf32>
    %464 = vector.shape_cast %463 : vector<16xf32> to vector<16x1xf32>
    %cst_173 = arith.constant 3.200000e+01 : f32
    %465 = vector.broadcast %cst_173 : f32 to vector<16x1xf32>
    %466 = arith.divf %464, %465 : vector<16x1xf32>
    %467 = vector.broadcast %466 : vector<16x1xf32> to vector<16x32xf32>
    %468 = arith.subf %460, %467 : vector<16x32xf32>
    %469 = arith.mulf %468, %468 : vector<16x32xf32>
    %cst_174 = arith.constant dense<0.000000e+00> : vector<16xf32>
    %470 = vector.multi_reduction <add>, %469, %cst_174 [1] : vector<16x32xf32> to vector<16xf32>
    %471 = vector.shape_cast %470 : vector<16xf32> to vector<16x1xf32>
    %cst_175 = arith.constant 3.200000e+01 : f32
    %472 = vector.broadcast %cst_175 : f32 to vector<16x1xf32>
    %473 = arith.divf %471, %472 : vector<16x1xf32>
    %474 = vector.broadcast %466 : vector<16x1xf32> to vector<16x32xf32>
    %475 = arith.subf %460, %474 : vector<16x32xf32>
    %cst_176 = arith.constant 9.99999974E-6 : f32
    %476 = vector.broadcast %cst_176 : f32 to vector<16x1xf32>
    %477 = arith.addf %473, %476 : vector<16x1xf32>
    %478 = math.rsqrt %477 : vector<16x1xf32>
    %479 = vector.broadcast %478 : vector<16x1xf32> to vector<16x32xf32>
    %480 = arith.mulf %475, %479 : vector<16x32xf32>
    %481 = vector.broadcast %461 : vector<1x32xf32> to vector<16x32xf32>
    %482 = arith.mulf %480, %481 : vector<16x32xf32>
    %483 = vector.broadcast %462 : vector<1x32xf32> to vector<16x32xf32>
    %484 = arith.addf %482, %483 : vector<16x32xf32>
    %c0_177 = arith.constant 0 : index
    %c0_178 = arith.constant 0 : index
    %c0_179 = arith.constant 0 : index
    %c0_180 = arith.constant 0 : index
    %485 = vector.load %arg10[%c0_177, %c0_178, %c0_179, %c0_180] : memref<2x2x32x64xf32, #tpu.memory_space<vmem>>, vector<1x1x32x64xf32>
    %486 = vector.shape_cast %485 : vector<1x1x32x64xf32> to vector<32x64xf32>
    %cst_181 = arith.constant dense<0.000000e+00> : vector<16x64xf32>
    %487 = tpu.matmul %484, %486, %cst_181 {dimension_numbers = #tpu.dot_dimension_numbers<[1], [0], [0], [1], [0, 0, 1, 1], [], []>} : vector<16x32xf32>, vector<32x64xf32>, vector<16x64xf32> -> vector<16x64xf32>
    %488 = vector.extract_strided_slice %87 {offsets = [14, 0], sizes = [1, 64], strides = [1, 1]} : vector<18x96xf32> to vector<1x64xf32>
    %489 = vector.broadcast %488 : vector<1x64xf32> to vector<16x64xf32>
    %490 = arith.addf %487, %489 : vector<16x64xf32>
    %cst_182 = arith.constant 5.000000e-01 : f32
    %491 = vector.broadcast %cst_182 : f32 to vector<16x64xf32>
    %492 = arith.mulf %491, %490 : vector<16x64xf32>
    %cst_183 = arith.constant 0.707106769 : f32
    %493 = vector.broadcast %cst_183 : f32 to vector<16x64xf32>
    %494 = arith.mulf %490, %493 : vector<16x64xf32>
    %495 = math.erf %494 : vector<16x64xf32>
    %cst_184 = arith.constant 1.000000e+00 : f32
    %496 = vector.broadcast %cst_184 : f32 to vector<16x64xf32>
    %497 = arith.addf %496, %495 : vector<16x64xf32>
    %498 = arith.mulf %492, %497 : vector<16x64xf32>
    %c0_185 = arith.constant 0 : index
    %c1_186 = arith.constant 1 : index
    %c0_187 = arith.constant 0 : index
    %c0_188 = arith.constant 0 : index
    %499 = vector.load %arg10[%c0_185, %c1_186, %c0_187, %c0_188] : memref<2x2x32x64xf32, #tpu.memory_space<vmem>>, vector<1x1x32x64xf32>
    %500 = vector.shape_cast %499 : vector<1x1x32x64xf32> to vector<32x64xf32>
    %cst_189 = arith.constant dense<0.000000e+00> : vector<16x32xf32>
    %501 = tpu.matmul %498, %500, %cst_189 {dimension_numbers = #tpu.dot_dimension_numbers<[1], [1], [0], [0], [0, 0, 1, 0], [], []>} : vector<16x64xf32>, vector<32x64xf32>, vector<16x32xf32> -> vector<16x32xf32>
    %502 = vector.extract_strided_slice %87 {offsets = [15, 0], sizes = [1, 32], strides = [1, 1]} : vector<18x96xf32> to vector<1x32xf32>
    %503 = vector.broadcast %502 : vector<1x32xf32> to vector<16x32xf32>
    %504 = arith.addf %501, %503 : vector<16x32xf32>
    %505 = arith.addf %484, %504 : vector<16x32xf32>
    %506 = vector.extract_strided_slice %87 {offsets = [16, 0], sizes = [1, 32], strides = [1, 1]} : vector<18x96xf32> to vector<1x32xf32>
    %507 = vector.extract_strided_slice %87 {offsets = [17, 0], sizes = [1, 32], strides = [1, 1]} : vector<18x96xf32> to vector<1x32xf32>
    %cst_190 = arith.constant dense<0.000000e+00> : vector<16xf32>
    %508 = vector.multi_reduction <add>, %505, %cst_190 [1] : vector<16x32xf32> to vector<16xf32>
    %509 = vector.shape_cast %508 : vector<16xf32> to vector<16x1xf32>
    %cst_191 = arith.constant 3.200000e+01 : f32
    %510 = vector.broadcast %cst_191 : f32 to vector<16x1xf32>
    %511 = arith.divf %509, %510 : vector<16x1xf32>
    %512 = vector.broadcast %511 : vector<16x1xf32> to vector<16x32xf32>
    %513 = arith.subf %505, %512 : vector<16x32xf32>
    %514 = arith.mulf %513, %513 : vector<16x32xf32>
    %cst_192 = arith.constant dense<0.000000e+00> : vector<16xf32>
    %515 = vector.multi_reduction <add>, %514, %cst_192 [1] : vector<16x32xf32> to vector<16xf32>
    %516 = vector.shape_cast %515 : vector<16xf32> to vector<16x1xf32>
    %cst_193 = arith.constant 3.200000e+01 : f32
    %517 = vector.broadcast %cst_193 : f32 to vector<16x1xf32>
    %518 = arith.divf %516, %517 : vector<16x1xf32>
    %519 = vector.broadcast %511 : vector<16x1xf32> to vector<16x32xf32>
    %520 = arith.subf %505, %519 : vector<16x32xf32>
    %cst_194 = arith.constant 9.99999974E-6 : f32
    %521 = vector.broadcast %cst_194 : f32 to vector<16x1xf32>
    %522 = arith.addf %518, %521 : vector<16x1xf32>
    %523 = math.rsqrt %522 : vector<16x1xf32>
    %524 = vector.broadcast %523 : vector<16x1xf32> to vector<16x32xf32>
    %525 = arith.mulf %520, %524 : vector<16x32xf32>
    %526 = vector.broadcast %506 : vector<1x32xf32> to vector<16x32xf32>
    %527 = arith.mulf %525, %526 : vector<16x32xf32>
    %528 = vector.broadcast %507 : vector<1x32xf32> to vector<16x32xf32>
    %529 = arith.addf %527, %528 : vector<16x32xf32>
    %c1_195 = arith.constant 1 : index
    %c0_196 = arith.constant 0 : index
    %c0_197 = arith.constant 0 : index
    %530 = vector.load %arg11[%c1_195, %c0_196, %c0_197] : memref<2x18x96xf32, #tpu.memory_space<vmem>>, vector<1x18x96xf32>
    %531 = vector.shape_cast %530 : vector<1x18x96xf32> to vector<18x96xf32>
    %c1_198 = arith.constant 1 : index
    %c0_199 = arith.constant 0 : index
    %c0_200 = arith.constant 0 : index
    %c0_201 = arith.constant 0 : index
    %532 = vector.load %arg8[%c1_198, %c0_199, %c0_200, %c0_201] : memref<2x3x32x96xf32, #tpu.memory_space<vmem>>, vector<1x1x32x96xf32>
    %533 = vector.shape_cast %532 : vector<1x1x32x96xf32> to vector<32x96xf32>
    %cst_202 = arith.constant dense<0.000000e+00> : vector<16x96xf32>
    %534 = tpu.matmul %529, %533, %cst_202 {dimension_numbers = #tpu.dot_dimension_numbers<[1], [0], [0], [1], [0, 0, 1, 1], [], []>} : vector<16x32xf32>, vector<32x96xf32>, vector<16x96xf32> -> vector<16x96xf32>
    %535 = vector.extract_strided_slice %531 {offsets = [0, 0], sizes = [1, 96], strides = [1, 1]} : vector<18x96xf32> to vector<1x96xf32>
    %536 = vector.broadcast %535 : vector<1x96xf32> to vector<16x96xf32>
    %537 = arith.addf %534, %536 : vector<16x96xf32>
    %538 = vector.extract_strided_slice %537 {offsets = [0, 0], sizes = [16, 32], strides = [1, 1]} : vector<16x96xf32> to vector<16x32xf32>
    %cst_203 = arith.constant 0.353553385 : f32
    %539 = vector.broadcast %cst_203 : f32 to vector<16x32xf32>
    %540 = arith.mulf %538, %539 : vector<16x32xf32>
    %541 = vector.extract_strided_slice %537 {offsets = [0, 32], sizes = [16, 32], strides = [1, 1]} : vector<16x96xf32> to vector<16x32xf32>
    %542 = vector.extract_strided_slice %537 {offsets = [0, 64], sizes = [16, 32], strides = [1, 1]} : vector<16x96xf32> to vector<16x32xf32>
    %543 = vector.extract_strided_slice %540 {offsets = [0, 0], sizes = [16, 8], strides = [1, 1]} : vector<16x32xf32> to vector<16x8xf32>
    %544 = vector.extract_strided_slice %541 {offsets = [0, 0], sizes = [16, 8], strides = [1, 1]} : vector<16x32xf32> to vector<16x8xf32>
    %cst_204 = arith.constant dense<0.000000e+00> : vector<16x16xf32>
    %545 = tpu.matmul %543, %544, %cst_204 {dimension_numbers = #tpu.dot_dimension_numbers<[1], [1], [0], [0], [0, 0, 1, 0], [], []>} : vector<16x8xf32>, vector<16x8xf32>, vector<16x16xf32> -> vector<16x16xf32>
    %546 = arith.addf %545, %16 : vector<16x16xf32>
    %cst_205 = arith.constant dense<0xFF800000> : vector<16xf32>
    %547 = vector.multi_reduction <maximumf>, %546, %cst_205 [1] : vector<16x16xf32> to vector<16xf32>
    %548 = vector.shape_cast %547 : vector<16xf32> to vector<16x1xf32>
    %549 = vector.broadcast %548 : vector<16x1xf32> to vector<16x16xf32>
    %550 = arith.subf %546, %549 : vector<16x16xf32>
    %551 = math.exp %550 : vector<16x16xf32>
    %cst_206 = arith.constant dense<0.000000e+00> : vector<16xf32>
    %552 = vector.multi_reduction <add>, %551, %cst_206 [1] : vector<16x16xf32> to vector<16xf32>
    %553 = vector.shape_cast %552 : vector<16xf32> to vector<16x1xf32>
    %554 = tpu.reciprocal %553 {approx = true} : vector<16x1xf32> -> vector<16x1xf32>
    %555 = vector.broadcast %554 : vector<16x1xf32> to vector<16x16xf32>
    %556 = arith.mulf %551, %555 : vector<16x16xf32>
    %557 = vector.extract_strided_slice %542 {offsets = [0, 0], sizes = [16, 8], strides = [1, 1]} : vector<16x32xf32> to vector<16x8xf32>
    %cst_207 = arith.constant dense<0.000000e+00> : vector<16x8xf32>
    %558 = tpu.matmul %556, %557, %cst_207 {dimension_numbers = #tpu.dot_dimension_numbers<[1], [0], [0], [1], [0, 0, 1, 1], [], []>} : vector<16x16xf32>, vector<16x8xf32>, vector<16x8xf32> -> vector<16x8xf32>
    %559 = vector.extract_strided_slice %540 {offsets = [0, 8], sizes = [16, 8], strides = [1, 1]} : vector<16x32xf32> to vector<16x8xf32>
    %560 = vector.extract_strided_slice %541 {offsets = [0, 8], sizes = [16, 8], strides = [1, 1]} : vector<16x32xf32> to vector<16x8xf32>
    %cst_208 = arith.constant dense<0.000000e+00> : vector<16x16xf32>
    %561 = tpu.matmul %559, %560, %cst_208 {dimension_numbers = #tpu.dot_dimension_numbers<[1], [1], [0], [0], [0, 0, 1, 0], [], []>} : vector<16x8xf32>, vector<16x8xf32>, vector<16x16xf32> -> vector<16x16xf32>
    %562 = arith.addf %561, %16 : vector<16x16xf32>
    %cst_209 = arith.constant dense<0xFF800000> : vector<16xf32>
    %563 = vector.multi_reduction <maximumf>, %562, %cst_209 [1] : vector<16x16xf32> to vector<16xf32>
    %564 = vector.shape_cast %563 : vector<16xf32> to vector<16x1xf32>
    %565 = vector.broadcast %564 : vector<16x1xf32> to vector<16x16xf32>
    %566 = arith.subf %562, %565 : vector<16x16xf32>
    %567 = math.exp %566 : vector<16x16xf32>
    %cst_210 = arith.constant dense<0.000000e+00> : vector<16xf32>
    %568 = vector.multi_reduction <add>, %567, %cst_210 [1] : vector<16x16xf32> to vector<16xf32>
    %569 = vector.shape_cast %568 : vector<16xf32> to vector<16x1xf32>
    %570 = tpu.reciprocal %569 {approx = true} : vector<16x1xf32> -> vector<16x1xf32>
    %571 = vector.broadcast %570 : vector<16x1xf32> to vector<16x16xf32>
    %572 = arith.mulf %567, %571 : vector<16x16xf32>
    %573 = vector.extract_strided_slice %542 {offsets = [0, 8], sizes = [16, 8], strides = [1, 1]} : vector<16x32xf32> to vector<16x8xf32>
    %cst_211 = arith.constant dense<0.000000e+00> : vector<16x8xf32>
    %574 = tpu.matmul %572, %573, %cst_211 {dimension_numbers = #tpu.dot_dimension_numbers<[1], [0], [0], [1], [0, 0, 1, 1], [], []>} : vector<16x16xf32>, vector<16x8xf32>, vector<16x8xf32> -> vector<16x8xf32>
    %575 = vector.extract_strided_slice %540 {offsets = [0, 16], sizes = [16, 8], strides = [1, 1]} : vector<16x32xf32> to vector<16x8xf32>
    %576 = vector.extract_strided_slice %541 {offsets = [0, 16], sizes = [16, 8], strides = [1, 1]} : vector<16x32xf32> to vector<16x8xf32>
    %cst_212 = arith.constant dense<0.000000e+00> : vector<16x16xf32>
    %577 = tpu.matmul %575, %576, %cst_212 {dimension_numbers = #tpu.dot_dimension_numbers<[1], [1], [0], [0], [0, 0, 1, 0], [], []>} : vector<16x8xf32>, vector<16x8xf32>, vector<16x16xf32> -> vector<16x16xf32>
    %578 = arith.addf %577, %16 : vector<16x16xf32>
    %cst_213 = arith.constant dense<0xFF800000> : vector<16xf32>
    %579 = vector.multi_reduction <maximumf>, %578, %cst_213 [1] : vector<16x16xf32> to vector<16xf32>
    %580 = vector.shape_cast %579 : vector<16xf32> to vector<16x1xf32>
    %581 = vector.broadcast %580 : vector<16x1xf32> to vector<16x16xf32>
    %582 = arith.subf %578, %581 : vector<16x16xf32>
    %583 = math.exp %582 : vector<16x16xf32>
    %cst_214 = arith.constant dense<0.000000e+00> : vector<16xf32>
    %584 = vector.multi_reduction <add>, %583, %cst_214 [1] : vector<16x16xf32> to vector<16xf32>
    %585 = vector.shape_cast %584 : vector<16xf32> to vector<16x1xf32>
    %586 = tpu.reciprocal %585 {approx = true} : vector<16x1xf32> -> vector<16x1xf32>
    %587 = vector.broadcast %586 : vector<16x1xf32> to vector<16x16xf32>
    %588 = arith.mulf %583, %587 : vector<16x16xf32>
    %589 = vector.extract_strided_slice %542 {offsets = [0, 16], sizes = [16, 8], strides = [1, 1]} : vector<16x32xf32> to vector<16x8xf32>
    %cst_215 = arith.constant dense<0.000000e+00> : vector<16x8xf32>
    %590 = tpu.matmul %588, %589, %cst_215 {dimension_numbers = #tpu.dot_dimension_numbers<[1], [0], [0], [1], [0, 0, 1, 1], [], []>} : vector<16x16xf32>, vector<16x8xf32>, vector<16x8xf32> -> vector<16x8xf32>
    %591 = vector.extract_strided_slice %540 {offsets = [0, 24], sizes = [16, 8], strides = [1, 1]} : vector<16x32xf32> to vector<16x8xf32>
    %592 = vector.extract_strided_slice %541 {offsets = [0, 24], sizes = [16, 8], strides = [1, 1]} : vector<16x32xf32> to vector<16x8xf32>
    %cst_216 = arith.constant dense<0.000000e+00> : vector<16x16xf32>
    %593 = tpu.matmul %591, %592, %cst_216 {dimension_numbers = #tpu.dot_dimension_numbers<[1], [1], [0], [0], [0, 0, 1, 0], [], []>} : vector<16x8xf32>, vector<16x8xf32>, vector<16x16xf32> -> vector<16x16xf32>
    %594 = arith.addf %593, %16 : vector<16x16xf32>
    %cst_217 = arith.constant dense<0xFF800000> : vector<16xf32>
    %595 = vector.multi_reduction <maximumf>, %594, %cst_217 [1] : vector<16x16xf32> to vector<16xf32>
    %596 = vector.shape_cast %595 : vector<16xf32> to vector<16x1xf32>
    %597 = vector.broadcast %596 : vector<16x1xf32> to vector<16x16xf32>
    %598 = arith.subf %594, %597 : vector<16x16xf32>
    %599 = math.exp %598 : vector<16x16xf32>
    %cst_218 = arith.constant dense<0.000000e+00> : vector<16xf32>
    %600 = vector.multi_reduction <add>, %599, %cst_218 [1] : vector<16x16xf32> to vector<16xf32>
    %601 = vector.shape_cast %600 : vector<16xf32> to vector<16x1xf32>
    %602 = tpu.reciprocal %601 {approx = true} : vector<16x1xf32> -> vector<16x1xf32>
    %603 = vector.broadcast %602 : vector<16x1xf32> to vector<16x16xf32>
    %604 = arith.mulf %599, %603 : vector<16x16xf32>
    %605 = vector.extract_strided_slice %542 {offsets = [0, 24], sizes = [16, 8], strides = [1, 1]} : vector<16x32xf32> to vector<16x8xf32>
    %cst_219 = arith.constant dense<0.000000e+00> : vector<16x8xf32>
    %606 = tpu.matmul %604, %605, %cst_219 {dimension_numbers = #tpu.dot_dimension_numbers<[1], [0], [0], [1], [0, 0, 1, 1], [], []>} : vector<16x16xf32>, vector<16x8xf32>, vector<16x8xf32> -> vector<16x8xf32>
    %607 = tpu.concatenate %558, %574, %590, %606 in 1 : vector<16x8xf32>, vector<16x8xf32>, vector<16x8xf32>, vector<16x8xf32> -> vector<16x32xf32>
    %c1_220 = arith.constant 1 : index
    %c0_221 = arith.constant 0 : index
    %c0_222 = arith.constant 0 : index
    %c0_223 = arith.constant 0 : index
    %608 = vector.load %arg7[%c1_220, %c0_221, %c0_222, %c0_223] : memref<2x4x32x32xf32, #tpu.memory_space<vmem>>, vector<1x1x32x32xf32>
    %609 = vector.shape_cast %608 : vector<1x1x32x32xf32> to vector<32x32xf32>
    %cst_224 = arith.constant dense<0.000000e+00> : vector<16x32xf32>
    %610 = tpu.matmul %607, %609, %cst_224 {dimension_numbers = #tpu.dot_dimension_numbers<[1], [0], [0], [1], [0, 0, 1, 1], [], []>} : vector<16x32xf32>, vector<32x32xf32>, vector<16x32xf32> -> vector<16x32xf32>
    %611 = vector.extract_strided_slice %531 {offsets = [1, 0], sizes = [1, 32], strides = [1, 1]} : vector<18x96xf32> to vector<1x32xf32>
    %612 = vector.broadcast %611 : vector<1x32xf32> to vector<16x32xf32>
    %613 = arith.addf %610, %612 : vector<16x32xf32>
    %614 = arith.addf %529, %613 : vector<16x32xf32>
    %615 = vector.extract_strided_slice %531 {offsets = [2, 0], sizes = [1, 32], strides = [1, 1]} : vector<18x96xf32> to vector<1x32xf32>
    %616 = vector.extract_strided_slice %531 {offsets = [3, 0], sizes = [1, 32], strides = [1, 1]} : vector<18x96xf32> to vector<1x32xf32>
    %cst_225 = arith.constant dense<0.000000e+00> : vector<16xf32>
    %617 = vector.multi_reduction <add>, %614, %cst_225 [1] : vector<16x32xf32> to vector<16xf32>
    %618 = vector.shape_cast %617 : vector<16xf32> to vector<16x1xf32>
    %cst_226 = arith.constant 3.200000e+01 : f32
    %619 = vector.broadcast %cst_226 : f32 to vector<16x1xf32>
    %620 = arith.divf %618, %619 : vector<16x1xf32>
    %621 = vector.broadcast %620 : vector<16x1xf32> to vector<16x32xf32>
    %622 = arith.subf %614, %621 : vector<16x32xf32>
    %623 = arith.mulf %622, %622 : vector<16x32xf32>
    %cst_227 = arith.constant dense<0.000000e+00> : vector<16xf32>
    %624 = vector.multi_reduction <add>, %623, %cst_227 [1] : vector<16x32xf32> to vector<16xf32>
    %625 = vector.shape_cast %624 : vector<16xf32> to vector<16x1xf32>
    %cst_228 = arith.constant 3.200000e+01 : f32
    %626 = vector.broadcast %cst_228 : f32 to vector<16x1xf32>
    %627 = arith.divf %625, %626 : vector<16x1xf32>
    %628 = vector.broadcast %620 : vector<16x1xf32> to vector<16x32xf32>
    %629 = arith.subf %614, %628 : vector<16x32xf32>
    %cst_229 = arith.constant 9.99999974E-6 : f32
    %630 = vector.broadcast %cst_229 : f32 to vector<16x1xf32>
    %631 = arith.addf %627, %630 : vector<16x1xf32>
    %632 = math.rsqrt %631 : vector<16x1xf32>
    %633 = vector.broadcast %632 : vector<16x1xf32> to vector<16x32xf32>
    %634 = arith.mulf %629, %633 : vector<16x32xf32>
    %635 = vector.broadcast %615 : vector<1x32xf32> to vector<16x32xf32>
    %636 = arith.mulf %634, %635 : vector<16x32xf32>
    %637 = vector.broadcast %616 : vector<1x32xf32> to vector<16x32xf32>
    %638 = arith.addf %636, %637 : vector<16x32xf32>
    %c1_230 = arith.constant 1 : index
    %c1_231 = arith.constant 1 : index
    %c0_232 = arith.constant 0 : index
    %c0_233 = arith.constant 0 : index
    %639 = vector.load %arg8[%c1_230, %c1_231, %c0_232, %c0_233] : memref<2x3x32x96xf32, #tpu.memory_space<vmem>>, vector<1x1x32x96xf32>
    %640 = vector.shape_cast %639 : vector<1x1x32x96xf32> to vector<32x96xf32>
    %cst_234 = arith.constant dense<0.000000e+00> : vector<16x96xf32>
    %641 = tpu.matmul %638, %640, %cst_234 {dimension_numbers = #tpu.dot_dimension_numbers<[1], [0], [0], [1], [0, 0, 1, 1], [], []>} : vector<16x32xf32>, vector<32x96xf32>, vector<16x96xf32> -> vector<16x96xf32>
    %642 = vector.extract_strided_slice %531 {offsets = [4, 0], sizes = [1, 96], strides = [1, 1]} : vector<18x96xf32> to vector<1x96xf32>
    %643 = vector.broadcast %642 : vector<1x96xf32> to vector<16x96xf32>
    %644 = arith.addf %641, %643 : vector<16x96xf32>
    %c0_235 = arith.constant 0 : index
    %c0_236 = arith.constant 0 : index
    %c0_237 = arith.constant 0 : index
    %645 = vector.load %arg2[%c0_235, %c0_236, %c0_237] : memref<3x16x32xf32, #tpu.memory_space<vmem>>, vector<1x16x32xf32>
    %646 = vector.shape_cast %645 : vector<1x16x32xf32> to vector<16x32xf32>
    %c1_238 = arith.constant 1 : index
    %c0_239 = arith.constant 0 : index
    %c0_240 = arith.constant 0 : index
    %c0_241 = arith.constant 0 : index
    %647 = vector.load %arg9[%c1_238, %c0_239, %c0_240, %c0_241] : memref<2x3x32x64xf32, #tpu.memory_space<vmem>>, vector<1x1x32x64xf32>
    %648 = vector.shape_cast %647 : vector<1x1x32x64xf32> to vector<32x64xf32>
    %cst_242 = arith.constant dense<0.000000e+00> : vector<16x64xf32>
    %649 = tpu.matmul %646, %648, %cst_242 {dimension_numbers = #tpu.dot_dimension_numbers<[1], [0], [0], [1], [0, 0, 1, 1], [], []>} : vector<16x32xf32>, vector<32x64xf32>, vector<16x64xf32> -> vector<16x64xf32>
    %650 = vector.extract_strided_slice %531 {offsets = [5, 0], sizes = [1, 64], strides = [1, 1]} : vector<18x96xf32> to vector<1x64xf32>
    %651 = vector.broadcast %650 : vector<1x64xf32> to vector<16x64xf32>
    %652 = arith.addf %649, %651 : vector<16x64xf32>
    %653 = vector.extract_strided_slice %652 {offsets = [0, 0], sizes = [16, 32], strides = [1, 1]} : vector<16x64xf32> to vector<16x32xf32>
    %654 = vector.extract_strided_slice %652 {offsets = [0, 32], sizes = [16, 32], strides = [1, 1]} : vector<16x64xf32> to vector<16x32xf32>
    %655 = vector.extract_strided_slice %644 {offsets = [0, 0], sizes = [16, 32], strides = [1, 1]} : vector<16x96xf32> to vector<16x32xf32>
    %cst_243 = arith.constant 0.353553385 : f32
    %656 = vector.broadcast %cst_243 : f32 to vector<16x32xf32>
    %657 = arith.mulf %655, %656 : vector<16x32xf32>
    %658 = vector.extract_strided_slice %657 {offsets = [0, 0], sizes = [16, 8], strides = [1, 1]} : vector<16x32xf32> to vector<16x8xf32>
    %659 = vector.extract_strided_slice %653 {offsets = [0, 0], sizes = [16, 8], strides = [1, 1]} : vector<16x32xf32> to vector<16x8xf32>
    %cst_244 = arith.constant dense<0.000000e+00> : vector<16x16xf32>
    %660 = tpu.matmul %658, %659, %cst_244 {dimension_numbers = #tpu.dot_dimension_numbers<[1], [1], [0], [0], [0, 0, 1, 0], [], []>} : vector<16x8xf32>, vector<16x8xf32>, vector<16x16xf32> -> vector<16x16xf32>
    %661 = arith.addf %660, %32 : vector<16x16xf32>
    %cst_245 = arith.constant dense<0xFF800000> : vector<16xf32>
    %662 = vector.multi_reduction <maximumf>, %661, %cst_245 [1] : vector<16x16xf32> to vector<16xf32>
    %663 = vector.shape_cast %662 : vector<16xf32> to vector<16x1xf32>
    %664 = vector.broadcast %663 : vector<16x1xf32> to vector<16x16xf32>
    %665 = arith.subf %661, %664 : vector<16x16xf32>
    %666 = math.exp %665 : vector<16x16xf32>
    %cst_246 = arith.constant dense<0.000000e+00> : vector<16xf32>
    %667 = vector.multi_reduction <add>, %666, %cst_246 [1] : vector<16x16xf32> to vector<16xf32>
    %668 = vector.shape_cast %667 : vector<16xf32> to vector<16x1xf32>
    %669 = tpu.reciprocal %668 {approx = true} : vector<16x1xf32> -> vector<16x1xf32>
    %670 = vector.broadcast %669 : vector<16x1xf32> to vector<16x16xf32>
    %671 = arith.mulf %666, %670 : vector<16x16xf32>
    %672 = vector.extract_strided_slice %654 {offsets = [0, 0], sizes = [16, 8], strides = [1, 1]} : vector<16x32xf32> to vector<16x8xf32>
    %cst_247 = arith.constant dense<0.000000e+00> : vector<16x8xf32>
    %673 = tpu.matmul %671, %672, %cst_247 {dimension_numbers = #tpu.dot_dimension_numbers<[1], [0], [0], [1], [0, 0, 1, 1], [], []>} : vector<16x16xf32>, vector<16x8xf32>, vector<16x8xf32> -> vector<16x8xf32>
    %674 = vector.extract_strided_slice %657 {offsets = [0, 8], sizes = [16, 8], strides = [1, 1]} : vector<16x32xf32> to vector<16x8xf32>
    %675 = vector.extract_strided_slice %653 {offsets = [0, 8], sizes = [16, 8], strides = [1, 1]} : vector<16x32xf32> to vector<16x8xf32>
    %cst_248 = arith.constant dense<0.000000e+00> : vector<16x16xf32>
    %676 = tpu.matmul %674, %675, %cst_248 {dimension_numbers = #tpu.dot_dimension_numbers<[1], [1], [0], [0], [0, 0, 1, 0], [], []>} : vector<16x8xf32>, vector<16x8xf32>, vector<16x16xf32> -> vector<16x16xf32>
    %677 = arith.addf %676, %32 : vector<16x16xf32>
    %cst_249 = arith.constant dense<0xFF800000> : vector<16xf32>
    %678 = vector.multi_reduction <maximumf>, %677, %cst_249 [1] : vector<16x16xf32> to vector<16xf32>
    %679 = vector.shape_cast %678 : vector<16xf32> to vector<16x1xf32>
    %680 = vector.broadcast %679 : vector<16x1xf32> to vector<16x16xf32>
    %681 = arith.subf %677, %680 : vector<16x16xf32>
    %682 = math.exp %681 : vector<16x16xf32>
    %cst_250 = arith.constant dense<0.000000e+00> : vector<16xf32>
    %683 = vector.multi_reduction <add>, %682, %cst_250 [1] : vector<16x16xf32> to vector<16xf32>
    %684 = vector.shape_cast %683 : vector<16xf32> to vector<16x1xf32>
    %685 = tpu.reciprocal %684 {approx = true} : vector<16x1xf32> -> vector<16x1xf32>
    %686 = vector.broadcast %685 : vector<16x1xf32> to vector<16x16xf32>
    %687 = arith.mulf %682, %686 : vector<16x16xf32>
    %688 = vector.extract_strided_slice %654 {offsets = [0, 8], sizes = [16, 8], strides = [1, 1]} : vector<16x32xf32> to vector<16x8xf32>
    %cst_251 = arith.constant dense<0.000000e+00> : vector<16x8xf32>
    %689 = tpu.matmul %687, %688, %cst_251 {dimension_numbers = #tpu.dot_dimension_numbers<[1], [0], [0], [1], [0, 0, 1, 1], [], []>} : vector<16x16xf32>, vector<16x8xf32>, vector<16x8xf32> -> vector<16x8xf32>
    %690 = vector.extract_strided_slice %657 {offsets = [0, 16], sizes = [16, 8], strides = [1, 1]} : vector<16x32xf32> to vector<16x8xf32>
    %691 = vector.extract_strided_slice %653 {offsets = [0, 16], sizes = [16, 8], strides = [1, 1]} : vector<16x32xf32> to vector<16x8xf32>
    %cst_252 = arith.constant dense<0.000000e+00> : vector<16x16xf32>
    %692 = tpu.matmul %690, %691, %cst_252 {dimension_numbers = #tpu.dot_dimension_numbers<[1], [1], [0], [0], [0, 0, 1, 0], [], []>} : vector<16x8xf32>, vector<16x8xf32>, vector<16x16xf32> -> vector<16x16xf32>
    %693 = arith.addf %692, %32 : vector<16x16xf32>
    %cst_253 = arith.constant dense<0xFF800000> : vector<16xf32>
    %694 = vector.multi_reduction <maximumf>, %693, %cst_253 [1] : vector<16x16xf32> to vector<16xf32>
    %695 = vector.shape_cast %694 : vector<16xf32> to vector<16x1xf32>
    %696 = vector.broadcast %695 : vector<16x1xf32> to vector<16x16xf32>
    %697 = arith.subf %693, %696 : vector<16x16xf32>
    %698 = math.exp %697 : vector<16x16xf32>
    %cst_254 = arith.constant dense<0.000000e+00> : vector<16xf32>
    %699 = vector.multi_reduction <add>, %698, %cst_254 [1] : vector<16x16xf32> to vector<16xf32>
    %700 = vector.shape_cast %699 : vector<16xf32> to vector<16x1xf32>
    %701 = tpu.reciprocal %700 {approx = true} : vector<16x1xf32> -> vector<16x1xf32>
    %702 = vector.broadcast %701 : vector<16x1xf32> to vector<16x16xf32>
    %703 = arith.mulf %698, %702 : vector<16x16xf32>
    %704 = vector.extract_strided_slice %654 {offsets = [0, 16], sizes = [16, 8], strides = [1, 1]} : vector<16x32xf32> to vector<16x8xf32>
    %cst_255 = arith.constant dense<0.000000e+00> : vector<16x8xf32>
    %705 = tpu.matmul %703, %704, %cst_255 {dimension_numbers = #tpu.dot_dimension_numbers<[1], [0], [0], [1], [0, 0, 1, 1], [], []>} : vector<16x16xf32>, vector<16x8xf32>, vector<16x8xf32> -> vector<16x8xf32>
    %706 = vector.extract_strided_slice %657 {offsets = [0, 24], sizes = [16, 8], strides = [1, 1]} : vector<16x32xf32> to vector<16x8xf32>
    %707 = vector.extract_strided_slice %653 {offsets = [0, 24], sizes = [16, 8], strides = [1, 1]} : vector<16x32xf32> to vector<16x8xf32>
    %cst_256 = arith.constant dense<0.000000e+00> : vector<16x16xf32>
    %708 = tpu.matmul %706, %707, %cst_256 {dimension_numbers = #tpu.dot_dimension_numbers<[1], [1], [0], [0], [0, 0, 1, 0], [], []>} : vector<16x8xf32>, vector<16x8xf32>, vector<16x16xf32> -> vector<16x16xf32>
    %709 = arith.addf %708, %32 : vector<16x16xf32>
    %cst_257 = arith.constant dense<0xFF800000> : vector<16xf32>
    %710 = vector.multi_reduction <maximumf>, %709, %cst_257 [1] : vector<16x16xf32> to vector<16xf32>
    %711 = vector.shape_cast %710 : vector<16xf32> to vector<16x1xf32>
    %712 = vector.broadcast %711 : vector<16x1xf32> to vector<16x16xf32>
    %713 = arith.subf %709, %712 : vector<16x16xf32>
    %714 = math.exp %713 : vector<16x16xf32>
    %cst_258 = arith.constant dense<0.000000e+00> : vector<16xf32>
    %715 = vector.multi_reduction <add>, %714, %cst_258 [1] : vector<16x16xf32> to vector<16xf32>
    %716 = vector.shape_cast %715 : vector<16xf32> to vector<16x1xf32>
    %717 = tpu.reciprocal %716 {approx = true} : vector<16x1xf32> -> vector<16x1xf32>
    %718 = vector.broadcast %717 : vector<16x1xf32> to vector<16x16xf32>
    %719 = arith.mulf %714, %718 : vector<16x16xf32>
    %720 = vector.extract_strided_slice %654 {offsets = [0, 24], sizes = [16, 8], strides = [1, 1]} : vector<16x32xf32> to vector<16x8xf32>
    %cst_259 = arith.constant dense<0.000000e+00> : vector<16x8xf32>
    %721 = tpu.matmul %719, %720, %cst_259 {dimension_numbers = #tpu.dot_dimension_numbers<[1], [0], [0], [1], [0, 0, 1, 1], [], []>} : vector<16x16xf32>, vector<16x8xf32>, vector<16x8xf32> -> vector<16x8xf32>
    %722 = tpu.concatenate %673, %689, %705, %721 in 1 : vector<16x8xf32>, vector<16x8xf32>, vector<16x8xf32>, vector<16x8xf32> -> vector<16x32xf32>
    %c1_260 = arith.constant 1 : index
    %c1_261 = arith.constant 1 : index
    %c0_262 = arith.constant 0 : index
    %c0_263 = arith.constant 0 : index
    %723 = vector.load %arg7[%c1_260, %c1_261, %c0_262, %c0_263] : memref<2x4x32x32xf32, #tpu.memory_space<vmem>>, vector<1x1x32x32xf32>
    %724 = vector.shape_cast %723 : vector<1x1x32x32xf32> to vector<32x32xf32>
    %cst_264 = arith.constant dense<0.000000e+00> : vector<16x32xf32>
    %725 = tpu.matmul %722, %724, %cst_264 {dimension_numbers = #tpu.dot_dimension_numbers<[1], [0], [0], [1], [0, 0, 1, 1], [], []>} : vector<16x32xf32>, vector<32x32xf32>, vector<16x32xf32> -> vector<16x32xf32>
    %726 = vector.extract_strided_slice %531 {offsets = [8, 0], sizes = [1, 32], strides = [1, 1]} : vector<18x96xf32> to vector<1x32xf32>
    %727 = vector.broadcast %726 : vector<1x32xf32> to vector<16x32xf32>
    %728 = arith.addf %725, %727 : vector<16x32xf32>
    %c1_265 = arith.constant 1 : index
    %c0_266 = arith.constant 0 : index
    %c0_267 = arith.constant 0 : index
    %729 = vector.load %arg2[%c1_265, %c0_266, %c0_267] : memref<3x16x32xf32, #tpu.memory_space<vmem>>, vector<1x16x32xf32>
    %730 = vector.shape_cast %729 : vector<1x16x32xf32> to vector<16x32xf32>
    %c1_268 = arith.constant 1 : index
    %c1_269 = arith.constant 1 : index
    %c0_270 = arith.constant 0 : index
    %c0_271 = arith.constant 0 : index
    %731 = vector.load %arg9[%c1_268, %c1_269, %c0_270, %c0_271] : memref<2x3x32x64xf32, #tpu.memory_space<vmem>>, vector<1x1x32x64xf32>
    %732 = vector.shape_cast %731 : vector<1x1x32x64xf32> to vector<32x64xf32>
    %cst_272 = arith.constant dense<0.000000e+00> : vector<16x64xf32>
    %733 = tpu.matmul %730, %732, %cst_272 {dimension_numbers = #tpu.dot_dimension_numbers<[1], [0], [0], [1], [0, 0, 1, 1], [], []>} : vector<16x32xf32>, vector<32x64xf32>, vector<16x64xf32> -> vector<16x64xf32>
    %734 = vector.extract_strided_slice %531 {offsets = [6, 0], sizes = [1, 64], strides = [1, 1]} : vector<18x96xf32> to vector<1x64xf32>
    %735 = vector.broadcast %734 : vector<1x64xf32> to vector<16x64xf32>
    %736 = arith.addf %733, %735 : vector<16x64xf32>
    %737 = vector.extract_strided_slice %736 {offsets = [0, 0], sizes = [16, 32], strides = [1, 1]} : vector<16x64xf32> to vector<16x32xf32>
    %738 = vector.extract_strided_slice %736 {offsets = [0, 32], sizes = [16, 32], strides = [1, 1]} : vector<16x64xf32> to vector<16x32xf32>
    %739 = vector.extract_strided_slice %644 {offsets = [0, 32], sizes = [16, 32], strides = [1, 1]} : vector<16x96xf32> to vector<16x32xf32>
    %cst_273 = arith.constant 0.353553385 : f32
    %740 = vector.broadcast %cst_273 : f32 to vector<16x32xf32>
    %741 = arith.mulf %739, %740 : vector<16x32xf32>
    %742 = vector.extract_strided_slice %741 {offsets = [0, 0], sizes = [16, 8], strides = [1, 1]} : vector<16x32xf32> to vector<16x8xf32>
    %743 = vector.extract_strided_slice %737 {offsets = [0, 0], sizes = [16, 8], strides = [1, 1]} : vector<16x32xf32> to vector<16x8xf32>
    %cst_274 = arith.constant dense<0.000000e+00> : vector<16x16xf32>
    %744 = tpu.matmul %742, %743, %cst_274 {dimension_numbers = #tpu.dot_dimension_numbers<[1], [1], [0], [0], [0, 0, 1, 0], [], []>} : vector<16x8xf32>, vector<16x8xf32>, vector<16x16xf32> -> vector<16x16xf32>
    %745 = arith.addf %744, %41 : vector<16x16xf32>
    %cst_275 = arith.constant dense<0xFF800000> : vector<16xf32>
    %746 = vector.multi_reduction <maximumf>, %745, %cst_275 [1] : vector<16x16xf32> to vector<16xf32>
    %747 = vector.shape_cast %746 : vector<16xf32> to vector<16x1xf32>
    %748 = vector.broadcast %747 : vector<16x1xf32> to vector<16x16xf32>
    %749 = arith.subf %745, %748 : vector<16x16xf32>
    %750 = math.exp %749 : vector<16x16xf32>
    %cst_276 = arith.constant dense<0.000000e+00> : vector<16xf32>
    %751 = vector.multi_reduction <add>, %750, %cst_276 [1] : vector<16x16xf32> to vector<16xf32>
    %752 = vector.shape_cast %751 : vector<16xf32> to vector<16x1xf32>
    %753 = tpu.reciprocal %752 {approx = true} : vector<16x1xf32> -> vector<16x1xf32>
    %754 = vector.broadcast %753 : vector<16x1xf32> to vector<16x16xf32>
    %755 = arith.mulf %750, %754 : vector<16x16xf32>
    %756 = vector.extract_strided_slice %738 {offsets = [0, 0], sizes = [16, 8], strides = [1, 1]} : vector<16x32xf32> to vector<16x8xf32>
    %cst_277 = arith.constant dense<0.000000e+00> : vector<16x8xf32>
    %757 = tpu.matmul %755, %756, %cst_277 {dimension_numbers = #tpu.dot_dimension_numbers<[1], [0], [0], [1], [0, 0, 1, 1], [], []>} : vector<16x16xf32>, vector<16x8xf32>, vector<16x8xf32> -> vector<16x8xf32>
    %758 = vector.extract_strided_slice %741 {offsets = [0, 8], sizes = [16, 8], strides = [1, 1]} : vector<16x32xf32> to vector<16x8xf32>
    %759 = vector.extract_strided_slice %737 {offsets = [0, 8], sizes = [16, 8], strides = [1, 1]} : vector<16x32xf32> to vector<16x8xf32>
    %cst_278 = arith.constant dense<0.000000e+00> : vector<16x16xf32>
    %760 = tpu.matmul %758, %759, %cst_278 {dimension_numbers = #tpu.dot_dimension_numbers<[1], [1], [0], [0], [0, 0, 1, 0], [], []>} : vector<16x8xf32>, vector<16x8xf32>, vector<16x16xf32> -> vector<16x16xf32>
    %761 = arith.addf %760, %41 : vector<16x16xf32>
    %cst_279 = arith.constant dense<0xFF800000> : vector<16xf32>
    %762 = vector.multi_reduction <maximumf>, %761, %cst_279 [1] : vector<16x16xf32> to vector<16xf32>
    %763 = vector.shape_cast %762 : vector<16xf32> to vector<16x1xf32>
    %764 = vector.broadcast %763 : vector<16x1xf32> to vector<16x16xf32>
    %765 = arith.subf %761, %764 : vector<16x16xf32>
    %766 = math.exp %765 : vector<16x16xf32>
    %cst_280 = arith.constant dense<0.000000e+00> : vector<16xf32>
    %767 = vector.multi_reduction <add>, %766, %cst_280 [1] : vector<16x16xf32> to vector<16xf32>
    %768 = vector.shape_cast %767 : vector<16xf32> to vector<16x1xf32>
    %769 = tpu.reciprocal %768 {approx = true} : vector<16x1xf32> -> vector<16x1xf32>
    %770 = vector.broadcast %769 : vector<16x1xf32> to vector<16x16xf32>
    %771 = arith.mulf %766, %770 : vector<16x16xf32>
    %772 = vector.extract_strided_slice %738 {offsets = [0, 8], sizes = [16, 8], strides = [1, 1]} : vector<16x32xf32> to vector<16x8xf32>
    %cst_281 = arith.constant dense<0.000000e+00> : vector<16x8xf32>
    %773 = tpu.matmul %771, %772, %cst_281 {dimension_numbers = #tpu.dot_dimension_numbers<[1], [0], [0], [1], [0, 0, 1, 1], [], []>} : vector<16x16xf32>, vector<16x8xf32>, vector<16x8xf32> -> vector<16x8xf32>
    %774 = vector.extract_strided_slice %741 {offsets = [0, 16], sizes = [16, 8], strides = [1, 1]} : vector<16x32xf32> to vector<16x8xf32>
    %775 = vector.extract_strided_slice %737 {offsets = [0, 16], sizes = [16, 8], strides = [1, 1]} : vector<16x32xf32> to vector<16x8xf32>
    %cst_282 = arith.constant dense<0.000000e+00> : vector<16x16xf32>
    %776 = tpu.matmul %774, %775, %cst_282 {dimension_numbers = #tpu.dot_dimension_numbers<[1], [1], [0], [0], [0, 0, 1, 0], [], []>} : vector<16x8xf32>, vector<16x8xf32>, vector<16x16xf32> -> vector<16x16xf32>
    %777 = arith.addf %776, %41 : vector<16x16xf32>
    %cst_283 = arith.constant dense<0xFF800000> : vector<16xf32>
    %778 = vector.multi_reduction <maximumf>, %777, %cst_283 [1] : vector<16x16xf32> to vector<16xf32>
    %779 = vector.shape_cast %778 : vector<16xf32> to vector<16x1xf32>
    %780 = vector.broadcast %779 : vector<16x1xf32> to vector<16x16xf32>
    %781 = arith.subf %777, %780 : vector<16x16xf32>
    %782 = math.exp %781 : vector<16x16xf32>
    %cst_284 = arith.constant dense<0.000000e+00> : vector<16xf32>
    %783 = vector.multi_reduction <add>, %782, %cst_284 [1] : vector<16x16xf32> to vector<16xf32>
    %784 = vector.shape_cast %783 : vector<16xf32> to vector<16x1xf32>
    %785 = tpu.reciprocal %784 {approx = true} : vector<16x1xf32> -> vector<16x1xf32>
    %786 = vector.broadcast %785 : vector<16x1xf32> to vector<16x16xf32>
    %787 = arith.mulf %782, %786 : vector<16x16xf32>
    %788 = vector.extract_strided_slice %738 {offsets = [0, 16], sizes = [16, 8], strides = [1, 1]} : vector<16x32xf32> to vector<16x8xf32>
    %cst_285 = arith.constant dense<0.000000e+00> : vector<16x8xf32>
    %789 = tpu.matmul %787, %788, %cst_285 {dimension_numbers = #tpu.dot_dimension_numbers<[1], [0], [0], [1], [0, 0, 1, 1], [], []>} : vector<16x16xf32>, vector<16x8xf32>, vector<16x8xf32> -> vector<16x8xf32>
    %790 = vector.extract_strided_slice %741 {offsets = [0, 24], sizes = [16, 8], strides = [1, 1]} : vector<16x32xf32> to vector<16x8xf32>
    %791 = vector.extract_strided_slice %737 {offsets = [0, 24], sizes = [16, 8], strides = [1, 1]} : vector<16x32xf32> to vector<16x8xf32>
    %cst_286 = arith.constant dense<0.000000e+00> : vector<16x16xf32>
    %792 = tpu.matmul %790, %791, %cst_286 {dimension_numbers = #tpu.dot_dimension_numbers<[1], [1], [0], [0], [0, 0, 1, 0], [], []>} : vector<16x8xf32>, vector<16x8xf32>, vector<16x16xf32> -> vector<16x16xf32>
    %793 = arith.addf %792, %41 : vector<16x16xf32>
    %cst_287 = arith.constant dense<0xFF800000> : vector<16xf32>
    %794 = vector.multi_reduction <maximumf>, %793, %cst_287 [1] : vector<16x16xf32> to vector<16xf32>
    %795 = vector.shape_cast %794 : vector<16xf32> to vector<16x1xf32>
    %796 = vector.broadcast %795 : vector<16x1xf32> to vector<16x16xf32>
    %797 = arith.subf %793, %796 : vector<16x16xf32>
    %798 = math.exp %797 : vector<16x16xf32>
    %cst_288 = arith.constant dense<0.000000e+00> : vector<16xf32>
    %799 = vector.multi_reduction <add>, %798, %cst_288 [1] : vector<16x16xf32> to vector<16xf32>
    %800 = vector.shape_cast %799 : vector<16xf32> to vector<16x1xf32>
    %801 = tpu.reciprocal %800 {approx = true} : vector<16x1xf32> -> vector<16x1xf32>
    %802 = vector.broadcast %801 : vector<16x1xf32> to vector<16x16xf32>
    %803 = arith.mulf %798, %802 : vector<16x16xf32>
    %804 = vector.extract_strided_slice %738 {offsets = [0, 24], sizes = [16, 8], strides = [1, 1]} : vector<16x32xf32> to vector<16x8xf32>
    %cst_289 = arith.constant dense<0.000000e+00> : vector<16x8xf32>
    %805 = tpu.matmul %803, %804, %cst_289 {dimension_numbers = #tpu.dot_dimension_numbers<[1], [0], [0], [1], [0, 0, 1, 1], [], []>} : vector<16x16xf32>, vector<16x8xf32>, vector<16x8xf32> -> vector<16x8xf32>
    %806 = tpu.concatenate %757, %773, %789, %805 in 1 : vector<16x8xf32>, vector<16x8xf32>, vector<16x8xf32>, vector<16x8xf32> -> vector<16x32xf32>
    %c1_290 = arith.constant 1 : index
    %c2_291 = arith.constant 2 : index
    %c0_292 = arith.constant 0 : index
    %c0_293 = arith.constant 0 : index
    %807 = vector.load %arg7[%c1_290, %c2_291, %c0_292, %c0_293] : memref<2x4x32x32xf32, #tpu.memory_space<vmem>>, vector<1x1x32x32xf32>
    %808 = vector.shape_cast %807 : vector<1x1x32x32xf32> to vector<32x32xf32>
    %cst_294 = arith.constant dense<0.000000e+00> : vector<16x32xf32>
    %809 = tpu.matmul %806, %808, %cst_294 {dimension_numbers = #tpu.dot_dimension_numbers<[1], [0], [0], [1], [0, 0, 1, 1], [], []>} : vector<16x32xf32>, vector<32x32xf32>, vector<16x32xf32> -> vector<16x32xf32>
    %810 = vector.extract_strided_slice %531 {offsets = [9, 0], sizes = [1, 32], strides = [1, 1]} : vector<18x96xf32> to vector<1x32xf32>
    %811 = vector.broadcast %810 : vector<1x32xf32> to vector<16x32xf32>
    %812 = arith.addf %809, %811 : vector<16x32xf32>
    %c2_295 = arith.constant 2 : index
    %c0_296 = arith.constant 0 : index
    %c0_297 = arith.constant 0 : index
    %813 = vector.load %arg2[%c2_295, %c0_296, %c0_297] : memref<3x16x32xf32, #tpu.memory_space<vmem>>, vector<1x16x32xf32>
    %814 = vector.shape_cast %813 : vector<1x16x32xf32> to vector<16x32xf32>
    %c1_298 = arith.constant 1 : index
    %c2_299 = arith.constant 2 : index
    %c0_300 = arith.constant 0 : index
    %c0_301 = arith.constant 0 : index
    %815 = vector.load %arg9[%c1_298, %c2_299, %c0_300, %c0_301] : memref<2x3x32x64xf32, #tpu.memory_space<vmem>>, vector<1x1x32x64xf32>
    %816 = vector.shape_cast %815 : vector<1x1x32x64xf32> to vector<32x64xf32>
    %cst_302 = arith.constant dense<0.000000e+00> : vector<16x64xf32>
    %817 = tpu.matmul %814, %816, %cst_302 {dimension_numbers = #tpu.dot_dimension_numbers<[1], [0], [0], [1], [0, 0, 1, 1], [], []>} : vector<16x32xf32>, vector<32x64xf32>, vector<16x64xf32> -> vector<16x64xf32>
    %818 = vector.extract_strided_slice %531 {offsets = [7, 0], sizes = [1, 64], strides = [1, 1]} : vector<18x96xf32> to vector<1x64xf32>
    %819 = vector.broadcast %818 : vector<1x64xf32> to vector<16x64xf32>
    %820 = arith.addf %817, %819 : vector<16x64xf32>
    %821 = vector.extract_strided_slice %820 {offsets = [0, 0], sizes = [16, 32], strides = [1, 1]} : vector<16x64xf32> to vector<16x32xf32>
    %822 = vector.extract_strided_slice %820 {offsets = [0, 32], sizes = [16, 32], strides = [1, 1]} : vector<16x64xf32> to vector<16x32xf32>
    %823 = vector.extract_strided_slice %644 {offsets = [0, 64], sizes = [16, 32], strides = [1, 1]} : vector<16x96xf32> to vector<16x32xf32>
    %cst_303 = arith.constant 0.353553385 : f32
    %824 = vector.broadcast %cst_303 : f32 to vector<16x32xf32>
    %825 = arith.mulf %823, %824 : vector<16x32xf32>
    %826 = vector.extract_strided_slice %825 {offsets = [0, 0], sizes = [16, 8], strides = [1, 1]} : vector<16x32xf32> to vector<16x8xf32>
    %827 = vector.extract_strided_slice %821 {offsets = [0, 0], sizes = [16, 8], strides = [1, 1]} : vector<16x32xf32> to vector<16x8xf32>
    %cst_304 = arith.constant dense<0.000000e+00> : vector<16x16xf32>
    %828 = tpu.matmul %826, %827, %cst_304 {dimension_numbers = #tpu.dot_dimension_numbers<[1], [1], [0], [0], [0, 0, 1, 0], [], []>} : vector<16x8xf32>, vector<16x8xf32>, vector<16x16xf32> -> vector<16x16xf32>
    %829 = arith.addf %828, %50 : vector<16x16xf32>
    %cst_305 = arith.constant dense<0xFF800000> : vector<16xf32>
    %830 = vector.multi_reduction <maximumf>, %829, %cst_305 [1] : vector<16x16xf32> to vector<16xf32>
    %831 = vector.shape_cast %830 : vector<16xf32> to vector<16x1xf32>
    %832 = vector.broadcast %831 : vector<16x1xf32> to vector<16x16xf32>
    %833 = arith.subf %829, %832 : vector<16x16xf32>
    %834 = math.exp %833 : vector<16x16xf32>
    %cst_306 = arith.constant dense<0.000000e+00> : vector<16xf32>
    %835 = vector.multi_reduction <add>, %834, %cst_306 [1] : vector<16x16xf32> to vector<16xf32>
    %836 = vector.shape_cast %835 : vector<16xf32> to vector<16x1xf32>
    %837 = tpu.reciprocal %836 {approx = true} : vector<16x1xf32> -> vector<16x1xf32>
    %838 = vector.broadcast %837 : vector<16x1xf32> to vector<16x16xf32>
    %839 = arith.mulf %834, %838 : vector<16x16xf32>
    %840 = vector.extract_strided_slice %822 {offsets = [0, 0], sizes = [16, 8], strides = [1, 1]} : vector<16x32xf32> to vector<16x8xf32>
    %cst_307 = arith.constant dense<0.000000e+00> : vector<16x8xf32>
    %841 = tpu.matmul %839, %840, %cst_307 {dimension_numbers = #tpu.dot_dimension_numbers<[1], [0], [0], [1], [0, 0, 1, 1], [], []>} : vector<16x16xf32>, vector<16x8xf32>, vector<16x8xf32> -> vector<16x8xf32>
    %842 = vector.extract_strided_slice %825 {offsets = [0, 8], sizes = [16, 8], strides = [1, 1]} : vector<16x32xf32> to vector<16x8xf32>
    %843 = vector.extract_strided_slice %821 {offsets = [0, 8], sizes = [16, 8], strides = [1, 1]} : vector<16x32xf32> to vector<16x8xf32>
    %cst_308 = arith.constant dense<0.000000e+00> : vector<16x16xf32>
    %844 = tpu.matmul %842, %843, %cst_308 {dimension_numbers = #tpu.dot_dimension_numbers<[1], [1], [0], [0], [0, 0, 1, 0], [], []>} : vector<16x8xf32>, vector<16x8xf32>, vector<16x16xf32> -> vector<16x16xf32>
    %845 = arith.addf %844, %50 : vector<16x16xf32>
    %cst_309 = arith.constant dense<0xFF800000> : vector<16xf32>
    %846 = vector.multi_reduction <maximumf>, %845, %cst_309 [1] : vector<16x16xf32> to vector<16xf32>
    %847 = vector.shape_cast %846 : vector<16xf32> to vector<16x1xf32>
    %848 = vector.broadcast %847 : vector<16x1xf32> to vector<16x16xf32>
    %849 = arith.subf %845, %848 : vector<16x16xf32>
    %850 = math.exp %849 : vector<16x16xf32>
    %cst_310 = arith.constant dense<0.000000e+00> : vector<16xf32>
    %851 = vector.multi_reduction <add>, %850, %cst_310 [1] : vector<16x16xf32> to vector<16xf32>
    %852 = vector.shape_cast %851 : vector<16xf32> to vector<16x1xf32>
    %853 = tpu.reciprocal %852 {approx = true} : vector<16x1xf32> -> vector<16x1xf32>
    %854 = vector.broadcast %853 : vector<16x1xf32> to vector<16x16xf32>
    %855 = arith.mulf %850, %854 : vector<16x16xf32>
    %856 = vector.extract_strided_slice %822 {offsets = [0, 8], sizes = [16, 8], strides = [1, 1]} : vector<16x32xf32> to vector<16x8xf32>
    %cst_311 = arith.constant dense<0.000000e+00> : vector<16x8xf32>
    %857 = tpu.matmul %855, %856, %cst_311 {dimension_numbers = #tpu.dot_dimension_numbers<[1], [0], [0], [1], [0, 0, 1, 1], [], []>} : vector<16x16xf32>, vector<16x8xf32>, vector<16x8xf32> -> vector<16x8xf32>
    %858 = vector.extract_strided_slice %825 {offsets = [0, 16], sizes = [16, 8], strides = [1, 1]} : vector<16x32xf32> to vector<16x8xf32>
    %859 = vector.extract_strided_slice %821 {offsets = [0, 16], sizes = [16, 8], strides = [1, 1]} : vector<16x32xf32> to vector<16x8xf32>
    %cst_312 = arith.constant dense<0.000000e+00> : vector<16x16xf32>
    %860 = tpu.matmul %858, %859, %cst_312 {dimension_numbers = #tpu.dot_dimension_numbers<[1], [1], [0], [0], [0, 0, 1, 0], [], []>} : vector<16x8xf32>, vector<16x8xf32>, vector<16x16xf32> -> vector<16x16xf32>
    %861 = arith.addf %860, %50 : vector<16x16xf32>
    %cst_313 = arith.constant dense<0xFF800000> : vector<16xf32>
    %862 = vector.multi_reduction <maximumf>, %861, %cst_313 [1] : vector<16x16xf32> to vector<16xf32>
    %863 = vector.shape_cast %862 : vector<16xf32> to vector<16x1xf32>
    %864 = vector.broadcast %863 : vector<16x1xf32> to vector<16x16xf32>
    %865 = arith.subf %861, %864 : vector<16x16xf32>
    %866 = math.exp %865 : vector<16x16xf32>
    %cst_314 = arith.constant dense<0.000000e+00> : vector<16xf32>
    %867 = vector.multi_reduction <add>, %866, %cst_314 [1] : vector<16x16xf32> to vector<16xf32>
    %868 = vector.shape_cast %867 : vector<16xf32> to vector<16x1xf32>
    %869 = tpu.reciprocal %868 {approx = true} : vector<16x1xf32> -> vector<16x1xf32>
    %870 = vector.broadcast %869 : vector<16x1xf32> to vector<16x16xf32>
    %871 = arith.mulf %866, %870 : vector<16x16xf32>
    %872 = vector.extract_strided_slice %822 {offsets = [0, 16], sizes = [16, 8], strides = [1, 1]} : vector<16x32xf32> to vector<16x8xf32>
    %cst_315 = arith.constant dense<0.000000e+00> : vector<16x8xf32>
    %873 = tpu.matmul %871, %872, %cst_315 {dimension_numbers = #tpu.dot_dimension_numbers<[1], [0], [0], [1], [0, 0, 1, 1], [], []>} : vector<16x16xf32>, vector<16x8xf32>, vector<16x8xf32> -> vector<16x8xf32>
    %874 = vector.extract_strided_slice %825 {offsets = [0, 24], sizes = [16, 8], strides = [1, 1]} : vector<16x32xf32> to vector<16x8xf32>
    %875 = vector.extract_strided_slice %821 {offsets = [0, 24], sizes = [16, 8], strides = [1, 1]} : vector<16x32xf32> to vector<16x8xf32>
    %cst_316 = arith.constant dense<0.000000e+00> : vector<16x16xf32>
    %876 = tpu.matmul %874, %875, %cst_316 {dimension_numbers = #tpu.dot_dimension_numbers<[1], [1], [0], [0], [0, 0, 1, 0], [], []>} : vector<16x8xf32>, vector<16x8xf32>, vector<16x16xf32> -> vector<16x16xf32>
    %877 = arith.addf %876, %50 : vector<16x16xf32>
    %cst_317 = arith.constant dense<0xFF800000> : vector<16xf32>
    %878 = vector.multi_reduction <maximumf>, %877, %cst_317 [1] : vector<16x16xf32> to vector<16xf32>
    %879 = vector.shape_cast %878 : vector<16xf32> to vector<16x1xf32>
    %880 = vector.broadcast %879 : vector<16x1xf32> to vector<16x16xf32>
    %881 = arith.subf %877, %880 : vector<16x16xf32>
    %882 = math.exp %881 : vector<16x16xf32>
    %cst_318 = arith.constant dense<0.000000e+00> : vector<16xf32>
    %883 = vector.multi_reduction <add>, %882, %cst_318 [1] : vector<16x16xf32> to vector<16xf32>
    %884 = vector.shape_cast %883 : vector<16xf32> to vector<16x1xf32>
    %885 = tpu.reciprocal %884 {approx = true} : vector<16x1xf32> -> vector<16x1xf32>
    %886 = vector.broadcast %885 : vector<16x1xf32> to vector<16x16xf32>
    %887 = arith.mulf %882, %886 : vector<16x16xf32>
    %888 = vector.extract_strided_slice %822 {offsets = [0, 24], sizes = [16, 8], strides = [1, 1]} : vector<16x32xf32> to vector<16x8xf32>
    %cst_319 = arith.constant dense<0.000000e+00> : vector<16x8xf32>
    %889 = tpu.matmul %887, %888, %cst_319 {dimension_numbers = #tpu.dot_dimension_numbers<[1], [0], [0], [1], [0, 0, 1, 1], [], []>} : vector<16x16xf32>, vector<16x8xf32>, vector<16x8xf32> -> vector<16x8xf32>
    %890 = tpu.concatenate %841, %857, %873, %889 in 1 : vector<16x8xf32>, vector<16x8xf32>, vector<16x8xf32>, vector<16x8xf32> -> vector<16x32xf32>
    %c1_320 = arith.constant 1 : index
    %c3_321 = arith.constant 3 : index
    %c0_322 = arith.constant 0 : index
    %c0_323 = arith.constant 0 : index
    %891 = vector.load %arg7[%c1_320, %c3_321, %c0_322, %c0_323] : memref<2x4x32x32xf32, #tpu.memory_space<vmem>>, vector<1x1x32x32xf32>
    %892 = vector.shape_cast %891 : vector<1x1x32x32xf32> to vector<32x32xf32>
    %cst_324 = arith.constant dense<0.000000e+00> : vector<16x32xf32>
    %893 = tpu.matmul %890, %892, %cst_324 {dimension_numbers = #tpu.dot_dimension_numbers<[1], [0], [0], [1], [0, 0, 1, 1], [], []>} : vector<16x32xf32>, vector<32x32xf32>, vector<16x32xf32> -> vector<16x32xf32>
    %894 = vector.extract_strided_slice %531 {offsets = [10, 0], sizes = [1, 32], strides = [1, 1]} : vector<18x96xf32> to vector<1x32xf32>
    %895 = vector.broadcast %894 : vector<1x32xf32> to vector<16x32xf32>
    %896 = arith.addf %893, %895 : vector<16x32xf32>
    %897 = tpu.concatenate %728, %812, %896 in 1 : vector<16x32xf32>, vector<16x32xf32>, vector<16x32xf32> -> vector<16x96xf32>
    %c1_325 = arith.constant 1 : index
    %c2_326 = arith.constant 2 : index
    %c0_327 = arith.constant 0 : index
    %c0_328 = arith.constant 0 : index
    %898 = vector.load %arg8[%c1_325, %c2_326, %c0_327, %c0_328] : memref<2x3x32x96xf32, #tpu.memory_space<vmem>>, vector<1x1x32x96xf32>
    %899 = vector.shape_cast %898 : vector<1x1x32x96xf32> to vector<32x96xf32>
    %cst_329 = arith.constant dense<0.000000e+00> : vector<16x32xf32>
    %900 = tpu.matmul %897, %899, %cst_329 {dimension_numbers = #tpu.dot_dimension_numbers<[1], [1], [0], [0], [0, 0, 1, 0], [], []>} : vector<16x96xf32>, vector<32x96xf32>, vector<16x32xf32> -> vector<16x32xf32>
    %901 = vector.extract_strided_slice %531 {offsets = [13, 0], sizes = [1, 32], strides = [1, 1]} : vector<18x96xf32> to vector<1x32xf32>
    %902 = vector.broadcast %901 : vector<1x32xf32> to vector<16x32xf32>
    %903 = arith.addf %900, %902 : vector<16x32xf32>
    %904 = arith.addf %638, %903 : vector<16x32xf32>
    %905 = vector.extract_strided_slice %531 {offsets = [11, 0], sizes = [1, 32], strides = [1, 1]} : vector<18x96xf32> to vector<1x32xf32>
    %906 = vector.extract_strided_slice %531 {offsets = [12, 0], sizes = [1, 32], strides = [1, 1]} : vector<18x96xf32> to vector<1x32xf32>
    %cst_330 = arith.constant dense<0.000000e+00> : vector<16xf32>
    %907 = vector.multi_reduction <add>, %904, %cst_330 [1] : vector<16x32xf32> to vector<16xf32>
    %908 = vector.shape_cast %907 : vector<16xf32> to vector<16x1xf32>
    %cst_331 = arith.constant 3.200000e+01 : f32
    %909 = vector.broadcast %cst_331 : f32 to vector<16x1xf32>
    %910 = arith.divf %908, %909 : vector<16x1xf32>
    %911 = vector.broadcast %910 : vector<16x1xf32> to vector<16x32xf32>
    %912 = arith.subf %904, %911 : vector<16x32xf32>
    %913 = arith.mulf %912, %912 : vector<16x32xf32>
    %cst_332 = arith.constant dense<0.000000e+00> : vector<16xf32>
    %914 = vector.multi_reduction <add>, %913, %cst_332 [1] : vector<16x32xf32> to vector<16xf32>
    %915 = vector.shape_cast %914 : vector<16xf32> to vector<16x1xf32>
    %cst_333 = arith.constant 3.200000e+01 : f32
    %916 = vector.broadcast %cst_333 : f32 to vector<16x1xf32>
    %917 = arith.divf %915, %916 : vector<16x1xf32>
    %918 = vector.broadcast %910 : vector<16x1xf32> to vector<16x32xf32>
    %919 = arith.subf %904, %918 : vector<16x32xf32>
    %cst_334 = arith.constant 9.99999974E-6 : f32
    %920 = vector.broadcast %cst_334 : f32 to vector<16x1xf32>
    %921 = arith.addf %917, %920 : vector<16x1xf32>
    %922 = math.rsqrt %921 : vector<16x1xf32>
    %923 = vector.broadcast %922 : vector<16x1xf32> to vector<16x32xf32>
    %924 = arith.mulf %919, %923 : vector<16x32xf32>
    %925 = vector.broadcast %905 : vector<1x32xf32> to vector<16x32xf32>
    %926 = arith.mulf %924, %925 : vector<16x32xf32>
    %927 = vector.broadcast %906 : vector<1x32xf32> to vector<16x32xf32>
    %928 = arith.addf %926, %927 : vector<16x32xf32>
    %c1_335 = arith.constant 1 : index
    %c0_336 = arith.constant 0 : index
    %c0_337 = arith.constant 0 : index
    %c0_338 = arith.constant 0 : index
    %929 = vector.load %arg10[%c1_335, %c0_336, %c0_337, %c0_338] : memref<2x2x32x64xf32, #tpu.memory_space<vmem>>, vector<1x1x32x64xf32>
    %930 = vector.shape_cast %929 : vector<1x1x32x64xf32> to vector<32x64xf32>
    %cst_339 = arith.constant dense<0.000000e+00> : vector<16x64xf32>
    %931 = tpu.matmul %928, %930, %cst_339 {dimension_numbers = #tpu.dot_dimension_numbers<[1], [0], [0], [1], [0, 0, 1, 1], [], []>} : vector<16x32xf32>, vector<32x64xf32>, vector<16x64xf32> -> vector<16x64xf32>
    %932 = vector.extract_strided_slice %531 {offsets = [14, 0], sizes = [1, 64], strides = [1, 1]} : vector<18x96xf32> to vector<1x64xf32>
    %933 = vector.broadcast %932 : vector<1x64xf32> to vector<16x64xf32>
    %934 = arith.addf %931, %933 : vector<16x64xf32>
    %cst_340 = arith.constant 5.000000e-01 : f32
    %935 = vector.broadcast %cst_340 : f32 to vector<16x64xf32>
    %936 = arith.mulf %935, %934 : vector<16x64xf32>
    %cst_341 = arith.constant 0.707106769 : f32
    %937 = vector.broadcast %cst_341 : f32 to vector<16x64xf32>
    %938 = arith.mulf %934, %937 : vector<16x64xf32>
    %939 = math.erf %938 : vector<16x64xf32>
    %cst_342 = arith.constant 1.000000e+00 : f32
    %940 = vector.broadcast %cst_342 : f32 to vector<16x64xf32>
    %941 = arith.addf %940, %939 : vector<16x64xf32>
    %942 = arith.mulf %936, %941 : vector<16x64xf32>
    %c1_343 = arith.constant 1 : index
    %c1_344 = arith.constant 1 : index
    %c0_345 = arith.constant 0 : index
    %c0_346 = arith.constant 0 : index
    %943 = vector.load %arg10[%c1_343, %c1_344, %c0_345, %c0_346] : memref<2x2x32x64xf32, #tpu.memory_space<vmem>>, vector<1x1x32x64xf32>
    %944 = vector.shape_cast %943 : vector<1x1x32x64xf32> to vector<32x64xf32>
    %cst_347 = arith.constant dense<0.000000e+00> : vector<16x32xf32>
    %945 = tpu.matmul %942, %944, %cst_347 {dimension_numbers = #tpu.dot_dimension_numbers<[1], [1], [0], [0], [0, 0, 1, 0], [], []>} : vector<16x64xf32>, vector<32x64xf32>, vector<16x32xf32> -> vector<16x32xf32>
    %946 = vector.extract_strided_slice %531 {offsets = [15, 0], sizes = [1, 32], strides = [1, 1]} : vector<18x96xf32> to vector<1x32xf32>
    %947 = vector.broadcast %946 : vector<1x32xf32> to vector<16x32xf32>
    %948 = arith.addf %945, %947 : vector<16x32xf32>
    %949 = arith.addf %928, %948 : vector<16x32xf32>
    %950 = vector.extract_strided_slice %531 {offsets = [16, 0], sizes = [1, 32], strides = [1, 1]} : vector<18x96xf32> to vector<1x32xf32>
    %951 = vector.extract_strided_slice %531 {offsets = [17, 0], sizes = [1, 32], strides = [1, 1]} : vector<18x96xf32> to vector<1x32xf32>
    %cst_348 = arith.constant dense<0.000000e+00> : vector<16xf32>
    %952 = vector.multi_reduction <add>, %949, %cst_348 [1] : vector<16x32xf32> to vector<16xf32>
    %953 = vector.shape_cast %952 : vector<16xf32> to vector<16x1xf32>
    %cst_349 = arith.constant 3.200000e+01 : f32
    %954 = vector.broadcast %cst_349 : f32 to vector<16x1xf32>
    %955 = arith.divf %953, %954 : vector<16x1xf32>
    %956 = vector.broadcast %955 : vector<16x1xf32> to vector<16x32xf32>
    %957 = arith.subf %949, %956 : vector<16x32xf32>
    %958 = arith.mulf %957, %957 : vector<16x32xf32>
    %cst_350 = arith.constant dense<0.000000e+00> : vector<16xf32>
    %959 = vector.multi_reduction <add>, %958, %cst_350 [1] : vector<16x32xf32> to vector<16xf32>
    %960 = vector.shape_cast %959 : vector<16xf32> to vector<16x1xf32>
    %cst_351 = arith.constant 3.200000e+01 : f32
    %961 = vector.broadcast %cst_351 : f32 to vector<16x1xf32>
    %962 = arith.divf %960, %961 : vector<16x1xf32>
    %963 = vector.broadcast %955 : vector<16x1xf32> to vector<16x32xf32>
    %964 = arith.subf %949, %963 : vector<16x32xf32>
    %cst_352 = arith.constant 9.99999974E-6 : f32
    %965 = vector.broadcast %cst_352 : f32 to vector<16x1xf32>
    %966 = arith.addf %962, %965 : vector<16x1xf32>
    %967 = math.rsqrt %966 : vector<16x1xf32>
    %968 = vector.broadcast %967 : vector<16x1xf32> to vector<16x32xf32>
    %969 = arith.mulf %964, %968 : vector<16x32xf32>
    %970 = vector.broadcast %950 : vector<1x32xf32> to vector<16x32xf32>
    %971 = arith.mulf %969, %970 : vector<16x32xf32>
    %972 = vector.broadcast %951 : vector<1x32xf32> to vector<16x32xf32>
    %973 = arith.addf %971, %972 : vector<16x32xf32>
    %c0_353 = arith.constant 0 : index
    %c0_354 = arith.constant 0 : index
    %974 = vector.load %arg12[%c0_353, %c0_354] : memref<16x32xf32, #tpu.memory_space<vmem>>, vector<16x32xf32>
    tpu.vector_store %arg12[%c0_353, %c0_354], %973 {strides = array<i32>} : memref<16x32xf32, #tpu.memory_space<vmem>>, vector<16x32xf32>,
    return
  }
}

</mosaic_0001>

<bundles_post_ra>
// kernel: tpu_custom_call.1
= control target key start
LH: loop header
LB: loop body
LE: loop exit
PB: predicated region body
PF: predicated region fallthrough
CT: control target
= control target key end

     0   :  { %17 = vsyncpa [#allocation3], 0  ;;  %s7464_s0 = inlined_call_operand.vmem [shape: s32[16,1], index: 0, kind: input, shape index: {}]   ;;  %s7465_s1 = inlined_call_operand.vmem [shape: f32[1,16], index: 1, kind: input, shape index: {}]   ;;  %s7466_s2 = inlined_call_operand.hbm [shape: f32[3,16,32], index: 2, kind: input, shape index: {}]   ;;  %s7467_s3 = inlined_call_operand.vmem [shape: f32[3,1,16], index: 3, kind: input, shape index: {}]   ;;  %s7468_s4 = inlined_call_operand.vmem [shape: f32[64,32], index: 4, kind: input, shape index: {}]   ;;  %s7469_s5 = inlined_call_operand.vmem [shape: f32[8,32], index: 5, kind: input, shape index: {}]   ;;  %s7470_s6 = inlined_call_operand.vmem [shape: f32[2,32], index: 6, kind: input, shape index: {}]   ;;  %s7471_s7 = inlined_call_operand.hbm [shape: f32[2,4,32,32], index: 7, kind: input, shape index: {}]   ;;  %s7472_s8 = inlined_call_operand.hbm [shape: f32[2,3,32,96], index: 8, kind: input, shape index: {}]   ;;  %s7473_s9 = inlined_call_operand.hbm [shape: f32[2,3,32,64], index: 9, kind: input, shape index: {}]   ;;  %s7474_s10 = inlined_call_operand.vmem [shape: f32[2,2,32,64], index: 10, kind: input, shape index: {}]   ;;  %s7475_s11 = inlined_call_operand.vmem [shape: f32[2,18,96], index: 11, kind: input, shape index: {}]   ;;  %s7476_s12 = inlined_call_operand.hbm [shape: f32[16,32], index: 12, kind: output, shape index: {}]  }
   0x1   :  { %18 = vsyncpa [#allocation6], 0 }
   0x2   :  { %19 = vsyncpa [#allocation9], 0 }
   0x3   :  { %20 = vsyncpa [#allocation4], 0  ;;  %s50_s23 = sshll.u32 %s7471_s7, 4  ;;  %s5911_s24 = smov [#allocation5]   ;;  %s51_s23 = int_to_ptr.hbm [resolvable:$true] %s50_s23 }
   0x4   :  { %s52_s25 = sshll.u32 %s5911_s24, 4  ;;  %s29_s28 = sshll.u32 %s7466_s2, 4  ;;  %s53_s25 = int_to_ptr.vmem [resolvable:$true] %s52_s25  ;;  %s30_s28 = int_to_ptr.hbm [resolvable:$true] %s29_s28 }
   0x5   :  { %s5912_s29 = smov 128   ;;  %s5913_s30 = smov 8  }
   0x6   :  { %58 = dma.hbm_to_vmem [thread:$0]  %s51_s23, 4096, %s53_s25, [#allocation6], %s5912_s29, %s5912_s29, %s5913_s30  }
   0x7   :  { %s5914_s13 = smov [#allocation2]   ;;  %s63_s7 = sshll.u32 %s7472_s8, 4  ;;  %s64_s7 = int_to_ptr.hbm [resolvable:$true] %s63_s7 }
   0x8   :  { %s31_s14 = sshll.u32 %s5914_s13, 4  ;;  %s76_s18 = sshll.u32 %s7473_s9, 4  ;;  %s32_s14 = int_to_ptr.vmem [resolvable:$true] %s31_s14  ;;  %s77_s18 = int_to_ptr.hbm [resolvable:$true] %s76_s18 }
   0x9   :  { %37 = dma.hbm_to_vmem [thread:$0]  %s30_s28, 768, %s32_s14, [#allocation3], %s5912_s29, %s5912_s29, %s5913_s30  }
   0xa   :  { %s5915_s19 = smov [#allocation7]   ;;  %s5916_s21 = smov [#allocation8]  }
   0xb   :  { %s65_s20 = sshll.u32 %s5915_s19, 4  ;;  %s78_s8 = sshll.u32 %s5916_s21, 4  ;;  %s66_s20 = int_to_ptr.vmem [resolvable:$true] %s65_s20  ;;  %s79_s8 = int_to_ptr.vmem [resolvable:$true] %s78_s8 }
   0xc   :  { %71 = dma.hbm_to_vmem [thread:$0]  %s64_s7, 3072, %s66_s20, [#allocation6], %s5912_s29, %s5912_s29, %s5913_s30  }
   0xd   :  { %84 = dma.hbm_to_vmem [thread:$0]  %s77_s18, 3072, %s79_s8, [#allocation9], %s5912_s29, %s5912_s29, %s5913_s30  }
   0xe   :  { %5903 = dma.done.wait [#allocation3], 768  }
   0xf   :  { %5904 = vsyncadd [#allocation3], 4294966528 }
  0x10   :  { %5905 = dma.done.wait [#allocation6], 7168  }
  0x11   :  { %5906 = vsyncadd [#allocation6], 4294960128 }
  0x12   :  { %5907 = dma.done.wait [#allocation9], 3072  }
  0x13   :  { %5908 = vsyncadd [#allocation9], 4294964224  ;;  %v105_v0 = vlaneseq  ;;  %v5917_v1 = vmov 0   ;;  %v117_v9 = vld [vmem:[%s7465_s1] sm:$0x1]  ;;  %v178_v22 = vld [vmem:[%s7468_s4 + $0x38] sm:$0xff] }
  0x14   :  { %5318 = vset.pattern.permute.xlu0 %v5917_v1  ;;  %v128_v11 = vld [vmem:[%s7467_s3] sm:$0x1]  ;;  %vm118_vm5 = vcmp.lt.f32.partialorder %v117_v9, 0.5  ;;  %v5010_v13 = vld [vmem:[%s7467_s3 + $0x1] sm:$0x1]  ;;  %v177_v23 = vld [vmem:[%s7468_s4 + $0x30] sm:$0xff]  ;;  %195 = vmatpush.msra.mxu0 %v178_v22 }
  0x15   :  { %v106_v2 = vshrl.u32 %v105_v0, 7  ;;  %v6025_v3 = vand.u32 127, %v105_v0  ;;  %vm129_vm6 = vcmp.gt.f32.partialorder %v128_v11, 0.5  ;;  %v5011_v14 = vld [vmem:[%s7467_s3 + $0x2] sm:$0x1]  ;;  %v121_v15 = vsel %vm118_vm5, 1, %v5917_v1 }
  0x16   :  { %v130_v16 = vsel %vm129_vm6, 1, %v5917_v1  ;;  %vm139_vm7 = vcmp.gt.f32.partialorder %v5010_v13, 0.5  ;;  %vm149_vm8 = vcmp.gt.f32.partialorder %v5011_v14, 0.5  ;;  %v157_v17 = vld [vmem:[%s7464_s0] sm:$0xff]  ;;  %v122_v18 = vperm.slane %v121_v15, 0  ;;  %v176_v29 = vld [vmem:[%s7468_s4 + $0x28] sm:$0xff]  ;;  %196 = vmatpush.msra.mxu0 %v177_v23 }
  0x17   :  { %v107_v4 = vadd.s32 8, %v106_v2  ;;  %v110_v5 = vshra.s32 %v106_v2, 3  ;;  %v112_v6 = vshra.s32 %v6025_v3, 3  ;;  %vm115_vm0 = vcmp.le.s32.totalorder %v6025_v3, %v106_v2  ;;  %160 = vperm.xlu0 %5318, %v157_v17   ;;  %v175_v33 = vld [vmem:[%s7468_s4 + $0x20] sm:$0xff]  ;;  %v158_v34 = vld [vmem:[%s7464_s0 + $0x8] sm:$0xff]  ;;  %v174_v37 = vld [vmem:[%s7468_s4 + $0x18] sm:$0xff] }
  0x18   :  { %v131_v19 = vperm.slane %v130_v16, 0  ;;  %v140_v20 = vsel %vm139_vm7, 1, %v5917_v1  ;;  %v150_v21 = vsel %vm149_vm8, 1, %v5917_v1  ;;  %vm6073_vm10 = vcmp.eq.s32.totalorder %v122_v18, 1  ;;  %197 = vmatpush.msra.mxu0 %v176_v29  ;;  %v173_v40 = vld [vmem:[%s7468_s4 + $0x10] sm:$0xff]  ;;  %v172_v43 = vld [vmem:[%s7468_s4 + $0x8] sm:$0xff] }
  0x19   :  { %v111_v7 = vshra.s32 %v107_v4, 3  ;;  %vm6029_vm1 = vcmp.eq.s32.totalorder %v110_v5, %v112_v6  ;;  %vm116_vm4 = vcmp.le.s32.totalorder %v6025_v3, %v107_v4  ;;  %v141_v25 = vperm.slane %v140_v20, 0  ;;  %v171_v45 = vld [vmem:[%s7468_s4] sm:$0xff]  ;;  %v276_v11 = vld [vmem:[#allocation7 + $0x18] sm:$0xff]  ;;  %v274_v13 = vld [vmem:[#allocation7 + $0x8] sm:$0xff]  ;;  %s5921_s14 = smov 96  }
  0x1a   :  { %vm6038_vm2 = vmand %vm6029_vm1, %vm115_vm0  ;;  %vm6077_vm11 = vcmp.eq.s32.totalorder %v131_v19, 1  ;;  %v151_v28 = vperm.slane %v150_v21, 0  ;;  %v5918_v30 = vmov -1e+09   ;;  %198 = vmatpush.msra.mxu0 %v175_v33  ;;  %v5919_v47 = vmov 0.0   ;;  %v179_v51 = vld [vmem:[%s7469_s5] sm:$0xff]  ;;  %296 = vmatpush.msra.mxu1 %v276_v11 }
  0x1b   :  { %vm6045_vm3 = vcmp.eq.s32.totalorder %v111_v7, %v112_v6  ;;  %vm124_vm12 = vmand %vm6038_vm2, %vm6073_vm10  ;;  %vm6095_vm14 = vcmp.eq.s32.totalorder %v141_v25, 1  ;;  %v5920_v58 = vmov 32.0   ;;  %v275_v12 = vld [vmem:[#allocation7 + $0x10] sm:$0xff]  ;;  %v273_v14 = vld [vmem:[#allocation7] sm:$0xff]  ;;  %s5922_s15 = smov 88   ;;  %s5923_s16 = smov 120  }
  0x1c   :  { %vm6069_vm9 = vmand %vm6045_vm3, %vm116_vm4  ;;  %v6093_v31 = vsel %vm124_vm12, 0.0, %v5918_v30  ;;  %vm6116_vm2 = vcmp.eq.s32.totalorder %v151_v28, 1  ;;  %199 = vmatpush.msra.mxu0 %v174_v37  ;;  %5481 = vrcp.f32 %v5920_v58  ;;  %297 = vmatpush.msra.mxu1 %v275_v12  ;;  %v5479_v33 = vld [vmem:[%s7470_s6] ss:$0 sm:$0xff]  ;;  %s5924_s7 = smov 80   ;;  %s5925_s3 = smov 104  }
  0x1d   :  { %vm125_vm13 = vmand %vm6069_vm9, %vm6073_vm10  ;;  %s5926_s2 = smov 64   ;;  %s5927_s17 = smov 72   ;;  %vm723_vm9 = vcmask 195584  }
  0x1e   :  { %vm133_vm15 = vmand %vm6029_vm1, %vm6077_vm11  ;;  %200 = vmatpush.msra.mxu0 %v173_v40  ;;  %298 = vmatpush.msra.mxu1 %v274_v13  ;;  %v5480_v40 = vld [vmem:[%s7470_s6 + $0x1] ss:$0 sm:$0xff]  ;;  %s5928_s18 = smov 112   ;;  %s5929_s19 = smov 56  }
  0x1f   :  { %vm134_vm0 = vmand %vm6045_vm3, %vm6077_vm11  ;;  %v6114_v35 = vsel %vm133_vm15, 0.0, %v5918_v30  ;;  %163 = vperm.xlu0 %5318, %v158_v34   ;;  %vm212_vm11 = vcmask 261120   ;;  %s5930_s20 = smov 40   ;;  %s5931_s21 = smov 48  }
  0x20   :  { %v6124_v38 = vsel %vm134_vm0, 0.0, %v5918_v30  ;;  %vm143_vm4 = vmand %vm6029_vm1, %vm6095_vm14  ;;  %201 = vmatpush.msra.mxu0 %v172_v43  ;;  %299 = vmatpush.msra.mxu1 %v273_v14  ;;  %s5932_s8 = smov 16   ;;  %s5933_s0 = smov 24  }
  0x21   :  { %vm144_vm5 = vmand %vm6045_vm3, %vm6095_vm14  ;;  %v6135_v39 = vsel %vm143_vm4, 0.0, %v5918_v30  ;;  %s5934_s25 = smov 32   ;;  %s4995_s6 = sshll.u32 %s7476_s12, 4  ;;  %s4996_s6 = int_to_ptr.hbm [resolvable:$true] %s4995_s6 }
  0x22   :  { %v6141_v41 = vsel %vm144_vm5, 0.0, %v5918_v30  ;;  %vm153_vm6 = vmand %vm6029_vm1, %vm6116_vm2  ;;  %202 = vmatpush.msra.mxu0 %v171_v45  ;;  %vm180_vm1 = vcmask 523264   ;;  %v5482_v59 = vpop.eup %5481 }
  0x23   :  { %vm154_vm7 = vmand %vm6045_vm3, %vm6116_vm2  ;;  %v6152_v42 = vsel %vm153_vm6, 0.0, %v5918_v30  ;;  %v220_v60 = vmul.f32 32.0, %v5482_v59  ;;  %vm224_vm12 = vweird.f32 %v5482_v59  ;;  %vm315_vm6 = vcmask 64512  }
  0x24   :  { %v6158_v44 = vsel %vm154_vm7, 0.0, %v5918_v30  ;;  %vm349_vm7 = vcmask 130048  }
  0x25   :  { %v221_v61 = vsub.f32 1.0, %v220_v60 }
  0x27   :  { %v222_v62 = vmul.f32 %v5482_v59, %v221_v61 }
  0x29   :  { %v223_v63 = vadd.f32 %v5482_v59, %v222_v62 }
  0x2b   :  { %v6172_v0 = vsel %vm224_vm12, %v5482_v59, %v223_v63 }
  0x89   :  { %v161_v46 = vpop.permute.xlu0 %160 }
  0x8a   :  { %vm165_vm3 = vcmp.eq.s32.totalorder %v161_v46, %v6025_v3 }
  0x8b   :  { %v5012_v48 = vsel %vm165_vm3, 1.0, %v5919_v47 }
  0x8c   :  { %5014 = vmatmul.msk.f32.vlgmr.msra.gmra.mxu0 %vm180_vm1, %v5012_v48 }
  0x91   :  { %v164_v49 = vpop.permute.xlu0 %163 }
  0x92   :  { %vm166_vm8 = vcmp.eq.s32.totalorder %v164_v49, %v6025_v3 }
  0x93   :  { %v5013_v50 = vsel %vm166_vm8, 1.0, %v5919_v47 }
  0x94   :  { %5015 = vmatmul.msk.f32.gmra.mxu0 %vm180_vm1, %v5013_v50 }
 0x109   :  { %v204_v52 = vpop.f32.mrf.mxu0 }
 0x10a   :  { %v205_v53 = vadd.f32 %v204_v52, %v179_v51 }
 0x10c   :  { %v213_v54 = vsel %vm212_vm11, %v205_v53, 0.0 }
 0x10d   :  { %214 = vadd.xlane.f32.xlu1 %v213_v54 }
 0x111   :  { %v207_v55 = vpop.f32.mrf.mxu0 }
 0x112   :  { %v208_v56 = vadd.f32 %v207_v55, %v179_v51 }
 0x114   :  { %v216_v57 = vsel %vm212_vm11, %v208_v56, 0.0 }
 0x115   :  { %217 = vadd.xlane.f32.xlu1 %v216_v57 }
 0x180   :  { %v215_v1 = vpop.xlane.xlu1 %214 }
 0x181   :  { %v226_v2 = vmul.f32 %v6172_v0, %v215_v1 }
 0x183   :  { %v228_v3 = vsub.f32 %v205_v53, %v226_v2  ;;  %v6197_v53 = vld [vmem:[%s7475_s11] sm:$0xff] }
 0x184   :  { %v277_v54 = vperm.slane %v6197_v53, 0 }
 0x185   :  { %v230_v4 = vmul.f32 %v228_v3, %v228_v3 }
 0x187   :  { %v232_v5 = vsel %vm212_vm11, %v230_v4, 0.0 }
 0x188   :  { %233 = vadd.xlane.f32.xlu2 %v232_v5  ;;  %v218_v6 = vpop.xlane.xlu1 %217  ;;  %v6225_v5 = vsel %vm125_vm13, 0.0, %v5918_v30 }
 0x189   :  { %v227_v7 = vmul.f32 %v6172_v0, %v218_v6 }
 0x18b   :  { %v229_v8 = vsub.f32 %v208_v56, %v227_v7 }
 0x18d   :  { %v231_v9 = vmul.f32 %v229_v8, %v229_v8 }
 0x18f   :  { %v235_v10 = vsel %vm212_vm11, %v231_v9, 0.0 }
 0x190   :  { %236 = vadd.xlane.f32.xlu2 %v235_v10 }
 0x1fb   :  { %v234_v15 = vpop.xlane.xlu2 %233 }
 0x1fc   :  { %v238_v16 = vmul.f32 %v234_v15, %v6172_v0 }
 0x1fe   :  { %v240_v17 = vadd.f32 1e-05, %v238_v16 }
 0x200   :  { %5483 = vrsqrt.f32 %v240_v17  ;;  %vm248_vm15 = vweird.f32 %v240_v17 }
 0x203   :  { %v237_v18 = vpop.xlane.xlu2 %236 }
 0x204   :  { %v239_v19 = vmul.f32 %v237_v18, %v6172_v0 }
 0x206   :  { %v5484_v20 = vpop.eup %5483  ;;  %v241_v21 = vadd.f32 1e-05, %v239_v19 }
 0x207   :  { %v243_v22 = vmul.f32 %v5484_v20, %v240_v17  ;;  %vm249_vm14 = vweird.f32 %v5484_v20 }
 0x208   :  { %5485 = vrsqrt.f32 %v241_v21  ;;  %vm250_vm0 = vmor %vm248_vm15, %vm249_vm14  ;;  %vm258_vm4 = vweird.f32 %v241_v21  ;;  %vm2326_vm15 = vcmask 785408  }
 0x209   :  { %v244_v23 = vmul.f32 %v5484_v20, %v243_v22 }
 0x20b   :  { %v245_v25 = vmul.f32 0.5, %v244_v23 }
 0x20d   :  { %v246_v27 = vsub.f32 1.5, %v245_v25 }
 0x20e   :  { %v5486_v28 = vpop.eup %5485 }
 0x20f   :  { %v247_v29 = vmul.f32 %v5484_v20, %v246_v27  ;;  %v253_v32 = vmul.f32 %v5486_v28, %v241_v21  ;;  %vm259_vm2 = vweird.f32 %v5486_v28 }
 0x210   :  { %vm260_vm5 = vmor %vm258_vm4, %vm259_vm2 }
 0x211   :  { %v254_v34 = vmul.f32 %v5486_v28, %v253_v32  ;;  %v251_v36 = vsel %vm250_vm0, %v5484_v20, %v247_v29 }
 0x212   :  { %v262_v37 = vmul.f32 %v251_v36, %v228_v3 }
 0x213   :  { %v255_v43 = vmul.f32 0.5, %v254_v34 }
 0x214   :  { %v265_v45 = vmul.f32 %v5479_v33, %v262_v37 }
 0x215   :  { %v256_v46 = vsub.f32 1.5, %v255_v43 }
 0x216   :  { %v6186_v47 = vadd.f32 %v5480_v40, %v265_v45 }
 0x217   :  { %v257_v48 = vmul.f32 %v5486_v28, %v256_v46 }
 0x218   :  { %5016 = vmatmul.msk.f32.vlgmr.msra.gmra.mxu1 %vm212_vm11, %v6186_v47 }
 0x219   :  { %v261_v49 = vsel %vm260_vm5, %v5486_v28, %v257_v48 }
 0x21a   :  { %v263_v50 = vmul.f32 %v261_v49, %v229_v8 }
 0x21c   :  { %v266_v51 = vmul.f32 %v5479_v33, %v263_v50 }
 0x21e   :  { %v6190_v52 = vadd.f32 %v5480_v40, %v266_v51 }
 0x220   :  { %5017 = vmatmul.msk.f32.gmra.mxu1 %vm212_vm11, %v6190_v52 }
 0x295   :  { %v301_v55 = vpop.f32.mrf.mxu1 }
 0x296   :  { %v6200_v56 = vadd.f32 %v301_v55, %v277_v54 }
 0x298   :  { %311 = vrot.lane.b32.xlu1 %v6200_v56, %s5921_s14  ;;  %v307_v59 = vmul.f32 0.35355338, %v6200_v56 }
 0x29d   :  { %v304_v57 = vpop.f32.mrf.mxu1 }
 0x29e   :  { %v305_v58 = vadd.f32 %v304_v57, %v277_v54 }
 0x2a0   :  { %413 = vrot.lane.b32.xlu1 %v305_v58, %s5922_s15  ;;  %313 = vrot.lane.b32.xlu0 %v305_v58, %s5921_s14  ;;  %v308_v60 = vmul.f32 0.35355338, %v305_v58  ;;  %v6230_v9 = vpack.i.bf16 %v6200_v56, %v305_v58 }
 0x2a8   :  { %407 = vrot.lane.b32.xlu1 %v307_v59, %s5923_s16 }
 0x2b0   :  { %509 = vrot.lane.b32.xlu1 %v305_v58, %s5924_s7 }
 0x2b8   :  { %507 = vrot.lane.b32.xlu1 %v6200_v56, %s5924_s7 }
 0x2c0   :  { %599 = vrot.lane.b32.xlu1 %v307_v59, %s5925_s3 }
 0x2c8   :  { %601 = vrot.lane.b32.xlu1 %v308_v60, %s5925_s3 }
 0x30a   :  { %v312_v61 = vpop.permute.xlu1 %311 }
 0x312   :  { %v314_v62 = vpop.permute.xlu0 %313  ;;  %v414_v63 = vpop.permute.xlu1 %413 }
 0x313   :  { %5018 = vmatpush.xpose.msk.msra.mxu2 %vm315_vm6, %v314_v62 }
 0x317   :  { %5019 = vmatpush.xpose.msk.msra.mxu2 %vm315_vm6, %v312_v61 }
 0x31a   :  { %5020 = vmatmul.msk.f32.vlgmr.msra.gmra.mxu2 %vm315_vm6, %v307_v59  ;;  %v408_v1 = vpop.permute.xlu1 %407 }
 0x322   :  { %5021 = vmatmul.msk.f32.gmra.mxu2 %vm315_vm6, %v308_v60  ;;  %v510_v2 = vpop.permute.xlu1 %509 }
 0x323   :  { %5030 = vmatpush.xpose.msk.msrb.mxu2 %vm315_vm6, %v510_v2 }
 0x32a   :  { %v508_v3 = vpop.permute.xlu1 %507 }
 0x32b   :  { %5031 = vmatpush.xpose.msk.msrb.mxu2 %vm315_vm6, %v508_v3 }
 0x332   :  { %v600_v28 = vpop.permute.xlu1 %599 }
 0x33a   :  { %v602_v29 = vpop.permute.xlu1 %601 }
 0x39d   :  { %v343_v4 = vpop.f32.mrf.mxu2 }
 0x39e   :  { %v344_v20 = vadd.f32 %v343_v4, %v6093_v31 }
 0x3a0   :  { %v350_v21 = vsel %vm349_vm7, %v344_v20, -inf }
 0x3a5   :  { %v346_v6 = vpop.f32.mrf.mxu2 }
 0x3a6   :  { %v347_v7 = vadd.f32 %v346_v6, %v6225_v5 }
 0x3a8   :  { %v353_v8 = vsel %vm349_vm7, %v347_v7, -inf }
 0x3a9   :  { %354 = vmax.xlane.f32.xlu2 %v353_v8 }
 0x3c1   :  { %5320 = vrot.lane.b32.xlu2 %v6230_v9, %s5926_s2 }
 0x3c9   :  { %411 = vrot.lane.b32.xlu2 %v6200_v56, %s5922_s15 }
 0x3d1   :  { %409 = vrot.lane.b32.xlu2 %v308_v60, %s5923_s16 }
 0x3d9   :  { %605 = vrot.lane.b32.xlu2 %v305_v58, %s5927_s17 }
 0x3e1   :  { %503 = vrot.lane.b32.xlu2 %v307_v59, %s5928_s18 }
 0x3e9   :  { %505 = vrot.lane.b32.xlu2 %v308_v60, %s5928_s18 }
 0x41c   :  { %v355_v24 = vpop.xlane.xlu2 %354 }
 0x41d   :  { %v357_v26 = vsub.f32 %v347_v7, %v355_v24 }
 0x41f   :  { %v360_v30 = vmul.f32 1.442695, %v357_v26 }
 0x421   :  { %5487 = vpow2.f32 %v360_v30 }
 0x424   :  { %v5321_v10 = vpop.permute.xlu2 %5320 }
 0x425   :  { %v5322_v11 = vunpack.i.l.bf16 %v5321_v10  ;;  %v5323_v13 = vunpack.i.h.bf16 %v5321_v10 }
 0x427   :  { %v5488_v12 = vpop.eup %5487  ;;  %398 = vmatpush.msrb.mxu1 %v5322_v11  ;;  %5291 = vmatpush.msra.mxu3 %v5322_v11 }
 0x428   :  { %v365_v14 = vsel %vm349_vm7, %v5488_v12, 0.0 }
 0x429   :  { %366 = vadd.xlane.f32.xlu0 %v365_v14  ;;  %399 = vmatpush.msrb.mxu1 %v5323_v13 }
 0x42a   :  { %5292 = vmatpush.msra.mxu3 %v5323_v13 }
 0x42c   :  { %5024 = vmatpush.xpose.msk.msrb.mxu3 %vm315_vm6, %v414_v63  ;;  %v412_v15 = vpop.permute.xlu2 %411 }
 0x430   :  { %5025 = vmatpush.xpose.msk.msrb.mxu3 %vm315_vm6, %v412_v15 }
 0x434   :  { %v410_v16 = vpop.permute.xlu2 %409 }
 0x43c   :  { %v606_v17 = vpop.permute.xlu2 %605 }
 0x43d   :  { %603 = vrot.lane.b32.xlu0 %v6200_v56, %s5927_s17 }
 0x444   :  { %v504_v18 = vpop.permute.xlu2 %503 }
 0x445   :  { %5032 = vmatmul.msk.f32.vlgmr.msrb.gmra.mxu2 %vm315_vm6, %v504_v18 }
 0x44c   :  { %v506_v19 = vpop.permute.xlu2 %505 }
 0x44d   :  { %5033 = vmatmul.msk.f32.gmra.mxu2 %vm315_vm6, %v506_v19 }
 0x467   :  { %351 = vmax.xlane.f32.xlu0 %v350_v21 }
 0x49c   :  { %v367_v22 = vpop.xlane.xlu0 %366 }
 0x49d   :  { %5489 = vrcp.f32 %v367_v22 }
 0x4a3   :  { %v5490_v23 = vpop.eup %5489 }
 0x4a4   :  { %v371_v25 = vmul.f32 %v5490_v23, %v5488_v12 }
 0x4a6   :  { %5023 = vmatmul.msk.f32.vlgmr.msra.gmra.mxu3 %vm349_vm7, %v371_v25 }
 0x4a7   :  { %5036 = vmatpush.xpose.msk.msra.mxu3 %vm315_vm6, %v606_v17 }
 0x4ae   :  { %5026 = vmatmul.msk.f32.vlgmr.msrb.gmra.mxu3 %vm315_vm6, %v408_v1 }
 0x4af   :  { %v604_v27 = vpop.permute.xlu0 %603 }
 0x4b0   :  { %5037 = vmatpush.xpose.msk.msra.mxu3 %vm315_vm6, %v604_v27 }
 0x4b6   :  { %5027 = vmatmul.msk.f32.gmra.mxu3 %vm315_vm6, %v410_v16 }
 0x4be   :  { %5038 = vmatmul.msk.f32.vlgmr.msra.gmra.mxu3 %vm315_vm6, %v600_v28 }
 0x4c6   :  { %5039 = vmatmul.msk.f32.gmra.mxu3 %vm315_vm6, %v602_v29 }
 0x4c8   :  { %v536_v32 = vpop.f32.mrf.mxu2 }
 0x4c9   :  { %v537_v33 = vadd.f32 %v536_v32, %v6093_v31 }
 0x4cb   :  { %v542_v34 = vsel %vm349_vm7, %v537_v33, -inf }
 0x4cc   :  { %543 = vmax.xlane.f32.xlu0 %v542_v34 }
 0x4d0   :  { %v539_v51 = vpop.f32.mrf.mxu2 }
 0x4d1   :  { %v540_v56 = vadd.f32 %v539_v51, %v6225_v5 }
 0x4d3   :  { %v545_v61 = vsel %vm349_vm7, %v540_v56, -inf }
 0x4da   :  { %v352_v45 = vpop.xlane.xlu0 %351 }
 0x4db   :  { %v356_v49 = vsub.f32 %v344_v20, %v352_v45 }
 0x4dd   :  { %v358_v54 = vmul.f32 1.442695, %v356_v49 }
 0x4df   :  { %5491 = vpow2.f32 %v358_v54 }
 0x4e5   :  { %v5492_v63 = vpop.eup %5491 }
 0x4e6   :  { %v362_v7 = vsel %vm349_vm7, %v5492_v63, 0.0 }
 0x529   :  { %v6258_v36 = vpop.f32.mrf.mxu3 }
 0x531   :  { %v440_v37 = vpop.f32.mrf.mxu3 }
 0x532   :  { %v441_v40 = vadd.f32 %v440_v37, %v6093_v31 }
 0x534   :  { %v446_v43 = vsel %vm349_vm7, %v441_v40, -inf }
 0x535   :  { %447 = vmax.xlane.f32.xlu2 %v446_v43 }
 0x539   :  { %v443_v46 = vpop.f32.mrf.mxu3 }
 0x53a   :  { %v444_v48 = vadd.f32 %v443_v46, %v6225_v5 }
 0x53c   :  { %v449_v50 = vsel %vm349_vm7, %v444_v48, -inf }
 0x53d   :  { %450 = vmax.xlane.f32.xlu1 %v449_v50 }
 0x53f   :  { %v544_v55 = vpop.xlane.xlu0 %543 }
 0x540   :  { %v548_v57 = vsub.f32 %v537_v33, %v544_v55 }
 0x541   :  { %v632_v58 = vpop.f32.mrf.mxu3 }
 0x542   :  { %v550_v59 = vmul.f32 1.442695, %v548_v57  ;;  %v633_v60 = vadd.f32 %v632_v58, %v6093_v31 }
 0x544   :  { %5493 = vpow2.f32 %v550_v59  ;;  %v638_v62 = vsel %vm349_vm7, %v633_v60, -inf }
 0x545   :  { %546 = vmax.xlane.f32.xlu1 %v545_v61  ;;  %639 = vmax.xlane.f32.xlu2 %v638_v62 }
 0x549   :  { %v635_v1 = vpop.f32.mrf.mxu3 }
 0x54a   :  { %v6268_v2 = vpop.eup %5493  ;;  %v636_v3 = vadd.f32 %v635_v1, %v6225_v5 }
 0x54b   :  { %v554_v4 = vsel %vm349_vm7, %v6268_v2, 0.0 }
 0x54c   :  { %v641_v6 = vsel %vm349_vm7, %v636_v3, -inf }
 0x54d   :  { %642 = vmax.xlane.f32.xlu0 %v641_v6  ;;  %363 = vadd.xlane.f32.xlu2 %v362_v7 }
 0x54e   :  { %555 = vadd.xlane.f32.xlu1 %v554_v4 }
 0x561   :  { %5325 = vrot.lane.b32.xlu0 %v6230_v9, %s5929_s19 }
 0x569   :  { %5335 = vrot.lane.b32.xlu0 %v6230_v9, %s5930_s20 }
 0x5a8   :  { %v448_v8 = vpop.xlane.xlu2 %447 }
 0x5a9   :  { %v452_v24 = vsub.f32 %v441_v40, %v448_v8 }
 0x5ab   :  { %v454_v26 = vmul.f32 1.442695, %v452_v24 }
 0x5ad   :  { %5495 = vpow2.f32 %v454_v26 }
 0x5b0   :  { %v451_v30 = vpop.xlane.xlu1 %450 }
 0x5b1   :  { %v453_v15 = vsub.f32 %v444_v48, %v451_v30 }
 0x5b3   :  { %v5496_v10 = vpop.eup %5495  ;;  %v456_v17 = vmul.f32 1.442695, %v453_v15 }
 0x5b4   :  { %v458_v11 = vsel %vm349_vm7, %v5496_v10, 0.0 }
 0x5b5   :  { %459 = vadd.xlane.f32.xlu1 %v458_v11 }
 0x5b8   :  { %v547_v12 = vpop.xlane.xlu1 %546  ;;  %v640_v13 = vpop.xlane.xlu2 %639 }
 0x5b9   :  { %v549_v14 = vsub.f32 %v540_v56, %v547_v12  ;;  %v644_v20 = vsub.f32 %v633_v60, %v640_v13 }
 0x5bb   :  { %v552_v16 = vmul.f32 1.442695, %v549_v14  ;;  %v646_v23 = vmul.f32 1.442695, %v644_v20  ;;  %v726_v20 = vld [vmem:[#allocation5] sm:$0xff] }
 0x5bd   :  { %5497 = vpow2.f32 %v552_v16 }
 0x5c0   :  { %v364_v18 = vpop.xlane.xlu2 %363  ;;  %v643_v25 = vpop.xlane.xlu0 %642 }
 0x5c1   :  { %5499 = vrcp.f32 %v364_v18  ;;  %v645_v29 = vsub.f32 %v636_v3, %v643_v25  ;;  %v728_v18 = vld [vmem:[#allocation5 + $0x10] sm:$0xff] }
 0x5c2   :  { %5501 = vpow2.f32 %v456_v17  ;;  %v729_v17 = vld [vmem:[#allocation5 + $0x18] sm:$0xff] }
 0x5c3   :  { %v5498_v19 = vpop.eup %5497  ;;  %5503 = vpow2.f32 %v646_v23  ;;  %v648_v33 = vmul.f32 1.442695, %v645_v29  ;;  %749 = vmatpush.msra.mxu2 %v729_v17 }
 0x5c4   :  { %v557_v21 = vsel %vm349_vm7, %v5498_v19, 0.0 }
 0x5c5   :  { %558 = vadd.xlane.f32.xlu2 %v557_v21  ;;  %5505 = vpow2.f32 %v648_v33  ;;  %750 = vmatpush.msra.mxu2 %v728_v18 }
 0x5c7   :  { %v5500_v22 = vpop.eup %5499 }
 0x5c8   :  { %v370_v27 = vmul.f32 %v5500_v22, %v5492_v63  ;;  %v5502_v28 = vpop.eup %5501 }
 0x5c9   :  { %v461_v32 = vsel %vm349_vm7, %v5502_v28, 0.0  ;;  %v5504_v34 = vpop.eup %5503 }
 0x5ca   :  { %5022 = vmatmul.msk.f32.vlgmr.msrb.gmra.mxu1 %vm349_vm7, %v370_v27  ;;  %v650_v43 = vsel %vm349_vm7, %v5504_v34, 0.0 }
 0x5cb   :  { %v5506_v46 = vpop.eup %5505 }
 0x5cc   :  { %v653_v50 = vsel %vm349_vm7, %v5506_v46, 0.0 }
 0x5cd   :  { %462 = vadd.xlane.f32.xlu2 %v461_v32 }
 0x5ce   :  { %5330 = vrot.lane.b32.xlu1 %v6230_v9, %s5931_s21  ;;  %v556_v9 = vpop.xlane.xlu1 %555 }
 0x5d3   :  { %v5326_v37 = vpop.permute.xlu0 %5325 }
 0x5d4   :  { %v5327_v40 = vunpack.i.l.bf16 %v5326_v37  ;;  %v5328_v45 = vunpack.i.h.bf16 %v5326_v37 }
 0x5d5   :  { %651 = vadd.xlane.f32.xlu2 %v650_v43  ;;  %v730_v43 = vperm.slane %v6197_v53, 1 }
 0x5d6   :  { %494 = vmatpush.msra.mxu1 %v5327_v40 }
 0x5d8   :  { %495 = vmatpush.msra.mxu1 %v5328_v45 }
 0x5db   :  { %v5336_v48 = vpop.permute.xlu0 %5335 }
 0x5dc   :  { %v5337_v49 = vunpack.i.l.bf16 %v5336_v48  ;;  %v5338_v51 = vunpack.i.h.bf16 %v5336_v48 }
 0x5dd   :  { %654 = vadd.xlane.f32.xlu2 %v653_v50 }
 0x5de   :  { %686 = vmatpush.msrb.mxu1 %v5337_v49 }
 0x5e0   :  { %687 = vmatpush.msrb.mxu1 %v5338_v51 }
 0x628   :  { %v460_v54 = vpop.xlane.xlu1 %459 }
 0x629   :  { %5507 = vrcp.f32 %v460_v54  ;;  %v852_v54 = vld [vmem:[#allocation8 + $0x18] sm:$0xff] }
 0x62a   :  { %5509 = vrcp.f32 %v556_v9  ;;  %872 = vmatpush.msrb.mxu3 %v852_v54 }
 0x62f   :  { %v5508_v55 = vpop.eup %5507 }
 0x630   :  { %v466_v56 = vmul.f32 %v5508_v55, %v5496_v10  ;;  %v5510_v60 = vpop.eup %5509  ;;  %v851_v55 = vld [vmem:[#allocation8 + $0x10] sm:$0xff] }
 0x631   :  { %v562_v63 = vmul.f32 %v5510_v60, %v6268_v2  ;;  %873 = vmatpush.msrb.mxu3 %v851_v55 }
 0x632   :  { %5028 = vmatmul.msk.f32.vlgmr.msra.gmra.mxu1 %vm349_vm7, %v466_v56  ;;  %v850_v56 = vld [vmem:[#allocation8 + $0x8] sm:$0xff] }
 0x633   :  { %874 = vmatpush.msrb.mxu3 %v850_v56  ;;  %v817_v56 = vperm.slane %v6197_v53, 4 }
 0x638   :  { %v559_v57 = vpop.xlane.xlu2 %558 }
 0x640   :  { %v463_v58 = vpop.xlane.xlu2 %462  ;;  %v5331_v59 = vpop.permute.xlu1 %5330 }
 0x641   :  { %5511 = vrcp.f32 %v463_v58  ;;  %v5332_v61 = vunpack.i.l.bf16 %v5331_v59  ;;  %v5333_v62 = vunpack.i.h.bf16 %v5331_v59  ;;  %v847_v58 = vld [vmem:[#allocation2] sm:$0xff] }
 0x642   :  { %5513 = vrcp.f32 %v559_v57  ;;  %v849_v57 = vld [vmem:[#allocation8] sm:$0xff] }
 0x643   :  { %590 = vmatpush.msrb.mxu0 %v5332_v61  ;;  %875 = vmatpush.msrb.mxu3 %v849_v57 }
 0x644   :  { %5046 = vmatmul.msk.f32.vlgmr.msrb.gmra.mxu3 %vm212_vm11, %v847_v58 }
 0x645   :  { %591 = vmatpush.msrb.mxu0 %v5333_v62 }
 0x646   :  { %5034 = vmatmul.msk.f32.vlgmr.msrb.gmra.mxu0 %vm349_vm7, %v562_v63 }
 0x647   :  { %v5512_v1 = vpop.eup %5511  ;;  %v401_v10 = vpop.f32.mrf.mxu1 }
 0x648   :  { %v652_v3 = vpop.xlane.xlu2 %651  ;;  %v467_v4 = vmul.f32 %v5512_v1, %v5502_v28  ;;  %v5514_v6 = vpop.eup %5513 }
 0x649   :  { %5515 = vrcp.f32 %v652_v3  ;;  %v563_v7 = vmul.f32 %v5514_v6, %v5498_v19  ;;  %v727_v19 = vld [vmem:[#allocation5 + $0x8] sm:$0xff] }
 0x64a   :  { %5029 = vmatmul.msk.f32.gmra.mxu1 %vm349_vm7, %v467_v4  ;;  %751 = vmatpush.msra.mxu2 %v727_v19 }
 0x64c   :  { %752 = vmatpush.msra.mxu2 %v726_v20 }
 0x64e   :  { %5035 = vmatmul.msk.f32.gmra.mxu0 %vm349_vm7, %v563_v7  ;;  %v816_v7 = vld [vmem:[#allocation7 + $0x38] sm:$0xff] }
 0x64f   :  { %v5516_v8 = vpop.eup %5515  ;;  %836 = vmatpush.msra.mxu0 %v816_v7 }
 0x650   :  { %v658_v24 = vmul.f32 %v5516_v8, %v5504_v34  ;;  %v655_v26 = vpop.xlane.xlu2 %654  ;;  %v815_v8 = vld [vmem:[#allocation7 + $0x30] sm:$0xff] }
 0x651   :  { %5517 = vrcp.f32 %v655_v26  ;;  %837 = vmatpush.msra.mxu0 %v815_v8  ;;  %v813_v26 = vld [vmem:[#allocation7 + $0x20] sm:$0xff] }
 0x652   :  { %5040 = vmatmul.msk.f32.vlgmr.msrb.gmra.mxu1 %vm349_vm7, %v658_v24  ;;  %v814_v24 = vld [vmem:[#allocation7 + $0x28] sm:$0xff] }
 0x653   :  { %838 = vmatpush.msra.mxu0 %v814_v24 }
 0x655   :  { %839 = vmatpush.msra.mxu0 %v813_v26 }
 0x657   :  { %v5518_v2 = vpop.eup %5517 }
 0x658   :  { %v659_v30 = vmul.f32 %v5518_v2, %v5506_v46 }
 0x65a   :  { %5041 = vmatmul.msk.f32.gmra.mxu1 %vm349_vm7, %v659_v30 }
 0x6af   :  { %v497_v11 = vpop.f32.mrf.mxu1 }
 0x6b0   :  { %697 = vrot.lane.b32.xlu0 %v497_v11, %s5913_s30  ;;  %v853_v11 = vperm.slane %v6197_v53, 5 }
 0x6c3   :  { %v593_v12 = vpop.f32.mrf.mxu0 }
 0x6c4   :  { %705 = vrot.lane.b32.xlu2 %v593_v12, %s5932_s8 }
 0x6c7   :  { %v500_v13 = vpop.f32.mrf.mxu1  ;;  %v877_v12 = vpop.f32.mrf.mxu3 }
 0x6c8   :  { %699 = vrot.lane.b32.xlu1 %v500_v13, %s5913_s30  ;;  %v6322_v13 = vadd.f32 %v877_v12, %v853_v11 }
 0x6cb   :  { %v596_v15 = vpop.f32.mrf.mxu0 }
 0x6cf   :  { %v689_v14 = vpop.f32.mrf.mxu1 }
 0x6d0   :  { %713 = vrot.lane.b32.xlu0 %v689_v14, %s5933_s0 }
 0x6d7   :  { %v692_v16 = vpop.f32.mrf.mxu1 }
 0x6d8   :  { %707 = vrot.lane.b32.xlu0 %v596_v15, %s5932_s8  ;;  %715 = vrot.lane.b32.xlu1 %v692_v16, %s5933_s0 }
 0x71e   :  { %v706_v23 = vpop.permute.xlu2 %705 }
 0x722   :  { %v698_v21 = vpop.permute.xlu0 %697 }
 0x723   :  { %v719_v22 = vsel %vm315_vm6, %v401_v10, %v698_v21 }
 0x724   :  { %v721_v27 = vsel %vm349_vm7, %v719_v22, %v706_v23 }
 0x73a   :  { %v700_v25 = vpop.permute.xlu1 %699 }
 0x73b   :  { %v720_v32 = vsel %vm315_vm6, %v6258_v36, %v700_v25 }
 0x742   :  { %v714_v28 = vpop.permute.xlu0 %713 }
 0x743   :  { %v724_v29 = vsel %vm723_vm9, %v721_v27, %v714_v28  ;;  %v806_v28 = vperm.slane %v6197_v53, 2 }
 0x744   :  { %5042 = vmatmul.msk.f32.vlgmr.msra.gmra.mxu2 %vm212_vm11, %v724_v29 }
 0x74a   :  { %v708_v33 = vpop.permute.xlu0 %707  ;;  %v716_v34 = vpop.permute.xlu1 %715 }
 0x74b   :  { %v722_v37 = vsel %vm349_vm7, %v720_v32, %v708_v33 }
 0x74c   :  { %v725_v40 = vsel %vm723_vm9, %v722_v37, %v716_v34  ;;  %v809_v37 = vperm.slane %v6197_v53, 3 }
 0x74d   :  { %5043 = vmatmul.msk.f32.gmra.mxu2 %vm212_vm11, %v725_v40 }
 0x7c7   :  { %v754_v45 = vpop.f32.mrf.mxu2 }
 0x7c8   :  { %v755_v46 = vadd.f32 %v754_v45, %v730_v43 }
 0x7ca   :  { %v760_v48 = vadd.f32 %v755_v46, %v6186_v47  ;;  %v848_v47 = vld [vmem:[#allocation2 + $0x8] sm:$0xff] }
 0x7cb   :  { %5047 = vmatmul.msk.f32.gmra.mxu3 %vm212_vm11, %v848_v47 }
 0x7cc   :  { %v762_v49 = vsel %vm212_vm11, %v760_v48, 0.0 }
 0x7cd   :  { %763 = vadd.xlane.f32.xlu0 %v762_v49 }
 0x7d0   :  { %v757_v50 = vpop.f32.mrf.mxu2 }
 0x7d1   :  { %v758_v51 = vadd.f32 %v757_v50, %v730_v43 }
 0x7d3   :  { %v761_v36 = vadd.f32 %v758_v51, %v6190_v52 }
 0x7d5   :  { %v765_v9 = vsel %vm212_vm11, %v761_v36, 0.0 }
 0x7d6   :  { %766 = vadd.xlane.f32.xlu1 %v765_v9 }
 0x840   :  { %v764_v59 = vpop.xlane.xlu0 %763 }
 0x841   :  { %v768_v60 = vmul.f32 %v764_v59, %v6172_v0 }
 0x843   :  { %v770_v52 = vsub.f32 %v760_v48, %v768_v60 }
 0x845   :  { %v772_v61 = vmul.f32 %v770_v52, %v770_v52 }
 0x847   :  { %v774_v62 = vsel %vm212_vm11, %v772_v61, 0.0 }
 0x848   :  { %775 = vadd.xlane.f32.xlu2 %v774_v62 }
 0x849   :  { %v767_v63 = vpop.xlane.xlu1 %766 }
 0x84a   :  { %v769_v1 = vmul.f32 %v767_v63, %v6172_v0 }
 0x84c   :  { %v771_v3 = vsub.f32 %v761_v36, %v769_v1 }
 0x84e   :  { %v773_v4 = vmul.f32 %v771_v3, %v771_v3  ;;  %v880_v20 = vpop.f32.mrf.mxu3 }
 0x84f   :  { %v6327_v21 = vadd.f32 %v880_v20, %v853_v11 }
 0x850   :  { %v777_v6 = vsel %vm212_vm11, %v773_v4, 0.0 }
 0x851   :  { %778 = vadd.xlane.f32.xlu0 %v777_v6  ;;  %983 = vrot.lane.b32.xlu1 %v6327_v21, %s5923_s16 }
 0x852   :  { %5048 = vmatpush.xpose.msk.msra.mxu1 %vm315_vm6, %v6327_v21 }
 0x856   :  { %5049 = vmatpush.xpose.msk.msra.mxu1 %vm315_vm6, %v6322_v13 }
 0x859   :  { %1077 = vrot.lane.b32.xlu1 %v6322_v13, %s5928_s18 }
 0x860   :  { %1079 = vrot.lane.b32.xlu2 %v6327_v21, %s5928_s18 }
 0x865   :  { %981 = vrot.lane.b32.xlu0 %v6322_v13, %s5923_s16 }
 0x8bb   :  { %v776_v2 = vpop.xlane.xlu2 %775 }
 0x8bc   :  { %v780_v30 = vmul.f32 %v776_v2, %v6172_v0 }
 0x8be   :  { %v782_v10 = vadd.f32 1e-05, %v780_v30 }
 0x8c0   :  { %5519 = vrsqrt.f32 %v782_v10  ;;  %vm790_vm13 = vweird.f32 %v782_v10 }
 0x8c3   :  { %v1080_v9 = vpop.permute.xlu2 %1079  ;;  %v984_v54 = vpop.permute.xlu1 %983 }
 0x8c4   :  { %v779_v14 = vpop.xlane.xlu0 %778  ;;  %5060 = vmatpush.xpose.msk.msrb.mxu1 %vm315_vm6, %v1080_v9  ;;  %5054 = vmatpush.xpose.msk.msrb.mxu0 %vm315_vm6, %v984_v54 }
 0x8c5   :  { %v781_v15 = vmul.f32 %v779_v14, %v6172_v0 }
 0x8c6   :  { %v5520_v16 = vpop.eup %5519 }
 0x8c7   :  { %v785_v17 = vmul.f32 %v5520_v16, %v782_v10  ;;  %v783_v18 = vadd.f32 1e-05, %v781_v15  ;;  %vm791_vm10 = vweird.f32 %v5520_v16 }
 0x8c8   :  { %vm792_vm3 = vmor %vm790_vm13, %vm791_vm10 }
 0x8c9   :  { %v786_v19 = vmul.f32 %v5520_v16, %v785_v17  ;;  %5521 = vrsqrt.f32 %v783_v18  ;;  %vm800_vm12 = vweird.f32 %v783_v18 }
 0x8cb   :  { %v787_v22 = vmul.f32 0.5, %v786_v19  ;;  %v1078_v57 = vpop.permute.xlu1 %1077 }
 0x8cc   :  { %5061 = vmatpush.xpose.msk.msrb.mxu1 %vm315_vm6, %v1078_v57 }
 0x8cd   :  { %v788_v23 = vsub.f32 1.5, %v787_v22 }
 0x8cf   :  { %v5522_v25 = vpop.eup %5521  ;;  %v789_v27 = vmul.f32 %v5520_v16, %v788_v23 }
 0x8d0   :  { %v795_v29 = vmul.f32 %v5522_v25, %v783_v18  ;;  %vm801_vm8 = vweird.f32 %v5522_v25 }
 0x8d1   :  { %v793_v32 = vsel %vm792_vm3, %v5520_v16, %v789_v27  ;;  %vm802_vm14 = vmor %vm800_vm12, %vm801_vm8 }
 0x8d2   :  { %v804_v33 = vmul.f32 %v793_v32, %v770_v52  ;;  %v796_v34 = vmul.f32 %v5522_v25, %v795_v29 }
 0x8d4   :  { %v807_v40 = vmul.f32 %v806_v28, %v804_v33  ;;  %v797_v43 = vmul.f32 0.5, %v796_v34 }
 0x8d6   :  { %v798_v45 = vsub.f32 1.5, %v797_v43  ;;  %v6341_v46 = vadd.f32 %v809_v37, %v807_v40 }
 0x8d7   :  { %v982_v55 = vpop.permute.xlu0 %981 }
 0x8d8   :  { %v799_v48 = vmul.f32 %v5522_v25, %v798_v45  ;;  %5044 = vmatmul.msk.f32.vlgmr.msra.gmra.mxu0 %vm212_vm11, %v6341_v46 }
 0x8d9   :  { %5055 = vmatpush.xpose.msk.msrb.mxu0 %vm315_vm6, %v982_v55  ;;  %v5344_v55 = vpack.i.bf16 %v6322_v13, %v6327_v21 }
 0x8da   :  { %v803_v49 = vsel %vm802_vm14, %v5522_v25, %v799_v48 }
 0x8db   :  { %v805_v50 = vmul.f32 %v803_v49, %v771_v3 }
 0x8dd   :  { %v808_v51 = vmul.f32 %v806_v28, %v805_v50 }
 0x8df   :  { %v6345_v36 = vadd.f32 %v809_v37, %v808_v51 }
 0x8e1   :  { %5045 = vmatmul.msk.f32.gmra.mxu0 %vm212_vm11, %v6345_v36 }
 0x955   :  { %v841_v58 = vpop.f32.mrf.mxu0 }
 0x956   :  { %v842_v47 = vadd.f32 %v841_v58, %v817_v56 }
 0x958   :  { %v6354_v59 = vmul.f32 0.35355338, %v842_v47 }
 0x95a   :  { %1073 = vrot.lane.b32.xlu2 %v6354_v59, %s5928_s18  ;;  %5050 = vmatmul.msk.f32.vlgmr.msra.gmra.mxu1 %vm315_vm6, %v6354_v59 }
 0x95b   :  { %977 = vrot.lane.b32.xlu0 %v6354_v59, %s5923_s16 }
 0x95e   :  { %v844_v60 = vpop.f32.mrf.mxu0 }
 0x95f   :  { %v845_v52 = vadd.f32 %v844_v60, %v817_v56 }
 0x961   :  { %v6362_v61 = vmul.f32 0.35355338, %v845_v52 }
 0x962   :  { %1175 = vrot.lane.b32.xlu2 %v6327_v21, %s5925_s3 }
 0x963   :  { %1075 = vrot.lane.b32.xlu0 %v6362_v61, %s5928_s18  ;;  %979 = vrot.lane.b32.xlu1 %v6362_v61, %s5923_s16 }
 0x964   :  { %5051 = vmatmul.msk.f32.gmra.mxu1 %vm315_vm6, %v6362_v61 }
 0x96a   :  { %1171 = vrot.lane.b32.xlu2 %v6362_v61, %s5925_s3 }
 0x96b   :  { %1169 = vrot.lane.b32.xlu0 %v6354_v59, %s5925_s3  ;;  %1173 = vrot.lane.b32.xlu1 %v6322_v13, %s5925_s3 }
 0x9b4   :  { %v1074_v53 = vpop.permute.xlu2 %1073 }
 0x9b5   :  { %5062 = vmatmul.msk.f32.vlgmr.msrb.gmra.mxu1 %vm315_vm6, %v1074_v53 }
 0x9bc   :  { %v1176_v62 = vpop.permute.xlu2 %1175 }
 0x9bd   :  { %5066 = vmatpush.xpose.msk.msra.mxu0 %vm315_vm6, %v1176_v62 }
 0x9c4   :  { %v1172_v10 = vpop.permute.xlu2 %1171 }
 0x9cd   :  { %v978_v63 = vpop.permute.xlu0 %977 }
 0x9ce   :  { %5056 = vmatmul.msk.f32.vlgmr.msrb.gmra.mxu0 %vm315_vm6, %v978_v63 }
 0x9d5   :  { %v1076_v1 = vpop.permute.xlu0 %1075  ;;  %v980_v3 = vpop.permute.xlu1 %979 }
 0x9d6   :  { %5057 = vmatmul.msk.f32.gmra.mxu0 %vm315_vm6, %v980_v3  ;;  %5063 = vmatmul.msk.f32.gmra.mxu1 %vm315_vm6, %v1076_v1 }
 0x9d7   :  { %v914_v4 = vpop.f32.mrf.mxu1 }
 0x9d8   :  { %v915_v6 = vadd.f32 %v914_v4, %v6114_v35 }
 0x9da   :  { %v920_v7 = vsel %vm349_vm7, %v915_v6, -inf }
 0x9db   :  { %921 = vmax.xlane.f32.xlu1 %v920_v7 }
 0x9dd   :  { %v1174_v8 = vpop.permute.xlu1 %1173  ;;  %v1170_v24 = vpop.permute.xlu0 %1169 }
 0x9de   :  { %5067 = vmatpush.xpose.msk.msra.mxu0 %vm315_vm6, %v1174_v8 }
 0x9e1   :  { %v917_v26 = vpop.f32.mrf.mxu1  ;;  %5068 = vmatmul.msk.f32.vlgmr.msra.gmra.mxu0 %vm315_vm6, %v1170_v24 }
 0x9e2   :  { %v918_v2 = vadd.f32 %v917_v26, %v6124_v38 }
 0x9e4   :  { %v923_v30 = vsel %vm349_vm7, %v918_v2, -inf }
 0x9e5   :  { %924 = vmax.xlane.f32.xlu0 %v923_v30 }
 0x9e9   :  { %5069 = vmatmul.msk.f32.gmra.mxu0 %vm315_vm6, %v1172_v10 }
 0xa32   :  { %v1106_v11 = vpop.f32.mrf.mxu1 }
 0xa33   :  { %v1107_v12 = vadd.f32 %v1106_v11, %v6114_v35 }
 0xa35   :  { %v1112_v14 = vsel %vm349_vm7, %v1107_v12, -inf }
 0xa36   :  { %1113 = vmax.xlane.f32.xlu1 %v1112_v14 }
 0xa4b   :  { %v1010_v15 = vpop.f32.mrf.mxu0 }
 0xa4c   :  { %v1011_v16 = vadd.f32 %v1010_v15, %v6114_v35 }
 0xa4e   :  { %v1016_v17 = vsel %vm349_vm7, %v1011_v16, -inf  ;;  %v922_v18 = vpop.xlane.xlu1 %921 }
 0xa4f   :  { %1017 = vmax.xlane.f32.xlu2 %v1016_v17  ;;  %v926_v19 = vsub.f32 %v915_v6, %v922_v18 }
 0xa51   :  { %v928_v20 = vmul.f32 1.442695, %v926_v19 }
 0xa53   :  { %v1013_v22 = vpop.f32.mrf.mxu0  ;;  %v1109_v23 = vpop.f32.mrf.mxu1  ;;  %5523 = vpow2.f32 %v928_v20 }
 0xa54   :  { %v1014_v25 = vadd.f32 %v1013_v22, %v6124_v38  ;;  %v1110_v27 = vadd.f32 %v1109_v23, %v6124_v38 }
 0xa56   :  { %v1019_v28 = vsel %vm349_vm7, %v1014_v25, -inf  ;;  %v1115_v29 = vsel %vm349_vm7, %v1110_v27, -inf }
 0xa57   :  { %1020 = vmax.xlane.f32.xlu2 %v1019_v28  ;;  %1116 = vmax.xlane.f32.xlu0 %v1115_v29 }
 0xa58   :  { %v925_v32 = vpop.xlane.xlu0 %924 }
 0xa59   :  { %v927_v33 = vsub.f32 %v918_v2, %v925_v32  ;;  %v6398_v34 = vpop.eup %5523 }
 0xa5a   :  { %v932_v43 = vsel %vm349_vm7, %v6398_v34, 0.0 }
 0xa5b   :  { %v930_v37 = vmul.f32 1.442695, %v927_v33 }
 0xa5d   :  { %5525 = vpow2.f32 %v930_v37 }
 0xa5e   :  { %v1202_v40 = vpop.f32.mrf.mxu0 }
 0xa5f   :  { %v1203_v45 = vadd.f32 %v1202_v40, %v6114_v35  ;;  %933 = vadd.xlane.f32.xlu0 %v932_v43 }
 0xa61   :  { %v1208_v48 = vsel %vm349_vm7, %v1203_v45, -inf }
 0xa62   :  { %1209 = vmax.xlane.f32.xlu1 %v1208_v48 }
 0xa63   :  { %v6404_v49 = vpop.eup %5525 }
 0xa64   :  { %v935_v50 = vsel %vm349_vm7, %v6404_v49, 0.0 }
 0xa65   :  { %936 = vadd.xlane.f32.xlu2 %v935_v50 }
 0xa66   :  { %v1205_v51 = vpop.f32.mrf.mxu0 }
 0xa67   :  { %v1206_v9 = vadd.f32 %v1205_v51, %v6124_v38 }
 0xa69   :  { %v1211_v54 = vsel %vm349_vm7, %v1206_v9, -inf }
 0xa6d   :  { %1212 = vmax.xlane.f32.xlu2 %v1211_v54  ;;  %v1337_v54 = vld [vmem:[#allocation8 + $0x38] sm:$0xff] }
 0xa73   :  { %5345 = vrot.lane.b32.xlu0 %v5344_v55, %s5922_s15 }
 0xa7b   :  { %5340 = vrot.lane.b32.xlu1 %v5344_v55, %s5921_s14 }
 0xaa9   :  { %v1114_v56 = vpop.xlane.xlu1 %1113 }
 0xaaa   :  { %v1118_v57 = vsub.f32 %v1107_v12, %v1114_v56  ;;  %v1334_v56 = vld [vmem:[#allocation8 + $0x20] sm:$0xff] }
 0xaac   :  { %v1120_v58 = vmul.f32 1.442695, %v1118_v57 }
 0xaae   :  { %5527 = vpow2.f32 %v1120_v58 }
 0xab4   :  { %v6414_v47 = vpop.eup %5527 }
 0xab5   :  { %v1124_v60 = vsel %vm349_vm7, %v6414_v47, 0.0 }
 0xab6   :  { %1125 = vadd.xlane.f32.xlu2 %v1124_v60 }
 0xac2   :  { %v1018_v52 = vpop.xlane.xlu2 %1017 }
 0xac3   :  { %v1022_v53 = vsub.f32 %v1011_v16, %v1018_v52 }
 0xac5   :  { %v1024_v62 = vmul.f32 1.442695, %v1022_v53 }
 0xac7   :  { %5529 = vpow2.f32 %v1024_v62 }
 0xaca   :  { %v1021_v63 = vpop.xlane.xlu2 %1020  ;;  %v1117_v13 = vpop.xlane.xlu0 %1116 }
 0xacb   :  { %v1023_v21 = vsub.f32 %v1014_v25, %v1021_v63  ;;  %v1119_v1 = vsub.f32 %v1110_v27, %v1117_v13 }
 0xacd   :  { %v6418_v3 = vpop.eup %5529  ;;  %v1026_v4 = vmul.f32 1.442695, %v1023_v21  ;;  %v1122_v6 = vmul.f32 1.442695, %v1119_v1  ;;  %v1331_v21 = vld [vmem:[#allocation2 + $0x10] sm:$0xff] }
 0xace   :  { %v1028_v7 = vsel %vm349_vm7, %v6418_v3, 0.0  ;;  %5350 = vrot.lane.b32.xlu2 %v5344_v55, %s5924_s7 }
 0xacf   :  { %5531 = vpow2.f32 %v1026_v4  ;;  %1029 = vadd.xlane.f32.xlu0 %v1028_v7 }
 0xad0   :  { %5533 = vpow2.f32 %v1122_v6 }
 0xad2   :  { %v934_v10 = vpop.xlane.xlu0 %933 }
 0xad5   :  { %v6423_v8 = vpop.eup %5531  ;;  %v1210_v14 = vpop.xlane.xlu1 %1209 }
 0xad6   :  { %v6425_v24 = vpop.eup %5533  ;;  %v1031_v26 = vsel %vm349_vm7, %v6423_v8, 0.0  ;;  %v1214_v16 = vsub.f32 %v1203_v45, %v1210_v14 }
 0xad7   :  { %1032 = vadd.xlane.f32.xlu1 %v1031_v26  ;;  %v1127_v2 = vsel %vm349_vm7, %v6425_v24, 0.0 }
 0xad8   :  { %v937_v30 = vpop.xlane.xlu2 %936  ;;  %1128 = vadd.xlane.f32.xlu0 %v1127_v2  ;;  %v1216_v20 = vmul.f32 1.442695, %v1214_v16 }
 0xae0   :  { %v1213_v11 = vpop.xlane.xlu2 %1212 }
 0xae1   :  { %v1215_v12 = vsub.f32 %v1206_v9, %v1213_v11 }
 0xae3   :  { %v1218_v15 = vmul.f32 1.442695, %v1215_v12 }
 0xae5   :  { %5535 = vpow2.f32 %v1218_v15  ;;  %v5346_v17 = vpop.permute.xlu0 %5345 }
 0xae6   :  { %v5347_v18 = vunpack.i.l.bf16 %v5346_v17  ;;  %5537 = vrcp.f32 %v934_v10  ;;  %v5348_v19 = vunpack.i.h.bf16 %v5346_v17  ;;  %v6467_v17 = vld [vmem:[%s7475_s11] sm:$0xff] }
 0xae7   :  { %5539 = vpow2.f32 %v1216_v20 }
 0xae8   :  { %1064 = vmatpush.msra.mxu3 %v5347_v18  ;;  %5541 = vrcp.f32 %v937_v30  ;;  %v1338_v18 = vperm.slane %v6467_v17, 6 }
 0xaea   :  { %1065 = vmatpush.msra.mxu3 %v5348_v19 }
 0xaeb   :  { %v6431_v22 = vpop.eup %5535 }
 0xaec   :  { %v1223_v23 = vsel %vm349_vm7, %v6431_v22, 0.0  ;;  %v5538_v27 = vpop.eup %5537 }
 0xaed   :  { %1224 = vadd.xlane.f32.xlu0 %v1223_v23  ;;  %v5341_v25 = vpop.permute.xlu1 %5340  ;;  %v940_v32 = vmul.f32 %v5538_v27, %v6398_v34  ;;  %v5540_v33 = vpop.eup %5539 }
 0xaee   :  { %v5342_v28 = vunpack.i.l.bf16 %v5341_v25  ;;  %v5343_v29 = vunpack.i.h.bf16 %v5341_v25  ;;  %v5542_v37 = vpop.eup %5541  ;;  %v1220_v40 = vsel %vm349_vm7, %v5540_v33, 0.0 }
 0xaef   :  { %v941_v43 = vmul.f32 %v5542_v37, %v6404_v49  ;;  %v1335_v49 = vld [vmem:[#allocation8 + $0x28] sm:$0xff]  ;;  %v1299_v37 = vld [vmem:[#allocation5 + $0x38] sm:$0xff] }
 0xaf0   :  { %5355 = vrot.lane.b32.xlu1 %v5344_v55, %s5927_s17  ;;  %968 = vmatpush.msrb.mxu2 %v5342_v28  ;;  %v1336_v55 = vld [vmem:[#allocation8 + $0x30] sm:$0xff] }
 0xaf1   :  { %1319 = vmatpush.msra.mxu1 %v1299_v37 }
 0xaf2   :  { %969 = vmatpush.msrb.mxu2 %v5343_v29 }
 0xaf3   :  { %5052 = vmatmul.msk.f32.vlgmr.msrb.gmra.mxu2 %vm349_vm7, %v940_v32 }
 0xaf7   :  { %1221 = vadd.xlane.f32.xlu2 %v1220_v40 }
 0xaf8   :  { %1368 = vrot.lane.b32.xlu1 %v6354_v59, %s5921_s14 }
 0xafb   :  { %5053 = vmatmul.msk.f32.gmra.mxu2 %vm349_vm7, %v941_v43  ;;  %v1298_v43 = vld [vmem:[#allocation5 + $0x30] sm:$0xff] }
 0xafc   :  { %1320 = vmatpush.msra.mxu1 %v1298_v43 }
 0xb01   :  { %1370 = vrot.lane.b32.xlu0 %v6362_v61, %s5921_s14 }
 0xb29   :  { %v1126_v45 = vpop.xlane.xlu2 %1125 }
 0xb2a   :  { %5543 = vrcp.f32 %v1126_v45  ;;  %v1297_v45 = vld [vmem:[#allocation5 + $0x28] sm:$0xff] }
 0xb2b   :  { %1321 = vmatpush.msra.mxu1 %v1297_v45 }
 0xb30   :  { %v5544_v48 = vpop.eup %5543 }
 0xb31   :  { %v5351_v34 = vpop.permute.xlu2 %5350  ;;  %v1132_v9 = vmul.f32 %v5544_v48, %v6414_v47 }
 0xb32   :  { %v5352_v50 = vunpack.i.l.bf16 %v5351_v34  ;;  %v5353_v51 = vunpack.i.h.bf16 %v5351_v34  ;;  %v1296_v34 = vld [vmem:[#allocation5 + $0x20] sm:$0xff] }
 0xb33   :  { %1322 = vmatpush.msra.mxu1 %v1296_v34 }
 0xb34   :  { %1160 = vmatpush.msra.mxu2 %v5352_v50 }
 0xb36   :  { %1161 = vmatpush.msra.mxu2 %v5353_v51 }
 0xb37   :  { %5064 = vmatmul.msk.f32.vlgmr.msra.gmra.mxu2 %vm349_vm7, %v1132_v9 }
 0xb38   :  { %1357 = vmatpush.msrb.mxu2 %v1337_v54 }
 0xb3a   :  { %1358 = vmatpush.msrb.mxu2 %v1336_v55 }
 0xb3c   :  { %1359 = vmatpush.msrb.mxu2 %v1335_v49 }
 0xb3e   :  { %1360 = vmatpush.msrb.mxu2 %v1334_v56 }
 0xb42   :  { %v1030_v57 = vpop.xlane.xlu0 %1029 }
 0xb43   :  { %5545 = vrcp.f32 %v1030_v57 }
 0xb49   :  { %v5546_v58 = vpop.eup %5545 }
 0xb4a   :  { %v1036_v60 = vmul.f32 %v5546_v58, %v6418_v3  ;;  %v1033_v52 = vpop.xlane.xlu1 %1032  ;;  %v1332_v3 = vld [vmem:[#allocation2 + $0x18] sm:$0xff] }
 0xb4b   :  { %v1129_v53 = vpop.xlane.xlu0 %1128  ;;  %5547 = vrcp.f32 %v1033_v52 }
 0xb4c   :  { %5549 = vrcp.f32 %v1129_v53  ;;  %5058 = vmatmul.msk.f32.vlgmr.msra.gmra.mxu3 %vm349_vm7, %v1036_v60 }
 0xb51   :  { %v5548_v47 = vpop.eup %5547 }
 0xb52   :  { %v5550_v62 = vpop.eup %5549  ;;  %v1037_v63 = vmul.f32 %v5548_v47, %v6423_v8 }
 0xb53   :  { %v1133_v13 = vmul.f32 %v5550_v62, %v6425_v24 }
 0xb54   :  { %5059 = vmatmul.msk.f32.gmra.mxu3 %vm349_vm7, %v1037_v63 }
 0xb55   :  { %5065 = vmatmul.msk.f32.gmra.mxu2 %vm349_vm7, %v1133_v13 }
 0xb5d   :  { %5074 = vmatmul.msk.f32.vlgmr.msrb.gmra.mxu2 %vm212_vm11, %v1331_v21 }
 0xb60   :  { %v1225_v8 = vpop.xlane.xlu0 %1224 }
 0xb62   :  { %v5356_v1 = vpop.permute.xlu1 %5355 }
 0xb63   :  { %v5357_v4 = vunpack.i.l.bf16 %v5356_v1  ;;  %v5358_v6 = vunpack.i.h.bf16 %v5356_v1 }
 0xb65   :  { %5075 = vmatmul.msk.f32.gmra.mxu2 %vm212_vm11, %v1332_v3  ;;  %1256 = vmatpush.msrb.mxu3 %v5357_v4 }
 0xb67   :  { %1257 = vmatpush.msrb.mxu3 %v5358_v6 }
 0xb6a   :  { %v1222_v7 = vpop.xlane.xlu2 %1221  ;;  %v1369_v27 = vpop.permute.xlu1 %1368 }
 0xb6b   :  { %5551 = vrcp.f32 %v1222_v7 }
 0xb6c   :  { %5553 = vrcp.f32 %v1225_v8 }
 0xb71   :  { %v5552_v26 = vpop.eup %5551 }
 0xb72   :  { %v1228_v24 = vmul.f32 %v5552_v26, %v5540_v33  ;;  %v5554_v2 = vpop.eup %5553 }
 0xb73   :  { %v1229_v30 = vmul.f32 %v5554_v2, %v6431_v22  ;;  %v1371_v29 = vpop.permute.xlu0 %1370 }
 0xb74   :  { %5070 = vmatmul.msk.f32.vlgmr.msrb.gmra.mxu3 %vm349_vm7, %v1228_v24 }
 0xb76   :  { %v971_v10 = vpop.f32.mrf.mxu2 }
 0xb7c   :  { %5071 = vmatmul.msk.f32.gmra.mxu3 %vm349_vm7, %v1229_v30 }
 0xb7e   :  { %v6458_v11 = vpop.f32.mrf.mxu2 }
 0xbba   :  { %v1163_v12 = vpop.f32.mrf.mxu2 }
 0xbbb   :  { %1275 = vrot.lane.b32.xlu2 %v1163_v12, %s5932_s8 }
 0xbcf   :  { %v1067_v14 = vpop.f32.mrf.mxu3 }
 0xbd0   :  { %1267 = vrot.lane.b32.xlu0 %v1067_v14, %s5913_s30 }
 0xbd7   :  { %v1070_v15 = vpop.f32.mrf.mxu3 }
 0xbd8   :  { %v1166_v16 = vpop.f32.mrf.mxu2  ;;  %1269 = vrot.lane.b32.xlu0 %v1070_v15, %s5913_s30 }
 0xbd9   :  { %1277 = vrot.lane.b32.xlu2 %v1166_v16, %s5932_s8 }
 0xbe0   :  { %v1362_v19 = vpop.f32.mrf.mxu2 }
 0xbe1   :  { %v1363_v20 = vadd.f32 %v1362_v19, %v1338_v18 }
 0xbe3   :  { %1466 = vrot.lane.b32.xlu0 %v1363_v20, %s5923_s16 }
 0xbe8   :  { %v1365_v22 = vpop.f32.mrf.mxu2 }
 0xbe9   :  { %v1366_v23 = vadd.f32 %v1365_v22, %v1338_v18 }
 0xbeb   :  { %1468 = vrot.lane.b32.xlu2 %v1366_v23, %s5923_s16  ;;  %5076 = vmatpush.xpose.msk.msrb.mxu0 %vm315_vm6, %v1366_v23  ;;  %v6473_v25 = vpack.i.bf16 %v1363_v20, %v1366_v23 }
 0xbec   :  { %1558 = vrot.lane.b32.xlu0 %v6354_v59, %s5924_s7 }
 0xbef   :  { %5077 = vmatpush.xpose.msk.msrb.mxu0 %vm315_vm6, %v1363_v20 }
 0xbf2   :  { %5078 = vmatmul.msk.f32.vlgmr.msrb.gmra.mxu0 %vm315_vm6, %v1369_v27 }
 0xbf3   :  { %1562 = vrot.lane.b32.xlu2 %v1363_v20, %s5928_s18 }
 0xbf4   :  { %1660 = vrot.lane.b32.xlu0 %v1366_v23, %s5925_s3 }
 0xbf7   :  { %v1259_v28 = vpop.f32.mrf.mxu3 }
 0xbf8   :  { %1283 = vrot.lane.b32.xlu1 %v1259_v28, %s5933_s0 }
 0xbfa   :  { %5079 = vmatmul.msk.f32.gmra.mxu0 %vm315_vm6, %v1371_v29 }
 0xbfb   :  { %1464 = vrot.lane.b32.xlu2 %v6362_v61, %s5922_s15 }
 0xbfc   :  { %1656 = vrot.lane.b32.xlu0 %v6362_v61, %s5927_s17 }
 0xbff   :  { %v1262_v32 = vpop.f32.mrf.mxu3 }
 0xc00   :  { %1285 = vrot.lane.b32.xlu1 %v1262_v32, %s5933_s0 }
 0xc03   :  { %1658 = vrot.lane.b32.xlu2 %v1363_v20, %s5925_s3 }
 0xc08   :  { %1564 = vrot.lane.b32.xlu1 %v1366_v23, %s5928_s18 }
 0xc10   :  { %1462 = vrot.lane.b32.xlu1 %v6354_v59, %s5922_s15 }
 0xc15   :  { %v1276_v33 = vpop.permute.xlu2 %1275 }
 0xc18   :  { %1560 = vrot.lane.b32.xlu1 %v6362_v61, %s5924_s7 }
 0xc20   :  { %1654 = vrot.lane.b32.xlu1 %v6354_v59, %s5927_s17 }
 0xc33   :  { %v1278_v40 = vpop.permute.xlu2 %1277 }
 0xc42   :  { %v1268_v48 = vpop.permute.xlu0 %1267 }
 0xc43   :  { %v1289_v56 = vsel %vm315_vm6, %v971_v10, %v1268_v48 }
 0xc44   :  { %v1291_v58 = vsel %vm349_vm7, %v1289_v56, %v1276_v33 }
 0xc45   :  { %v1469_v50 = vpop.permute.xlu2 %1468 }
 0xc46   :  { %5082 = vmatpush.xpose.msk.msrb.mxu1 %vm315_vm6, %v1469_v50 }
 0xc4a   :  { %v1270_v51 = vpop.permute.xlu0 %1269 }
 0xc4b   :  { %v1290_v53 = vsel %vm315_vm6, %v6458_v11, %v1270_v51 }
 0xc4c   :  { %v1292_v1 = vsel %vm349_vm7, %v1290_v53, %v1278_v40 }
 0xc4d   :  { %v1563_v54 = vpop.permute.xlu2 %1562 }
 0xc55   :  { %v1467_v9 = vpop.permute.xlu0 %1466  ;;  %v1465_v49 = vpop.permute.xlu2 %1464 }
 0xc56   :  { %5083 = vmatpush.xpose.msk.msrb.mxu1 %vm315_vm6, %v1467_v9 }
 0xc5d   :  { %v1659_v62 = vpop.permute.xlu2 %1658 }
 0xc5e   :  { %v1559_v55 = vpop.permute.xlu0 %1558 }
 0xc66   :  { %v1661_v52 = vpop.permute.xlu0 %1660 }
 0xc6a   :  { %v1284_v57 = vpop.permute.xlu1 %1283 }
 0xc6b   :  { %v1293_v60 = vsel %vm723_vm9, %v1291_v58, %v1284_v57 }
 0xc6c   :  { %5072 = vmatmul.msk.f32.vlgmr.msra.gmra.mxu1 %vm212_vm11, %v1293_v60 }
 0xc6d   :  { %5094 = vmatpush.xpose.msk.msra.mxu1 %vm315_vm6, %v1661_v52 }
 0xc6e   :  { %v1657_v30 = vpop.permute.xlu0 %1656 }
 0xc6f   :  { %v1399_v47 = vpop.f32.mrf.mxu0 }
 0xc70   :  { %v1400_v63 = vadd.f32 %v1399_v47, %v6135_v39 }
 0xc71   :  { %5095 = vmatpush.xpose.msk.msra.mxu1 %vm315_vm6, %v1659_v62 }
 0xc72   :  { %v1286_v13 = vpop.permute.xlu1 %1285  ;;  %v1405_v21 = vsel %vm349_vm7, %v1400_v63, -inf }
 0xc73   :  { %1406 = vmax.xlane.f32.xlu2 %v1405_v21  ;;  %v1294_v3 = vsel %vm723_vm9, %v1292_v1, %v1286_v13 }
 0xc74   :  { %5073 = vmatmul.msk.f32.gmra.mxu1 %vm212_vm11, %v1294_v3 }
 0xc77   :  { %v1402_v4 = vpop.f32.mrf.mxu0 }
 0xc78   :  { %v1403_v6 = vadd.f32 %v1402_v4, %v6141_v41 }
 0xc7a   :  { %v1565_v7 = vpop.permute.xlu1 %1564  ;;  %v1408_v8 = vsel %vm349_vm7, %v1403_v6, -inf }
 0xc7b   :  { %1409 = vmax.xlane.f32.xlu1 %v1408_v8  ;;  %5088 = vmatpush.xpose.msk.msra.mxu0 %vm315_vm6, %v1565_v7 }
 0xc7f   :  { %5089 = vmatpush.xpose.msk.msra.mxu0 %vm315_vm6, %v1563_v54 }
 0xc82   :  { %v1463_v26 = vpop.permute.xlu1 %1462  ;;  %5090 = vmatmul.msk.f32.vlgmr.msra.gmra.mxu0 %vm315_vm6, %v1559_v55 }
 0xc83   :  { %5084 = vmatmul.msk.f32.vlgmr.msrb.gmra.mxu1 %vm315_vm6, %v1463_v26 }
 0xc8a   :  { %v1561_v24 = vpop.permute.xlu1 %1560 }
 0xc8b   :  { %5085 = vmatmul.msk.f32.gmra.mxu1 %vm315_vm6, %v1465_v49  ;;  %5091 = vmatmul.msk.f32.gmra.mxu0 %vm315_vm6, %v1561_v24 }
 0xc92   :  { %v1655_v2 = vpop.permute.xlu1 %1654 }
 0xc93   :  { %5096 = vmatmul.msk.f32.vlgmr.msra.gmra.mxu1 %vm315_vm6, %v1655_v2 }
 0xc9b   :  { %5097 = vmatmul.msk.f32.gmra.mxu1 %vm315_vm6, %v1657_v30 }
 0xce6   :  { %v1407_v15 = vpop.xlane.xlu2 %1406 }
 0xce7   :  { %v1411_v23 = vsub.f32 %v1400_v63, %v1407_v15 }
 0xce9   :  { %v6521_v10 = vpop.f32.mrf.mxu1  ;;  %v1413_v29 = vmul.f32 1.442695, %v1411_v23 }
 0xcee   :  { %v1410_v12 = vpop.xlane.xlu1 %1409 }
 0xcef   :  { %v1412_v20 = vsub.f32 %v1403_v6, %v1410_v12 }
 0xcf1   :  { %v6523_v11 = vpop.f32.mrf.mxu1  ;;  %v1415_v28 = vmul.f32 1.442695, %v1412_v20 }
 0xcf3   :  { %5555 = vpow2.f32 %v1415_v28 }
 0xcf4   :  { %5557 = vpow2.f32 %v1413_v29 }
 0xcf9   :  { %v6533_v34 = vpop.eup %5555 }
 0xcfa   :  { %v5558_v50 = vpop.eup %5557  ;;  %v1420_v9 = vsel %vm349_vm7, %v6533_v34, 0.0 }
 0xcfb   :  { %v1417_v55 = vsel %vm349_vm7, %v5558_v50, 0.0 }
 0xcff   :  { %v1591_v14 = vpop.f32.mrf.mxu0 }
 0xd00   :  { %v1592_v16 = vadd.f32 %v1591_v14, %v6135_v39  ;;  %v1495_v18 = vpop.f32.mrf.mxu1 }
 0xd01   :  { %v1496_v19 = vadd.f32 %v1495_v18, %v6135_v39 }
 0xd02   :  { %v1597_v22 = vsel %vm349_vm7, %v1592_v16, -inf }
 0xd03   :  { %1598 = vmax.xlane.f32.xlu2 %v1597_v22  ;;  %v1501_v27 = vsel %vm349_vm7, %v1496_v19, -inf }
 0xd04   :  { %1502 = vmax.xlane.f32.xlu0 %v1501_v27 }
 0xd08   :  { %v1498_v32 = vpop.f32.mrf.mxu1  ;;  %v1594_v33 = vpop.f32.mrf.mxu0 }
 0xd09   :  { %v1499_v37 = vadd.f32 %v1498_v32, %v6141_v41  ;;  %v1595_v40 = vadd.f32 %v1594_v33, %v6141_v41 }
 0xd0b   :  { %v1600_v43 = vsel %vm349_vm7, %v1595_v40, -inf  ;;  %v1504_v45 = vsel %vm349_vm7, %v1499_v37, -inf }
 0xd0c   :  { %1601 = vmax.xlane.f32.xlu0 %v1600_v43  ;;  %1505 = vmax.xlane.f32.xlu1 %v1504_v45 }
 0xd10   :  { %v1687_v48 = vpop.f32.mrf.mxu1 }
 0xd11   :  { %v6536_v51 = vadd.f32 %v1687_v48, %v6135_v39 }
 0xd13   :  { %v1693_v54 = vsel %vm349_vm7, %v6536_v51, -inf }
 0xd14   :  { %1421 = vadd.xlane.f32.xlu1 %v1420_v9  ;;  %1694 = vmax.xlane.f32.xlu2 %v1693_v54 }
 0xd15   :  { %1418 = vadd.xlane.f32.xlu0 %v1417_v55 }
 0xd18   :  { %v1690_v49 = vpop.f32.mrf.mxu1 }
 0xd19   :  { %v1691_v56 = vadd.f32 %v1690_v49, %v6141_v41 }
 0xd1b   :  { %v1696_v57 = vsel %vm349_vm7, %v1691_v56, -inf }
 0xd1c   :  { %1697 = vmax.xlane.f32.xlu1 %v1696_v57 }
 0xd29   :  { %5365 = vrot.lane.b32.xlu0 %v6473_v25, %s5922_s15 }
 0xd2c   :  { %5360 = vrot.lane.b32.xlu2 %v6473_v25, %s5921_s14 }
 0xd76   :  { %v1599_v58 = vpop.xlane.xlu2 %1598 }
 0xd77   :  { %v1603_v60 = vsub.f32 %v1592_v16, %v1599_v58  ;;  %v1503_v52 = vpop.xlane.xlu0 %1502 }
 0xd78   :  { %v1507_v53 = vsub.f32 %v1496_v19, %v1503_v52 }
 0xd79   :  { %v1605_v47 = vmul.f32 1.442695, %v1603_v60 }
 0xd7a   :  { %v1509_v62 = vmul.f32 1.442695, %v1507_v53 }
 0xd7b   :  { %5559 = vpow2.f32 %v1605_v47 }
 0xd7c   :  { %5561 = vpow2.f32 %v1509_v62 }
 0xd7f   :  { %v1602_v63 = vpop.xlane.xlu0 %1601  ;;  %v1506_v13 = vpop.xlane.xlu1 %1505 }
 0xd80   :  { %v1604_v21 = vsub.f32 %v1595_v40, %v1602_v63  ;;  %v1508_v1 = vsub.f32 %v1499_v37, %v1506_v13 }
 0xd81   :  { %v6549_v3 = vpop.eup %5559 }
 0xd82   :  { %v5562_v4 = vpop.eup %5561  ;;  %v1607_v6 = vmul.f32 1.442695, %v1604_v21  ;;  %v1511_v7 = vmul.f32 1.442695, %v1508_v1  ;;  %v1609_v8 = vsel %vm349_vm7, %v6549_v3, 0.0 }
 0xd83   :  { %1610 = vadd.xlane.f32.xlu1 %v1609_v8  ;;  %v1513_v26 = vsel %vm349_vm7, %v5562_v4, 0.0 }
 0xd84   :  { %5563 = vpow2.f32 %v1607_v6  ;;  %1514 = vadd.xlane.f32.xlu0 %v1513_v26  ;;  %v1821_v6 = vld [vmem:[#allocation8 + $0x50] sm:$0xff]  ;;  %v1819_v26 = vld [vmem:[#allocation8 + $0x40] sm:$0xff] }
 0xd85   :  { %5565 = vpow2.f32 %v1511_v7  ;;  %v1820_v7 = vld [vmem:[#allocation8 + $0x48] sm:$0xff] }
 0xd87   :  { %v1422_v24 = vpop.xlane.xlu1 %1421  ;;  %v1695_v2 = vpop.xlane.xlu2 %1694 }
 0xd88   :  { %v1419_v30 = vpop.xlane.xlu0 %1418 }
 0xd89   :  { %5567 = vrcp.f32 %v1419_v30 }
 0xd8a   :  { %v6554_v12 = vpop.eup %5563  ;;  %5569 = vrcp.f32 %v1422_v24 }
 0xd8b   :  { %v5566_v14 = vpop.eup %5565  ;;  %v1612_v15 = vsel %vm349_vm7, %v6554_v12, 0.0 }
 0xd8c   :  { %v1516_v16 = vsel %vm349_vm7, %v5566_v14, 0.0  ;;  %1613 = vadd.xlane.f32.xlu0 %v1612_v15 }
 0xd8d   :  { %1517 = vadd.xlane.f32.xlu2 %v1516_v16 }
 0xd8f   :  { %v1698_v18 = vpop.xlane.xlu1 %1697  ;;  %v5361_v19 = vpop.permute.xlu2 %5360 }
 0xd90   :  { %v5568_v20 = vpop.eup %5567  ;;  %v1700_v22 = vsub.f32 %v1691_v56, %v1698_v18  ;;  %v5362_v23 = vunpack.i.l.bf16 %v5361_v19  ;;  %v5363_v28 = vunpack.i.h.bf16 %v5361_v19 }
 0xd91   :  { %v1425_v29 = vmul.f32 %v5568_v20, %v5558_v50  ;;  %v5570_v32 = vpop.eup %5569  ;;  %v1699_v50 = vsub.f32 %v6536_v51, %v1695_v2  ;;  %v1816_v2 = vld [vmem:[#allocation2 + $0x20] sm:$0xff] }
 0xd92   :  { %v1703_v27 = vmul.f32 1.442695, %v1700_v22  ;;  %1453 = vmatpush.msra.mxu3 %v5362_v23  ;;  %v1426_v43 = vmul.f32 %v5570_v32, %v6533_v34 }
 0xd93   :  { %v1701_v9 = vmul.f32 1.442695, %v1699_v50  ;;  %v1783_v50 = vld [vmem:[#allocation5 + $0x50] sm:$0xff] }
 0xd94   :  { %5571 = vpow2.f32 %v1703_v27  ;;  %1454 = vmatpush.msra.mxu3 %v5363_v28 }
 0xd95   :  { %5080 = vmatmul.msk.f32.vlgmr.msra.gmra.mxu3 %vm349_vm7, %v1425_v29  ;;  %5573 = vpow2.f32 %v1701_v9  ;;  %v1823_v29 = vperm.slane %v6467_v17, 7  ;;  %v1782_v9 = vld [vmem:[#allocation5 + $0x48] sm:$0xff] }
 0xd9a   :  { %v6560_v33 = vpop.eup %5571 }
 0xd9b   :  { %v5366_v37 = vpop.permute.xlu0 %5365  ;;  %v1708_v40 = vsel %vm349_vm7, %v6560_v33, 0.0  ;;  %v5574_v54 = vpop.eup %5573 }
 0xd9c   :  { %v5367_v45 = vunpack.i.l.bf16 %v5366_v37  ;;  %1709 = vadd.xlane.f32.xlu0 %v1708_v40  ;;  %5370 = vrot.lane.b32.xlu1 %v6473_v25, %s5924_s7  ;;  %v5368_v48 = vunpack.i.h.bf16 %v5366_v37  ;;  %v1705_v34 = vsel %vm349_vm7, %v5574_v54, 0.0 }
 0xd9d   :  { %5081 = vmatmul.msk.f32.gmra.mxu3 %vm349_vm7, %v1426_v43 }
 0xd9e   :  { %1549 = vmatpush.msra.mxu2 %v5367_v45 }
 0xda0   :  { %1550 = vmatpush.msra.mxu2 %v5368_v48  ;;  %v1784_v48 = vld [vmem:[#allocation5 + $0x58] sm:$0xff] }
 0xda1   :  { %1804 = vmatpush.msrb.mxu0 %v1784_v48 }
 0xda3   :  { %1805 = vmatpush.msrb.mxu0 %v1783_v50 }
 0xda5   :  { %5375 = vrot.lane.b32.xlu2 %v6473_v25, %s5927_s17  ;;  %1806 = vmatpush.msrb.mxu0 %v1782_v9 }
 0xdc6   :  { %1706 = vadd.xlane.f32.xlu1 %v1705_v34 }
 0xdf6   :  { %v1611_v58 = vpop.xlane.xlu1 %1610 }
 0xdf7   :  { %v1515_v55 = vpop.xlane.xlu0 %1514 }
 0xdf8   :  { %5575 = vrcp.f32 %v1515_v55 }
 0xdfe   :  { %v5576_v49 = vpop.eup %5575 }
 0xdff   :  { %v1521_v56 = vmul.f32 %v5576_v49, %v5562_v4  ;;  %v1614_v47 = vpop.xlane.xlu0 %1613  ;;  %v1822_v4 = vld [vmem:[#allocation8 + $0x58] sm:$0xff] }
 0xe00   :  { %v1518_v57 = vpop.xlane.xlu2 %1517 }
 0xe01   :  { %5577 = vrcp.f32 %v1518_v57  ;;  %5086 = vmatmul.msk.f32.vlgmr.msra.gmra.mxu2 %vm349_vm7, %v1521_v56 }
 0xe02   :  { %5579 = vrcp.f32 %v1611_v58 }
 0xe03   :  { %5581 = vrcp.f32 %v1614_v47 }
 0xe07   :  { %v5578_v60 = vpop.eup %5577 }
 0xe08   :  { %v5376_v52 = vpop.permute.xlu2 %5375  ;;  %v1522_v25 = vmul.f32 %v5578_v60, %v5566_v14  ;;  %v5580_v63 = vpop.eup %5579 }
 0xe09   :  { %v5377_v51 = vunpack.i.l.bf16 %v5376_v52  ;;  %v5378_v53 = vunpack.i.h.bf16 %v5376_v52  ;;  %v1617_v1 = vmul.f32 %v5580_v63, %v6549_v3  ;;  %v5582_v8 = vpop.eup %5581  ;;  %v1817_v3 = vld [vmem:[#allocation2 + $0x28] sm:$0xff] }
 0xe0a   :  { %5087 = vmatmul.msk.f32.gmra.mxu2 %vm349_vm7, %v1522_v25  ;;  %v1618_v24 = vmul.f32 %v5582_v8, %v6554_v12 }
 0xe0b   :  { %1741 = vmatpush.msrb.mxu2 %v5377_v51 }
 0xe0d   :  { %1742 = vmatpush.msrb.mxu2 %v5378_v53 }
 0xe0e   :  { %v5371_v62 = vpop.permute.xlu1 %5370 }
 0xe0f   :  { %v5372_v13 = vunpack.i.l.bf16 %v5371_v62  ;;  %v5373_v21 = vunpack.i.h.bf16 %v5371_v62  ;;  %v1710_v14 = vpop.xlane.xlu0 %1709 }
 0xe11   :  { %1645 = vmatpush.msrb.mxu3 %v5372_v13 }
 0xe13   :  { %1646 = vmatpush.msrb.mxu3 %v5373_v21 }
 0xe14   :  { %5092 = vmatmul.msk.f32.vlgmr.msrb.gmra.mxu3 %vm349_vm7, %v1617_v1 }
 0xe15   :  { %1842 = vmatpush.msra.mxu3 %v1822_v4 }
 0xe17   :  { %1843 = vmatpush.msra.mxu3 %v1821_v6 }
 0xe18   :  { %v1456_v20 = vpop.f32.mrf.mxu3 }
 0xe19   :  { %1844 = vmatpush.msra.mxu3 %v1820_v7 }
 0xe1b   :  { %1845 = vmatpush.msra.mxu3 %v1819_v26 }
 0xe1c   :  { %5093 = vmatmul.msk.f32.gmra.mxu3 %vm349_vm7, %v1618_v24 }
 0xe20   :  { %v1459_v23 = vpop.f32.mrf.mxu3 }
 0xe24   :  { %5102 = vmatmul.msk.f32.vlgmr.msra.gmra.mxu3 %vm212_vm11, %v1816_v2 }
 0xe2c   :  { %5103 = vmatmul.msk.f32.gmra.mxu3 %vm212_vm11, %v1817_v3 }
 0xe39   :  { %v1707_v30 = vpop.xlane.xlu1 %1706 }
 0xe3a   :  { %5583 = vrcp.f32 %v1707_v30 }
 0xe3b   :  { %5585 = vrcp.f32 %v1710_v14 }
 0xe40   :  { %v5584_v15 = vpop.eup %5583 }
 0xe41   :  { %v1713_v16 = vmul.f32 %v5584_v15, %v5574_v54  ;;  %v5586_v18 = vpop.eup %5585  ;;  %v1781_v54 = vld [vmem:[#allocation5 + $0x40] sm:$0xff] }
 0xe42   :  { %v1714_v12 = vmul.f32 %v5586_v18, %v6560_v33  ;;  %1807 = vmatpush.msrb.mxu0 %v1781_v54 }
 0xe43   :  { %5098 = vmatmul.msk.f32.vlgmr.msrb.gmra.mxu2 %vm349_vm7, %v1713_v16 }
 0xe4b   :  { %5099 = vmatmul.msk.f32.gmra.mxu2 %vm349_vm7, %v1714_v12 }
 0xe84   :  { %v1552_v19 = vpop.f32.mrf.mxu2 }
 0xe85   :  { %1752 = vrot.lane.b32.xlu0 %v1552_v19, %s5913_s30 }
 0xe8d   :  { %v1555_v22 = vpop.f32.mrf.mxu2 }
 0xe8e   :  { %1754 = vrot.lane.b32.xlu2 %v1555_v22, %s5913_s30 }
 0xe97   :  { %v1648_v27 = vpop.f32.mrf.mxu3 }
 0xe98   :  { %1760 = vrot.lane.b32.xlu1 %v1648_v27, %s5932_s8 }
 0xe9f   :  { %v1651_v28 = vpop.f32.mrf.mxu3 }
 0xea0   :  { %1762 = vrot.lane.b32.xlu0 %v1651_v28, %s5932_s8 }
 0xea7   :  { %v1847_v32 = vpop.f32.mrf.mxu3 }
 0xea8   :  { %v1848_v33 = vadd.f32 %v1847_v32, %v1823_v29 }
 0xeaa   :  { %1951 = vrot.lane.b32.xlu1 %v1848_v33, %s5923_s16 }
 0xeaf   :  { %v1850_v37 = vpop.f32.mrf.mxu3 }
 0xeb0   :  { %v1851_v40 = vadd.f32 %v1850_v37, %v1823_v29 }
 0xeb2   :  { %1953 = vrot.lane.b32.xlu0 %v1851_v40, %s5923_s16  ;;  %1855 = vrot.lane.b32.xlu1 %v6362_v61, %s5926_s2  ;;  %v6597_v17 = vpack.i.bf16 %v1848_v33, %v1851_v40 }
 0xeb3   :  { %5104 = vmatpush.xpose.msk.msrb.mxu1 %vm315_vm6, %v1851_v40 }
 0xeb7   :  { %5105 = vmatpush.xpose.msk.msrb.mxu1 %vm315_vm6, %v1848_v33 }
 0xeba   :  { %1947 = vrot.lane.b32.xlu0 %v6354_v59, %s5929_s19  ;;  %2145 = vrot.lane.b32.xlu1 %v1851_v40, %s5925_s3 }
 0xec2   :  { %2049 = vrot.lane.b32.xlu0 %v1851_v40, %s5928_s18  ;;  %2043 = vrot.lane.b32.xlu1 %v6354_v59, %s5931_s21 }
 0xec6   :  { %v1744_v43 = vpop.f32.mrf.mxu2 }
 0xec7   :  { %1768 = vrot.lane.b32.xlu2 %v1744_v43, %s5933_s0 }
 0xeca   :  { %2143 = vrot.lane.b32.xlu0 %v1848_v33, %s5925_s3  ;;  %2141 = vrot.lane.b32.xlu1 %v6362_v61, %s5930_s20 }
 0xece   :  { %v1747_v45 = vpop.f32.mrf.mxu2 }
 0xecf   :  { %1770 = vrot.lane.b32.xlu2 %v1747_v45, %s5933_s0 }
 0xed2   :  { %2045 = vrot.lane.b32.xlu0 %v6362_v61, %s5931_s21 }
 0xed7   :  { %1853 = vrot.lane.b32.xlu2 %v6354_v59, %s5926_s2 }
 0xedf   :  { %1949 = vrot.lane.b32.xlu2 %v6362_v61, %s5929_s19 }
 0xee7   :  { %2047 = vrot.lane.b32.xlu2 %v1848_v33, %s5928_s18 }
 0xee8   :  { %v1755_v49 = vpop.permute.xlu2 %1754 }
 0xee9   :  { %v1775_v51 = vsel %vm315_vm6, %v1459_v23, %v1755_v49 }
 0xeef   :  { %2139 = vrot.lane.b32.xlu2 %v6354_v59, %s5930_s20 }
 0xef7   :  { %v1753_v34 = vpop.permute.xlu0 %1752 }
 0xef8   :  { %v1774_v61 = vsel %vm315_vm6, %v1456_v20, %v1753_v34 }
 0xf0a   :  { %v1761_v55 = vpop.permute.xlu1 %1760 }
 0xf0b   :  { %v1776_v58 = vsel %vm349_vm7, %v1774_v61, %v1761_v55 }
 0xf12   :  { %v1763_v56 = vpop.permute.xlu0 %1762 }
 0xf13   :  { %v1777_v53 = vsel %vm349_vm7, %v1775_v51, %v1763_v56 }
 0xf1c   :  { %v1952_v57 = vpop.permute.xlu1 %1951 }
 0xf21   :  { %v1769_v60 = vpop.permute.xlu2 %1768 }
 0xf22   :  { %v1778_v59 = vsel %vm723_vm9, %v1776_v58, %v1769_v60 }
 0xf23   :  { %5100 = vmatmul.msk.f32.vlgmr.msrb.gmra.mxu0 %vm212_vm11, %v1778_v59 }
 0xf24   :  { %v1954_v52 = vpop.permute.xlu0 %1953  ;;  %v1856_v25 = vpop.permute.xlu1 %1855 }
 0xf25   :  { %5110 = vmatpush.xpose.msk.msra.mxu0 %vm315_vm6, %v1954_v52 }
 0xf29   :  { %v1771_v47 = vpop.permute.xlu2 %1770  ;;  %5111 = vmatpush.xpose.msk.msra.mxu0 %vm315_vm6, %v1952_v57 }
 0xf2a   :  { %v1779_v62 = vsel %vm723_vm9, %v1777_v53, %v1771_v47 }
 0xf2b   :  { %5101 = vmatmul.msk.f32.gmra.mxu0 %vm212_vm11, %v1779_v62 }
 0xf2c   :  { %v1948_v63 = vpop.permute.xlu0 %1947  ;;  %v2146_v13 = vpop.permute.xlu1 %2145 }
 0xf2d   :  { %5122 = vmatpush.xpose.msk.msrb.mxu0 %vm315_vm6, %v2146_v13 }
 0xf31   :  { %v1854_v21 = vpop.permute.xlu2 %1853 }
 0xf32   :  { %5106 = vmatmul.msk.f32.vlgmr.msrb.gmra.mxu1 %vm315_vm6, %v1854_v21 }
 0xf33   :  { %5112 = vmatmul.msk.f32.vlgmr.msra.gmra.mxu0 %vm315_vm6, %v1948_v63 }
 0xf34   :  { %v2050_v1 = vpop.permute.xlu0 %2049  ;;  %v2044_v8 = vpop.permute.xlu1 %2043 }
 0xf35   :  { %5116 = vmatpush.xpose.msk.msra.mxu1 %vm315_vm6, %v2050_v1 }
 0xf39   :  { %v1950_v4 = vpop.permute.xlu2 %1949 }
 0xf3a   :  { %5107 = vmatmul.msk.f32.gmra.mxu1 %vm315_vm6, %v1856_v25 }
 0xf3b   :  { %5113 = vmatmul.msk.f32.gmra.mxu0 %vm315_vm6, %v1950_v4 }
 0xf3c   :  { %v2144_v6 = vpop.permute.xlu0 %2143  ;;  %v2142_v2 = vpop.permute.xlu1 %2141 }
 0xf3d   :  { %5123 = vmatpush.xpose.msk.msrb.mxu0 %vm315_vm6, %v2144_v6 }
 0xf41   :  { %v2048_v7 = vpop.permute.xlu2 %2047 }
 0xf42   :  { %5117 = vmatpush.xpose.msk.msra.mxu1 %vm315_vm6, %v2048_v7 }
 0xf44   :  { %v2046_v24 = vpop.permute.xlu0 %2045 }
 0xf45   :  { %5118 = vmatmul.msk.f32.vlgmr.msra.gmra.mxu1 %vm315_vm6, %v2044_v8 }
 0xf49   :  { %v2140_v26 = vpop.permute.xlu2 %2139 }
 0xf4a   :  { %5124 = vmatmul.msk.f32.vlgmr.msrb.gmra.mxu0 %vm315_vm6, %v2140_v26 }
 0xf4d   :  { %5119 = vmatmul.msk.f32.gmra.mxu1 %vm315_vm6, %v2046_v24 }
 0xf52   :  { %5125 = vmatmul.msk.f32.gmra.mxu0 %vm315_vm6, %v2142_v2 }
 0xfa0   :  { %v6638_v3 = vpop.f32.mrf.mxu0 }
 0xfa8   :  { %v6640_v30 = vpop.f32.mrf.mxu0 }
 0xfaf   :  { %v1884_v14 = vpop.f32.mrf.mxu1 }
 0xfb0   :  { %v1885_v15 = vadd.f32 %v1884_v14, %v6152_v42  ;;  %v1980_v16 = vpop.f32.mrf.mxu0 }
 0xfb1   :  { %v1981_v18 = vadd.f32 %v1980_v16, %v6152_v42 }
 0xfb2   :  { %v1890_v12 = vsel %vm349_vm7, %v1885_v15, -inf }
 0xfb3   :  { %1891 = vmax.xlane.f32.xlu2 %v1890_v12  ;;  %v1986_v19 = vsel %vm349_vm7, %v1981_v18, -inf }
 0xfb4   :  { %1987 = vmax.xlane.f32.xlu0 %v1986_v19 }
 0xfb7   :  { %v1887_v20 = vpop.f32.mrf.mxu1 }
 0xfb8   :  { %v1888_v22 = vadd.f32 %v1887_v20, %v6158_v44  ;;  %v1983_v23 = vpop.f32.mrf.mxu0 }
 0xfb9   :  { %v1984_v27 = vadd.f32 %v1983_v23, %v6158_v44 }
 0xfba   :  { %v1893_v28 = vsel %vm349_vm7, %v1888_v22, -inf }
 0xfbb   :  { %1894 = vmax.xlane.f32.xlu1 %v1893_v28  ;;  %v1989_v29 = vsel %vm349_vm7, %v1984_v27, -inf }
 0xfbc   :  { %1990 = vmax.xlane.f32.xlu2 %v1989_v29 }
 0xfc2   :  { %v2076_v32 = vpop.f32.mrf.mxu1 }
 0xfc3   :  { %v2077_v33 = vadd.f32 %v2076_v32, %v6152_v42 }
 0xfc5   :  { %v2082_v37 = vsel %vm349_vm7, %v2077_v33, -inf }
 0xfc6   :  { %2083 = vmax.xlane.f32.xlu0 %v2082_v37 }
 0xfc7   :  { %v2172_v40 = vpop.f32.mrf.mxu0 }
 0xfc8   :  { %v2173_v47 = vadd.f32 %v2172_v40, %v6152_v42 }
 0xfca   :  { %v2079_v43 = vpop.f32.mrf.mxu1  ;;  %v2178_v13 = vsel %vm349_vm7, %v2173_v47, -inf }
 0xfcb   :  { %v2080_v45 = vadd.f32 %v2079_v43, %v6158_v44 }
 0xfcd   :  { %v2085_v48 = vsel %vm349_vm7, %v2080_v45, -inf }
 0xfce   :  { %2086 = vmax.xlane.f32.xlu2 %v2085_v48 }
 0xfcf   :  { %v2175_v50 = vpop.f32.mrf.mxu0 }
 0xfd0   :  { %v2176_v9 = vadd.f32 %v2175_v50, %v6158_v44 }
 0xfd2   :  { %v2181_v54 = vsel %vm349_vm7, %v2176_v9, -inf }
 0xfd3   :  { %2182 = vmax.xlane.f32.xlu0 %v2181_v54 }
 0xfe7   :  { %5380 = vrot.lane.b32.xlu0 %v6597_v17, %s5921_s14 }
0x1026   :  { %v1892_v34 = vpop.xlane.xlu2 %1891 }
0x1027   :  { %v1896_v55 = vsub.f32 %v1885_v15, %v1892_v34  ;;  %v1988_v49 = vpop.xlane.xlu0 %1987 }
0x1028   :  { %v1992_v56 = vsub.f32 %v1981_v18, %v1988_v49 }
0x1029   :  { %v1898_v57 = vmul.f32 1.442695, %v1896_v55 }
0x102a   :  { %v1994_v61 = vmul.f32 1.442695, %v1992_v56 }
0x102b   :  { %5587 = vpow2.f32 %v1898_v57 }
0x102c   :  { %5589 = vpow2.f32 %v1994_v61 }
0x102e   :  { %v1895_v58 = vpop.xlane.xlu1 %1894 }
0x102f   :  { %v1897_v59 = vsub.f32 %v1888_v22, %v1895_v58  ;;  %v1991_v1 = vpop.xlane.xlu2 %1990 }
0x1030   :  { %v1993_v6 = vsub.f32 %v1984_v27, %v1991_v1 }
0x1031   :  { %v5588_v60 = vpop.eup %5587  ;;  %v1900_v53 = vmul.f32 1.442695, %v1897_v59 }
0x1032   :  { %v6658_v52 = vpop.eup %5589  ;;  %v1902_v25 = vsel %vm349_vm7, %v5588_v60, 0.0  ;;  %v1996_v8 = vmul.f32 1.442695, %v1993_v6 }
0x1033   :  { %1903 = vadd.xlane.f32.xlu1 %v1902_v25  ;;  %v1998_v51 = vsel %vm349_vm7, %v6658_v52, 0.0  ;;  %5591 = vpow2.f32 %v1900_v53 }
0x1034   :  { %1999 = vadd.xlane.f32.xlu2 %v1998_v51 }
0x1039   :  { %v2084_v62 = vpop.xlane.xlu0 %2083  ;;  %v6665_v4 = vpop.eup %5591 }
0x103a   :  { %v2088_v63 = vsub.f32 %v2077_v33, %v2084_v62  ;;  %v1905_v7 = vsel %vm349_vm7, %v6665_v4, 0.0 }
0x103b   :  { %2179 = vmax.xlane.f32.xlu1 %v2178_v13 }
0x103c   :  { %v2090_v21 = vmul.f32 1.442695, %v2088_v63 }
0x103e   :  { %5593 = vpow2.f32 %v2090_v21 }
0x103f   :  { %5595 = vpow2.f32 %v1996_v8 }
0x1041   :  { %v2087_v19 = vpop.xlane.xlu2 %2086 }
0x1042   :  { %v2089_v20 = vsub.f32 %v2080_v45, %v2087_v19 }
0x1043   :  { %1906 = vadd.xlane.f32.xlu1 %v1905_v7 }
0x1044   :  { %v6669_v26 = vpop.eup %5593  ;;  %v2092_v22 = vmul.f32 1.442695, %v2089_v20 }
0x1045   :  { %v2094_v24 = vsel %vm349_vm7, %v6669_v26, 0.0  ;;  %v5596_v2 = vpop.eup %5595 }
0x1046   :  { %v2183_v14 = vpop.xlane.xlu0 %2182  ;;  %v2001_v15 = vsel %vm349_vm7, %v5596_v2, 0.0  ;;  %5597 = vpow2.f32 %v2092_v22 }
0x1047   :  { %v2185_v28 = vsub.f32 %v2176_v9, %v2183_v14  ;;  %v6691_v9 = vld [vmem:[%s7475_s11 + $0x8] sm:$0xff] }
0x1048   :  { %v1785_v55 = vperm.slane %v6691_v9, 1 }
0x1049   :  { %v2188_v29 = vmul.f32 1.442695, %v2185_v28 }
0x104a   :  { %v1810_v61 = vadd.f32 %v6638_v3, %v1785_v55 }
0x104b   :  { %2095 = vadd.xlane.f32.xlu1 %v2094_v24  ;;  %5599 = vpow2.f32 %v2188_v29  ;;  %v2269_v29 = vld [vmem:[#allocation5 + $0x78] sm:$0xff] }
0x104c   :  { %5385 = vrot.lane.b32.xlu2 %v6597_v17, %s5922_s15  ;;  %v6678_v23 = vpop.eup %5597  ;;  %2289 = vmatpush.msrb.mxu1 %v2269_v29 }
0x104d   :  { %v2097_v27 = vsel %vm349_vm7, %v6678_v23, 0.0 }
0x1051   :  { %v6684_v32 = vpop.eup %5599 }
0x1052   :  { %v2193_v33 = vsel %vm349_vm7, %v6684_v32, 0.0 }
0x1053   :  { %2002 = vadd.xlane.f32.xlu1 %v2001_v15 }
0x1059   :  { %v5381_v16 = vpop.permute.xlu0 %5380 }
0x105a   :  { %v5382_v18 = vunpack.i.l.bf16 %v5381_v16  ;;  %v5383_v12 = vunpack.i.h.bf16 %v5381_v16 }
0x105c   :  { %1938 = vmatpush.msra.mxu2 %v5382_v18 }
0x105e   :  { %1939 = vmatpush.msra.mxu2 %v5383_v12 }
0x106c   :  { %5390 = vrot.lane.b32.xlu1 %v6597_v17, %s5924_s7 }
0x1074   :  { %5395 = vrot.lane.b32.xlu1 %v6597_v17, %s5927_s17 }
0x1075   :  { %2098 = vadd.xlane.f32.xlu2 %v2097_v27 }
0x109e   :  { %2194 = vadd.xlane.f32.xlu1 %v2193_v33  ;;  %v2268_v33 = vld [vmem:[#allocation5 + $0x70] sm:$0xff] }
0x109f   :  { %2290 = vmatpush.msrb.mxu1 %v2268_v33 }
0x10a6   :  { %v1904_v37 = vpop.xlane.xlu1 %1903 }
0x10a7   :  { %5601 = vrcp.f32 %v1904_v37  ;;  %v2000_v40 = vpop.xlane.xlu2 %1999  ;;  %v2267_v37 = vld [vmem:[#allocation5 + $0x68] sm:$0xff] }
0x10a8   :  { %5603 = vrcp.f32 %v2000_v40  ;;  %2291 = vmatpush.msrb.mxu1 %v2267_v37 }
0x10ad   :  { %v5602_v43 = vpop.eup %5601 }
0x10ae   :  { %v1910_v45 = vmul.f32 %v5602_v43, %v5588_v60  ;;  %v2180_v17 = vpop.xlane.xlu1 %2179  ;;  %v5604_v54 = vpop.eup %5603  ;;  %v1813_v43 = vadd.f32 %v6640_v30, %v1785_v55 }
0x10af   :  { %v2184_v48 = vsub.f32 %v2173_v47, %v2180_v17  ;;  %v5386_v50 = vpop.permute.xlu2 %5385  ;;  %v2006_v57 = vmul.f32 %v5604_v54, %v6658_v52 }
0x10b0   :  { %v5387_v34 = vunpack.i.l.bf16 %v5386_v50  ;;  %5108 = vmatmul.msk.f32.vlgmr.msra.gmra.mxu2 %vm349_vm7, %v1910_v45  ;;  %v5388_v56 = vunpack.i.h.bf16 %v5386_v50  ;;  %v2266_v45 = vld [vmem:[#allocation5 + $0x60] sm:$0xff] }
0x10b1   :  { %v2186_v49 = vmul.f32 1.442695, %v2184_v48  ;;  %2292 = vmatpush.msrb.mxu1 %v2266_v45  ;;  %v2421_v45 = vld [vmem:[%s7474_s10 + $0x8] sm:$0xff] }
0x10b2   :  { %2034 = vmatpush.msrb.mxu3 %v5387_v34 }
0x10b3   :  { %5605 = vpow2.f32 %v2186_v49 }
0x10b4   :  { %2035 = vmatpush.msrb.mxu3 %v5388_v56 }
0x10b5   :  { %5114 = vmatmul.msk.f32.vlgmr.msrb.gmra.mxu3 %vm349_vm7, %v2006_v57 }
0x10b6   :  { %v1907_v58 = vpop.xlane.xlu1 %1906 }
0x10b7   :  { %5607 = vrcp.f32 %v1907_v58  ;;  %2302 = vrot.lane.b32.xlu1 %v1810_v61, %s5934_s25 }
0x10b9   :  { %v5606_v60 = vpop.eup %5605 }
0x10ba   :  { %v2190_v59 = vsel %vm349_vm7, %v5606_v60, 0.0 }
0x10bb   :  { %2191 = vadd.xlane.f32.xlu0 %v2190_v59  ;;  %v2323_v59 = vld [vmem:[#allocation7 + $0x50] sm:$0xff] }
0x10bd   :  { %v5608_v25 = vpop.eup %5607 }
0x10be   :  { %v2096_v51 = vpop.xlane.xlu1 %2095  ;;  %v1911_v52 = vmul.f32 %v5608_v25, %v6665_v4  ;;  %v2322_v25 = vld [vmem:[#allocation7 + $0x48] sm:$0xff] }
0x10c0   :  { %5109 = vmatmul.msk.f32.gmra.mxu2 %vm349_vm7, %v1911_v52  ;;  %v2270_v52 = vperm.slane %v6691_v9, 2 }
0x10c6   :  { %v2003_v53 = vpop.xlane.xlu1 %2002 }
0x10c7   :  { %5609 = vrcp.f32 %v2003_v53 }
0x10c8   :  { %5611 = vrcp.f32 %v2096_v51  ;;  %v2321_v51 = vld [vmem:[#allocation7 + $0x40] sm:$0xff] }
0x10cd   :  { %v5610_v3 = vpop.eup %5609 }
0x10ce   :  { %v2007_v47 = vmul.f32 %v5610_v3, %v5596_v2  ;;  %v5612_v63 = vpop.eup %5611 }
0x10cf   :  { %v2102_v1 = vmul.f32 %v5612_v63, %v6669_v26  ;;  %v1300_v63 = vperm.slane %v6691_v9, 0 }
0x10d0   :  { %5115 = vmatmul.msk.f32.gmra.mxu3 %vm349_vm7, %v2007_v47 }
0x10de   :  { %v5391_v62 = vpop.permute.xlu1 %5390 }
0x10df   :  { %v5392_v13 = vunpack.i.l.bf16 %v5391_v62  ;;  %v5393_v21 = vunpack.i.h.bf16 %v5391_v62 }
0x10e1   :  { %2130 = vmatpush.msrb.mxu2 %v5392_v13 }
0x10e3   :  { %2131 = vmatpush.msrb.mxu2 %v5393_v21  ;;  %v1325_v21 = vadd.f32 %v6521_v10, %v1300_v63 }
0x10e4   :  { %5120 = vmatmul.msk.f32.vlgmr.msrb.gmra.mxu2 %vm349_vm7, %v2102_v1 }
0x10e6   :  { %v5396_v4 = vpop.permute.xlu1 %5395 }
0x10e7   :  { %v5397_v6 = vunpack.i.l.bf16 %v5396_v4  ;;  %v5398_v8 = vunpack.i.h.bf16 %v5396_v4 }
0x10e8   :  { %v2099_v7 = vpop.xlane.xlu2 %2098 }
0x10e9   :  { %5613 = vrcp.f32 %v2099_v7  ;;  %2226 = vmatpush.msra.mxu3 %v5397_v6 }
0x10eb   :  { %2227 = vmatpush.msra.mxu3 %v5398_v8  ;;  %v1328_v8 = vadd.f32 %v6523_v11, %v1300_v63 }
0x10ef   :  { %v5614_v24 = vpop.eup %5613 }
0x10f0   :  { %v2103_v2 = vmul.f32 %v5614_v24, %v6678_v23 }
0x10f2   :  { %5121 = vmatmul.msk.f32.gmra.mxu2 %vm349_vm7, %v2103_v2 }
0x1111   :  { %v2195_v15 = vpop.xlane.xlu1 %2194 }
0x1129   :  { %v2303_v13 = vpop.permute.xlu1 %2302 }
0x112a   :  { %v2316_v1 = vsel %vm212_vm11, %v1325_v21, %v2303_v13 }
0x112e   :  { %v2192_v14 = vpop.xlane.xlu0 %2191 }
0x112f   :  { %5615 = vrcp.f32 %v2192_v14 }
0x1130   :  { %5617 = vrcp.f32 %v2195_v15  ;;  %v2325_v15 = vperm.slane %v6691_v9, 5 }
0x1133   :  { %v1941_v22 = vpop.f32.mrf.mxu2 }
0x1135   :  { %v5616_v16 = vpop.eup %5615 }
0x1136   :  { %v2198_v26 = vmul.f32 %v5616_v16, %v5606_v60  ;;  %v5618_v12 = vpop.eup %5617  ;;  %v2324_v60 = vld [vmem:[#allocation7 + $0x58] sm:$0xff] }
0x1137   :  { %v2199_v19 = vmul.f32 %v5618_v12, %v6684_v32  ;;  %5130 = vmatpush.xpose.msk.msra.mxu2 %vm2326_vm15, %v2324_v60 }
0x1138   :  { %v2037_v18 = vpop.f32.mrf.mxu3  ;;  %5126 = vmatmul.msk.f32.vlgmr.msra.gmra.mxu3 %vm349_vm7, %v2198_v26 }
0x1139   :  { %2237 = vrot.lane.b32.xlu0 %v2037_v18, %s5913_s30 }
0x113b   :  { %5131 = vmatpush.xpose.msk.msra.mxu2 %vm2326_vm15, %v2323_v59 }
0x113f   :  { %5132 = vmatpush.xpose.msk.msra.mxu2 %vm2326_vm15, %v2322_v25 }
0x1140   :  { %5127 = vmatmul.msk.f32.gmra.mxu3 %vm349_vm7, %v2199_v19 }
0x1143   :  { %v1944_v23 = vpop.f32.mrf.mxu2  ;;  %5133 = vmatpush.xpose.msk.msra.mxu2 %vm2326_vm15, %v2321_v51  ;;  %v2414_v51 = vperm.slane %v6691_v9, 3 }
0x1153   :  { %v2040_v20 = vpop.f32.mrf.mxu3 }
0x1154   :  { %2239 = vrot.lane.b32.xlu0 %v2040_v20, %s5913_s30 }
0x1167   :  { %v2133_v27 = vpop.f32.mrf.mxu2 }
0x1168   :  { %2245 = vrot.lane.b32.xlu2 %v2133_v27, %s5932_s8 }
0x1175   :  { %v2136_v28 = vpop.f32.mrf.mxu2 }
0x1176   :  { %2247 = vrot.lane.b32.xlu2 %v2136_v28, %s5932_s8 }
0x11ab   :  { %v2238_v17 = vpop.permute.xlu0 %2237 }
0x11ac   :  { %v2259_v54 = vsel %vm315_vm6, %v1941_v22, %v2238_v17  ;;  %v2420_v17 = vld [vmem:[%s7474_s10] sm:$0xff] }
0x11bb   :  { %v2229_v32 = vpop.f32.mrf.mxu3 }
0x11bc   :  { %2253 = vrot.lane.b32.xlu0 %v2229_v32, %s5933_s0 }
0x11c2   :  { %v2246_v50 = vpop.permute.xlu2 %2245 }
0x11c3   :  { %v2232_v40 = vpop.f32.mrf.mxu3  ;;  %v2261_v34 = vsel %vm349_vm7, %v2259_v54, %v2246_v50 }
0x11c4   :  { %2255 = vrot.lane.b32.xlu0 %v2232_v40, %s5933_s0 }
0x11c6   :  { %v2240_v48 = vpop.permute.xlu0 %2239 }
0x11c7   :  { %v2260_v61 = vsel %vm315_vm6, %v1944_v23, %v2240_v48 }
0x11cc   :  { %2304 = vrot.lane.b32.xlu0 %v1813_v43, %s5934_s25  ;;  %v2422_v43 = vld [vmem:[%s7474_s10 + $0x10] sm:$0xff] }
0x11d0   :  { %v2248_v57 = vpop.permute.xlu2 %2247 }
0x11d1   :  { %v2262_v30 = vsel %vm349_vm7, %v2260_v61, %v2248_v57 }
0x122e   :  { %v2254_v49 = vpop.permute.xlu0 %2253 }
0x122f   :  { %v2263_v56 = vsel %vm723_vm9, %v2261_v34, %v2254_v49 }
0x1230   :  { %5128 = vmatmul.msk.f32.vlgmr.msrb.gmra.mxu1 %vm212_vm11, %v2263_v56 }
0x1236   :  { %v2256_v55 = vpop.permute.xlu0 %2255 }
0x1237   :  { %v2264_v58 = vsel %vm723_vm9, %v2262_v30, %v2256_v55 }
0x1238   :  { %5129 = vmatmul.msk.f32.gmra.mxu1 %vm212_vm11, %v2264_v58 }
0x123e   :  { %v2305_v7 = vpop.permute.xlu0 %2304 }
0x123f   :  { %v2317_v24 = vsel %vm212_vm11, %v1328_v8, %v2305_v7 }
0x12ad   :  { %v2294_v53 = vpop.f32.mrf.mxu1 }
0x12ae   :  { %v2295_v3 = vadd.f32 %v2294_v53, %v2270_v52 }
0x12b0   :  { %2310 = vrot.lane.b32.xlu2 %v2295_v3, %s5926_s2 }
0x12b5   :  { %v2297_v47 = vpop.f32.mrf.mxu1 }
0x12b6   :  { %v2298_v62 = vadd.f32 %v2297_v47, %v2270_v52  ;;  %v2417_v47 = vperm.slane %v6691_v9, 4 }
0x12b8   :  { %2312 = vrot.lane.b32.xlu2 %v2298_v62, %s5926_s2 }
0x130a   :  { %v2311_v4 = vpop.permute.xlu2 %2310 }
0x130b   :  { %v2318_v6 = vsel %vm180_vm1, %v2316_v1, %v2311_v4 }
0x130c   :  { %5134 = vmatmul.msk.f32.vlgmr.msra.gmra.mxu2 %vm2326_vm15, %v2318_v6 }
0x1312   :  { %v2313_v2 = vpop.permute.xlu2 %2312 }
0x1313   :  { %v2319_v14 = vsel %vm180_vm1, %v2317_v24, %v2313_v2  ;;  %v2424_v24 = vperm.slane %v6691_v9, 6 }
0x1314   :  { %5135 = vmatmul.msk.f32.gmra.mxu2 %vm2326_vm15, %v2319_v14 }
0x138f   :  { %v2362_v10 = vpop.f32.mrf.mxu2 }
0x1390   :  { %v2363_v16 = vadd.f32 %v2362_v10, %v2325_v15 }
0x1392   :  { %v2368_v26 = vadd.f32 %v2363_v16, %v6341_v46 }
0x1394   :  { %v2370_v18 = vsel %vm212_vm11, %v2368_v26, 0.0 }
0x1395   :  { %2371 = vadd.xlane.f32.xlu0 %v2370_v18  ;;  %v5143_v18 = vld [vmem:[%s7474_s10 + $0x38] sm:$0xff] }
0x1396   :  { %5144 = vmatpush.xpose.msk.msrb.mxu3 %vm180_vm1, %v5143_v18 }
0x1397   :  { %v2365_v12 = vpop.f32.mrf.mxu2 }
0x1398   :  { %v2366_v19 = vadd.f32 %v2365_v12, %v2325_v15 }
0x139a   :  { %v2369_v11 = vadd.f32 %v2366_v19, %v6345_v36  ;;  %v2423_v36 = vld [vmem:[%s7474_s10 + $0x18] sm:$0xff] }
0x139b   :  { %2443 = vmatpush.msra.mxu0 %v2423_v36 }
0x139c   :  { %v2373_v20 = vsel %vm212_vm11, %v2369_v11, 0.0 }
0x139d   :  { %2374 = vadd.xlane.f32.xlu2 %v2373_v20  ;;  %2444 = vmatpush.msra.mxu0 %v2422_v43 }
0x139f   :  { %2445 = vmatpush.msra.mxu0 %v2421_v45 }
0x13a1   :  { %2446 = vmatpush.msra.mxu0 %v2420_v17 }
0x1408   :  { %v2372_v22 = vpop.xlane.xlu0 %2371 }
0x1409   :  { %v2376_v23 = vmul.f32 %v2372_v22, %v6172_v0 }
0x140b   :  { %v2378_v27 = vsub.f32 %v2368_v26, %v2376_v23 }
0x140d   :  { %v2380_v28 = vmul.f32 %v2378_v27, %v2378_v27 }
0x140f   :  { %v2382_v29 = vsel %vm212_vm11, %v2380_v28, 0.0 }
0x1410   :  { %v2375_v33 = vpop.xlane.xlu2 %2374  ;;  %2383 = vadd.xlane.f32.xlu1 %v2382_v29 }
0x1411   :  { %v2377_v46 = vmul.f32 %v2375_v33, %v6172_v0 }
0x1413   :  { %v2379_v37 = vsub.f32 %v2369_v11, %v2377_v46 }
0x1415   :  { %v2381_v32 = vmul.f32 %v2379_v37, %v2379_v37 }
0x1417   :  { %v2385_v40 = vsel %vm212_vm11, %v2381_v32, 0.0 }
0x1418   :  { %2386 = vadd.xlane.f32.xlu0 %v2385_v40  ;;  %v5141_v40 = vld [vmem:[%s7474_s10 + $0x28] sm:$0xff] }
0x1483   :  { %v2384_v48 = vpop.xlane.xlu1 %2383 }
0x1484   :  { %v2388_v50 = vmul.f32 %v2384_v48, %v6172_v0 }
0x1486   :  { %v2390_v54 = vadd.f32 1e-05, %v2388_v50 }
0x1488   :  { %5619 = vrsqrt.f32 %v2390_v54  ;;  %vm2398_vm2 = vweird.f32 %v2390_v54 }
0x148b   :  { %v2387_v34 = vpop.xlane.xlu0 %2386 }
0x148c   :  { %v2389_v49 = vmul.f32 %v2387_v34, %v6172_v0  ;;  %v5140_v34 = vld [vmem:[%s7474_s10 + $0x20] sm:$0xff] }
0x148e   :  { %v5620_v56 = vpop.eup %5619  ;;  %v2391_v57 = vadd.f32 1e-05, %v2389_v49 }
0x148f   :  { %v2393_v61 = vmul.f32 %v5620_v56, %v2390_v54  ;;  %vm2399_vm0 = vweird.f32 %v5620_v56 }
0x1490   :  { %5621 = vrsqrt.f32 %v2391_v57  ;;  %vm2400_vm4 = vmor %vm2398_vm2, %vm2399_vm0  ;;  %vm2408_vm10 = vweird.f32 %v2391_v57 }
0x1491   :  { %v2394_v30 = vmul.f32 %v5620_v56, %v2393_v61 }
0x1493   :  { %v2395_v55 = vmul.f32 0.5, %v2394_v30 }
0x1495   :  { %v2396_v58 = vsub.f32 1.5, %v2395_v55 }
0x1496   :  { %v5622_v60 = vpop.eup %5621 }
0x1497   :  { %v2397_v59 = vmul.f32 %v5620_v56, %v2396_v58  ;;  %v2403_v25 = vmul.f32 %v5622_v60, %v2391_v57  ;;  %vm2409_vm5 = vweird.f32 %v5622_v60 }
0x1498   :  { %vm2410_vm13 = vmor %vm2408_vm10, %vm2409_vm5 }
0x1499   :  { %v2401_v52 = vsel %vm2400_vm4, %v5620_v56, %v2397_v59  ;;  %v2404_v53 = vmul.f32 %v5622_v60, %v2403_v25 }
0x149a   :  { %v2412_v3 = vmul.f32 %v2401_v52, %v2378_v27  ;;  %v5142_v27 = vld [vmem:[%s7474_s10 + $0x30] sm:$0xff] }
0x149b   :  { %v2405_v62 = vmul.f32 0.5, %v2404_v53  ;;  %5145 = vmatpush.xpose.msk.msrb.mxu3 %vm180_vm1, %v5142_v27 }
0x149c   :  { %v2415_v63 = vmul.f32 %v2414_v51, %v2412_v3 }
0x149d   :  { %v2406_v13 = vsub.f32 1.5, %v2405_v62 }
0x149e   :  { %v6771_v21 = vadd.f32 %v2417_v47, %v2415_v63 }
0x149f   :  { %v2407_v1 = vmul.f32 %v5622_v60, %v2406_v13  ;;  %5146 = vmatpush.xpose.msk.msrb.mxu3 %vm180_vm1, %v5141_v40 }
0x14a0   :  { %5136 = vmatmul.msk.f32.vlgmr.msra.gmra.mxu0 %vm212_vm11, %v6771_v21 }
0x14a1   :  { %v2411_v4 = vsel %vm2410_vm13, %v5622_v60, %v2407_v1 }
0x14a2   :  { %v2413_v6 = vmul.f32 %v2411_v4, %v2379_v37 }
0x14a3   :  { %5147 = vmatpush.xpose.msk.msrb.mxu3 %vm180_vm1, %v5140_v34 }
0x14a4   :  { %v2416_v7 = vmul.f32 %v2414_v51, %v2413_v6 }
0x14a6   :  { %v6775_v8 = vadd.f32 %v2417_v47, %v2416_v7 }
0x14a8   :  { %5137 = vmatmul.msk.f32.gmra.mxu0 %vm212_vm11, %v6775_v8 }
0x151d   :  { %v2448_v2 = vpop.f32.mrf.mxu0 }
0x151e   :  { %v6780_v14 = vadd.f32 %v2448_v2, %v2424_v24 }
0x1520   :  { %v6783_v15 = vmul.f32 0.70710677, %v6780_v14 }
0x1522   :  { %v2458_v10 = vmul.f32 %v6783_v15, %v6783_v15 }
0x1524   :  { %v2459_v16 = vmin.f32 %v2458_v10, 16.0 }
0x1525   :  { %v2451_v26 = vpop.f32.mrf.mxu0 }
0x1526   :  { %v2460_v12 = vmul.f32 2.1237322e-06, %v2459_v16  ;;  %v2471_v19 = vmul.f32 3.8918573e-05, %v2459_v16  ;;  %v6790_v11 = vadd.f32 %v2451_v26, %v2424_v24 }
0x1528   :  { %v2461_v20 = vadd.f32 0.00028619796, %v2460_v12  ;;  %v2472_v22 = vadd.f32 0.001143296, %v2471_v19  ;;  %v6794_v23 = vmul.f32 0.70710677, %v6790_v11 }
0x152a   :  { %v2462_v28 = vmul.f32 %v2461_v20, %v2459_v16  ;;  %v2473_v29 = vmul.f32 %v2472_v22, %v2459_v16  ;;  %v2498_v33 = vmul.f32 %v6794_v23, %v6794_v23 }
0x152c   :  { %v2474_v46 = vadd.f32 0.014752088, %v2473_v29  ;;  %v2463_v37 = vadd.f32 0.0036580483, %v2462_v28  ;;  %v2499_v32 = vmin.f32 %v2498_v33, 16.0 }
0x152e   :  { %v2475_v36 = vmul.f32 %v2474_v46, %v2459_v16  ;;  %v2500_v43 = vmul.f32 2.1237322e-06, %v2499_v32  ;;  %v2511_v45 = vmul.f32 3.8918573e-05, %v2499_v32  ;;  %v2464_v48 = vmul.f32 %v2463_v37, %v2459_v16 }
0x1530   :  { %v2476_v17 = vadd.f32 0.112945676, %v2475_v36  ;;  %v2501_v50 = vadd.f32 0.00028619796, %v2500_v43  ;;  %v2512_v54 = vadd.f32 0.001143296, %v2511_v45 }
0x1531   :  { %v2465_v30 = vadd.f32 0.05243302, %v2464_v48 }
0x1532   :  { %v2477_v49 = vmul.f32 %v2476_v17, %v2459_v16  ;;  %v2502_v56 = vmul.f32 %v2501_v50, %v2499_v32  ;;  %v2513_v57 = vmul.f32 %v2512_v54, %v2499_v32  ;;  %v2454_v50 = vmul.f32 0.5, %v6780_v14 }
0x1533   :  { %v2466_v51 = vmul.f32 %v2465_v30, %v2459_v16  ;;  %v2547_v14 = vperm.slane %v6691_v9, 7 }
0x1534   :  { %v2478_v61 = vadd.f32 0.4994258, %v2477_v49  ;;  %v2514_v55 = vadd.f32 0.014752088, %v2513_v57  ;;  %v2503_v60 = vadd.f32 0.0036580483, %v2502_v56 }
0x1535   :  { %v2467_v47 = vadd.f32 0.18741608, %v2466_v51 }
0x1536   :  { %v2479_v58 = vmul.f32 %v2478_v61, %v2459_v16  ;;  %v2515_v59 = vmul.f32 %v2514_v55, %v2499_v32  ;;  %v2504_v53 = vmul.f32 %v2503_v60, %v2499_v32  ;;  %v2455_v55 = vmul.f32 0.5, %v6790_v11 }
0x1537   :  { %v2468_v4 = vmul.f32 %v2467_v47, %v2459_v16 }
0x1538   :  { %v2480_v25 = vadd.f32 1.0, %v2479_v58  ;;  %v2516_v52 = vadd.f32 0.112945676, %v2515_v59  ;;  %v2505_v63 = vadd.f32 0.05243302, %v2504_v53 }
0x1539   :  { %v2469_v26 = vadd.f32 1.1283791, %v2468_v4 }
0x153a   :  { %5623 = vrcp.f32 %v2480_v25  ;;  %v2517_v3 = vmul.f32 %v2516_v52, %v2499_v32  ;;  %v2506_v24 = vmul.f32 %v2505_v63, %v2499_v32  ;;  %v2492_v10 = vand.u32 2147483648, %v2480_v25 }
0x153b   :  { %v2490_v12 = vand.u32 2147483647, %v2480_v25  ;;  %vm2486_vm8 = vweird.f32 %v2480_v25  ;;  %v2470_v28 = vmul.f32 %v2469_v26, %v6783_v15 }
0x153c   :  { %v2518_v62 = vadd.f32 0.4994258, %v2517_v3  ;;  %v2507_v19 = vadd.f32 0.18741608, %v2506_v24  ;;  %v2493_v22 = vor.u32 1.1754944e-38, %v2492_v10  ;;  %v2648_v24 = vld [vmem:[#allocation7 + $0x70] sm:$0xff] }
0x153d   :  { %vm2491_vm14 = vcmp.eq.f32.partialorder %v2490_v12, 8.507059e+37  ;;  %v2646_v10 = vld [vmem:[#allocation7 + $0x60] sm:$0xff] }
0x153e   :  { %v2519_v13 = vmul.f32 %v2518_v62, %v2499_v32  ;;  %v2508_v33 = vmul.f32 %v2507_v19, %v2499_v32 }
0x1540   :  { %v5624_v1 = vpop.eup %5623  ;;  %v2520_v7 = vadd.f32 1.0, %v2519_v13  ;;  %v2509_v45 = vadd.f32 1.1283791, %v2508_v33  ;;  %v272_v33 = vld [vmem:[%s7475_s11 + $0x10] sm:$0x3] }
0x1541   :  { %v2482_v6 = vmul.f32 %v5624_v1, %v2480_v25  ;;  %vm2487_vm3 = vweird.f32 %v5624_v1 }
0x1542   :  { %5625 = vrcp.f32 %v2520_v7  ;;  %vm2488_vm12 = vmor %vm2486_vm8, %vm2487_vm3  ;;  %v2532_v43 = vand.u32 2147483648, %v2520_v7  ;;  %v2530_v48 = vand.u32 2147483647, %v2520_v7  ;;  %vm2526_vm2 = vweird.f32 %v2520_v7 }
0x1543   :  { %v2483_v2 = vsub.f32 1.0, %v2482_v6  ;;  %v2510_v56 = vmul.f32 %v2509_v45, %v6794_v23 }
0x1544   :  { %v2533_v15 = vor.u32 1.1754944e-38, %v2532_v43  ;;  %vm2531_vm5 = vcmp.eq.f32.partialorder %v2530_v48, 8.507059e+37 }
0x1545   :  { %v2484_v18 = vmul.f32 %v5624_v1, %v2483_v2  ;;  %v2647_v2 = vld [vmem:[#allocation7 + $0x68] sm:$0xff] }
0x1547   :  { %v2485_v20 = vadd.f32 %v5624_v1, %v2484_v18 }
0x1548   :  { %v5626_v27 = vpop.eup %5625 }
0x1549   :  { %v2489_v29 = vsel %vm2488_vm12, %v5624_v1, %v2485_v20  ;;  %v2522_v46 = vmul.f32 %v5626_v27, %v2520_v7  ;;  %vm2527_vm0 = vweird.f32 %v5626_v27 }
0x154a   :  { %v2494_v16 = vsel %vm2491_vm14, %v2493_v22, %v2489_v29  ;;  %vm2528_vm4 = vmor %vm2526_vm2, %vm2527_vm0 }
0x154b   :  { %v2495_v37 = vmul.f32 %v2494_v16, %v2470_v28  ;;  %v2523_v40 = vsub.f32 1.0, %v2522_v46 }
0x154d   :  { %v5138_v36 = vclamps-f32 %v2495_v37, 1.0  ;;  %v2524_v17 = vmul.f32 %v5626_v27, %v2523_v40 }
0x154f   :  { %v2538_v54 = vadd.f32 1.0, %v5138_v36  ;;  %v2525_v34 = vadd.f32 %v5626_v27, %v2524_v17  ;;  %v2635_v36 = vperm.slane %v272_v33, 0 }
0x1551   :  { %v2540_v49 = vmul.f32 %v2538_v54, %v2454_v50  ;;  %v2529_v32 = vsel %vm2528_vm4, %v5626_v27, %v2525_v34  ;;  %v2638_v50 = vperm.slane %v272_v33, 1 }
0x1552   :  { %v2534_v57 = vsel %vm2531_vm5, %v2533_v15, %v2529_v32 }
0x1553   :  { %5148 = vmatmul.msk.f32.vlgmr.msrb.gmra.mxu3 %vm180_vm1, %v2540_v49  ;;  %v2535_v61 = vmul.f32 %v2534_v57, %v2510_v56 }
0x1555   :  { %v5139_v30 = vclamps-f32 %v2535_v61, 1.0 }
0x1557   :  { %v2539_v58 = vadd.f32 1.0, %v5139_v30 }
0x1559   :  { %v2541_v60 = vmul.f32 %v2539_v58, %v2455_v55  ;;  %v6841_v55 = vld [vmem:[%s7475_s11 + $0x18] sm:$0xff] }
0x155a   :  { %v2650_v58 = vperm.slane %v6841_v55, 0 }
0x155b   :  { %5149 = vmatmul.msk.f32.gmra.mxu3 %vm180_vm1, %v2541_v60 }
0x15d6   :  { %v2583_v59 = vpop.f32.mrf.mxu3 }
0x15d7   :  { %v2584_v25 = vadd.f32 %v2583_v59, %v2547_v14 }
0x15d9   :  { %v2589_v51 = vadd.f32 %v2584_v25, %v6771_v21 }
0x15db   :  { %v2591_v23 = vsel %vm212_vm11, %v2589_v51, 0.0 }
0x15dc   :  { %2592 = vadd.xlane.f32.xlu2 %v2591_v23 }
0x15de   :  { %v2586_v52 = vpop.f32.mrf.mxu3 }
0x15df   :  { %v2587_v53 = vadd.f32 %v2586_v52, %v2547_v14 }
0x15e1   :  { %v2590_v3 = vadd.f32 %v2587_v53, %v6775_v8  ;;  %v2649_v8 = vld [vmem:[#allocation7 + $0x78] sm:$0xff] }
0x15e2   :  { %2669 = vmatpush.msra.mxu1 %v2649_v8 }
0x15e3   :  { %v2594_v47 = vsel %vm212_vm11, %v2590_v3, 0.0 }
0x15e4   :  { %2595 = vadd.xlane.f32.xlu0 %v2594_v47  ;;  %2670 = vmatpush.msra.mxu1 %v2648_v24 }
0x15e6   :  { %2671 = vmatpush.msra.mxu1 %v2647_v2 }
0x15e8   :  { %2672 = vmatpush.msra.mxu1 %v2646_v10 }
0x164f   :  { %v2593_v11 = vpop.xlane.xlu2 %2592 }
0x1650   :  { %v2597_v62 = vmul.f32 %v2593_v11, %v6172_v0 }
0x1652   :  { %v2599_v63 = vsub.f32 %v2589_v51, %v2597_v62 }
0x1654   :  { %v2601_v13 = vmul.f32 %v2599_v63, %v2599_v63 }
0x1656   :  { %v2603_v9 = vsel %vm212_vm11, %v2601_v13, 0.0 }
0x1657   :  { %2604 = vadd.xlane.f32.xlu2 %v2603_v9  ;;  %v2596_v1 = vpop.xlane.xlu0 %2595 }
0x1658   :  { %v2598_v21 = vmul.f32 %v2596_v1, %v6172_v0 }
0x165a   :  { %v2600_v4 = vsub.f32 %v2590_v3, %v2598_v21 }
0x165c   :  { %v2602_v6 = vmul.f32 %v2600_v4, %v2600_v4 }
0x165e   :  { %v2606_v7 = vsel %vm212_vm11, %v2602_v6, 0.0 }
0x165f   :  { %2607 = vadd.xlane.f32.xlu1 %v2606_v7 }
0x16ca   :  { %v2605_v26 = vpop.xlane.xlu2 %2604 }
0x16cb   :  { %v2609_v18 = vmul.f32 %v2605_v26, %v6172_v0 }
0x16cd   :  { %v2611_v12 = vadd.f32 1e-05, %v2609_v18 }
0x16cf   :  { %5627 = vrsqrt.f32 %v2611_v12  ;;  %vm2619_vm13 = vweird.f32 %v2611_v12 }
0x16d2   :  { %v2608_v19 = vpop.xlane.xlu1 %2607 }
0x16d3   :  { %v2610_v20 = vmul.f32 %v2608_v19, %v6172_v0 }
0x16d5   :  { %v5628_v22 = vpop.eup %5627  ;;  %v2612_v28 = vadd.f32 1e-05, %v2610_v20 }
0x16d6   :  { %v2614_v27 = vmul.f32 %v5628_v22, %v2611_v12  ;;  %vm2620_vm10 = vweird.f32 %v5628_v22 }
0x16d7   :  { %5629 = vrsqrt.f32 %v2612_v28  ;;  %vm2621_vm3 = vmor %vm2619_vm13, %vm2620_vm10  ;;  %vm2629_vm12 = vweird.f32 %v2612_v28 }
0x16d8   :  { %v2615_v29 = vmul.f32 %v5628_v22, %v2614_v27 }
0x16da   :  { %v2616_v16 = vmul.f32 0.5, %v2615_v29 }
0x16dc   :  { %v2617_v46 = vsub.f32 1.5, %v2616_v16 }
0x16dd   :  { %v5630_v37 = vpop.eup %5629 }
0x16de   :  { %v2618_v40 = vmul.f32 %v5628_v22, %v2617_v46  ;;  %v2624_v43 = vmul.f32 %v5630_v37, %v2612_v28  ;;  %vm2630_vm8 = vweird.f32 %v5630_v37 }
0x16df   :  { %vm2631_vm14 = vmor %vm2629_vm12, %vm2630_vm8 }
0x16e0   :  { %v2622_v45 = vsel %vm2621_vm3, %v5628_v22, %v2618_v40  ;;  %v2625_v48 = vmul.f32 %v5630_v37, %v2624_v43 }
0x16e1   :  { %v2633_v17 = vmul.f32 %v2622_v45, %v2599_v63 }
0x16e2   :  { %v2626_v34 = vmul.f32 0.5, %v2625_v48 }
0x16e3   :  { %v2636_v54 = vmul.f32 %v2635_v36, %v2633_v17 }
0x16e4   :  { %v2627_v49 = vsub.f32 1.5, %v2626_v34 }
0x16e5   :  { %v6830_v15 = vadd.f32 %v2638_v50, %v2636_v54 }
0x16e6   :  { %v2628_v56 = vmul.f32 %v5630_v37, %v2627_v49 }
0x16e7   :  { %5153 = vmatmul.msk.f32.vlgmr.msra.gmra.mxu1 %vm212_vm11, %v6830_v15 }
0x16e8   :  { %v2632_v32 = vsel %vm2631_vm14, %v5630_v37, %v2628_v56 }
0x16e9   :  { %v2634_v57 = vmul.f32 %v2632_v32, %v2600_v4 }
0x16eb   :  { %v2637_v61 = vmul.f32 %v2635_v36, %v2634_v57 }
0x16ed   :  { %v6834_v30 = vadd.f32 %v2638_v50, %v2637_v61 }
0x16ef   :  { %5154 = vmatmul.msk.f32.gmra.mxu1 %vm212_vm11, %v6834_v30 }
0x1764   :  { %v2674_v60 = vpop.f32.mrf.mxu1 }
0x1765   :  { %v2675_v14 = vadd.f32 %v2674_v60, %v2650_v58 }
0x1767   :  { %2782 = vrot.lane.b32.xlu0 %v2675_v14, %s5922_s15  ;;  %2684 = vrot.lane.b32.xlu1 %v2675_v14, %s5921_s14  ;;  %v2680_v23 = vmul.f32 0.35355338, %v2675_v14 }
0x176c   :  { %v2677_v59 = vpop.f32.mrf.mxu1 }
0x176d   :  { %v2678_v25 = vadd.f32 %v2677_v59, %v2650_v58 }
0x176f   :  { %2880 = vrot.lane.b32.xlu1 %v2678_v25, %s5924_s7  ;;  %2784 = vrot.lane.b32.xlu2 %v2678_v25, %s5922_s15  ;;  %v6848_v51 = vpack.i.bf16 %v2675_v14, %v2678_v25  ;;  %v2681_v52 = vmul.f32 0.35355338, %v2678_v25 }
0x1770   :  { %2686 = vrot.lane.b32.xlu0 %v2678_v25, %s5921_s14 }
0x1777   :  { %2974 = vrot.lane.b32.xlu1 %v2675_v14, %s5927_s17  ;;  %2778 = vrot.lane.b32.xlu2 %v2680_v23, %s5923_s16 }
0x1778   :  { %2878 = vrot.lane.b32.xlu0 %v2675_v14, %s5924_s7 }
0x177f   :  { %2976 = vrot.lane.b32.xlu2 %v2678_v25, %s5927_s17  ;;  %2876 = vrot.lane.b32.xlu1 %v2681_v52, %s5928_s18 }
0x1780   :  { %2780 = vrot.lane.b32.xlu0 %v2681_v52, %s5923_s16 }
0x1787   :  { %2874 = vrot.lane.b32.xlu2 %v2680_v23, %s5928_s18 }
0x1788   :  { %2970 = vrot.lane.b32.xlu0 %v2680_v23, %s5925_s3 }
0x178f   :  { %2972 = vrot.lane.b32.xlu2 %v2681_v52, %s5925_s3 }
0x17c9   :  { %v2785_v53 = vpop.permute.xlu2 %2784 }
0x17ca   :  { %5161 = vmatpush.xpose.msk.msra.mxu3 %vm315_vm6, %v2785_v53 }
0x17d1   :  { %v2779_v3 = vpop.permute.xlu2 %2778 }
0x17d9   :  { %v2685_v47 = vpop.permute.xlu1 %2684  ;;  %v2783_v11 = vpop.permute.xlu0 %2782 }
0x17da   :  { %v2977_v62 = vpop.permute.xlu2 %2976  ;;  %5162 = vmatpush.xpose.msk.msra.mxu3 %vm315_vm6, %v2783_v11 }
0x17dd   :  { %5163 = vmatmul.msk.f32.vlgmr.msra.gmra.mxu3 %vm315_vm6, %v2779_v3 }
0x17de   :  { %5173 = vmatpush.xpose.msk.msrb.mxu3 %vm315_vm6, %v2977_v62 }
0x17e1   :  { %v2881_v63 = vpop.permute.xlu1 %2880 }
0x17e2   :  { %v2687_v13 = vpop.permute.xlu0 %2686  ;;  %v2875_v4 = vpop.permute.xlu2 %2874 }
0x17e3   :  { %5155 = vmatpush.xpose.msk.msrb.mxu2 %vm315_vm6, %v2687_v13 }
0x17e7   :  { %5156 = vmatpush.xpose.msk.msrb.mxu2 %vm315_vm6, %v2685_v47 }
0x17e9   :  { %v2975_v9 = vpop.permute.xlu1 %2974 }
0x17ea   :  { %5157 = vmatmul.msk.f32.vlgmr.msrb.gmra.mxu2 %vm315_vm6, %v2680_v23  ;;  %v2879_v1 = vpop.permute.xlu0 %2878  ;;  %5174 = vmatpush.xpose.msk.msrb.mxu3 %vm315_vm6, %v2975_v9  ;;  %v2973_v8 = vpop.permute.xlu2 %2972 }
0x17eb   :  { %5167 = vmatpush.xpose.msk.msra.mxu2 %vm315_vm6, %v2881_v63 }
0x17ef   :  { %5168 = vmatpush.xpose.msk.msra.mxu2 %vm315_vm6, %v2879_v1 }
0x17f1   :  { %v2877_v7 = vpop.permute.xlu1 %2876 }
0x17f2   :  { %5158 = vmatmul.msk.f32.gmra.mxu2 %vm315_vm6, %v2681_v52  ;;  %v2781_v21 = vpop.permute.xlu0 %2780 }
0x17f3   :  { %5164 = vmatmul.msk.f32.gmra.mxu3 %vm315_vm6, %v2781_v21 }
0x17fa   :  { %5169 = vmatmul.msk.f32.vlgmr.msra.gmra.mxu2 %vm315_vm6, %v2875_v4  ;;  %v2971_v6 = vpop.permute.xlu0 %2970 }
0x17fb   :  { %5175 = vmatmul.msk.f32.vlgmr.msrb.gmra.mxu3 %vm315_vm6, %v2971_v6 }
0x1802   :  { %5170 = vmatmul.msk.f32.gmra.mxu2 %vm315_vm6, %v2877_v7 }
0x1803   :  { %5176 = vmatmul.msk.f32.gmra.mxu3 %vm315_vm6, %v2973_v8 }
0x1860   :  { %v2811_v24 = vpop.f32.mrf.mxu3 }
0x1861   :  { %v2812_v2 = vadd.f32 %v2811_v24, %v6093_v31 }
0x1863   :  { %v2817_v10 = vsel %vm349_vm7, %v2812_v2, -inf }
0x1864   :  { %2818 = vmax.xlane.f32.xlu1 %v2817_v10 }
0x186d   :  { %v2715_v26 = vpop.f32.mrf.mxu2 }
0x186e   :  { %v2716_v18 = vadd.f32 %v2715_v26, %v6093_v31 }
0x1870   :  { %v2721_v12 = vsel %vm349_vm7, %v2716_v18, -inf }
0x1871   :  { %2722 = vmax.xlane.f32.xlu0 %v2721_v12 }
0x1875   :  { %v2718_v19 = vpop.f32.mrf.mxu2 }
0x1876   :  { %v2719_v20 = vadd.f32 %v2718_v19, %v6225_v5  ;;  %v2814_v22 = vpop.f32.mrf.mxu3 }
0x1877   :  { %v2815_v27 = vadd.f32 %v2814_v22, %v6225_v5 }
0x1878   :  { %v2724_v28 = vsel %vm349_vm7, %v2719_v20, -inf }
0x1879   :  { %2725 = vmax.xlane.f32.xlu2 %v2724_v28  ;;  %v2820_v29 = vsel %vm349_vm7, %v2815_v27, -inf }
0x187a   :  { %2821 = vmax.xlane.f32.xlu0 %v2820_v29 }
0x187d   :  { %v2907_v16 = vpop.f32.mrf.mxu2 }
0x187e   :  { %v2908_v33 = vadd.f32 %v2907_v16, %v6093_v31  ;;  %v3003_v46 = vpop.f32.mrf.mxu3 }
0x187f   :  { %v3004_v37 = vadd.f32 %v3003_v46, %v6093_v31 }
0x1880   :  { %v2913_v40 = vsel %vm349_vm7, %v2908_v33, -inf }
0x1881   :  { %2914 = vmax.xlane.f32.xlu1 %v2913_v40  ;;  %v3009_v36 = vsel %vm349_vm7, %v3004_v37, -inf }
0x1882   :  { %3010 = vmax.xlane.f32.xlu2 %v3009_v36 }
0x1885   :  { %v2910_v43 = vpop.f32.mrf.mxu2 }
0x1886   :  { %v2911_v45 = vadd.f32 %v2910_v43, %v6225_v5  ;;  %v3006_v17 = vpop.f32.mrf.mxu3 }
0x1887   :  { %v3007_v48 = vadd.f32 %v3006_v17, %v6225_v5 }
0x1888   :  { %v2916_v50 = vsel %vm349_vm7, %v2911_v45, -inf }
0x1889   :  { %2917 = vmax.xlane.f32.xlu0 %v2916_v50  ;;  %v3012_v54 = vsel %vm349_vm7, %v3007_v48, -inf }
0x188a   :  { %3013 = vmax.xlane.f32.xlu1 %v3012_v54 }
0x189d   :  { %5405 = vrot.lane.b32.xlu0 %v6848_v51, %s5929_s19 }
0x18a3   :  { %5400 = vrot.lane.b32.xlu1 %v6848_v51, %s5926_s2 }
0x18d7   :  { %v2819_v31 = vpop.xlane.xlu1 %2818 }
0x18d8   :  { %v2823_v34 = vsub.f32 %v2812_v2, %v2819_v31 }
0x18da   :  { %v2825_v49 = vmul.f32 1.442695, %v2823_v34 }
0x18dc   :  { %5631 = vpow2.f32 %v2825_v49 }
0x18e2   :  { %v6896_v56 = vpop.eup %5631 }
0x18e3   :  { %v2829_v5 = vsel %vm349_vm7, %v6896_v56, 0.0 }
0x18e4   :  { %2830 = vadd.xlane.f32.xlu0 %v2829_v5  ;;  %v2723_v32 = vpop.xlane.xlu0 %2722 }
0x18e5   :  { %v2727_v57 = vsub.f32 %v2716_v18, %v2723_v32 }
0x18e7   :  { %v2729_v61 = vmul.f32 1.442695, %v2727_v57 }
0x18e9   :  { %5633 = vpow2.f32 %v2729_v61 }
0x18ec   :  { %v2726_v58 = vpop.xlane.xlu2 %2725 }
0x18ed   :  { %v2728_v60 = vsub.f32 %v2719_v20, %v2726_v58  ;;  %v2822_v14 = vpop.xlane.xlu0 %2821 }
0x18ee   :  { %v2824_v23 = vsub.f32 %v2815_v27, %v2822_v14 }
0x18ef   :  { %v6900_v59 = vpop.eup %5633  ;;  %v2731_v25 = vmul.f32 1.442695, %v2728_v60 }
0x18f0   :  { %v2733_v52 = vsel %vm349_vm7, %v6900_v59, 0.0  ;;  %v2827_v53 = vmul.f32 1.442695, %v2824_v23 }
0x18f1   :  { %5635 = vpow2.f32 %v2731_v25  ;;  %2734 = vadd.xlane.f32.xlu2 %v2733_v52 }
0x18f2   :  { %5637 = vpow2.f32 %v2827_v53 }
0x18f4   :  { %v2915_v3 = vpop.xlane.xlu1 %2914 }
0x18f5   :  { %v3011_v47 = vpop.xlane.xlu2 %3010  ;;  %v2919_v63 = vsub.f32 %v2908_v33, %v2915_v3 }
0x18f6   :  { %v3015_v11 = vsub.f32 %v3004_v37, %v3011_v47 }
0x18f7   :  { %v6904_v62 = vpop.eup %5635  ;;  %v2921_v1 = vmul.f32 1.442695, %v2919_v63 }
0x18f8   :  { %5410 = vrot.lane.b32.xlu0 %v6848_v51, %s5931_s21  ;;  %v3017_v13 = vmul.f32 1.442695, %v3015_v11  ;;  %v2736_v9 = vsel %vm349_vm7, %v6904_v62, 0.0  ;;  %v6910_v4 = vpop.eup %5637 }
0x18f9   :  { %2737 = vadd.xlane.f32.xlu2 %v2736_v9  ;;  %v2832_v8 = vsel %vm349_vm7, %v6910_v4, 0.0 }
0x18fa   :  { %5639 = vpow2.f32 %v3017_v13 }
0x18fb   :  { %5641 = vpow2.f32 %v2921_v1 }
0x18fc   :  { %v2918_v21 = vpop.xlane.xlu0 %2917 }
0x18fd   :  { %v2920_v6 = vsub.f32 %v2911_v45, %v2918_v21  ;;  %v3014_v10 = vpop.xlane.xlu1 %3013 }
0x18fe   :  { %v3016_v18 = vsub.f32 %v3007_v48, %v3014_v10  ;;  %v3099_v10 = vld [vmem:[#allocation5 + $0x90] sm:$0xff] }
0x18ff   :  { %v2923_v2 = vmul.f32 1.442695, %v2920_v6 }
0x1900   :  { %5415 = vrot.lane.b32.xlu0 %v6848_v51, %s5930_s20  ;;  %v6914_v7 = vpop.eup %5639  ;;  %v3019_v19 = vmul.f32 1.442695, %v3016_v18  ;;  %v3097_v18 = vld [vmem:[#allocation5 + $0x80] sm:$0xff] }
0x1901   :  { %2833 = vadd.xlane.f32.xlu2 %v2832_v8  ;;  %v3021_v24 = vsel %vm349_vm7, %v6914_v7, 0.0  ;;  %v5642_v26 = vpop.eup %5641  ;;  %5643 = vpow2.f32 %v2923_v2  ;;  %v3100_v2 = vld [vmem:[#allocation5 + $0x98] sm:$0xff] }
0x1902   :  { %3022 = vadd.xlane.f32.xlu1 %v3021_v24  ;;  %v2925_v12 = vsel %vm349_vm7, %v5642_v26, 0.0  ;;  %5645 = vpow2.f32 %v3019_v19  ;;  %3120 = vmatpush.msrb.mxu2 %v3100_v2 }
0x1904   :  { %3121 = vmatpush.msrb.mxu2 %v3099_v10 }
0x1907   :  { %v5644_v51 = vpop.eup %5643 }
0x1908   :  { %v2928_v27 = vsel %vm349_vm7, %v5644_v51, 0.0  ;;  %v5646_v29 = vpop.eup %5645 }
0x1909   :  { %2926 = vadd.xlane.f32.xlu2 %v2925_v12  ;;  %v3024_v37 = vsel %vm349_vm7, %v5646_v29, 0.0 }
0x190f   :  { %v5406_v20 = vpop.permute.xlu0 %5405 }
0x1910   :  { %v5407_v22 = vunpack.i.l.bf16 %v5406_v20  ;;  %v5408_v28 = vunpack.i.h.bf16 %v5406_v20 }
0x1911   :  { %2929 = vadd.xlane.f32.xlu2 %v2928_v27 }
0x1912   :  { %2865 = vmatpush.msrb.mxu1 %v5407_v22 }
0x1914   :  { %2866 = vmatpush.msrb.mxu1 %v5408_v28 }
0x1915   :  { %v5401_v16 = vpop.permute.xlu1 %5400 }
0x1916   :  { %v5402_v33 = vunpack.i.l.bf16 %v5401_v16  ;;  %v5403_v46 = vunpack.i.h.bf16 %v5401_v16 }
0x1918   :  { %2769 = vmatpush.msrb.mxu0 %v5402_v33 }
0x1919   :  { %3025 = vadd.xlane.f32.xlu2 %v3024_v37 }
0x191a   :  { %2770 = vmatpush.msrb.mxu0 %v5403_v46 }
0x1957   :  { %v2831_v40 = vpop.xlane.xlu0 %2830 }
0x1958   :  { %5647 = vrcp.f32 %v2831_v40  ;;  %v3101_v40 = vperm.slane %v6841_v55, 1 }
0x195e   :  { %v5648_v36 = vpop.eup %5647 }
0x195f   :  { %v2837_v43 = vmul.f32 %v5648_v36, %v6896_v56 }
0x1961   :  { %5165 = vmatmul.msk.f32.vlgmr.msrb.gmra.mxu1 %vm349_vm7, %v2837_v43 }
0x1964   :  { %v2735_v45 = vpop.xlane.xlu2 %2734 }
0x1965   :  { %5649 = vrcp.f32 %v2735_v45 }
0x196a   :  { %v5411_v17 = vpop.permute.xlu0 %5410 }
0x196b   :  { %v5412_v48 = vunpack.i.l.bf16 %v5411_v17  ;;  %v5650_v50 = vpop.eup %5649  ;;  %v5413_v34 = vunpack.i.h.bf16 %v5411_v17 }
0x196c   :  { %v2741_v54 = vmul.f32 %v5650_v50, %v6900_v59  ;;  %v2738_v31 = vpop.xlane.xlu2 %2737 }
0x196d   :  { %2961 = vmatpush.msra.mxu0 %v5412_v48  ;;  %5651 = vrcp.f32 %v2738_v31 }
0x196e   :  { %5159 = vmatmul.msk.f32.vlgmr.msrb.gmra.mxu0 %vm349_vm7, %v2741_v54 }
0x196f   :  { %2962 = vmatpush.msra.mxu0 %v5413_v34  ;;  %v3222_v34 = vld [vmem:[#allocation8 + $0x78] sm:$0xff] }
0x1970   :  { %3236 = vmatpush.msra.mxu3 %v3222_v34 }
0x1972   :  { %v5416_v49 = vpop.permute.xlu0 %5415 }
0x1973   :  { %v5417_v5 = vunpack.i.l.bf16 %v5416_v49  ;;  %v5652_v32 = vpop.eup %5651  ;;  %v5418_v56 = vunpack.i.h.bf16 %v5416_v49  ;;  %v3221_v49 = vld [vmem:[#allocation8 + $0x70] sm:$0xff] }
0x1974   :  { %v2834_v57 = vpop.xlane.xlu2 %2833  ;;  %v2742_v61 = vmul.f32 %v5652_v32, %v6904_v62  ;;  %3237 = vmatpush.msra.mxu3 %v3221_v49  ;;  %v3219_v32 = vld [vmem:[#allocation8 + $0x60] sm:$0xff] }
0x1975   :  { %3057 = vmatpush.msra.mxu1 %v5417_v5  ;;  %5653 = vrcp.f32 %v2834_v57  ;;  %v3023_v58 = vpop.xlane.xlu1 %3022  ;;  %v3220_v5 = vld [vmem:[#allocation8 + $0x68] sm:$0xff] }
0x1976   :  { %5160 = vmatmul.msk.f32.gmra.mxu0 %vm349_vm7, %v2742_v61  ;;  %5655 = vrcp.f32 %v3023_v58  ;;  %3238 = vmatpush.msra.mxu3 %v3220_v5 }
0x1977   :  { %3058 = vmatpush.msra.mxu1 %v5418_v56 }
0x1978   :  { %3239 = vmatpush.msra.mxu3 %v3219_v32 }
0x197b   :  { %v5654_v60 = vpop.eup %5653 }
0x197c   :  { %v2927_v14 = vpop.xlane.xlu2 %2926  ;;  %v2838_v59 = vmul.f32 %v5654_v60, %v6910_v4  ;;  %v5656_v25 = vpop.eup %5655  ;;  %v5777_v60 = vld [vmem:[#allocation2 + $0x8] sm:$0xff] }
0x197d   :  { %5657 = vrcp.f32 %v2927_v14  ;;  %v3029_v52 = vmul.f32 %v5656_v25, %v6914_v7 }
0x197e   :  { %5166 = vmatmul.msk.f32.gmra.mxu1 %vm349_vm7, %v2838_v59 }
0x1983   :  { %v5658_v23 = vpop.eup %5657 }
0x1984   :  { %v2933_v53 = vmul.f32 %v5658_v23, %v5642_v26  ;;  %v2930_v3 = vpop.xlane.xlu2 %2929  ;;  %v3098_v26 = vld [vmem:[#allocation5 + $0x88] sm:$0xff] }
0x1985   :  { %5659 = vrcp.f32 %v2930_v3  ;;  %3122 = vmatpush.msrb.mxu2 %v3098_v26  ;;  %v3186_v3 = vld [vmem:[#allocation7 + $0x90] sm:$0xff] }
0x1986   :  { %5171 = vmatmul.msk.f32.vlgmr.msra.gmra.mxu0 %vm349_vm7, %v2933_v53  ;;  %5177 = vmatmul.msk.f32.vlgmr.msra.gmra.mxu1 %vm349_vm7, %v3029_v52  ;;  %v3187_v53 = vld [vmem:[#allocation7 + $0x98] sm:$0xff] }
0x1987   :  { %3123 = vmatpush.msrb.mxu2 %v3097_v18  ;;  %3207 = vmatpush.msrb.mxu0 %v3187_v53 }
0x1989   :  { %3208 = vmatpush.msrb.mxu0 %v3186_v3 }
0x198b   :  { %v5660_v47 = vpop.eup %5659 }
0x198c   :  { %v3026_v11 = vpop.xlane.xlu2 %3025  ;;  %v2934_v62 = vmul.f32 %v5660_v47, %v5644_v51  ;;  %v3185_v47 = vld [vmem:[#allocation7 + $0x88] sm:$0xff] }
0x198d   :  { %5661 = vrcp.f32 %v3026_v11  ;;  %3209 = vmatpush.msrb.mxu0 %v3185_v47  ;;  %v3184_v11 = vld [vmem:[#allocation7 + $0x80] sm:$0xff] }
0x198e   :  { %5172 = vmatmul.msk.f32.gmra.mxu0 %vm349_vm7, %v2934_v62 }
0x198f   :  { %3210 = vmatpush.msrb.mxu0 %v3184_v11 }
0x1993   :  { %v5662_v63 = vpop.eup %5661 }
0x1994   :  { %v3030_v13 = vmul.f32 %v5662_v63, %v5646_v29 }
0x1996   :  { %5178 = vmatmul.msk.f32.gmra.mxu1 %vm349_vm7, %v3030_v13 }
0x19de   :  { %v2868_v9 = vpop.f32.mrf.mxu1 }
0x19df   :  { %3068 = vrot.lane.b32.xlu0 %v2868_v9, %s5913_s30 }
0x19eb   :  { %v2772_v1 = vpop.f32.mrf.mxu0 }
0x19f3   :  { %v2775_v21 = vpop.f32.mrf.mxu0 }
0x19fb   :  { %v2871_v4 = vpop.f32.mrf.mxu1 }
0x19fc   :  { %3070 = vrot.lane.b32.xlu0 %v2871_v4, %s5913_s30 }
0x1a03   :  { %v2964_v6 = vpop.f32.mrf.mxu0  ;;  %v3060_v7 = vpop.f32.mrf.mxu1 }
0x1a04   :  { %3076 = vrot.lane.b32.xlu2 %v2964_v6, %s5932_s8  ;;  %3084 = vrot.lane.b32.xlu0 %v3060_v7, %s5933_s0 }
0x1a0b   :  { %v2967_v8 = vpop.f32.mrf.mxu0 }
0x1a0c   :  { %3078 = vrot.lane.b32.xlu1 %v2967_v8, %s5932_s8 }
0x1a13   :  { %v3063_v24 = vpop.f32.mrf.mxu1 }
0x1a14   :  { %3086 = vrot.lane.b32.xlu0 %v3063_v24, %s5933_s0 }
0x1a51   :  { %v3069_v12 = vpop.permute.xlu0 %3068 }
0x1a52   :  { %v3090_v20 = vsel %vm315_vm6, %v2772_v1, %v3069_v12  ;;  %v3177_v12 = vperm.slane %v6841_v55, 2 }
0x1a5e   :  { %v3077_v51 = vpop.permute.xlu2 %3076 }
0x1a5f   :  { %v3092_v22 = vsel %vm349_vm7, %v3090_v20, %v3077_v51 }
0x1a6e   :  { %v3071_v19 = vpop.permute.xlu0 %3070 }
0x1a6f   :  { %v3091_v16 = vsel %vm315_vm6, %v2775_v21, %v3071_v19  ;;  %v3223_v21 = vperm.slane %v6841_v55, 5 }
0x1a76   :  { %v3085_v27 = vpop.permute.xlu0 %3084 }
0x1a77   :  { %v3094_v28 = vsel %vm723_vm9, %v3092_v22, %v3085_v27  ;;  %v3180_v22 = vperm.slane %v6841_v55, 3 }
0x1a78   :  { %5179 = vmatmul.msk.f32.vlgmr.msrb.gmra.mxu2 %vm212_vm11, %v3094_v28 }
0x1a7e   :  { %v3079_v29 = vpop.permute.xlu1 %3078 }
0x1a7f   :  { %v3093_v33 = vsel %vm349_vm7, %v3091_v16, %v3079_v29 }
0x1a86   :  { %v3087_v46 = vpop.permute.xlu0 %3086 }
0x1a87   :  { %v3095_v37 = vsel %vm723_vm9, %v3093_v33, %v3087_v46 }
0x1a88   :  { %5180 = vmatmul.msk.f32.gmra.mxu2 %vm212_vm11, %v3095_v37 }
0x1afb   :  { %v3125_v36 = vpop.f32.mrf.mxu2 }
0x1afc   :  { %v3126_v43 = vadd.f32 %v3125_v36, %v3101_v40 }
0x1afe   :  { %v3131_v45 = vadd.f32 %v3126_v43, %v6830_v15  ;;  %v5776_v15 = vld [vmem:[#allocation2] sm:$0xff] }
0x1aff   :  { %5183 = vmatmul.msk.f32.vlgmr.msra.gmra.mxu3 %vm212_vm11, %v5776_v15 }
0x1b00   :  { %v3133_v17 = vsel %vm212_vm11, %v3131_v45, 0.0 }
0x1b01   :  { %3134 = vadd.xlane.f32.xlu2 %v3133_v17 }
0x1b07   :  { %5184 = vmatmul.msk.f32.gmra.mxu3 %vm212_vm11, %v5777_v60 }
0x1b0b   :  { %v3128_v48 = vpop.f32.mrf.mxu2 }
0x1b0c   :  { %v3129_v50 = vadd.f32 %v3128_v48, %v3101_v40 }
0x1b0e   :  { %v3132_v54 = vadd.f32 %v3129_v50, %v6834_v30  ;;  %v3188_v50 = vperm.slane %v6841_v55, 4 }
0x1b10   :  { %v3136_v31 = vsel %vm212_vm11, %v3132_v54, 0.0 }
0x1b11   :  { %3137 = vadd.xlane.f32.xlu0 %v3136_v31 }
0x1b74   :  { %v3135_v56 = vpop.xlane.xlu2 %3134 }
0x1b75   :  { %v3139_v57 = vmul.f32 %v3135_v56, %v6172_v0 }
0x1b77   :  { %v3141_v61 = vsub.f32 %v3131_v45, %v3139_v57 }
0x1b79   :  { %v3143_v58 = vmul.f32 %v3141_v61, %v3141_v61 }
0x1b7b   :  { %v3145_v30 = vsel %vm212_vm11, %v3143_v58, 0.0 }
0x1b7c   :  { %3146 = vadd.xlane.f32.xlu1 %v3145_v30 }
0x1b82   :  { %v3241_v4 = vpop.f32.mrf.mxu3 }
0x1b83   :  { %v6963_v7 = vadd.f32 %v3241_v4, %v3223_v21 }
0x1b84   :  { %v3138_v14 = vpop.xlane.xlu0 %3137 }
0x1b85   :  { %v3140_v59 = vmul.f32 %v3138_v14, %v6172_v0 }
0x1b87   :  { %v3142_v25 = vsub.f32 %v3132_v54, %v3140_v59 }
0x1b89   :  { %v3144_v23 = vmul.f32 %v3142_v25, %v3142_v25 }
0x1b8a   :  { %v3244_v19 = vpop.f32.mrf.mxu3 }
0x1b8b   :  { %v3148_v52 = vsel %vm212_vm11, %v3144_v23, 0.0  ;;  %v6969_v20 = vadd.f32 %v3244_v19, %v3223_v21 }
0x1b8c   :  { %3149 = vadd.xlane.f32.xlu2 %v3148_v52 }
0x1b8d   :  { %3443 = vrot.lane.b32.xlu0 %v6969_v20, %s5928_s18  ;;  %5185 = vmatpush.xpose.msk.msrb.mxu1 %vm315_vm6, %v6969_v20 }
0x1b91   :  { %5186 = vmatpush.xpose.msk.msrb.mxu1 %vm315_vm6, %v6963_v7 }
0x1b95   :  { %3345 = vrot.lane.b32.xlu1 %v6963_v7, %s5923_s16  ;;  %3441 = vrot.lane.b32.xlu0 %v6963_v7, %s5928_s18 }
0x1b9d   :  { %3537 = vrot.lane.b32.xlu1 %v6963_v7, %s5925_s3 }
0x1ba4   :  { %3347 = vrot.lane.b32.xlu2 %v6969_v20, %s5923_s16 }
0x1bef   :  { %v3147_v62 = vpop.xlane.xlu1 %3146 }
0x1bf0   :  { %v3151_v63 = vmul.f32 %v3147_v62, %v6172_v0 }
0x1bf2   :  { %v3153_v13 = vadd.f32 1e-05, %v3151_v63 }
0x1bf4   :  { %5663 = vrsqrt.f32 %v3153_v13  ;;  %vm3161_vm2 = vweird.f32 %v3153_v13 }
0x1bfa   :  { %v5664_v9 = vpop.eup %5663 }
0x1bfb   :  { %v3156_v1 = vmul.f32 %v5664_v9, %v3153_v13  ;;  %vm3162_vm0 = vweird.f32 %v5664_v9 }
0x1bfc   :  { %vm3163_vm4 = vmor %vm3161_vm2, %vm3162_vm0 }
0x1bfd   :  { %v3157_v6 = vmul.f32 %v5664_v9, %v3156_v1 }
0x1bff   :  { %v3158_v8 = vmul.f32 0.5, %v3157_v6  ;;  %v3150_v24 = vpop.xlane.xlu2 %3149  ;;  %v3444_v5 = vpop.permute.xlu0 %3443 }
0x1c00   :  { %v3152_v2 = vmul.f32 %v3150_v24, %v6172_v0  ;;  %5197 = vmatpush.xpose.msk.msra.mxu1 %vm315_vm6, %v3444_v5 }
0x1c01   :  { %v3159_v10 = vsub.f32 1.5, %v3158_v8 }
0x1c02   :  { %v3154_v26 = vadd.f32 1e-05, %v3152_v2 }
0x1c03   :  { %v3160_v18 = vmul.f32 %v5664_v9, %v3159_v10 }
0x1c04   :  { %5665 = vrsqrt.f32 %v3154_v26  ;;  %vm3171_vm10 = vweird.f32 %v3154_v26 }
0x1c05   :  { %v3164_v51 = vsel %vm3163_vm4, %v5664_v9, %v3160_v18 }
0x1c06   :  { %v3175_v27 = vmul.f32 %v3164_v51, %v3141_v61 }
0x1c07   :  { %v3348_v49 = vpop.permute.xlu2 %3347  ;;  %v3346_v55 = vpop.permute.xlu1 %3345 }
0x1c08   :  { %v3178_v28 = vmul.f32 %v3177_v12, %v3175_v27  ;;  %5191 = vmatpush.xpose.msk.msra.mxu0 %vm315_vm6, %v3348_v49  ;;  %v3442_v57 = vpop.permute.xlu0 %3441 }
0x1c09   :  { %5198 = vmatpush.xpose.msk.msra.mxu1 %vm315_vm6, %v3442_v57 }
0x1c0a   :  { %v5666_v29 = vpop.eup %5665  ;;  %v6980_v16 = vadd.f32 %v3180_v22, %v3178_v28 }
0x1c0b   :  { %v3166_v33 = vmul.f32 %v5666_v29, %v3154_v26  ;;  %vm3172_vm5 = vweird.f32 %v5666_v29 }
0x1c0c   :  { %5181 = vmatmul.msk.f32.vlgmr.msrb.gmra.mxu0 %vm212_vm11, %v6980_v16  ;;  %vm3173_vm13 = vmor %vm3171_vm10, %vm3172_vm5 }
0x1c0d   :  { %v3167_v46 = vmul.f32 %v5666_v29, %v3166_v33  ;;  %5192 = vmatpush.xpose.msk.msra.mxu0 %vm315_vm6, %v3346_v55 }
0x1c0f   :  { %v3168_v37 = vmul.f32 0.5, %v3167_v46  ;;  %v3538_v14 = vpop.permute.xlu1 %3537 }
0x1c11   :  { %v3169_v40 = vsub.f32 1.5, %v3168_v37 }
0x1c13   :  { %v3170_v36 = vmul.f32 %v5666_v29, %v3169_v40 }
0x1c15   :  { %v3174_v43 = vsel %vm3173_vm13, %v5666_v29, %v3170_v36 }
0x1c16   :  { %v3176_v45 = vmul.f32 %v3174_v43, %v3142_v25 }
0x1c18   :  { %v3179_v17 = vmul.f32 %v3177_v12, %v3176_v45 }
0x1c1a   :  { %v6988_v48 = vadd.f32 %v3180_v22, %v3179_v17  ;;  %v5424_v17 = vpack.i.bf16 %v6963_v7, %v6969_v20 }
0x1c1c   :  { %5182 = vmatmul.msk.f32.gmra.mxu0 %vm212_vm11, %v6988_v48 }
0x1c89   :  { %v3212_v54 = vpop.f32.mrf.mxu0 }
0x1c8a   :  { %v3213_v31 = vadd.f32 %v3212_v54, %v3188_v50 }
0x1c8c   :  { %v6993_v34 = vmul.f32 0.35355338, %v3213_v31 }
0x1c8e   :  { %5187 = vmatmul.msk.f32.vlgmr.msrb.gmra.mxu1 %vm315_vm6, %v6993_v34  ;;  %3437 = vrot.lane.b32.xlu0 %v6993_v34, %s5928_s18 }
0x1c8f   :  { %3341 = vrot.lane.b32.xlu2 %v6993_v34, %s5923_s16 }
0x1c99   :  { %v3215_v32 = vpop.f32.mrf.mxu0 }
0x1c9a   :  { %v3216_v56 = vadd.f32 %v3215_v32, %v3188_v50 }
0x1c9c   :  { %v7004_v15 = vmul.f32 0.35355338, %v3216_v56 }
0x1c9e   :  { %3439 = vrot.lane.b32.xlu0 %v7004_v15, %s5928_s18  ;;  %3343 = vrot.lane.b32.xlu2 %v7004_v15, %s5923_s16 }
0x1c9f   :  { %5188 = vmatmul.msk.f32.gmra.mxu1 %vm315_vm6, %v7004_v15 }
0x1ca6   :  { %3533 = vrot.lane.b32.xlu0 %v6993_v34, %s5925_s3  ;;  %3539 = vrot.lane.b32.xlu2 %v6969_v20, %s5925_s3 }
0x1cae   :  { %3535 = vrot.lane.b32.xlu2 %v7004_v15, %s5925_s3 }
0x1ce9   :  { %v3342_v61 = vpop.permute.xlu2 %3341 }
0x1cea   :  { %5193 = vmatmul.msk.f32.vlgmr.msra.gmra.mxu0 %vm315_vm6, %v3342_v61 }
0x1cf8   :  { %v3344_v58 = vpop.permute.xlu2 %3343 }
0x1cf9   :  { %5194 = vmatmul.msk.f32.gmra.mxu0 %vm315_vm6, %v3344_v58 }
0x1d00   :  { %v3540_v30 = vpop.permute.xlu2 %3539  ;;  %v3438_v60 = vpop.permute.xlu0 %3437 }
0x1d01   :  { %5199 = vmatmul.msk.f32.vlgmr.msra.gmra.mxu1 %vm315_vm6, %v3438_v60  ;;  %5203 = vmatpush.xpose.msk.msrb.mxu0 %vm315_vm6, %v3540_v30 }
0x1d05   :  { %5204 = vmatpush.xpose.msk.msrb.mxu0 %vm315_vm6, %v3538_v14 }
0x1d08   :  { %v3536_v62 = vpop.permute.xlu2 %3535 }
0x1d0b   :  { %v3278_v59 = vpop.f32.mrf.mxu1 }
0x1d0c   :  { %v3279_v25 = vadd.f32 %v3278_v59, %v6114_v35 }
0x1d0e   :  { %v3284_v23 = vsel %vm349_vm7, %v3279_v25, -inf }
0x1d0f   :  { %3285 = vmax.xlane.f32.xlu1 %v3284_v23 }
0x1d10   :  { %v3440_v52 = vpop.permute.xlu0 %3439 }
0x1d11   :  { %5200 = vmatmul.msk.f32.gmra.mxu1 %vm315_vm6, %v3440_v52 }
0x1d18   :  { %v3534_v53 = vpop.permute.xlu0 %3533 }
0x1d19   :  { %5205 = vmatmul.msk.f32.vlgmr.msrb.gmra.mxu0 %vm315_vm6, %v3534_v53 }
0x1d1c   :  { %v3281_v3 = vpop.f32.mrf.mxu1 }
0x1d1d   :  { %v3282_v47 = vadd.f32 %v3281_v3, %v6124_v38 }
0x1d1f   :  { %v3287_v11 = vsel %vm349_vm7, %v3282_v47, -inf }
0x1d20   :  { %3288 = vmax.xlane.f32.xlu0 %v3287_v11 }
0x1d21   :  { %5206 = vmatmul.msk.f32.gmra.mxu0 %vm315_vm6, %v3536_v62 }
0x1d67   :  { %v3374_v63 = vpop.f32.mrf.mxu0 }
0x1d68   :  { %v3375_v13 = vadd.f32 %v3374_v63, %v6114_v35 }
0x1d6a   :  { %v3380_v9 = vsel %vm349_vm7, %v3375_v13, -inf }
0x1d6b   :  { %3381 = vmax.xlane.f32.xlu2 %v3380_v9 }
0x1d76   :  { %v3377_v1 = vpop.f32.mrf.mxu0 }
0x1d77   :  { %v3378_v21 = vadd.f32 %v3377_v1, %v6124_v38 }
0x1d79   :  { %v3383_v4 = vsel %vm349_vm7, %v3378_v21, -inf }
0x1d7a   :  { %3384 = vmax.xlane.f32.xlu0 %v3383_v4 }
0x1d7e   :  { %v3470_v6 = vpop.f32.mrf.mxu1 }
0x1d7f   :  { %v3471_v8 = vadd.f32 %v3470_v6, %v6114_v35 }
0x1d81   :  { %v3476_v24 = vsel %vm349_vm7, %v3471_v8, -inf }
0x1d82   :  { %3477 = vmax.xlane.f32.xlu1 %v3476_v24  ;;  %v3286_v2 = vpop.xlane.xlu1 %3285 }
0x1d83   :  { %v3290_v10 = vsub.f32 %v3279_v25, %v3286_v2 }
0x1d85   :  { %v3292_v26 = vmul.f32 1.442695, %v3290_v10 }
0x1d87   :  { %5667 = vpow2.f32 %v3292_v26 }
0x1d8d   :  { %v7039_v27 = vpop.eup %5667 }
0x1d8e   :  { %v3473_v18 = vpop.f32.mrf.mxu1  ;;  %v3296_v37 = vsel %vm349_vm7, %v7039_v27, 0.0 }
0x1d8f   :  { %v3474_v12 = vadd.f32 %v3473_v18, %v6124_v38 }
0x1d91   :  { %v3479_v19 = vsel %vm349_vm7, %v3474_v12, -inf }
0x1d92   :  { %3480 = vmax.xlane.f32.xlu2 %v3479_v19 }
0x1d93   :  { %v3289_v51 = vpop.xlane.xlu0 %3288 }
0x1d94   :  { %v3291_v22 = vsub.f32 %v3282_v47, %v3289_v51 }
0x1d96   :  { %v3294_v28 = vmul.f32 1.442695, %v3291_v22  ;;  %v3566_v29 = vpop.f32.mrf.mxu0 }
0x1d97   :  { %v7042_v33 = vadd.f32 %v3566_v29, %v6114_v35 }
0x1d98   :  { %5669 = vpow2.f32 %v3294_v28 }
0x1d99   :  { %v3572_v46 = vsel %vm349_vm7, %v7042_v33, -inf }
0x1d9a   :  { %3573 = vmax.xlane.f32.xlu1 %v3572_v46  ;;  %3297 = vadd.xlane.f32.xlu2 %v3296_v37 }
0x1d9e   :  { %v7048_v40 = vpop.eup %5669  ;;  %v3569_v43 = vpop.f32.mrf.mxu0 }
0x1d9f   :  { %v3299_v36 = vsel %vm349_vm7, %v7048_v40, 0.0  ;;  %v3570_v45 = vadd.f32 %v3569_v43, %v6124_v38 }
0x1da0   :  { %3300 = vadd.xlane.f32.xlu0 %v3299_v36 }
0x1da1   :  { %v3575_v35 = vsel %vm349_vm7, %v3570_v45, -inf }
0x1da8   :  { %3576 = vmax.xlane.f32.xlu0 %v3575_v35 }
0x1db2   :  { %5425 = vrot.lane.b32.xlu2 %v5424_v17, %s5922_s15 }
0x1db3   :  { %5420 = vrot.lane.b32.xlu1 %v5424_v17, %s5921_s14 }
0x1dde   :  { %v3382_v50 = vpop.xlane.xlu2 %3381 }
0x1ddf   :  { %v3386_v54 = vsub.f32 %v3375_v13, %v3382_v50 }
0x1de1   :  { %v3388_v31 = vmul.f32 1.442695, %v3386_v54 }
0x1de3   :  { %5671 = vpow2.f32 %v3388_v31 }
0x1de9   :  { %v7058_v49 = vpop.eup %5671 }
0x1dea   :  { %v3392_v5 = vsel %vm349_vm7, %v7058_v49, 0.0 }
0x1deb   :  { %3393 = vadd.xlane.f32.xlu2 %v3392_v5  ;;  %v3697_v5 = vld [vmem:[#allocation8 + $0x90] sm:$0xff] }
0x1ded   :  { %v3385_v38 = vpop.xlane.xlu0 %3384 }
0x1dee   :  { %v3387_v55 = vsub.f32 %v3378_v21, %v3385_v38  ;;  %v3696_v38 = vld [vmem:[#allocation8 + $0x88] sm:$0xff] }
0x1df0   :  { %v3390_v32 = vmul.f32 1.442695, %v3387_v55 }
0x1df2   :  { %5673 = vpow2.f32 %v3390_v32  ;;  %v3695_v32 = vld [vmem:[#allocation8 + $0x80] sm:$0xff] }
0x1df5   :  { %v3478_v56 = vpop.xlane.xlu1 %3477 }
0x1df6   :  { %v3482_v7 = vsub.f32 %v3471_v8, %v3478_v56 }
0x1df8   :  { %v5674_v20 = vpop.eup %5673  ;;  %v3484_v57 = vmul.f32 1.442695, %v3482_v7  ;;  %v5778_v7 = vld [vmem:[#allocation2 + $0x10] sm:$0xff] }
0x1df9   :  { %v3395_v61 = vsel %vm349_vm7, %v5674_v20, 0.0 }
0x1dfa   :  { %5675 = vpow2.f32 %v3484_v57  ;;  %3396 = vadd.xlane.f32.xlu1 %v3395_v61 }
0x1e00   :  { %v7063_v58 = vpop.eup %5675 }
0x1e01   :  { %v3488_v30 = vsel %vm349_vm7, %v7063_v58, 0.0 }
0x1e02   :  { %3489 = vadd.xlane.f32.xlu0 %v3488_v30 }
0x1e05   :  { %v3481_v60 = vpop.xlane.xlu2 %3480 }
0x1e06   :  { %v3483_v14 = vsub.f32 %v3474_v12, %v3481_v60 }
0x1e08   :  { %v3486_v59 = vmul.f32 1.442695, %v3483_v14 }
0x1e0a   :  { %5677 = vpow2.f32 %v3486_v59 }
0x1e0d   :  { %v3298_v25 = vpop.xlane.xlu2 %3297  ;;  %v3574_v13 = vpop.xlane.xlu1 %3573 }
0x1e0e   :  { %5679 = vrcp.f32 %v3298_v25  ;;  %v3578_v26 = vsub.f32 %v7042_v33, %v3574_v13 }
0x1e10   :  { %v7067_v23 = vpop.eup %5677  ;;  %v3580_v12 = vmul.f32 1.442695, %v3578_v26  ;;  %v3661_v26 = vld [vmem:[#allocation5 + $0xa8] sm:$0xff] }
0x1e11   :  { %v3491_v52 = vsel %vm349_vm7, %v7067_v23, 0.0 }
0x1e12   :  { %3492 = vadd.xlane.f32.xlu2 %v3491_v52 }
0x1e13   :  { %v3301_v53 = vpop.xlane.xlu0 %3300  ;;  %5435 = vrot.lane.b32.xlu1 %v5424_v17, %s5927_s17 }
0x1e14   :  { %v5680_v1 = vpop.eup %5679 }
0x1e15   :  { %v5426_v3 = vpop.permute.xlu2 %5425  ;;  %v3304_v2 = vmul.f32 %v5680_v1, %v7039_v27 }
0x1e16   :  { %v5427_v47 = vunpack.i.l.bf16 %v5426_v3  ;;  %5430 = vrot.lane.b32.xlu0 %v5424_v17, %s5924_s7  ;;  %v5428_v11 = vunpack.i.h.bf16 %v5426_v3 }
0x1e18   :  { %3428 = vmatpush.msrb.mxu3 %v5427_v47  ;;  %v7106_v47 = vld [vmem:[%s7475_s11 + $0x18] sm:$0xff] }
0x1e1a   :  { %3429 = vmatpush.msrb.mxu3 %v5428_v11  ;;  %v3699_v11 = vperm.slane %v7106_v47, 6 }
0x1e1b   :  { %v3577_v62 = vpop.xlane.xlu0 %3576  ;;  %3723 = vrot.lane.b32.xlu1 %v6993_v34, %s5921_s14 }
0x1e1c   :  { %v3579_v63 = vsub.f32 %v3570_v45, %v3577_v62 }
0x1e1e   :  { %v3582_v9 = vmul.f32 1.442695, %v3579_v63 }
0x1e20   :  { %5681 = vpow2.f32 %v3582_v9 }
0x1e21   :  { %5683 = vrcp.f32 %v3301_v53 }
0x1e22   :  { %5685 = vpow2.f32 %v3580_v12 }
0x1e25   :  { %v5421_v21 = vpop.permute.xlu1 %5420 }
0x1e26   :  { %v7075_v4 = vpop.eup %5681  ;;  %v5422_v6 = vunpack.i.l.bf16 %v5421_v21  ;;  %v5423_v24 = vunpack.i.h.bf16 %v5421_v21 }
0x1e27   :  { %v3587_v8 = vsel %vm349_vm7, %v7075_v4, 0.0  ;;  %v5684_v10 = vpop.eup %5683 }
0x1e28   :  { %3588 = vadd.xlane.f32.xlu2 %v3587_v8  ;;  %3332 = vmatpush.msra.mxu2 %v5422_v6  ;;  %v3305_v18 = vmul.f32 %v5684_v10, %v7048_v40  ;;  %v5686_v19 = vpop.eup %5685  ;;  %v3662_v10 = vld [vmem:[#allocation5 + $0xb0] sm:$0xff] }
0x1e29   :  { %v3584_v51 = vsel %vm349_vm7, %v5686_v19, 0.0 }
0x1e2a   :  { %3333 = vmatpush.msra.mxu2 %v5423_v24 }
0x1e2b   :  { %5189 = vmatmul.msk.f32.vlgmr.msra.gmra.mxu2 %vm349_vm7, %v3304_v2  ;;  %v3663_v2 = vld [vmem:[#allocation5 + $0xb8] sm:$0xff] }
0x1e2c   :  { %3683 = vmatpush.msrb.mxu1 %v3663_v2 }
0x1e2e   :  { %3684 = vmatpush.msrb.mxu1 %v3662_v10 }
0x1e30   :  { %3685 = vmatpush.msrb.mxu1 %v3661_v26 }
0x1e33   :  { %5190 = vmatmul.msk.f32.gmra.mxu2 %vm349_vm7, %v3305_v18  ;;  %v3660_v18 = vld [vmem:[#allocation5 + $0xa0] sm:$0xff] }
0x1e34   :  { %3686 = vmatpush.msrb.mxu1 %v3660_v18 }
0x1e40   :  { %3585 = vadd.xlane.f32.xlu0 %v3584_v51 }
0x1e5e   :  { %v3394_v22 = vpop.xlane.xlu2 %3393 }
0x1e5f   :  { %5687 = vrcp.f32 %v3394_v22 }
0x1e65   :  { %v5688_v28 = vpop.eup %5687 }
0x1e66   :  { %v3400_v27 = vmul.f32 %v5688_v28, %v7058_v49  ;;  %v3698_v49 = vld [vmem:[#allocation8 + $0x98] sm:$0xff] }
0x1e68   :  { %5195 = vmatmul.msk.f32.vlgmr.msrb.gmra.mxu3 %vm349_vm7, %v3400_v27 }
0x1e6d   :  { %v3397_v29 = vpop.xlane.xlu1 %3396 }
0x1e6e   :  { %5689 = vrcp.f32 %v3397_v29 }
0x1e74   :  { %v5690_v33 = vpop.eup %5689 }
0x1e75   :  { %v3401_v46 = vmul.f32 %v5690_v33, %v5674_v20  ;;  %v3490_v37 = vpop.xlane.xlu0 %3489  ;;  %v5779_v20 = vld [vmem:[#allocation2 + $0x18] sm:$0xff] }
0x1e76   :  { %5691 = vrcp.f32 %v3490_v37 }
0x1e77   :  { %5196 = vmatmul.msk.f32.gmra.mxu3 %vm349_vm7, %v3401_v46 }
0x1e7c   :  { %v5692_v17 = vpop.eup %5691 }
0x1e7d   :  { %v3496_v31 = vmul.f32 %v5692_v17, %v7063_v58 }
0x1e85   :  { %v5436_v40 = vpop.permute.xlu1 %5435  ;;  %v3493_v43 = vpop.xlane.xlu2 %3492 }
0x1e86   :  { %v5437_v36 = vunpack.i.l.bf16 %v5436_v40  ;;  %v5438_v45 = vunpack.i.h.bf16 %v5436_v40  ;;  %5693 = vrcp.f32 %v3493_v43 }
0x1e88   :  { %v5431_v35 = vpop.permute.xlu0 %5430  ;;  %3620 = vmatpush.msra.mxu3 %v5437_v36 }
0x1e89   :  { %v5432_v50 = vunpack.i.l.bf16 %v5431_v35  ;;  %v5433_v54 = vunpack.i.h.bf16 %v5431_v35 }
0x1e8a   :  { %3621 = vmatpush.msra.mxu3 %v5438_v45 }
0x1e8b   :  { %3524 = vmatpush.msrb.mxu2 %v5432_v50 }
0x1e8c   :  { %v5694_v55 = vpop.eup %5693 }
0x1e8d   :  { %3525 = vmatpush.msrb.mxu2 %v5433_v54  ;;  %v3497_v56 = vmul.f32 %v5694_v55, %v7067_v23  ;;  %v3724_v21 = vpop.permute.xlu1 %3723 }
0x1e8e   :  { %5201 = vmatmul.msk.f32.vlgmr.msrb.gmra.mxu2 %vm349_vm7, %v3496_v31 }
0x1e8f   :  { %3712 = vmatpush.msra.mxu2 %v3698_v49 }
0x1e91   :  { %3713 = vmatpush.msra.mxu2 %v3697_v5 }
0x1e93   :  { %3714 = vmatpush.msra.mxu2 %v3696_v38 }
0x1e95   :  { %3715 = vmatpush.msra.mxu2 %v3695_v32 }
0x1e96   :  { %5202 = vmatmul.msk.f32.gmra.mxu2 %vm349_vm7, %v3497_v56 }
0x1e9b   :  { %v3589_v61 = vpop.xlane.xlu2 %3588 }
0x1e9e   :  { %5211 = vmatmul.msk.f32.vlgmr.msra.gmra.mxu2 %vm212_vm11, %v5778_v7 }
0x1ea6   :  { %5212 = vmatmul.msk.f32.gmra.mxu2 %vm212_vm11, %v5779_v20 }
0x1eae   :  { %v3335_v23 = vpop.f32.mrf.mxu2 }
0x1eb3   :  { %v3586_v57 = vpop.xlane.xlu0 %3585 }
0x1eb4   :  { %5695 = vrcp.f32 %v3586_v57 }
0x1eb5   :  { %5697 = vrcp.f32 %v3589_v61 }
0x1eb6   :  { %v3338_v52 = vpop.f32.mrf.mxu2 }
0x1eba   :  { %v5696_v58 = vpop.eup %5695 }
0x1ebb   :  { %v3592_v30 = vmul.f32 %v5696_v58, %v5686_v19  ;;  %v5698_v60 = vpop.eup %5697 }
0x1ebc   :  { %v3593_v14 = vmul.f32 %v5698_v60, %v7075_v4 }
0x1ebd   :  { %5207 = vmatmul.msk.f32.vlgmr.msra.gmra.mxu3 %vm349_vm7, %v3592_v30 }
0x1ec5   :  { %5208 = vmatmul.msk.f32.gmra.mxu3 %vm349_vm7, %v3593_v14 }
0x1eeb   :  { %v3431_v59 = vpop.f32.mrf.mxu3 }
0x1eec   :  { %3631 = vrot.lane.b32.xlu0 %v3431_v59, %s5913_s30 }
0x1efa   :  { %v3434_v25 = vpop.f32.mrf.mxu3 }
0x1efb   :  { %3633 = vrot.lane.b32.xlu0 %v3434_v25, %s5913_s30 }
0x1f11   :  { %v3527_v53 = vpop.f32.mrf.mxu2 }
0x1f12   :  { %3639 = vrot.lane.b32.xlu2 %v3527_v53, %s5932_s8 }
0x1f19   :  { %v3530_v3 = vpop.f32.mrf.mxu2 }
0x1f1a   :  { %3725 = vrot.lane.b32.xlu2 %v7004_v15, %s5921_s14  ;;  %3641 = vrot.lane.b32.xlu1 %v3530_v3, %s5932_s8 }
0x1f21   :  { %v3717_v62 = vpop.f32.mrf.mxu2 }
0x1f22   :  { %v3718_v63 = vadd.f32 %v3717_v62, %v3699_v11 }
0x1f24   :  { %3821 = vrot.lane.b32.xlu2 %v3718_v63, %s5923_s16 }
0x1f29   :  { %v3720_v13 = vpop.f32.mrf.mxu2 }
0x1f2a   :  { %v3721_v9 = vadd.f32 %v3720_v13, %v3699_v11 }
0x1f2c   :  { %5213 = vmatpush.xpose.msk.msra.mxu0 %vm315_vm6, %v3721_v9  ;;  %3913 = vrot.lane.b32.xlu2 %v6993_v34, %s5924_s7  ;;  %v7113_v1 = vpack.i.bf16 %v3718_v63, %v3721_v9 }
0x1f30   :  { %5214 = vmatpush.xpose.msk.msra.mxu0 %vm315_vm6, %v3718_v63 }
0x1f33   :  { %5215 = vmatmul.msk.f32.vlgmr.msra.gmra.mxu0 %vm315_vm6, %v3724_v21 }
0x1f34   :  { %4015 = vrot.lane.b32.xlu2 %v3721_v9, %s5925_s3 }
0x1f3c   :  { %4011 = vrot.lane.b32.xlu2 %v7004_v15, %s5927_s17 }
0x1f40   :  { %v3623_v4 = vpop.f32.mrf.mxu3 }
0x1f41   :  { %3647 = vrot.lane.b32.xlu1 %v3623_v4, %s5933_s0 }
0x1f48   :  { %v3626_v6 = vpop.f32.mrf.mxu3 }
0x1f49   :  { %3649 = vrot.lane.b32.xlu0 %v3626_v6, %s5933_s0  ;;  %3823 = vrot.lane.b32.xlu1 %v3721_v9, %s5923_s16 }
0x1f51   :  { %3919 = vrot.lane.b32.xlu0 %v3721_v9, %s5928_s18  ;;  %3917 = vrot.lane.b32.xlu1 %v3718_v63, %s5928_s18 }
0x1f59   :  { %3817 = vrot.lane.b32.xlu0 %v6993_v34, %s5922_s15  ;;  %3819 = vrot.lane.b32.xlu1 %v7004_v15, %s5922_s15 }
0x1f5e   :  { %v3632_v12 = vpop.permute.xlu0 %3631 }
0x1f5f   :  { %v3653_v27 = vsel %vm315_vm6, %v3335_v23, %v3632_v12 }
0x1f61   :  { %3915 = vrot.lane.b32.xlu0 %v7004_v15, %s5924_s7  ;;  %4013 = vrot.lane.b32.xlu1 %v3718_v63, %s5925_s3 }
0x1f69   :  { %4009 = vrot.lane.b32.xlu0 %v6993_v34, %s5927_s17 }
0x1f6c   :  { %v3640_v8 = vpop.permute.xlu2 %3639 }
0x1f6d   :  { %v3655_v29 = vsel %vm349_vm7, %v3653_v27, %v3640_v8  ;;  %v3634_v33 = vpop.permute.xlu0 %3633 }
0x1f6e   :  { %v3654_v43 = vsel %vm315_vm6, %v3338_v52, %v3634_v33 }
0x1f74   :  { %v3726_v24 = vpop.permute.xlu2 %3725 }
0x1f75   :  { %5216 = vmatmul.msk.f32.gmra.mxu0 %vm315_vm6, %v3726_v24 }
0x1f7e   :  { %v3822_v51 = vpop.permute.xlu2 %3821 }
0x1f86   :  { %v3914_v36 = vpop.permute.xlu2 %3913 }
0x1f8c   :  { %v3642_v19 = vpop.permute.xlu1 %3641 }
0x1f8d   :  { %v3656_v45 = vsel %vm349_vm7, %v3654_v43, %v3642_v19 }
0x1f8e   :  { %v4016_v54 = vpop.permute.xlu2 %4015 }
0x1f96   :  { %v4012_v7 = vpop.permute.xlu2 %4011 }
0x1fb0   :  { %v3754_v22 = vpop.f32.mrf.mxu0 }
0x1fb1   :  { %v3755_v28 = vadd.f32 %v3754_v22, %v6135_v39 }
0x1fb3   :  { %v3648_v46 = vpop.permute.xlu1 %3647  ;;  %v3760_v37 = vsel %vm349_vm7, %v3755_v28, -inf }
0x1fb4   :  { %v3657_v40 = vsel %vm723_vm9, %v3655_v29, %v3648_v46  ;;  %3761 = vmax.xlane.f32.xlu1 %v3760_v37 }
0x1fb5   :  { %5209 = vmatmul.msk.f32.vlgmr.msrb.gmra.mxu1 %vm212_vm11, %v3657_v40 }
0x1fbb   :  { %v3650_v35 = vpop.permute.xlu0 %3649  ;;  %v3824_v17 = vpop.permute.xlu1 %3823 }
0x1fbc   :  { %v3658_v50 = vsel %vm723_vm9, %v3656_v45, %v3650_v35  ;;  %5219 = vmatpush.xpose.msk.msra.mxu1 %vm315_vm6, %v3824_v17 }
0x1fbd   :  { %5210 = vmatmul.msk.f32.gmra.mxu1 %vm212_vm11, %v3658_v50 }
0x1fc0   :  { %5220 = vmatpush.xpose.msk.msra.mxu1 %vm315_vm6, %v3822_v51 }
0x1fc3   :  { %v3920_v31 = vpop.permute.xlu0 %3919  ;;  %v3918_v49 = vpop.permute.xlu1 %3917 }
0x1fc4   :  { %5231 = vmatpush.xpose.msk.msrb.mxu1 %vm315_vm6, %v4016_v54  ;;  %5225 = vmatpush.xpose.msk.msrb.mxu0 %vm315_vm6, %v3920_v31 }
0x1fc8   :  { %5226 = vmatpush.xpose.msk.msrb.mxu0 %vm315_vm6, %v3918_v49 }
0x1fcb   :  { %v3818_v5 = vpop.permute.xlu0 %3817  ;;  %v3820_v38 = vpop.permute.xlu1 %3819  ;;  %5227 = vmatmul.msk.f32.vlgmr.msrb.gmra.mxu0 %vm315_vm6, %v3914_v36 }
0x1fcc   :  { %5221 = vmatmul.msk.f32.vlgmr.msra.gmra.mxu1 %vm315_vm6, %v3818_v5 }
0x1fd3   :  { %v3916_v55 = vpop.permute.xlu0 %3915  ;;  %v4014_v32 = vpop.permute.xlu1 %4013 }
0x1fd4   :  { %5222 = vmatmul.msk.f32.gmra.mxu1 %vm315_vm6, %v3820_v38  ;;  %5228 = vmatmul.msk.f32.gmra.mxu0 %vm315_vm6, %v3916_v55 }
0x1fd5   :  { %5232 = vmatpush.xpose.msk.msrb.mxu1 %vm315_vm6, %v4014_v32 }
0x1fdb   :  { %v4010_v56 = vpop.permute.xlu0 %4009 }
0x1fdc   :  { %5233 = vmatmul.msk.f32.vlgmr.msrb.gmra.mxu1 %vm315_vm6, %v4010_v56 }
0x1fe4   :  { %5234 = vmatmul.msk.f32.gmra.mxu1 %vm315_vm6, %v4012_v7 }
0x1ff2   :  { %v3757_v20 = vpop.f32.mrf.mxu0 }
0x1ff3   :  { %v3758_v57 = vadd.f32 %v3757_v20, %v6141_v41 }
0x1ff5   :  { %v3763_v61 = vsel %vm349_vm7, %v3758_v57, -inf }
0x1ff6   :  { %3764 = vmax.xlane.f32.xlu0 %v3763_v61 }
0x2027   :  { %v3762_v60 = vpop.xlane.xlu1 %3761 }
0x2028   :  { %v3766_v52 = vsub.f32 %v3755_v28, %v3762_v60 }
0x202a   :  { %v3768_v11 = vmul.f32 1.442695, %v3766_v52 }
0x202c   :  { %5699 = vpow2.f32 %v3768_v11 }
0x2032   :  { %v7159_v58 = vpop.f32.mrf.mxu1  ;;  %v7171_v6 = vpop.eup %5699 }
0x2033   :  { %v3772_v10 = vsel %vm349_vm7, %v7171_v6, 0.0 }
0x203a   :  { %v7161_v30 = vpop.f32.mrf.mxu1 }
0x2048   :  { %v3946_v14 = vpop.f32.mrf.mxu0 }
0x2049   :  { %v3947_v59 = vadd.f32 %v3946_v14, %v6135_v39  ;;  %v3850_v25 = vpop.f32.mrf.mxu1 }
0x204a   :  { %v3851_v23 = vadd.f32 %v3850_v25, %v6135_v39 }
0x204b   :  { %v3952_v53 = vsel %vm349_vm7, %v3947_v59, -inf }
0x204c   :  { %3953 = vmax.xlane.f32.xlu1 %v3952_v53  ;;  %v3856_v3 = vsel %vm349_vm7, %v3851_v23, -inf }
0x204d   :  { %3857 = vmax.xlane.f32.xlu2 %v3856_v3 }
0x2051   :  { %v3853_v62 = vpop.f32.mrf.mxu1  ;;  %v3949_v63 = vpop.f32.mrf.mxu0 }
0x2052   :  { %v3854_v13 = vadd.f32 %v3853_v62, %v6141_v41  ;;  %v3950_v9 = vadd.f32 %v3949_v63, %v6141_v41 }
0x2054   :  { %v3955_v21 = vsel %vm349_vm7, %v3950_v9, -inf  ;;  %v3859_v4 = vsel %vm349_vm7, %v3854_v13, -inf }
0x2055   :  { %3956 = vmax.xlane.f32.xlu2 %v3955_v21  ;;  %3860 = vmax.xlane.f32.xlu0 %v3859_v4 }
0x2059   :  { %v4042_v8 = vpop.f32.mrf.mxu1 }
0x205a   :  { %v7174_v24 = vadd.f32 %v4042_v8, %v6135_v39 }
0x205c   :  { %v4048_v2 = vsel %vm349_vm7, %v7174_v24, -inf }
0x205d   :  { %4049 = vmax.xlane.f32.xlu1 %v4048_v2  ;;  %3773 = vadd.xlane.f32.xlu2 %v3772_v10 }
0x2061   :  { %v4045_v39 = vpop.f32.mrf.mxu1 }
0x2062   :  { %v4046_v22 = vadd.f32 %v4045_v39, %v6141_v41 }
0x2064   :  { %v4051_v28 = vsel %vm349_vm7, %v4046_v22, -inf }
0x2069   :  { %v3765_v26 = vpop.xlane.xlu0 %3764 }
0x206a   :  { %v3767_v18 = vsub.f32 %v3758_v57, %v3765_v26 }
0x206c   :  { %v3770_v12 = vmul.f32 1.442695, %v3767_v18 }
0x206e   :  { %5701 = vpow2.f32 %v3770_v12 }
0x2074   :  { %v5702_v19 = vpop.eup %5701 }
0x2075   :  { %5445 = vrot.lane.b32.xlu2 %v7113_v1, %s5922_s15  ;;  %v3775_v51 = vsel %vm349_vm7, %v5702_v19, 0.0 }
0x2076   :  { %3776 = vadd.xlane.f32.xlu0 %v3775_v51  ;;  %5440 = vrot.lane.b32.xlu1 %v7113_v1, %s5921_s14 }
0x207e   :  { %4052 = vmax.xlane.f32.xlu0 %v4051_v28 }
0x20bf   :  { %v3954_v27 = vpop.xlane.xlu1 %3953 }
0x20c0   :  { %v3958_v29 = vsub.f32 %v3947_v59, %v3954_v27  ;;  %v3858_v33 = vpop.xlane.xlu2 %3857 }
0x20c1   :  { %v3862_v46 = vsub.f32 %v3851_v23, %v3858_v33  ;;  %v4173_v33 = vld [vmem:[#allocation8 + $0xb0] sm:$0xff] }
0x20c2   :  { %v3960_v37 = vmul.f32 1.442695, %v3958_v29  ;;  %v4174_v29 = vld [vmem:[#allocation8 + $0xb8] sm:$0xff] }
0x20c3   :  { %v3864_v40 = vmul.f32 1.442695, %v3862_v46  ;;  %v4172_v46 = vld [vmem:[#allocation8 + $0xa8] sm:$0xff] }
0x20c4   :  { %5703 = vpow2.f32 %v3960_v37 }
0x20c5   :  { %5705 = vpow2.f32 %v3864_v40  ;;  %v4171_v40 = vld [vmem:[#allocation8 + $0xa0] sm:$0xff] }
0x20c8   :  { %v3957_v36 = vpop.xlane.xlu2 %3956  ;;  %v3861_v43 = vpop.xlane.xlu0 %3860 }
0x20c9   :  { %v3959_v45 = vsub.f32 %v3950_v9, %v3957_v36  ;;  %v3863_v35 = vsub.f32 %v3854_v13, %v3861_v43 }
0x20ca   :  { %v7187_v17 = vpop.eup %5703 }
0x20cb   :  { %v5706_v50 = vpop.eup %5705  ;;  %v3962_v54 = vmul.f32 1.442695, %v3959_v45  ;;  %v3866_v41 = vmul.f32 1.442695, %v3863_v35  ;;  %v3964_v31 = vsel %vm349_vm7, %v7187_v17, 0.0 }
0x20cc   :  { %3965 = vadd.xlane.f32.xlu0 %v3964_v31  ;;  %v3868_v49 = vsel %vm349_vm7, %v5706_v50, 0.0 }
0x20cd   :  { %5707 = vpow2.f32 %v3962_v54  ;;  %3869 = vadd.xlane.f32.xlu2 %v3868_v49 }
0x20ce   :  { %5709 = vpow2.f32 %v3866_v41 }
0x20d0   :  { %v3774_v5 = vpop.xlane.xlu2 %3773  ;;  %v4050_v61 = vpop.xlane.xlu1 %4049 }
0x20d1   :  { %5711 = vrcp.f32 %v3774_v5  ;;  %v4054_v13 = vsub.f32 %v7174_v24, %v4050_v61 }
0x20d3   :  { %v7192_v38 = vpop.eup %5707  ;;  %v4056_v21 = vmul.f32 1.442695, %v4054_v13 }
0x20d4   :  { %v5710_v55 = vpop.eup %5709  ;;  %v3967_v32 = vsel %vm349_vm7, %v7192_v38, 0.0 }
0x20d5   :  { %v3871_v56 = vsel %vm349_vm7, %v5710_v55, 0.0  ;;  %3968 = vadd.xlane.f32.xlu2 %v3967_v32 }
0x20d6   :  { %3872 = vadd.xlane.f32.xlu1 %v3871_v56 }
0x20d7   :  { %v5712_v14 = vpop.eup %5711 }
0x20d8   :  { %v5446_v7 = vpop.permute.xlu2 %5445  ;;  %v3780_v52 = vmul.f32 %v5712_v14, %v7171_v6 }
0x20d9   :  { %v5447_v20 = vunpack.i.l.bf16 %v5446_v7  ;;  %v5448_v57 = vunpack.i.h.bf16 %v5446_v7 }
0x20db   :  { %3904 = vmatpush.msrb.mxu2 %v5447_v20 }
0x20dd   :  { %3905 = vmatpush.msrb.mxu2 %v5448_v57 }
0x20e0   :  { %5450 = vrot.lane.b32.xlu0 %v7113_v1, %s5924_s7 }
0x20e8   :  { %v5441_v60 = vpop.permute.xlu1 %5440 }
0x20e9   :  { %v5442_v59 = vunpack.i.l.bf16 %v5441_v60  ;;  %v3777_v25 = vpop.xlane.xlu0 %3776  ;;  %v5443_v23 = vunpack.i.h.bf16 %v5441_v60  ;;  %v4175_v60 = vperm.slane %v7106_v47, 7 }
0x20ea   :  { %5713 = vrcp.f32 %v3777_v25 }
0x20eb   :  { %3808 = vmatpush.msrb.mxu3 %v5442_v59 }
0x20ed   :  { %3809 = vmatpush.msrb.mxu3 %v5443_v23 }
0x20ee   :  { %5217 = vmatmul.msk.f32.vlgmr.msrb.gmra.mxu3 %vm349_vm7, %v3780_v52 }
0x20ef   :  { %5455 = vrot.lane.b32.xlu1 %v7113_v1, %s5927_s17 }
0x20f0   :  { %v5714_v53 = vpop.eup %5713 }
0x20f1   :  { %v4053_v3 = vpop.xlane.xlu0 %4052  ;;  %v3781_v63 = vmul.f32 %v5714_v53, %v5702_v19 }
0x20f2   :  { %v4055_v11 = vsub.f32 %v4046_v22, %v4053_v3  ;;  %v4139_v3 = vld [vmem:[#allocation5 + $0xd8] sm:$0xff] }
0x20f3   :  { %4159 = vmatpush.msra.mxu0 %v4139_v3 }
0x20f4   :  { %v4058_v62 = vmul.f32 1.442695, %v4055_v11  ;;  %v4138_v11 = vld [vmem:[#allocation5 + $0xd0] sm:$0xff] }
0x20f5   :  { %4160 = vmatpush.msra.mxu0 %v4138_v11 }
0x20f6   :  { %5715 = vpow2.f32 %v4058_v62  ;;  %5218 = vmatmul.msk.f32.gmra.mxu3 %vm349_vm7, %v3781_v63  ;;  %v4137_v62 = vld [vmem:[#allocation5 + $0xc8] sm:$0xff]  ;;  %v4136_v63 = vld [vmem:[#allocation5 + $0xc0] sm:$0xff] }
0x20f7   :  { %5717 = vpow2.f32 %v4056_v21  ;;  %4161 = vmatpush.msra.mxu0 %v4137_v62 }
0x20f9   :  { %4162 = vmatpush.msra.mxu0 %v4136_v63 }
0x20fc   :  { %v5716_v9 = vpop.eup %5715 }
0x20fd   :  { %v4063_v4 = vsel %vm349_vm7, %v5716_v9, 0.0  ;;  %v5718_v6 = vpop.eup %5717 }
0x20fe   :  { %4064 = vadd.xlane.f32.xlu2 %v4063_v4  ;;  %v4060_v8 = vsel %vm349_vm7, %v5718_v6, 0.0 }
0x210a   :  { %4061 = vadd.xlane.f32.xlu0 %v4060_v8 }
0x213f   :  { %v3966_v18 = vpop.xlane.xlu0 %3965 }
0x2140   :  { %v3870_v1 = vpop.xlane.xlu2 %3869 }
0x2141   :  { %5719 = vrcp.f32 %v3870_v1 }
0x2147   :  { %v5720_v2 = vpop.eup %5719 }
0x2148   :  { %v3876_v10 = vmul.f32 %v5720_v2, %v5706_v50  ;;  %v3969_v19 = vpop.xlane.xlu2 %3968  ;;  %v5782_v50 = vld [vmem:[#allocation2 + $0x28] sm:$0xff] }
0x2149   :  { %v3873_v26 = vpop.xlane.xlu1 %3872 }
0x214a   :  { %5721 = vrcp.f32 %v3873_v26  ;;  %5223 = vmatmul.msk.f32.vlgmr.msrb.gmra.mxu2 %vm349_vm7, %v3876_v10 }
0x214b   :  { %5723 = vrcp.f32 %v3966_v18 }
0x214c   :  { %5725 = vrcp.f32 %v3969_v19 }
0x2150   :  { %v5722_v24 = vpop.eup %5721 }
0x2151   :  { %v3877_v12 = vmul.f32 %v5722_v24, %v5710_v55  ;;  %v5724_v39 = vpop.eup %5723 }
0x2152   :  { %v5451_v51 = vpop.permute.xlu0 %5450  ;;  %v3972_v27 = vmul.f32 %v5724_v39, %v7187_v17  ;;  %v5726_v37 = vpop.eup %5725  ;;  %v5781_v17 = vld [vmem:[#allocation2 + $0x20] sm:$0xff] }
0x2153   :  { %v5452_v22 = vunpack.i.l.bf16 %v5451_v51  ;;  %5224 = vmatmul.msk.f32.gmra.mxu2 %vm349_vm7, %v3877_v12  ;;  %v5453_v28 = vunpack.i.h.bf16 %v5451_v51  ;;  %v3973_v36 = vmul.f32 %v5726_v37, %v7192_v38 }
0x2155   :  { %4000 = vmatpush.msra.mxu3 %v5452_v22 }
0x2157   :  { %4001 = vmatpush.msra.mxu3 %v5453_v28 }
0x2158   :  { %5229 = vmatmul.msk.f32.vlgmr.msra.gmra.mxu3 %vm349_vm7, %v3972_v27 }
0x2159   :  { %4188 = vmatpush.msrb.mxu3 %v4174_v29 }
0x215b   :  { %4189 = vmatpush.msrb.mxu3 %v4173_v33 }
0x215d   :  { %4190 = vmatpush.msrb.mxu3 %v4172_v46 }
0x215f   :  { %4191 = vmatpush.msrb.mxu3 %v4171_v40 }
0x2160   :  { %5230 = vmatmul.msk.f32.gmra.mxu3 %vm349_vm7, %v3973_v36 }
0x2161   :  { %v5456_v43 = vpop.permute.xlu1 %5455 }
0x2162   :  { %v5457_v45 = vunpack.i.l.bf16 %v5456_v43  ;;  %v5458_v35 = vunpack.i.h.bf16 %v5456_v43 }
0x2164   :  { %4096 = vmatpush.msra.mxu2 %v5457_v45 }
0x2166   :  { %4097 = vmatpush.msra.mxu2 %v5458_v35  ;;  %v7279_v35 = vld [vmem:[%s7475_s11 + $0x20] sm:$0xff] }
0x2168   :  { %5239 = vmatmul.msk.f32.vlgmr.msrb.gmra.mxu3 %vm212_vm11, %v5781_v17  ;;  %v4140_v17 = vperm.slane %v7279_v35, 1 }
0x2170   :  { %5240 = vmatmul.msk.f32.gmra.mxu3 %vm212_vm11, %v5782_v50 }
0x2171   :  { %v4065_v41 = vpop.xlane.xlu2 %4064  ;;  %v3811_v55 = vpop.f32.mrf.mxu3 }
0x2179   :  { %v3814_v56 = vpop.f32.mrf.mxu3 }
0x217d   :  { %v4062_v54 = vpop.xlane.xlu0 %4061 }
0x217e   :  { %5727 = vrcp.f32 %v4062_v54 }
0x217f   :  { %5729 = vrcp.f32 %v4065_v41 }
0x2184   :  { %v5728_v31 = vpop.eup %5727 }
0x2185   :  { %v4068_v49 = vmul.f32 %v5728_v31, %v5718_v6  ;;  %v5730_v5 = vpop.eup %5729 }
0x2186   :  { %v4069_v38 = vmul.f32 %v5730_v5, %v5716_v9 }
0x2187   :  { %5235 = vmatmul.msk.f32.vlgmr.msra.gmra.mxu2 %vm349_vm7, %v4068_v49 }
0x218f   :  { %5236 = vmatmul.msk.f32.gmra.mxu2 %vm349_vm7, %v4069_v38 }
0x21cd   :  { %v3907_v32 = vpop.f32.mrf.mxu2 }
0x21ce   :  { %4107 = vrot.lane.b32.xlu0 %v3907_v32, %s5913_s30 }
0x21d6   :  { %v3910_v7 = vpop.f32.mrf.mxu2 }
0x21d7   :  { %4109 = vrot.lane.b32.xlu0 %v3910_v7, %s5913_s30 }
0x21db   :  { %v4003_v20 = vpop.f32.mrf.mxu3 }
0x21dc   :  { %4115 = vrot.lane.b32.xlu2 %v4003_v20, %s5932_s8 }
0x21e3   :  { %v4006_v57 = vpop.f32.mrf.mxu3 }
0x21e4   :  { %4117 = vrot.lane.b32.xlu1 %v4006_v57, %s5932_s8 }
0x21eb   :  { %v4193_v61 = vpop.f32.mrf.mxu3 }
0x21ec   :  { %v4194_v25 = vadd.f32 %v4193_v61, %v4175_v60 }
0x21f3   :  { %v4196_v14 = vpop.f32.mrf.mxu3 }
0x21f4   :  { %v4197_v59 = vadd.f32 %v4196_v14, %v4175_v60 }
0x21f6   :  { %4299 = vrot.lane.b32.xlu0 %v4197_v59, %s5923_s16  ;;  %5241 = vmatpush.xpose.msk.msra.mxu1 %vm315_vm6, %v4197_v59  ;;  %v7227_v23 = vpack.i.bf16 %v4194_v25, %v4197_v59 }
0x21fa   :  { %5242 = vmatpush.xpose.msk.msra.mxu1 %vm315_vm6, %v4194_v25 }
0x21fe   :  { %4293 = vrot.lane.b32.xlu0 %v6993_v34, %s5929_s19 }
0x2206   :  { %4395 = vrot.lane.b32.xlu0 %v4197_v59, %s5928_s18 }
0x220a   :  { %v4099_v52 = vpop.f32.mrf.mxu2 }
0x220b   :  { %4123 = vrot.lane.b32.xlu1 %v4099_v52, %s5933_s0 }
0x220e   :  { %4489 = vrot.lane.b32.xlu0 %v4194_v25, %s5925_s3 }
0x2212   :  { %v4102_v47 = vpop.f32.mrf.mxu2 }
0x2213   :  { %4125 = vrot.lane.b32.xlu2 %v4102_v47, %s5933_s0  ;;  %4297 = vrot.lane.b32.xlu1 %v4194_v25, %s5923_s16 }
0x2216   :  { %4391 = vrot.lane.b32.xlu0 %v7004_v15, %s5931_s21 }
0x221b   :  { %4199 = vrot.lane.b32.xlu2 %v6993_v34, %s5926_s2  ;;  %4201 = vrot.lane.b32.xlu1 %v7004_v15, %s5926_s2 }
0x2223   :  { %4295 = vrot.lane.b32.xlu2 %v7004_v15, %s5929_s19  ;;  %4491 = vrot.lane.b32.xlu1 %v4197_v59, %s5925_s3 }
0x222b   :  { %4393 = vrot.lane.b32.xlu2 %v4194_v25, %s5928_s18  ;;  %4389 = vrot.lane.b32.xlu1 %v6993_v34, %s5931_s21 }
0x2233   :  { %4485 = vrot.lane.b32.xlu2 %v6993_v34, %s5930_s20  ;;  %4487 = vrot.lane.b32.xlu1 %v7004_v15, %s5930_s20 }
0x2236   :  { %v4116_v9 = vpop.permute.xlu2 %4115 }
0x2240   :  { %v4108_v53 = vpop.permute.xlu0 %4107 }
0x2241   :  { %v4129_v1 = vsel %vm315_vm6, %v3811_v55, %v4108_v53 }
0x2242   :  { %v4131_v10 = vsel %vm349_vm7, %v4129_v1, %v4116_v9 }
0x2249   :  { %v4110_v13 = vpop.permute.xlu0 %4109 }
0x224a   :  { %v4130_v24 = vsel %vm315_vm6, %v3814_v56, %v4110_v13 }
0x2256   :  { %v4118_v34 = vpop.permute.xlu1 %4117 }
0x2257   :  { %v4132_v12 = vsel %vm349_vm7, %v4130_v24, %v4118_v34 }
0x2268   :  { %v4300_v21 = vpop.permute.xlu0 %4299 }
0x2269   :  { %5247 = vmatpush.xpose.msk.msrb.mxu0 %vm315_vm6, %v4300_v21 }
0x226d   :  { %v4126_v4 = vpop.permute.xlu2 %4125 }
0x226e   :  { %v4134_v39 = vsel %vm723_vm9, %v4132_v12, %v4126_v4 }
0x2270   :  { %v4294_v6 = vpop.permute.xlu0 %4293 }
0x2275   :  { %v4200_v8 = vpop.permute.xlu2 %4199 }
0x2276   :  { %5243 = vmatmul.msk.f32.vlgmr.msra.gmra.mxu1 %vm315_vm6, %v4200_v8 }
0x2278   :  { %v4396_v15 = vpop.permute.xlu0 %4395 }
0x2279   :  { %5253 = vmatpush.xpose.msk.msrb.mxu1 %vm315_vm6, %v4396_v15 }
0x227d   :  { %v4296_v2 = vpop.permute.xlu2 %4295  ;;  %v4124_v26 = vpop.permute.xlu1 %4123 }
0x227e   :  { %v4133_v18 = vsel %vm723_vm9, %v4131_v10, %v4124_v26 }
0x227f   :  { %5237 = vmatmul.msk.f32.vlgmr.msra.gmra.mxu0 %vm212_vm11, %v4133_v18 }
0x2280   :  { %v4490_v27 = vpop.permute.xlu0 %4489 }
0x2285   :  { %v4394_v19 = vpop.permute.xlu2 %4393  ;;  %v4298_v51 = vpop.permute.xlu1 %4297 }
0x2286   :  { %5254 = vmatpush.xpose.msk.msrb.mxu1 %vm315_vm6, %v4394_v19  ;;  %5248 = vmatpush.xpose.msk.msrb.mxu0 %vm315_vm6, %v4298_v51 }
0x2287   :  { %5238 = vmatmul.msk.f32.gmra.mxu0 %vm212_vm11, %v4134_v39 }
0x2288   :  { %v4392_v46 = vpop.permute.xlu0 %4391 }
0x228d   :  { %v4202_v22 = vpop.permute.xlu1 %4201  ;;  %v4486_v33 = vpop.permute.xlu2 %4485 }
0x228e   :  { %5244 = vmatmul.msk.f32.gmra.mxu1 %vm315_vm6, %v4202_v22 }
0x228f   :  { %5249 = vmatmul.msk.f32.vlgmr.msrb.gmra.mxu0 %vm315_vm6, %v4294_v6 }
0x2295   :  { %v4492_v28 = vpop.permute.xlu1 %4491 }
0x2296   :  { %5259 = vmatpush.xpose.msk.msra.mxu0 %vm315_vm6, %v4492_v28 }
0x2297   :  { %5250 = vmatmul.msk.f32.gmra.mxu0 %vm315_vm6, %v4296_v2 }
0x229a   :  { %5260 = vmatpush.xpose.msk.msra.mxu0 %vm315_vm6, %v4490_v27 }
0x229d   :  { %v4390_v29 = vpop.permute.xlu1 %4389 }
0x229e   :  { %5255 = vmatmul.msk.f32.vlgmr.msrb.gmra.mxu1 %vm315_vm6, %v4390_v29 }
0x229f   :  { %5261 = vmatmul.msk.f32.vlgmr.msra.gmra.mxu0 %vm315_vm6, %v4486_v33 }
0x22a5   :  { %v4488_v37 = vpop.permute.xlu1 %4487 }
0x22a6   :  { %5256 = vmatmul.msk.f32.gmra.mxu1 %vm315_vm6, %v4392_v46 }
0x22a7   :  { %5262 = vmatmul.msk.f32.gmra.mxu0 %vm315_vm6, %v4488_v37 }
0x22f3   :  { %v4230_v40 = vpop.f32.mrf.mxu1 }
0x22f4   :  { %v4231_v36 = vadd.f32 %v4230_v40, %v6152_v42 }
0x22f6   :  { %v4236_v43 = vsel %vm349_vm7, %v4231_v36, -inf }
0x22f7   :  { %4237 = vmax.xlane.f32.xlu2 %v4236_v43 }
0x22fc   :  { %v7274_v45 = vpop.f32.mrf.mxu0 }
0x2304   :  { %v4167_v50 = vpop.f32.mrf.mxu0 }
0x2305   :  { %v7284_v54 = vadd.f32 %v4167_v50, %v4140_v17 }
0x230b   :  { %v4233_v41 = vpop.f32.mrf.mxu1 }
0x230c   :  { %v4234_v31 = vadd.f32 %v4233_v41, %v6158_v44  ;;  %v4326_v49 = vpop.f32.mrf.mxu0 }
0x230d   :  { %v4327_v5 = vadd.f32 %v4326_v49, %v6152_v42 }
0x230e   :  { %v4239_v38 = vsel %vm349_vm7, %v4234_v31, -inf }
0x230f   :  { %4240 = vmax.xlane.f32.xlu1 %v4239_v38  ;;  %v4332_v55 = vsel %vm349_vm7, %v4327_v5, -inf }
0x2310   :  { %4333 = vmax.xlane.f32.xlu0 %v4332_v55 }
0x2314   :  { %v4329_v32 = vpop.f32.mrf.mxu0 }
0x2315   :  { %v4330_v56 = vadd.f32 %v4329_v32, %v6158_v44 }
0x2317   :  { %v4335_v7 = vsel %vm349_vm7, %v4330_v56, -inf }
0x2318   :  { %4336 = vmax.xlane.f32.xlu2 %v4335_v7 }
0x231b   :  { %v4422_v20 = vpop.f32.mrf.mxu1 }
0x231c   :  { %v4423_v57 = vadd.f32 %v4422_v20, %v6152_v42  ;;  %v4518_v61 = vpop.f32.mrf.mxu0 }
0x231d   :  { %v4519_v9 = vadd.f32 %v4518_v61, %v6152_v42 }
0x231e   :  { %v4428_v60 = vsel %vm349_vm7, %v4423_v57, -inf }
0x231f   :  { %4429 = vmax.xlane.f32.xlu0 %v4428_v60 }
0x2323   :  { %v4425_v14 = vpop.f32.mrf.mxu1 }
0x2324   :  { %v4426_v59 = vadd.f32 %v4425_v14, %v6158_v44  ;;  %v4521_v25 = vpop.f32.mrf.mxu0 }
0x2325   :  { %v4522_v52 = vadd.f32 %v4521_v25, %v6158_v44  ;;  %v4524_v44 = vsel %vm349_vm7, %v4519_v9, -inf  ;;  %v4165_v25 = vadd.f32 %v7274_v45, %v4140_v17 }
0x2326   :  { %v4431_v47 = vsel %vm349_vm7, %v4426_v59, -inf }
0x2327   :  { %4432 = vmax.xlane.f32.xlu2 %v4431_v47  ;;  %v4527_v53 = vsel %vm349_vm7, %v4522_v52, -inf }
0x2328   :  { %4528 = vmax.xlane.f32.xlu0 %v4527_v53 }
0x233c   :  { %5460 = vrot.lane.b32.xlu0 %v7227_v23, %s5921_s14 }
0x236a   :  { %v4238_v3 = vpop.xlane.xlu2 %4237 }
0x236b   :  { %v4242_v11 = vsub.f32 %v4231_v36, %v4238_v3 }
0x236d   :  { %v4244_v62 = vmul.f32 1.442695, %v4242_v11 }
0x236f   :  { %5731 = vpow2.f32 %v4244_v62 }
0x2375   :  { %v5732_v63 = vpop.eup %5731 }
0x2376   :  { %v4248_v13 = vsel %vm349_vm7, %v5732_v63, 0.0 }
0x2377   :  { %4249 = vadd.xlane.f32.xlu1 %v4248_v13 }
0x237f   :  { %4525 = vmax.xlane.f32.xlu1 %v4524_v44 }
0x2382   :  { %v4241_v21 = vpop.xlane.xlu1 %4240 }
0x2383   :  { %v4243_v4 = vsub.f32 %v4234_v31, %v4241_v21  ;;  %v4334_v6 = vpop.xlane.xlu0 %4333 }
0x2384   :  { %v4338_v34 = vsub.f32 %v4327_v5, %v4334_v6 }
0x2385   :  { %v4246_v8 = vmul.f32 1.442695, %v4243_v4 }
0x2386   :  { %v4340_v15 = vmul.f32 1.442695, %v4338_v34 }
0x2387   :  { %5733 = vpow2.f32 %v4246_v8 }
0x2388   :  { %5735 = vpow2.f32 %v4340_v15 }
0x238b   :  { %v4337_v26 = vpop.xlane.xlu2 %4336 }
0x238c   :  { %v4339_v12 = vsub.f32 %v4330_v56, %v4337_v26 }
0x238d   :  { %v5734_v1 = vpop.eup %5733 }
0x238e   :  { %v7303_v2 = vpop.eup %5735  ;;  %v4251_v10 = vsel %vm349_vm7, %v5734_v1, 0.0  ;;  %v4342_v51 = vmul.f32 1.442695, %v4339_v12 }
0x238f   :  { %4252 = vadd.xlane.f32.xlu1 %v4251_v10  ;;  %v4344_v42 = vsel %vm349_vm7, %v7303_v2, 0.0 }
0x2390   :  { %4345 = vadd.xlane.f32.xlu2 %v4344_v42 }
0x2392   :  { %v4430_v18 = vpop.xlane.xlu0 %4429 }
0x2393   :  { %v4434_v24 = vsub.f32 %v4423_v57, %v4430_v18 }
0x2395   :  { %v4436_v19 = vmul.f32 1.442695, %v4434_v24 }
0x2397   :  { %5737 = vpow2.f32 %v4436_v19 }
0x2398   :  { %5739 = vpow2.f32 %v4342_v51 }
0x239a   :  { %v4433_v40 = vpop.xlane.xlu2 %4432 }
0x239b   :  { %v4529_v27 = vpop.xlane.xlu0 %4528  ;;  %v4435_v36 = vsub.f32 %v4426_v59, %v4433_v40  ;;  %v4614_v40 = vld [vmem:[#allocation5 + $0xf0] sm:$0xff] }
0x239c   :  { %v4531_v31 = vsub.f32 %v4522_v52, %v4529_v27 }
0x239d   :  { %v7308_v39 = vpop.eup %5737  ;;  %v4438_v43 = vmul.f32 1.442695, %v4435_v36  ;;  %v4613_v36 = vld [vmem:[#allocation5 + $0xe8] sm:$0xff] }
0x239e   :  { %v4440_v22 = vsel %vm349_vm7, %v7308_v39, 0.0  ;;  %v5740_v28 = vpop.eup %5739  ;;  %v4534_v49 = vmul.f32 1.442695, %v4531_v31 }
0x239f   :  { %4441 = vadd.xlane.f32.xlu1 %v4440_v22  ;;  %v4347_v29 = vsel %vm349_vm7, %v5740_v28, 0.0  ;;  %5741 = vpow2.f32 %v4438_v43  ;;  %v4612_v43 = vld [vmem:[#allocation5 + $0xe0] sm:$0xff] }
0x23a0   :  { %5743 = vpow2.f32 %v4534_v49 }
0x23a5   :  { %v5742_v50 = vpop.eup %5741 }
0x23a6   :  { %v4443_v41 = vsel %vm349_vm7, %v5742_v50, 0.0  ;;  %v7320_v38 = vpop.eup %5743 }
0x23a7   :  { %4348 = vadd.xlane.f32.xlu1 %v4347_v29  ;;  %v4539_v32 = vsel %vm349_vm7, %v7320_v38, 0.0 }
0x23a8   :  { %5465 = vrot.lane.b32.xlu2 %v7227_v23, %s5922_s15 }
0x23ae   :  { %v5461_v33 = vpop.permute.xlu0 %5460 }
0x23af   :  { %v5462_v46 = vunpack.i.l.bf16 %v5461_v33  ;;  %v5463_v37 = vunpack.i.h.bf16 %v5461_v33 }
0x23b1   :  { %4284 = vmatpush.msrb.mxu2 %v5462_v46 }
0x23b3   :  { %4285 = vmatpush.msrb.mxu2 %v5463_v37  ;;  %v4615_v37 = vld [vmem:[#allocation5 + $0xf8] sm:$0xff] }
0x23b4   :  { %4635 = vmatpush.msra.mxu1 %v4615_v37 }
0x23b6   :  { %4636 = vmatpush.msra.mxu1 %v4614_v40 }
0x23b8   :  { %4637 = vmatpush.msra.mxu1 %v4613_v36 }
0x23ba   :  { %4638 = vmatpush.msra.mxu1 %v4612_v43 }
0x23c0   :  { %5470 = vrot.lane.b32.xlu1 %v7227_v23, %s5924_s7 }
0x23c8   :  { %5475 = vrot.lane.b32.xlu1 %v7227_v23, %s5927_s17 }
0x23d1   :  { %4444 = vadd.xlane.f32.xlu2 %v4443_v41 }
0x23ea   :  { %v4250_v5 = vpop.xlane.xlu1 %4249 }
0x23eb   :  { %5745 = vrcp.f32 %v4250_v5 }
0x23f1   :  { %v5746_v55 = vpop.eup %5745 }
0x23f2   :  { %v4256_v56 = vmul.f32 %v5746_v55, %v5732_v63  ;;  %v4526_v7 = vpop.xlane.xlu1 %4525  ;;  %4540 = vadd.xlane.f32.xlu1 %v4539_v32 }
0x23f3   :  { %v4530_v20 = vsub.f32 %v4519_v9, %v4526_v7 }
0x23f4   :  { %5245 = vmatmul.msk.f32.vlgmr.msrb.gmra.mxu2 %vm349_vm7, %v4256_v56 }
0x23f5   :  { %v4532_v23 = vmul.f32 1.442695, %v4530_v20 }
0x23f7   :  { %5747 = vpow2.f32 %v4532_v23  ;;  %v4670_v23 = vld [vmem:[#allocation7 + $0xb8] sm:$0xff] }
0x23fd   :  { %v5748_v57 = vpop.eup %5747 }
0x23fe   :  { %v4536_v61 = vsel %vm349_vm7, %v5748_v57, 0.0 }
0x23ff   :  { %4537 = vadd.xlane.f32.xlu0 %v4536_v61  ;;  %v4668_v61 = vld [vmem:[#allocation7 + $0xa8] sm:$0xff] }
0x2402   :  { %v4253_v60 = vpop.xlane.xlu1 %4252 }
0x2403   :  { %5749 = vrcp.f32 %v4253_v60  ;;  %v4346_v14 = vpop.xlane.xlu2 %4345  ;;  %v4667_v60 = vld [vmem:[#allocation7 + $0xa0] sm:$0xff] }
0x2404   :  { %5751 = vrcp.f32 %v4346_v14  ;;  %v4616_v14 = vperm.slane %v7279_v35, 2 }
0x2409   :  { %v5750_v59 = vpop.eup %5749 }
0x240a   :  { %v4257_v52 = vmul.f32 %v5750_v59, %v5734_v1  ;;  %v5752_v53 = vpop.eup %5751 }
0x240b   :  { %4648 = vrot.lane.b32.xlu1 %v4165_v25, %s5934_s25  ;;  %v5466_v47 = vpop.permute.xlu2 %5465  ;;  %v4352_v62 = vmul.f32 %v5752_v53, %v7303_v2  ;;  %v3664_v53 = vperm.slane %v7279_v35, 0 }
0x240c   :  { %v5467_v3 = vunpack.i.l.bf16 %v5466_v47  ;;  %5246 = vmatmul.msk.f32.gmra.mxu2 %vm349_vm7, %v4257_v52  ;;  %v5468_v11 = vunpack.i.h.bf16 %v5466_v47 }
0x240e   :  { %4380 = vmatpush.msra.mxu3 %v5467_v3 }
0x2410   :  { %4381 = vmatpush.msra.mxu3 %v5468_v11  ;;  %v3689_v11 = vadd.f32 %v7159_v58, %v3664_v53 }
0x2411   :  { %5251 = vmatmul.msk.f32.vlgmr.msra.gmra.mxu3 %vm349_vm7, %v4352_v62 }
0x2412   :  { %v4442_v63 = vpop.xlane.xlu1 %4441 }
0x241a   :  { %v4349_v13 = vpop.xlane.xlu1 %4348 }
0x241b   :  { %5753 = vrcp.f32 %v4349_v13 }
0x241c   :  { %5755 = vrcp.f32 %v4442_v63 }
0x2421   :  { %v5754_v9 = vpop.eup %5753 }
0x2422   :  { %v4353_v45 = vmul.f32 %v5754_v9, %v5740_v28  ;;  %v5756_v44 = vpop.eup %5755 }
0x2423   :  { %v4448_v6 = vmul.f32 %v5756_v44, %v7308_v39 }
0x2424   :  { %5252 = vmatmul.msk.f32.gmra.mxu3 %vm349_vm7, %v4353_v45  ;;  %v3692_v45 = vadd.f32 %v7161_v30, %v3664_v53  ;;  %v4770_v53 = vperm.slane %v7279_v35, 6 }
0x2432   :  { %v5471_v17 = vpop.permute.xlu1 %5470 }
0x2433   :  { %v5472_v21 = vunpack.i.l.bf16 %v5471_v17  ;;  %v5473_v4 = vunpack.i.h.bf16 %v5471_v17 }
0x2435   :  { %4476 = vmatpush.msra.mxu2 %v5472_v21 }
0x2437   :  { %4477 = vmatpush.msra.mxu2 %v5473_v4  ;;  %v4671_v4 = vperm.slane %v7279_v35, 5 }
0x2438   :  { %5257 = vmatmul.msk.f32.vlgmr.msra.gmra.mxu2 %vm349_vm7, %v4448_v6 }
0x2439   :  { %5267 = vmatpush.xpose.msk.msrb.mxu2 %vm2326_vm15, %v4670_v23 }
0x243a   :  { %v5476_v34 = vpop.permute.xlu1 %5475 }
0x243b   :  { %v5477_v8 = vunpack.i.l.bf16 %v5476_v34  ;;  %v5478_v15 = vunpack.i.h.bf16 %v5476_v34 }
0x243d   :  { %4572 = vmatpush.msrb.mxu3 %v5477_v8 }
0x243f   :  { %4573 = vmatpush.msrb.mxu3 %v5478_v15 }
0x2444   :  { %v4445_v1 = vpop.xlane.xlu2 %4444 }
0x2445   :  { %5757 = vrcp.f32 %v4445_v1 }
0x244b   :  { %v5758_v2 = vpop.eup %5757 }
0x244c   :  { %v4449_v10 = vmul.f32 %v5758_v2, %v5742_v50 }
0x244e   :  { %5258 = vmatmul.msk.f32.gmra.mxu2 %vm349_vm7, %v4449_v10 }
0x2465   :  { %v4541_v26 = vpop.xlane.xlu1 %4540 }
0x2472   :  { %v4538_v42 = vpop.xlane.xlu0 %4537 }
0x2473   :  { %5759 = vrcp.f32 %v4538_v42 }
0x2474   :  { %5761 = vrcp.f32 %v4541_v26 }
0x2477   :  { %v4287_v22 = vpop.f32.mrf.mxu2 }
0x2479   :  { %v5760_v18 = vpop.eup %5759 }
0x247a   :  { %v4544_v24 = vmul.f32 %v5760_v18, %v5748_v57  ;;  %v5762_v12 = vpop.eup %5761  ;;  %v4669_v57 = vld [vmem:[#allocation7 + $0xb0] sm:$0xff] }
0x247b   :  { %v4545_v19 = vmul.f32 %v5762_v12, %v7320_v38  ;;  %5268 = vmatpush.xpose.msk.msrb.mxu2 %vm2326_vm15, %v4669_v57 }
0x247c   :  { %5263 = vmatmul.msk.f32.vlgmr.msrb.gmra.mxu3 %vm349_vm7, %v4544_v24 }
0x247d   :  { %v4649_v3 = vpop.permute.xlu1 %4648 }
0x247e   :  { %v4662_v62 = vsel %vm212_vm11, %v3689_v11, %v4649_v3 }
0x247f   :  { %5269 = vmatpush.xpose.msk.msrb.mxu2 %vm2326_vm15, %v4668_v61 }
0x2483   :  { %5270 = vmatpush.xpose.msk.msrb.mxu2 %vm2326_vm15, %v4667_v60 }
0x2484   :  { %5264 = vmatmul.msk.f32.gmra.mxu3 %vm349_vm7, %v4545_v19 }
0x248f   :  { %v4290_v28 = vpop.f32.mrf.mxu2 }
0x2494   :  { %v4383_v51 = vpop.f32.mrf.mxu3 }
0x2495   :  { %4583 = vrot.lane.b32.xlu0 %v4383_v51, %s5913_s30 }
0x24a7   :  { %v4386_v39 = vpop.f32.mrf.mxu3 }
0x24a8   :  { %4585 = vrot.lane.b32.xlu0 %v4386_v39, %s5913_s30 }
0x24bb   :  { %v4479_v27 = vpop.f32.mrf.mxu2 }
0x24bc   :  { %4591 = vrot.lane.b32.xlu2 %v4479_v27, %s5932_s8  ;;  %v5273_v27 = vld [vmem:[%s7474_s10 + $0x40] sm:$0xff] }
0x24d1   :  { %v4482_v29 = vpop.f32.mrf.mxu2 }
0x24d2   :  { %4593 = vrot.lane.b32.xlu2 %v4482_v29, %s5932_s8 }
0x24ff   :  { %v4575_v33 = vpop.f32.mrf.mxu3 }
0x2500   :  { %4599 = vrot.lane.b32.xlu0 %v4575_v33, %s5933_s0 }
0x2507   :  { %v4578_v46 = vpop.f32.mrf.mxu3  ;;  %v4584_v50 = vpop.permute.xlu0 %4583 }
0x2508   :  { %4601 = vrot.lane.b32.xlu0 %v4578_v46, %s5933_s0  ;;  %v4605_v49 = vsel %vm315_vm6, %v4287_v22, %v4584_v50  ;;  %v5275_v22 = vld [vmem:[%s7474_s10 + $0x50] sm:$0xff] }
0x2510   :  { %4650 = vrot.lane.b32.xlu0 %v7284_v54, %s5934_s25 }
0x2516   :  { %v4592_v31 = vpop.permute.xlu2 %4591 }
0x2517   :  { %v4607_v5 = vsel %vm349_vm7, %v4605_v49, %v4592_v31 }
0x251a   :  { %v4586_v41 = vpop.permute.xlu0 %4585 }
0x251b   :  { %v4606_v56 = vsel %vm315_vm6, %v4290_v28, %v4586_v41  ;;  %v5274_v28 = vld [vmem:[%s7474_s10 + $0x48] sm:$0xff] }
0x252c   :  { %v4594_v32 = vpop.permute.xlu2 %4593 }
0x252d   :  { %v4608_v54 = vsel %vm349_vm7, %v4606_v56, %v4594_v32  ;;  %v4759_v32 = vperm.slane %v7279_v35, 3 }
0x2572   :  { %v4600_v38 = vpop.permute.xlu0 %4599 }
0x2573   :  { %v4609_v55 = vsel %vm723_vm9, %v4607_v5, %v4600_v38 }
0x2574   :  { %5265 = vmatmul.msk.f32.vlgmr.msra.gmra.mxu1 %vm212_vm11, %v4609_v55 }
0x257a   :  { %v4602_v7 = vpop.permute.xlu0 %4601 }
0x257b   :  { %v4610_v20 = vsel %vm723_vm9, %v4608_v54, %v4602_v7  ;;  %v4762_v7 = vperm.slane %v7279_v35, 4 }
0x257c   :  { %5266 = vmatmul.msk.f32.gmra.mxu1 %vm212_vm11, %v4610_v20 }
0x2582   :  { %v4651_v9 = vpop.permute.xlu0 %4650 }
0x2583   :  { %v4663_v17 = vsel %vm212_vm11, %v3692_v45, %v4651_v9  ;;  %v5284_v45 = vld [vmem:[%s7474_s10 + $0x78] sm:$0xff] }
0x2584   :  { %5285 = vmatpush.xpose.msk.msra.mxu3 %vm180_vm1, %v5284_v45 }
0x25f1   :  { %v4640_v59 = vpop.f32.mrf.mxu1 }
0x25f2   :  { %v4641_v25 = vadd.f32 %v4640_v59, %v4616_v14 }
0x25f4   :  { %4656 = vrot.lane.b32.xlu2 %v4641_v25, %s5926_s2 }
0x25f9   :  { %v4643_v52 = vpop.f32.mrf.mxu1 }
0x25fa   :  { %v4644_v47 = vadd.f32 %v4643_v52, %v4616_v14 }
0x25fc   :  { %4658 = vrot.lane.b32.xlu2 %v4644_v47, %s5926_s2 }
0x264e   :  { %v4657_v63 = vpop.permute.xlu2 %4656 }
0x264f   :  { %v4664_v13 = vsel %vm180_vm1, %v4662_v62, %v4657_v63 }
0x2650   :  { %5271 = vmatmul.msk.f32.vlgmr.msrb.gmra.mxu2 %vm2326_vm15, %v4664_v13 }
0x2656   :  { %v4659_v44 = vpop.permute.xlu2 %4658 }
0x2657   :  { %v4665_v21 = vsel %vm180_vm1, %v4663_v17, %v4659_v44 }
0x2658   :  { %5272 = vmatmul.msk.f32.gmra.mxu2 %vm2326_vm15, %v4665_v21 }
0x26d3   :  { %v4707_v58 = vpop.f32.mrf.mxu2 }
0x26d4   :  { %v4708_v6 = vadd.f32 %v4707_v58, %v4671_v4 }
0x26d6   :  { %v4713_v34 = vadd.f32 %v4708_v6, %v6980_v16 }
0x26d8   :  { %v4715_v8 = vsel %vm212_vm11, %v4713_v34, 0.0 }
0x26d9   :  { %4716 = vadd.xlane.f32.xlu0 %v4715_v8 }
0x26db   :  { %v4710_v15 = vpop.f32.mrf.mxu2 }
0x26dc   :  { %v4711_v1 = vadd.f32 %v4710_v15, %v4671_v4 }
0x26de   :  { %v4714_v30 = vadd.f32 %v4711_v1, %v6988_v48  ;;  %v5276_v48 = vld [vmem:[%s7474_s10 + $0x58] sm:$0xff] }
0x26df   :  { %4789 = vmatpush.msrb.mxu0 %v5276_v48 }
0x26e0   :  { %v4718_v2 = vsel %vm212_vm11, %v4714_v30, 0.0 }
0x26e1   :  { %4719 = vadd.xlane.f32.xlu2 %v4718_v2  ;;  %4790 = vmatpush.msrb.mxu0 %v5275_v22 }
0x26e3   :  { %4791 = vmatpush.msrb.mxu0 %v5274_v28 }
0x26e5   :  { %4792 = vmatpush.msrb.mxu0 %v5273_v27 }
0x274c   :  { %v4717_v10 = vpop.xlane.xlu0 %4716 }
0x274d   :  { %v4721_v42 = vmul.f32 %v4717_v10, %v6172_v0 }
0x274f   :  { %v4723_v26 = vsub.f32 %v4713_v34, %v4721_v42  ;;  %v5283_v34 = vld [vmem:[%s7474_s10 + $0x70] sm:$0xff]  ;;  %v5282_v42 = vld [vmem:[%s7474_s10 + $0x68] sm:$0xff] }
0x2750   :  { %5286 = vmatpush.xpose.msk.msra.mxu3 %vm180_vm1, %v5283_v34 }
0x2751   :  { %v4725_v18 = vmul.f32 %v4723_v26, %v4723_v26 }
0x2753   :  { %v4727_v24 = vsel %vm212_vm11, %v4725_v18, 0.0 }
0x2754   :  { %v4720_v12 = vpop.xlane.xlu2 %4719  ;;  %4728 = vadd.xlane.f32.xlu1 %v4727_v24  ;;  %5287 = vmatpush.xpose.msk.msra.mxu3 %vm180_vm1, %v5282_v42 }
0x2755   :  { %v4722_v16 = vmul.f32 %v4720_v12, %v6172_v0 }
0x2757   :  { %v4724_v19 = vsub.f32 %v4714_v30, %v4722_v16 }
0x2759   :  { %v4726_v51 = vmul.f32 %v4724_v19, %v4724_v19 }
0x275b   :  { %v4730_v39 = vsel %vm212_vm11, %v4726_v51, 0.0 }
0x275c   :  { %4731 = vadd.xlane.f32.xlu0 %v4730_v39  ;;  %v5281_v39 = vld [vmem:[%s7474_s10 + $0x60] sm:$0xff] }
0x275d   :  { %5288 = vmatpush.xpose.msk.msra.mxu3 %vm180_vm1, %v5281_v39 }
0x27c7   :  { %v4729_v29 = vpop.xlane.xlu1 %4728 }
0x27c8   :  { %v4733_v33 = vmul.f32 %v4729_v29, %v6172_v0 }
0x27ca   :  { %v4735_v46 = vadd.f32 1e-05, %v4733_v33 }
0x27cc   :  { %5763 = vrsqrt.f32 %v4735_v46  ;;  %vm4743_vm7 = vweird.f32 %v4735_v46 }
0x27cf   :  { %v4732_v37 = vpop.xlane.xlu0 %4731 }
0x27d0   :  { %v4734_v40 = vmul.f32 %v4732_v37, %v6172_v0 }
0x27d2   :  { %v5764_v36 = vpop.eup %5763  ;;  %v4736_v43 = vadd.f32 1e-05, %v4734_v40 }
0x27d3   :  { %v4738_v50 = vmul.f32 %v5764_v36, %v4735_v46  ;;  %vm4744_vm6 = vweird.f32 %v5764_v36 }
0x27d4   :  { %5765 = vrsqrt.f32 %v4736_v43  ;;  %vm4745_vm9 = vmor %vm4743_vm7, %vm4744_vm6  ;;  %vm4753_vm3 = vweird.f32 %v4736_v43 }
0x27d5   :  { %v4739_v41 = vmul.f32 %v5764_v36, %v4738_v50 }
0x27d7   :  { %v4740_v31 = vmul.f32 0.5, %v4739_v41 }
0x27d9   :  { %v4741_v49 = vsub.f32 1.5, %v4740_v31 }
0x27da   :  { %v5766_v5 = vpop.eup %5765 }
0x27db   :  { %v4742_v38 = vmul.f32 %v5764_v36, %v4741_v49  ;;  %v4748_v55 = vmul.f32 %v5766_v5, %v4736_v43  ;;  %vm4754_vm15 = vweird.f32 %v5766_v5 }
0x27dc   :  { %vm4755_vm8 = vmor %vm4753_vm3, %vm4754_vm15 }
0x27dd   :  { %v4746_v56 = vsel %vm4745_vm9, %v5764_v36, %v4742_v38  ;;  %v4749_v54 = vmul.f32 %v5766_v5, %v4748_v55 }
0x27de   :  { %v4757_v20 = vmul.f32 %v4746_v56, %v4723_v26 }
0x27df   :  { %v4750_v23 = vmul.f32 0.5, %v4749_v54 }
0x27e0   :  { %v4760_v57 = vmul.f32 %v4759_v32, %v4757_v20 }
0x27e1   :  { %v4751_v61 = vsub.f32 1.5, %v4750_v23 }
0x27e2   :  { %v7397_v60 = vadd.f32 %v4762_v7, %v4760_v57 }
0x27e3   :  { %v4752_v14 = vmul.f32 %v5766_v5, %v4751_v61 }
0x27e4   :  { %5277 = vmatmul.msk.f32.vlgmr.msrb.gmra.mxu0 %vm212_vm11, %v7397_v60 }
0x27e5   :  { %v4756_v59 = vsel %vm4755_vm8, %v5766_v5, %v4752_v14 }
0x27e6   :  { %v4758_v25 = vmul.f32 %v4756_v59, %v4724_v19 }
0x27e8   :  { %v4761_v52 = vmul.f32 %v4759_v32, %v4758_v25 }
0x27ea   :  { %v7401_v47 = vadd.f32 %v4762_v7, %v4761_v52 }
0x27ec   :  { %5278 = vmatmul.msk.f32.gmra.mxu0 %vm212_vm11, %v7401_v47 }
0x2861   :  { %v4794_v3 = vpop.f32.mrf.mxu0 }
0x2862   :  { %v7406_v11 = vadd.f32 %v4794_v3, %v4770_v53 }
0x2864   :  { %v7409_v62 = vmul.f32 0.70710677, %v7406_v11 }
0x2866   :  { %v4804_v63 = vmul.f32 %v7409_v62, %v7409_v62 }
0x2868   :  { %v4805_v13 = vmin.f32 %v4804_v63, 16.0 }
0x2869   :  { %v4797_v9 = vpop.f32.mrf.mxu0 }
0x286a   :  { %v4806_v17 = vmul.f32 2.1237322e-06, %v4805_v13  ;;  %v4817_v44 = vmul.f32 3.8918573e-05, %v4805_v13  ;;  %v7416_v21 = vadd.f32 %v4797_v9, %v4770_v53 }
0x286c   :  { %v4807_v4 = vadd.f32 0.00028619796, %v4806_v17  ;;  %v4818_v58 = vadd.f32 0.001143296, %v4817_v44  ;;  %v7420_v6 = vmul.f32 0.70710677, %v7416_v21 }
0x286e   :  { %v4808_v8 = vmul.f32 %v4807_v4, %v4805_v13  ;;  %v4819_v15 = vmul.f32 %v4818_v58, %v4805_v13  ;;  %v4844_v1 = vmul.f32 %v7420_v6, %v7420_v6 }
0x2870   :  { %v4820_v30 = vadd.f32 0.014752088, %v4819_v15  ;;  %v4809_v2 = vadd.f32 0.0036580483, %v4808_v8  ;;  %v4845_v10 = vmin.f32 %v4844_v1, 16.0 }
0x2872   :  { %v4821_v26 = vmul.f32 %v4820_v30, %v4805_v13  ;;  %v4846_v18 = vmul.f32 2.1237322e-06, %v4845_v10  ;;  %v4857_v24 = vmul.f32 3.8918573e-05, %v4845_v10  ;;  %v4810_v16 = vmul.f32 %v4809_v2, %v4805_v13 }
0x2873   :  { %v4800_v30 = vmul.f32 0.5, %v7406_v11  ;;  %v4893_v11 = vperm.slane %v7279_v35, 7 }
0x2874   :  { %v4822_v12 = vadd.f32 0.112945676, %v4821_v26  ;;  %v4847_v19 = vadd.f32 0.00028619796, %v4846_v18  ;;  %v4858_v51 = vadd.f32 0.001143296, %v4857_v24 }
0x2875   :  { %v4811_v29 = vadd.f32 0.05243302, %v4810_v16 }
0x2876   :  { %v4823_v48 = vmul.f32 %v4822_v12, %v4805_v13  ;;  %v4848_v22 = vmul.f32 %v4847_v19, %v4845_v10  ;;  %v4859_v28 = vmul.f32 %v4858_v51, %v4845_v10  ;;  %v4801_v19 = vmul.f32 0.5, %v7416_v21 }
0x2877   :  { %v4812_v43 = vmul.f32 %v4811_v29, %v4805_v13 }
0x2878   :  { %v4824_v27 = vadd.f32 0.4994258, %v4823_v48  ;;  %v4860_v33 = vadd.f32 0.014752088, %v4859_v28  ;;  %v4849_v37 = vadd.f32 0.0036580483, %v4848_v22 }
0x2879   :  { %v4813_v49 = vadd.f32 0.18741608, %v4812_v43 }
0x287a   :  { %v4825_v46 = vmul.f32 %v4824_v27, %v4805_v13  ;;  %v4861_v40 = vmul.f32 %v4860_v33, %v4845_v10  ;;  %v4850_v41 = vmul.f32 %v4849_v37, %v4845_v10 }
0x287b   :  { %v4814_v56 = vmul.f32 %v4813_v49, %v4805_v13 }
0x287c   :  { %v4826_v36 = vadd.f32 1.0, %v4825_v46  ;;  %v4862_v50 = vadd.f32 0.112945676, %v4861_v40  ;;  %v4851_v38 = vadd.f32 0.05243302, %v4850_v41 }
0x287d   :  { %v4815_v61 = vadd.f32 1.1283791, %v4814_v56 }
0x287e   :  { %5767 = vrcp.f32 %v4826_v36  ;;  %v4863_v31 = vmul.f32 %v4862_v50, %v4845_v10  ;;  %v4852_v20 = vmul.f32 %v4851_v38, %v4845_v10  ;;  %v4838_v57 = vand.u32 2147483648, %v4826_v36 }
0x287f   :  { %v4836_v59 = vand.u32 2147483647, %v4826_v36  ;;  %vm4832_vm14 = vweird.f32 %v4826_v36  ;;  %v4816_v63 = vmul.f32 %v4815_v61, %v7409_v62 }
0x2880   :  { %v4864_v5 = vadd.f32 0.4994258, %v4863_v31  ;;  %v4853_v25 = vadd.f32 0.18741608, %v4852_v20  ;;  %v4839_v53 = vor.u32 1.1754944e-38, %v4838_v57 }
0x2881   :  { %vm4837_vm2 = vcmp.eq.f32.partialorder %v4836_v59, 8.507059e+37 }
0x2882   :  { %v4865_v55 = vmul.f32 %v4864_v5, %v4845_v10  ;;  %v4854_v45 = vmul.f32 %v4853_v25, %v4845_v10 }
0x2884   :  { %v5768_v32 = vpop.eup %5767  ;;  %v4866_v7 = vadd.f32 1.0, %v4865_v55  ;;  %v4855_v8 = vadd.f32 1.1283791, %v4854_v45 }
0x2885   :  { %v4828_v54 = vmul.f32 %v5768_v32, %v4826_v36  ;;  %vm4833_vm12 = vweird.f32 %v5768_v32 }
0x2886   :  { %5769 = vrcp.f32 %v4866_v7  ;;  %vm4834_vm0 = vmor %vm4832_vm14, %vm4833_vm12  ;;  %v4878_v34 = vand.u32 2147483648, %v4866_v7  ;;  %v4876_v1 = vand.u32 2147483647, %v4866_v7  ;;  %vm4872_vm5 = vweird.f32 %v4866_v7 }
0x2887   :  { %v4829_v23 = vsub.f32 1.0, %v4828_v54  ;;  %v4856_v18 = vmul.f32 %v4855_v8, %v7420_v6 }
0x2888   :  { %v4879_v62 = vor.u32 1.1754944e-38, %v4878_v34  ;;  %vm4877_vm13 = vcmp.eq.f32.partialorder %v4876_v1, 8.507059e+37 }
0x2889   :  { %v4830_v14 = vmul.f32 %v5768_v32, %v4829_v23  ;;  %v5152_v23 = vld [vmem:[%s7475_s11 + $0x28] sm:$0x3]  ;;  %s5935_s11 = smov [#allocation10]  }
0x288a   :  { %v4981_v59 = vperm.slane %v5152_v23, 0  ;;  %s4993_s5 = sshll.u32 %s5935_s11, 4  ;;  %s4994_s5 = int_to_ptr.vmem [resolvable:$true] %s4993_s5 }
0x288b   :  { %v4831_v52 = vadd.f32 %v5768_v32, %v4830_v14 }
0x288c   :  { %v5770_v3 = vpop.eup %5769 }
0x288d   :  { %v4835_v9 = vsel %vm4834_vm0, %v5768_v32, %v4831_v52  ;;  %v4868_v17 = vmul.f32 %v5770_v3, %v4866_v7  ;;  %vm4873_vm4 = vweird.f32 %v5770_v3 }
0x288e   :  { %v4840_v13 = vsel %vm4837_vm2, %v4839_v53, %v4835_v9  ;;  %vm4874_vm10 = vmor %vm4872_vm5, %vm4873_vm4 }
0x288f   :  { %v4841_v44 = vmul.f32 %v4840_v13, %v4816_v63  ;;  %v4869_v4 = vsub.f32 1.0, %v4868_v17 }
0x2891   :  { %v5279_v58 = vclamps-f32 %v4841_v44, 1.0  ;;  %v4870_v15 = vmul.f32 %v5770_v3, %v4869_v4 }
0x2893   :  { %v4884_v2 = vadd.f32 1.0, %v5279_v58  ;;  %v4871_v42 = vadd.f32 %v5770_v3, %v4870_v15 }
0x2895   :  { %v4886_v26 = vmul.f32 %v4884_v2, %v4800_v30  ;;  %v4875_v10 = vsel %vm4874_vm10, %v5770_v3, %v4871_v42  ;;  %v4984_v3 = vperm.slane %v5152_v23, 1 }
0x2896   :  { %v4880_v24 = vsel %vm4877_vm13, %v4879_v62, %v4875_v10 }
0x2897   :  { %5289 = vmatmul.msk.f32.vlgmr.msra.gmra.mxu3 %vm180_vm1, %v4886_v26  ;;  %v4881_v12 = vmul.f32 %v4880_v24, %v4856_v18 }
0x2899   :  { %v5280_v16 = vclamps-f32 %v4881_v12, 1.0 }
0x289b   :  { %v4885_v51 = vadd.f32 1.0, %v5280_v16 }
0x289d   :  { %v4887_v39 = vmul.f32 %v4885_v51, %v4801_v19 }
0x289f   :  { %5290 = vmatmul.msk.f32.gmra.mxu3 %vm180_vm1, %v4887_v39 }
0x291a   :  { %v4929_v48 = vpop.f32.mrf.mxu3 }
0x291b   :  { %v4930_v22 = vadd.f32 %v4929_v48, %v4893_v11 }
0x291d   :  { %v4935_v28 = vadd.f32 %v4930_v22, %v7397_v60 }
0x291f   :  { %v4937_v6 = vsel %vm212_vm11, %v4935_v28, 0.0 }
0x2920   :  { %4938 = vadd.xlane.f32.xlu2 %v4937_v6 }
0x2922   :  { %v4932_v27 = vpop.f32.mrf.mxu3 }
0x2923   :  { %v4933_v29 = vadd.f32 %v4932_v27, %v4893_v11 }
0x2925   :  { %v4936_v33 = vadd.f32 %v4933_v29, %v7401_v47 }
0x2927   :  { %v4940_v46 = vsel %vm212_vm11, %v4936_v33, 0.0 }
0x2928   :  { %4941 = vadd.xlane.f32.xlu0 %v4940_v46 }
0x2993   :  { %v4939_v21 = vpop.xlane.xlu2 %4938 }
0x2994   :  { %v4943_v37 = vmul.f32 %v4939_v21, %v6172_v0 }
0x2996   :  { %v4945_v40 = vsub.f32 %v4935_v28, %v4943_v37 }
0x2998   :  { %v4947_v36 = vmul.f32 %v4945_v40, %v4945_v40 }
0x299a   :  { %v4949_v35 = vsel %vm212_vm11, %v4947_v36, 0.0 }
0x299b   :  { %4950 = vadd.xlane.f32.xlu1 %v4949_v35  ;;  %v4942_v43 = vpop.xlane.xlu0 %4941 }
0x299c   :  { %v4944_v60 = vmul.f32 %v4942_v43, %v6172_v0 }
0x299e   :  { %v4946_v50 = vsub.f32 %v4936_v33, %v4944_v60 }
0x29a0   :  { %v4948_v41 = vmul.f32 %v4946_v50, %v4946_v50 }
0x29a2   :  { %v4952_v31 = vsel %vm212_vm11, %v4948_v41, 0.0 }
0x29a3   :  { %4953 = vadd.xlane.f32.xlu2 %v4952_v31 }
0x2a0e   :  { %v4951_v47 = vpop.xlane.xlu1 %4950 }
0x2a0f   :  { %v4955_v49 = vmul.f32 %v4951_v47, %v6172_v0 }
0x2a11   :  { %v4957_v5 = vadd.f32 1e-05, %v4955_v49 }
0x2a13   :  { %5771 = vrsqrt.f32 %v4957_v5  ;;  %vm4965_vm6 = vweird.f32 %v4957_v5 }
0x2a16   :  { %v4954_v38 = vpop.xlane.xlu2 %4953 }
0x2a17   :  { %v4956_v55 = vmul.f32 %v4954_v38, %v6172_v0 }
0x2a19   :  { %v5772_v32 = vpop.eup %5771  ;;  %v4958_v54 = vadd.f32 1e-05, %v4956_v55 }
0x2a1a   :  { %v4960_v56 = vmul.f32 %v5772_v32, %v4957_v5  ;;  %vm4966_vm1 = vweird.f32 %v5772_v32 }
0x2a1b   :  { %5773 = vrsqrt.f32 %v4958_v54  ;;  %vm4967_vm7 = vmor %vm4965_vm6, %vm4966_vm1  ;;  %vm4975_vm15 = vweird.f32 %v4958_v54 }
0x2a1c   :  { %v4961_v7 = vmul.f32 %v5772_v32, %v4960_v56 }
0x2a1e   :  { %v4962_v20 = vmul.f32 0.5, %v4961_v7 }
0x2a20   :  { %v4963_v57 = vsub.f32 1.5, %v4962_v20 }
0x2a21   :  { %v5774_v61 = vpop.eup %5773 }
0x2a22   :  { %v4964_v14 = vmul.f32 %v5772_v32, %v4963_v57  ;;  %v4970_v25 = vmul.f32 %v5774_v61, %v4958_v54  ;;  %vm4976_vm9 = vweird.f32 %v5774_v61 }
0x2a23   :  { %vm4977_vm3 = vmor %vm4975_vm15, %vm4976_vm9 }
0x2a24   :  { %v4968_v52 = vsel %vm4967_vm7, %v5772_v32, %v4964_v14  ;;  %v4971_v53 = vmul.f32 %v5774_v61, %v4970_v25 }
0x2a25   :  { %v4979_v0 = vmul.f32 %v4968_v52, %v4945_v40 }
0x2a26   :  { %v4972_v9 = vmul.f32 0.5, %v4971_v53 }
0x2a27   :  { %v4982_v63 = vmul.f32 %v4981_v59, %v4979_v0 }
0x2a28   :  { %v4973_v13 = vsub.f32 1.5, %v4972_v9 }
0x2a29   :  { %v4985_v45 = vadd.f32 %v4984_v3, %v4982_v63 }
0x2a2a   :  { %v4974_v17 = vmul.f32 %v5774_v61, %v4973_v13 }
0x2a2b   :  { %4987 = vst.msk [vmem:[#allocation10] sm:$0xff] %vm212_vm11, %v4985_v45 }
0x2a2c   :  { %v4978_v44 = vsel %vm4977_vm3, %v5774_v61, %v4974_v17 }
0x2a2d   :  { %v4980_v4 = vmul.f32 %v4978_v44, %v4946_v50 }
0x2a2f   :  { %v4983_v58 = vmul.f32 %v4981_v59, %v4980_v4 }
0x2a31   :  { %v4986_v34 = vadd.f32 %v4984_v3, %v4983_v58 }
0x2a33   :  { %4988 = vst.msk [vmem:[#allocation10 + $0x8] sm:$0xff] %vm212_vm11, %v4986_v34 }
0x2a34   :  { %5001 = dma.vmem_to_hbm [thread:$0]  %s4994_s5, 256, %s4996_s6, [#allocation4], %s5912_s29, %s5912_s29, %s5913_s30  }
0x2a35   :  { %5909 = dma.done.wait [#allocation4], 256  }
0x2a36   :  { %5910 = vsyncadd [#allocation4], 4294967040 }
0x2a37   :  { %5006 = vsyncpa [#allocation3], 1 }
0x2a38   :  { %5007 = vsyncpa [#allocation6], 1 }
0x2a39   :  { %5008 = vsyncpa [#allocation9], 1 }
0x2a3a   :  { %5009 = vsyncpa [#allocation4], 1 }

</bundles_post_ra>
